<compile_context>
chip_gen: v7x
topology: tpu7x:2x2x1
jax: 0.10.0
libtpu: 0.0.40
codegen_flags: <defaults>
</compile_context>

<pallas_src>
import functools
import math

import jax
import jax.numpy as jnp
from jax.experimental import pallas as pl
from jax.experimental.pallas import tpu as pltpu

# Safe across v5e/v6e/v7x (>= default scoped limit on all generations, well
# below v7x's 64 MiB physical VMEM given the tile sizes used below).
_VMEM_LIMIT = 32 * 1024 * 1024
_TILE_M = 256  # row tile for the fused linear kernel (fits 2x-buffered VMEM)


def _cparams(*sem):
    return pltpu.CompilerParams(dimension_semantics=sem,
                                vmem_limit_bytes=_VMEM_LIMIT)


# ----------------------------------------------------------------------------
# Fused LN + Linear (+activation, +sigmoid-gate, +residual) kernel
# ----------------------------------------------------------------------------

def _fused_linear_kernel(x_ref, w_ref, b_ref, *rest,
                         activation, has_ln, has_gate, has_res, eps):
    idx = 0
    if has_ln:
        lng_ref, lnb_ref = rest[idx], rest[idx + 1]
        idx += 2
    if has_gate:
        g_ref = rest[idx]
        idx += 1
    if has_res:
        r_ref = rest[idx]
        idx += 1
    o_ref = rest[idx]

    x = x_ref[...].astype(jnp.float32)
    if has_ln:
        mu = jnp.mean(x, axis=-1, keepdims=True)
        xc = x - mu
        var = jnp.mean(xc * xc, axis=-1, keepdims=True)
        x = xc * jax.lax.rsqrt(var + eps) * lng_ref[...] + lnb_ref[...]

    y = jnp.dot(x, w_ref[...], preferred_element_type=jnp.float32) + b_ref[...]
    if activation == "relu":
        y = jnp.maximum(y, 0.0)
    elif activation == "sigmoid":
        y = jax.nn.sigmoid(y)
    if has_gate:
        y = y * jax.nn.sigmoid(g_ref[...].astype(jnp.float32))
    if has_res:
        y = y + r_ref[...].astype(jnp.float32)
    o_ref[...] = y.astype(o_ref.dtype)


def fused_linear(x, w, b, *, activation="none", ln=None, gate=None,
                 residual=None, eps=1e-5, tile_m=_TILE_M):
    """y = [LN(x)] @ w + b, optional activation, * sigmoid(gate), + residual.

    Tiled over the flattened leading dims with a parallel 1-D grid so the
    built-in double-buffer pipeline overlaps DMA and compute.
    """
    lead = x.shape[:-1]
    K = x.shape[-1]
    N = w.shape[1]
    M = int(math.prod(lead)) if lead else 1
    x2 = x.reshape(M, K)

    tm = min(tile_m, M)
    grid = (pl.cdiv(M, tm),)

    in_specs = [
        pl.BlockSpec((tm, K), lambda i: (i, 0)),
        pl.BlockSpec((K, N), lambda i: (0, 0)),
        pl.BlockSpec((1, N), lambda i: (0, 0)),
    ]
    args = [x2, w, b.reshape(1, N)]
    if ln is not None:
        in_specs += [pl.BlockSpec((1, K), lambda i: (0, 0)),
                     pl.BlockSpec((1, K), lambda i: (0, 0))]
        args += [ln[0].reshape(1, K), ln[1].reshape(1, K)]
    if gate is not None:
        in_specs.append(pl.BlockSpec((tm, N), lambda i: (i, 0)))
        args.append(gate.reshape(M, N))
    if residual is not None:
        in_specs.append(pl.BlockSpec((tm, N), lambda i: (i, 0)))
        args.append(residual.reshape(M, N))

    out = pl.pallas_call(
        functools.partial(_fused_linear_kernel, activation=activation,
                          has_ln=ln is not None, has_gate=gate is not None,
                          has_res=residual is not None, eps=eps),
        grid=grid,
        out_shape=jax.ShapeDtypeStruct((M, N), x.dtype),
        in_specs=in_specs,
        out_specs=pl.BlockSpec((tm, N), lambda i: (i, 0)),
        compiler_params=_cparams("parallel"),
    )(*args)
    return out.reshape(*lead, N)


# ----------------------------------------------------------------------------
# Gated multi-head attention kernel (all heads of one row per grid step)
# ----------------------------------------------------------------------------

def _attn_kernel(qkvg_ref, *rest, H, c, scale, has_bias):
    o_ref = rest[-1]
    bias_ref = rest[0] if has_bias else None

    x = qkvg_ref[0].astype(jnp.float32)          # (L, 4*H*c) lane-dense slab
    hc = H * c
    outs = []
    for h in range(H):
        q = x[:, h * c:(h + 1) * c]
        k = x[:, hc + h * c:hc + (h + 1) * c]
        v = x[:, 2 * hc + h * c:2 * hc + (h + 1) * c]
        s = jnp.dot(q, k.T, preferred_element_type=jnp.float32) * scale
        if has_bias:
            s = s + bias_ref[h].astype(jnp.float32)
        s = s - jnp.max(s, axis=-1, keepdims=True)
        p = jnp.exp(s)
        # approx reciprocal -> EUP slot, off the VPU critical path
        p = p * pl.reciprocal(jnp.sum(p, axis=-1, keepdims=True), approx=True)
        outs.append(jnp.dot(p, v, preferred_element_type=jnp.float32))
    o = jnp.concatenate(outs, axis=-1)           # (L, H*c) lane-dense
    g = jax.nn.sigmoid(x[:, 3 * hc:])            # fused output gate
    o_ref[0] = (o * g).astype(o_ref.dtype)


def gated_attention(qkvg, bias, H, c, scale):
    """qkvg: (G, L, 4*H*c) fused [q|k|v|gate] slab, bias: (H, L, L) or None.
    Returns sigmoid(gate) * softmax(q k^T * scale + bias) v  as (G, L, H*c)."""
    G, L, _ = qkvg.shape
    hc = H * c

    in_specs = [pl.BlockSpec((1, L, 4 * hc), lambda g: (g, 0, 0))]
    args = [qkvg]
    if bias is not None:
        # shared across the whole grid: indexed, never broadcast-materialized
        in_specs.append(pl.BlockSpec((H, L, L), lambda g: (0, 0, 0)))
        args.append(bias)

    return pl.pallas_call(
        functools.partial(_attn_kernel, H=H, c=c, scale=scale,
                          has_bias=bias is not None),
        grid=(G,),
        out_shape=jax.ShapeDtypeStruct((G, L, hc), qkvg.dtype),
        in_specs=in_specs,
        out_specs=pl.BlockSpec((1, L, hc), lambda g: (g, 0, 0)),
        compiler_params=_cparams("parallel"),
    )(*args)


# ----------------------------------------------------------------------------
# Outer-product-mean matmul: out = A^T @ B * scale, tiled with f32 accumulator
# ----------------------------------------------------------------------------

def _opm_kernel(a_ref, b_ref, o_ref, acc_ref, *, scale):
    @pl.when(pl.program_id(2) == 0)
    def _():
        acc_ref[...] = jnp.zeros_like(acc_ref)

    acc_ref[...] += jax.lax.dot_general(
        a_ref[...], b_ref[...],
        dimension_numbers=(((0,), (0,)), ((), ())),   # contract over K (rows)
        preferred_element_type=jnp.float32)

    @pl.when(pl.program_id(2) == pl.num_programs(2) - 1)
    def _():
        o_ref[...] = (acc_ref[...] * scale).astype(o_ref.dtype)


def opm_matmul(a, b, scale, tm=256, tn=256, tk=512):
    """a: (K, M), b: (K, N)  ->  (M, N) = a^T @ b * scale (no transposed copy)."""
    K, M = a.shape
    _, N = b.shape
    tm, tn, tk = min(tm, M), min(tn, N), min(tk, K)
    grid = (pl.cdiv(M, tm), pl.cdiv(N, tn), pl.cdiv(K, tk))
    return pl.pallas_call(
        functools.partial(_opm_kernel, scale=scale),
        grid=grid,
        out_shape=jax.ShapeDtypeStruct((M, N), a.dtype),
        in_specs=[pl.BlockSpec((tk, tm), lambda i, j, k: (k, i)),
                  pl.BlockSpec((tk, tn), lambda i, j, k: (k, j))],
        out_specs=pl.BlockSpec((tm, tn), lambda i, j, k: (i, j)),
        scratch_shapes=[pltpu.VMEM((tm, tn), jnp.float32)],
        compiler_params=_cparams("parallel", "parallel", "arbitrary"),
    )(a, b)


# ----------------------------------------------------------------------------
# Triangle multiplicative core: per-channel (R,R)x(R,R), channel-grouped grid
# ----------------------------------------------------------------------------

def _trimul_kernel(a_ref, b_ref, o_ref, *, incoming, dc):
    for d in range(dc):
        a = a_ref[d]
        b = b_ref[d]
        if incoming:   # x[i,j] = sum_k a[k,i] * b[k,j]
            o = jnp.dot(a.T, b, preferred_element_type=jnp.float32)
        else:          # x[i,j] = sum_k a[i,k] * b[j,k]
            o = jnp.dot(a, b.T, preferred_element_type=jnp.float32)
        o_ref[d] = o.astype(o_ref.dtype)


def trimul(a, b, incoming):
    R, _, D = a.shape
    a_t = jnp.transpose(a, (2, 0, 1))   # channel-major for MXU matmuls
    b_t = jnp.transpose(b, (2, 0, 1))
    dc = math.gcd(D, 8)                 # channels per grid step (divides D)
    out = pl.pallas_call(
        functools.partial(_trimul_kernel, incoming=incoming, dc=dc),
        grid=(D // dc,),
        out_shape=jax.ShapeDtypeStruct((D, R, R), a.dtype),
        in_specs=[pl.BlockSpec((dc, R, R), lambda d: (d, 0, 0)),
                  pl.BlockSpec((dc, R, R), lambda d: (d, 0, 0))],
        out_specs=pl.BlockSpec((dc, R, R), lambda d: (d, 0, 0)),
        compiler_params=_cparams("parallel"),
    )(a_t, b_t)
    return jnp.transpose(out, (1, 2, 0))


# ----------------------------------------------------------------------------
# Evoformer sub-modules (glue in plain JAX, compute in the kernels above)
# ----------------------------------------------------------------------------

def msa_row(m, z, p, H, c):
    # fused [Wq|Wk|Wv|Wgate] projection with the MSA layernorm folded in
    qkvg = fused_linear(m, *p["qkvg"], ln=p["ln_m"])          # (S, R, 4*H*c)
    bias = fused_linear(z, *p["bias"], ln=p["ln_z"])          # (R, R, H)
    bias_h = jnp.transpose(bias, (2, 0, 1))                   # (H, R, R)
    o = gated_attention(qkvg, bias_h, H, c, 1.0 / math.sqrt(c))
    return fused_linear(o, *p["out"], residual=m)             # m + out-proj


def msa_col(m, p, H, c):
    qkvg = fused_linear(m, *p["qkvg"], ln=p["ln"])            # (S, R, 4*H*c)
    qkvg_t = jnp.transpose(qkvg, (1, 0, 2))                   # (R, S, 4*H*c)
    o = gated_attention(qkvg_t, None, H, c, 1.0 / math.sqrt(c))
    o = jnp.transpose(o, (1, 0, 2))                           # (S, R, H*c)
    return fused_linear(o, *p["out"], residual=m)


def msa_trans(m, p):
    h = fused_linear(m, *p["fc1"], ln=p["ln"], activation="relu")
    return fused_linear(h, *p["fc2"], residual=m)


def msa_opm(m, z, p, c_opm):
    S, R, _ = m.shape
    ab = fused_linear(m, *p["ab"], ln=p["ln"])                # (S, R, 2*c)
    a2 = ab[..., :c_opm].reshape(S, R * c_opm)                # (S, R*c)
    b2 = ab[..., c_opm:].reshape(S, R * c_opm)
    outer = opm_matmul(a2, b2, scale=1.0 / S)                 # (R*c, R*c)
    outer = outer.reshape(R, c_opm, R, c_opm).transpose(0, 2, 1, 3)
    outer = outer.reshape(R, R, c_opm * c_opm)
    return fused_linear(outer, *p["out"], residual=z)         # z + out-proj


def tri_mult(z, p, incoming):
    hid = p["ln_out"][0].shape[0]
    # fused [Wa_g|Wa_p|Wb_g|Wb_p|Wgate] projection with LN folded in
    proj = fused_linear(z, *p["abg"], ln=p["ln_in"])          # (R, R, 4h+z)
    a = jax.nn.sigmoid(proj[..., 0 * hid:1 * hid]) * proj[..., 1 * hid:2 * hid]
    b = jax.nn.sigmoid(proj[..., 2 * hid:3 * hid]) * proj[..., 3 * hid:4 * hid]
    gate = proj[..., 4 * hid:]                                # raw (pre-sigmoid)
    x = trimul(a, b, incoming=incoming)                       # (R, R, hid)
    # LN(x) -> out-proj -> * sigmoid(gate) -> + z, all in one kernel
    return fused_linear(x, *p["out"], ln=p["ln_out"], gate=gate, residual=z)


def tri_att(z, p, H, c, transposed):
    z_in = jnp.swapaxes(z, 0, 1) if transposed else z
    qkvg = fused_linear(z_in, *p["qkvg"], ln=p["ln"])         # (R, R, 4*H*c)
    bias = fused_linear(z_in, *p["bias"], ln=p["ln"])         # (R, R, H)
    bias_h = jnp.transpose(bias, (2, 0, 1))                   # (H, R, R)
    o = gated_attention(qkvg, bias_h, H, c, 1.0 / math.sqrt(c))
    out = fused_linear(o, *p["out"], residual=z_in)
    return jnp.swapaxes(out, 0, 1) if transposed else out


def pair_trans(z, p):
    h = fused_linear(z, *p["fc1"], ln=p["ln"], activation="relu")
    return fused_linear(h, *p["fc2"], residual=z)


def evoblock(m, z, p, H, c, c_opm):
    # residual adds are fused into each module's final projection kernel
    m = msa_row(m, z, p["msa_row"], H, c)
    m = msa_col(m, p["msa_col"], H, c)
    m = msa_trans(m, p["msa_trans"])
    z = msa_opm(m, z, p["msa_opm"], c_opm)
    z = tri_mult(z, p["tri_out"], incoming=False)
    z = tri_mult(z, p["tri_in"], incoming=True)
    z = tri_att(z, p["tri_att_start"], H, c, transposed=False)
    z = tri_att(z, p["tri_att_end"], H, c, transposed=True)
    z = pair_trans(z, p["pair_trans"])
    return m, z


def evoformer_forward(m, z, params, H, c, c_opm):
    # docheck / num_block_per_check only change gradient checkpointing; the
    # forward math is an identical sequential stack of EvoBlocks.
    for p in params:
        m, z = evoblock(m, z, p, H, c, c_opm)
    return m, z


# ----------------------------------------------------------------------------
# Deterministic parameter init (fused weights == concatenated per-proj weights)
# ----------------------------------------------------------------------------

def init_block_params(key, m_dim, z_dim, H, c):
    keys = iter(jax.random.split(key, 32))
    f32 = jnp.float32

    def dense(din, dout):
        w = jax.random.normal(next(keys), (din, dout), f32) * (1.0 / math.sqrt(din))
        return (w, jnp.zeros((dout,), f32))

    def ln(d):
        return (jnp.ones((d,), f32), jnp.zeros((d,), f32))

    hc = H * c
    p = {}
    p["msa_row"] = dict(ln_m=ln(m_dim), ln_z=ln(z_dim),
                        qkvg=dense(m_dim, 4 * hc), bias=dense(z_dim, H),
                        out=dense(hc, m_dim))
    p["msa_col"] = dict(ln=ln(m_dim), qkvg=dense(m_dim, 4 * hc),
                        out=dense(hc, m_dim))
    p["msa_trans"] = dict(ln=ln(m_dim), fc1=dense(m_dim, 4 * m_dim),
                          fc2=dense(4 * m_dim, m_dim))
    p["msa_opm"] = dict(ln=ln(m_dim), ab=dense(m_dim, 2 * c),
                        out=dense(c * c, z_dim))

    def tri_mul_p(hid):
        return dict(ln_in=ln(z_dim), abg=dense(z_dim, 4 * hid + z_dim),
                    ln_out=ln(hid), out=dense(hid, z_dim))

    p["tri_out"] = tri_mul_p(z_dim)   # TriOut(z_dim, z_dim): hidden == z_dim
    p["tri_in"] = tri_mul_p(z_dim)

    def tri_att_p():
        return dict(ln=ln(z_dim), qkvg=dense(z_dim, 4 * hc),
                    bias=dense(z_dim, H), out=dense(hc, z_dim))

    p["tri_att_start"] = tri_att_p()
    p["tri_att_end"] = tri_att_p()
    p["pair_trans"] = dict(ln=ln(z_dim), fc1=dense(z_dim, 2 * z_dim),
                           fc2=dense(2 * z_dim, z_dim))
    return p


# ----------------------------------------------------------------------------
# Main
# ----------------------------------------------------------------------------

if __name__ == "__main__":
    m_dim, z_dim, n_head, c = 32, 16, 4, 8
    num_layers = 2
    S, R = 8, 8  # sequences, residues

    key = jax.random.PRNGKey(0)
    k_m, k_z, k_p = jax.random.split(key, 3)
    m = jax.random.normal(k_m, (S, R, m_dim), jnp.float32)
    z = jax.random.normal(k_z, (R, R, z_dim), jnp.float32)
    params = [init_block_params(k, m_dim, z_dim, n_head, c)
              for k in jax.random.split(k_p, num_layers)]

    fwd = jax.jit(functools.partial(evoformer_forward, H=n_head, c=c, c_opm=c))
    m_out, z_out = fwd(m, z, params)
    jax.block_until_ready((m_out, z_out))

    assert m_out.shape == (S, R, m_dim) and z_out.shape == (R, R, z_dim)
    assert bool(jnp.all(jnp.isfinite(m_out))) and bool(jnp.all(jnp.isfinite(z_out)))
    print("KERNEL_OK")
</pallas_src>

<mosaic_0001>
module attributes {stable_mosaic.version = 11 : i64} {
  func.func @_fused_linear_kernel(%arg0: i32, %arg1: memref<64x32xf32, #tpu.memory_space<vmem>>, %arg2: memref<32x128xf32, #tpu.memory_space<vmem>>, %arg3: memref<1x128xf32, #tpu.memory_space<vmem>>, %arg4: memref<1x32xf32, #tpu.memory_space<vmem>>, %arg5: memref<1x32xf32, #tpu.memory_space<vmem>>, %arg6: memref<64x128xf32, #tpu.memory_space<vmem>>) attributes {dimension_semantics = [#tpu.dimension_semantics<parallel>], iteration_bounds = array<i64: 1>, scalar_prefetch = 0 : i64, scratch_operands = 0 : i64, tpu.core_type = #tpu.core_type<tc>, window_params = [{transform_indices = @transform_0, window_bounds = array<i64: 64, 32>}, {pipeline_mode = #tpu.pipeline_mode<synchronous>, transform_indices = @transform_1, window_bounds = array<i64: 32, 128>}, {pipeline_mode = #tpu.pipeline_mode<synchronous>, transform_indices = @transform_2, window_bounds = array<i64: 1, 128>}, {pipeline_mode = #tpu.pipeline_mode<synchronous>, transform_indices = @transform_3, window_bounds = array<i64: 1, 32>}, {pipeline_mode = #tpu.pipeline_mode<synchronous>, transform_indices = @transform_4, window_bounds = array<i64: 1, 32>}, {transform_indices = @transform_5, window_bounds = array<i64: 64, 128>}]} {
    %c0 = arith.constant 0 : index
    %c0_0 = arith.constant 0 : index
    %0 = vector.load %arg1[%c0, %c0_0] : memref<64x32xf32, #tpu.memory_space<vmem>>, vector<64x32xf32>
    %cst = arith.constant dense<0.000000e+00> : vector<64xf32>
    %1 = vector.multi_reduction <add>, %0, %cst [1] : vector<64x32xf32> to vector<64xf32>
    %2 = vector.shape_cast %1 : vector<64xf32> to vector<64x1xf32>
    %cst_1 = arith.constant 3.200000e+01 : f32
    %3 = vector.broadcast %cst_1 : f32 to vector<64x1xf32>
    %4 = arith.divf %2, %3 : vector<64x1xf32>
    %5 = vector.broadcast %4 : vector<64x1xf32> to vector<64x32xf32>
    %6 = arith.subf %0, %5 : vector<64x32xf32>
    %7 = arith.mulf %6, %6 : vector<64x32xf32>
    %cst_2 = arith.constant dense<0.000000e+00> : vector<64xf32>
    %8 = vector.multi_reduction <add>, %7, %cst_2 [1] : vector<64x32xf32> to vector<64xf32>
    %9 = vector.shape_cast %8 : vector<64xf32> to vector<64x1xf32>
    %cst_3 = arith.constant 3.200000e+01 : f32
    %10 = vector.broadcast %cst_3 : f32 to vector<64x1xf32>
    %11 = arith.divf %9, %10 : vector<64x1xf32>
    %cst_4 = arith.constant 9.99999974E-6 : f32
    %12 = vector.broadcast %cst_4 : f32 to vector<64x1xf32>
    %13 = arith.addf %11, %12 : vector<64x1xf32>
    %14 = math.rsqrt %13 : vector<64x1xf32>
    %15 = vector.broadcast %14 : vector<64x1xf32> to vector<64x32xf32>
    %16 = arith.mulf %6, %15 : vector<64x32xf32>
    %c0_5 = arith.constant 0 : index
    %c0_6 = arith.constant 0 : index
    %17 = vector.load %arg4[%c0_5, %c0_6] : memref<1x32xf32, #tpu.memory_space<vmem>>, vector<1x32xf32>
    %18 = vector.broadcast %17 : vector<1x32xf32> to vector<64x32xf32>
    %19 = arith.mulf %16, %18 : vector<64x32xf32>
    %c0_7 = arith.constant 0 : index
    %c0_8 = arith.constant 0 : index
    %20 = vector.load %arg5[%c0_7, %c0_8] : memref<1x32xf32, #tpu.memory_space<vmem>>, vector<1x32xf32>
    %21 = vector.broadcast %20 : vector<1x32xf32> to vector<64x32xf32>
    %22 = arith.addf %19, %21 : vector<64x32xf32>
    %c0_9 = arith.constant 0 : index
    %c0_10 = arith.constant 0 : index
    %23 = vector.load %arg2[%c0_9, %c0_10] : memref<32x128xf32, #tpu.memory_space<vmem>>, vector<32x128xf32>
    %cst_11 = arith.constant dense<0.000000e+00> : vector<64x128xf32>
    %24 = tpu.matmul %22, %23, %cst_11 {dimension_numbers = #tpu.dot_dimension_numbers<[1], [0], [0], [1], [0, 0, 1, 1], [], []>} : vector<64x32xf32>, vector<32x128xf32>, vector<64x128xf32> -> vector<64x128xf32>
    %c0_12 = arith.constant 0 : index
    %c0_13 = arith.constant 0 : index
    %25 = vector.load %arg3[%c0_12, %c0_13] : memref<1x128xf32, #tpu.memory_space<vmem>>, vector<1x128xf32>
    %26 = vector.broadcast %25 : vector<1x128xf32> to vector<64x128xf32>
    %27 = arith.addf %24, %26 : vector<64x128xf32>
    %c0_14 = arith.constant 0 : index
    %c0_15 = arith.constant 0 : index
    %28 = vector.load %arg6[%c0_14, %c0_15] : memref<64x128xf32, #tpu.memory_space<vmem>>, vector<64x128xf32>
    tpu.vector_store %arg6[%c0_14, %c0_15], %27 {strides = array<i32>} : memref<64x128xf32, #tpu.memory_space<vmem>>, vector<64x128xf32>,
    return
  }
  func.func @transform_0(%arg0: i32) -> (i32, i32) {
    %c0_i32 = arith.constant 0 : i32
    %c0_i32_0 = arith.constant 0 : i32
    return %arg0, %c0_i32 : i32, i32
  }
  func.func @transform_1(%arg0: i32) -> (i32, i32) {
    %c0_i32 = arith.constant 0 : i32
    %c0_i32_0 = arith.constant 0 : i32
    %c0_i32_1 = arith.constant 0 : i32
    return %c0_i32, %c0_i32_0 : i32, i32
  }
  func.func @transform_2(%arg0: i32) -> (i32, i32) {
    %c0_i32 = arith.constant 0 : i32
    %c0_i32_0 = arith.constant 0 : i32
    %c0_i32_1 = arith.constant 0 : i32
    return %c0_i32, %c0_i32_0 : i32, i32
  }
  func.func @transform_3(%arg0: i32) -> (i32, i32) {
    %c0_i32 = arith.constant 0 : i32
    %c0_i32_0 = arith.constant 0 : i32
    %c0_i32_1 = arith.constant 0 : i32
    return %c0_i32, %c0_i32_0 : i32, i32
  }
  func.func @transform_4(%arg0: i32) -> (i32, i32) {
    %c0_i32 = arith.constant 0 : i32
    %c0_i32_0 = arith.constant 0 : i32
    %c0_i32_1 = arith.constant 0 : i32
    return %c0_i32, %c0_i32_0 : i32, i32
  }
  func.func @transform_5(%arg0: i32) -> (i32, i32) {
    %c0_i32 = arith.constant 0 : i32
    %c0_i32_0 = arith.constant 0 : i32
    return %arg0, %c0_i32 : i32, i32
  }
}

module attributes {stable_mosaic.version = 11 : i64} {
  func.func @_fused_linear_kernel(%arg0: i32, %arg1: memref<64x16xf32, #tpu.memory_space<vmem>>, %arg2: memref<16x4xf32, #tpu.memory_space<vmem>>, %arg3: memref<1x4xf32, #tpu.memory_space<vmem>>, %arg4: memref<1x16xf32, #tpu.memory_space<vmem>>, %arg5: memref<1x16xf32, #tpu.memory_space<vmem>>, %arg6: memref<64x4xf32, #tpu.memory_space<vmem>>) attributes {dimension_semantics = [#tpu.dimension_semantics<parallel>], iteration_bounds = array<i64: 1>, scalar_prefetch = 0 : i64, scratch_operands = 0 : i64, tpu.core_type = #tpu.core_type<tc>, window_params = [{transform_indices = @transform_0, window_bounds = array<i64: 64, 16>}, {pipeline_mode = #tpu.pipeline_mode<synchronous>, transform_indices = @transform_1, window_bounds = array<i64: 16, 4>}, {pipeline_mode = #tpu.pipeline_mode<synchronous>, transform_indices = @transform_2, window_bounds = array<i64: 1, 4>}, {pipeline_mode = #tpu.pipeline_mode<synchronous>, transform_indices = @transform_3, window_bounds = array<i64: 1, 16>}, {pipeline_mode = #tpu.pipeline_mode<synchronous>, transform_indices = @transform_4, window_bounds = array<i64: 1, 16>}, {transform_indices = @transform_5, window_bounds = array<i64: 64, 4>}]} {
    %c0 = arith.constant 0 : index
    %c0_0 = arith.constant 0 : index
    %0 = vector.load %arg1[%c0, %c0_0] : memref<64x16xf32, #tpu.memory_space<vmem>>, vector<64x16xf32>
    %cst = arith.constant dense<0.000000e+00> : vector<64xf32>
    %1 = vector.multi_reduction <add>, %0, %cst [1] : vector<64x16xf32> to vector<64xf32>
    %2 = vector.shape_cast %1 : vector<64xf32> to vector<64x1xf32>
    %cst_1 = arith.constant 1.600000e+01 : f32
    %3 = vector.broadcast %cst_1 : f32 to vector<64x1xf32>
    %4 = arith.divf %2, %3 : vector<64x1xf32>
    %5 = vector.broadcast %4 : vector<64x1xf32> to vector<64x16xf32>
    %6 = arith.subf %0, %5 : vector<64x16xf32>
    %7 = arith.mulf %6, %6 : vector<64x16xf32>
    %cst_2 = arith.constant dense<0.000000e+00> : vector<64xf32>
    %8 = vector.multi_reduction <add>, %7, %cst_2 [1] : vector<64x16xf32> to vector<64xf32>
    %9 = vector.shape_cast %8 : vector<64xf32> to vector<64x1xf32>
    %cst_3 = arith.constant 1.600000e+01 : f32
    %10 = vector.broadcast %cst_3 : f32 to vector<64x1xf32>
    %11 = arith.divf %9, %10 : vector<64x1xf32>
    %cst_4 = arith.constant 9.99999974E-6 : f32
    %12 = vector.broadcast %cst_4 : f32 to vector<64x1xf32>
    %13 = arith.addf %11, %12 : vector<64x1xf32>
    %14 = math.rsqrt %13 : vector<64x1xf32>
    %15 = vector.broadcast %14 : vector<64x1xf32> to vector<64x16xf32>
    %16 = arith.mulf %6, %15 : vector<64x16xf32>
    %c0_5 = arith.constant 0 : index
    %c0_6 = arith.constant 0 : index
    %17 = vector.load %arg4[%c0_5, %c0_6] : memref<1x16xf32, #tpu.memory_space<vmem>>, vector<1x16xf32>
    %18 = vector.broadcast %17 : vector<1x16xf32> to vector<64x16xf32>
    %19 = arith.mulf %16, %18 : vector<64x16xf32>
    %c0_7 = arith.constant 0 : index
    %c0_8 = arith.constant 0 : index
    %20 = vector.load %arg5[%c0_7, %c0_8] : memref<1x16xf32, #tpu.memory_space<vmem>>, vector<1x16xf32>
    %21 = vector.broadcast %20 : vector<1x16xf32> to vector<64x16xf32>
    %22 = arith.addf %19, %21 : vector<64x16xf32>
    %c0_9 = arith.constant 0 : index
    %c0_10 = arith.constant 0 : index
    %23 = vector.load %arg2[%c0_9, %c0_10] : memref<16x4xf32, #tpu.memory_space<vmem>>, vector<16x4xf32>
    %cst_11 = arith.constant dense<0.000000e+00> : vector<64x4xf32>
    %24 = tpu.matmul %22, %23, %cst_11 {dimension_numbers = #tpu.dot_dimension_numbers<[1], [0], [0], [1], [0, 0, 1, 1], [], []>} : vector<64x16xf32>, vector<16x4xf32>, vector<64x4xf32> -> vector<64x4xf32>
    %c0_12 = arith.constant 0 : index
    %c0_13 = arith.constant 0 : index
    %25 = vector.load %arg3[%c0_12, %c0_13] : memref<1x4xf32, #tpu.memory_space<vmem>>, vector<1x4xf32>
    %26 = vector.broadcast %25 : vector<1x4xf32> to vector<64x4xf32>
    %27 = arith.addf %24, %26 : vector<64x4xf32>
    %c0_14 = arith.constant 0 : index
    %c0_15 = arith.constant 0 : index
    %28 = vector.load %arg6[%c0_14, %c0_15] : memref<64x4xf32, #tpu.memory_space<vmem>>, vector<64x4xf32>
    tpu.vector_store %arg6[%c0_14, %c0_15], %27 {strides = array<i32>} : memref<64x4xf32, #tpu.memory_space<vmem>>, vector<64x4xf32>,
    return
  }
  func.func @transform_0(%arg0: i32) -> (i32, i32) {
    %c0_i32 = arith.constant 0 : i32
    %c0_i32_0 = arith.constant 0 : i32
    return %arg0, %c0_i32 : i32, i32
  }
  func.func @transform_1(%arg0: i32) -> (i32, i32) {
    %c0_i32 = arith.constant 0 : i32
    %c0_i32_0 = arith.constant 0 : i32
    %c0_i32_1 = arith.constant 0 : i32
    return %c0_i32, %c0_i32_0 : i32, i32
  }
  func.func @transform_2(%arg0: i32) -> (i32, i32) {
    %c0_i32 = arith.constant 0 : i32
    %c0_i32_0 = arith.constant 0 : i32
    %c0_i32_1 = arith.constant 0 : i32
    return %c0_i32, %c0_i32_0 : i32, i32
  }
  func.func @transform_3(%arg0: i32) -> (i32, i32) {
    %c0_i32 = arith.constant 0 : i32
    %c0_i32_0 = arith.constant 0 : i32
    %c0_i32_1 = arith.constant 0 : i32
    return %c0_i32, %c0_i32_0 : i32, i32
  }
  func.func @transform_4(%arg0: i32) -> (i32, i32) {
    %c0_i32 = arith.constant 0 : i32
    %c0_i32_0 = arith.constant 0 : i32
    %c0_i32_1 = arith.constant 0 : i32
    return %c0_i32, %c0_i32_0 : i32, i32
  }
  func.func @transform_5(%arg0: i32) -> (i32, i32) {
    %c0_i32 = arith.constant 0 : i32
    %c0_i32_0 = arith.constant 0 : i32
    return %arg0, %c0_i32 : i32, i32
  }
}

module attributes {stable_mosaic.version = 11 : i64} {
  func.func @_attn_kernel(%arg0: i32, %arg1: memref<1x8x128xf32, #tpu.memory_space<vmem>>, %arg2: memref<4x8x8xf32, #tpu.memory_space<vmem>>, %arg3: memref<1x8x32xf32, #tpu.memory_space<vmem>>) attributes {dimension_semantics = [#tpu.dimension_semantics<parallel>], iteration_bounds = array<i64: 8>, scalar_prefetch = 0 : i64, scratch_operands = 0 : i64, tpu.core_type = #tpu.core_type<tc>, window_params = [{transform_indices = @transform_0, window_bounds = array<i64: 1, 8, 128>}, {pipeline_mode = #tpu.pipeline_mode<synchronous>, transform_indices = @transform_1, window_bounds = array<i64: 4, 8, 8>}, {transform_indices = @transform_2, window_bounds = array<i64: 1, 8, 32>}]} {
    %c0 = arith.constant 0 : index
    %c0_0 = arith.constant 0 : index
    %c0_1 = arith.constant 0 : index
    %0 = vector.load %arg1[%c0, %c0_0, %c0_1] : memref<1x8x128xf32, #tpu.memory_space<vmem>>, vector<1x8x128xf32>
    %1 = vector.shape_cast %0 : vector<1x8x128xf32> to vector<8x128xf32>
    %2 = vector.extract_strided_slice %1 {offsets = [0, 0], sizes = [8, 8], strides = [1, 1]} : vector<8x128xf32> to vector<8x8xf32>
    %3 = vector.extract_strided_slice %1 {offsets = [0, 32], sizes = [8, 8], strides = [1, 1]} : vector<8x128xf32> to vector<8x8xf32>
    %4 = vector.extract_strided_slice %1 {offsets = [0, 64], sizes = [8, 8], strides = [1, 1]} : vector<8x128xf32> to vector<8x8xf32>
    %5 = tpu.transpose %3, [1, 0] : vector<8x8xf32> -> vector<8x8xf32>
    %cst = arith.constant dense<0.000000e+00> : vector<8x8xf32>
    %6 = tpu.matmul %2, %5, %cst {dimension_numbers = #tpu.dot_dimension_numbers<[1], [0], [0], [1], [0, 0, 1, 1], [], []>} : vector<8x8xf32>, vector<8x8xf32>, vector<8x8xf32> -> vector<8x8xf32>
    %cst_2 = arith.constant 0.353553385 : f32
    %7 = vector.broadcast %cst_2 : f32 to vector<8x8xf32>
    %8 = arith.mulf %6, %7 : vector<8x8xf32>
    %c0_3 = arith.constant 0 : index
    %c0_4 = arith.constant 0 : index
    %c0_5 = arith.constant 0 : index
    %9 = vector.load %arg2[%c0_3, %c0_4, %c0_5] : memref<4x8x8xf32, #tpu.memory_space<vmem>>, vector<1x8x8xf32>
    %10 = vector.shape_cast %9 : vector<1x8x8xf32> to vector<8x8xf32>
    %11 = arith.addf %8, %10 : vector<8x8xf32>
    %cst_6 = arith.constant dense<0xFF800000> : vector<8xf32>
    %12 = vector.multi_reduction <maximumf>, %11, %cst_6 [1] : vector<8x8xf32> to vector<8xf32>
    %13 = vector.shape_cast %12 : vector<8xf32> to vector<8x1xf32>
    %14 = vector.broadcast %13 : vector<8x1xf32> to vector<8x8xf32>
    %15 = arith.subf %11, %14 : vector<8x8xf32>
    %16 = math.exp %15 : vector<8x8xf32>
    %cst_7 = arith.constant dense<0.000000e+00> : vector<8xf32>
    %17 = vector.multi_reduction <add>, %16, %cst_7 [1] : vector<8x8xf32> to vector<8xf32>
    %18 = vector.shape_cast %17 : vector<8xf32> to vector<8x1xf32>
    %19 = tpu.reciprocal %18 {approx = true} : vector<8x1xf32> -> vector<8x1xf32>
    %20 = vector.broadcast %19 : vector<8x1xf32> to vector<8x8xf32>
    %21 = arith.mulf %16, %20 : vector<8x8xf32>
    %cst_8 = arith.constant dense<0.000000e+00> : vector<8x8xf32>
    %22 = tpu.matmul %21, %4, %cst_8 {dimension_numbers = #tpu.dot_dimension_numbers<[1], [0], [0], [1], [0, 0, 1, 1], [], []>} : vector<8x8xf32>, vector<8x8xf32>, vector<8x8xf32> -> vector<8x8xf32>
    %23 = vector.extract_strided_slice %1 {offsets = [0, 8], sizes = [8, 8], strides = [1, 1]} : vector<8x128xf32> to vector<8x8xf32>
    %24 = vector.extract_strided_slice %1 {offsets = [0, 40], sizes = [8, 8], strides = [1, 1]} : vector<8x128xf32> to vector<8x8xf32>
    %25 = vector.extract_strided_slice %1 {offsets = [0, 72], sizes = [8, 8], strides = [1, 1]} : vector<8x128xf32> to vector<8x8xf32>
    %26 = tpu.transpose %24, [1, 0] : vector<8x8xf32> -> vector<8x8xf32>
    %cst_9 = arith.constant dense<0.000000e+00> : vector<8x8xf32>
    %27 = tpu.matmul %23, %26, %cst_9 {dimension_numbers = #tpu.dot_dimension_numbers<[1], [0], [0], [1], [0, 0, 1, 1], [], []>} : vector<8x8xf32>, vector<8x8xf32>, vector<8x8xf32> -> vector<8x8xf32>
    %cst_10 = arith.constant 0.353553385 : f32
    %28 = vector.broadcast %cst_10 : f32 to vector<8x8xf32>
    %29 = arith.mulf %27, %28 : vector<8x8xf32>
    %c1 = arith.constant 1 : index
    %c0_11 = arith.constant 0 : index
    %c0_12 = arith.constant 0 : index
    %30 = vector.load %arg2[%c1, %c0_11, %c0_12] : memref<4x8x8xf32, #tpu.memory_space<vmem>>, vector<1x8x8xf32>
    %31 = vector.shape_cast %30 : vector<1x8x8xf32> to vector<8x8xf32>
    %32 = arith.addf %29, %31 : vector<8x8xf32>
    %cst_13 = arith.constant dense<0xFF800000> : vector<8xf32>
    %33 = vector.multi_reduction <maximumf>, %32, %cst_13 [1] : vector<8x8xf32> to vector<8xf32>
    %34 = vector.shape_cast %33 : vector<8xf32> to vector<8x1xf32>
    %35 = vector.broadcast %34 : vector<8x1xf32> to vector<8x8xf32>
    %36 = arith.subf %32, %35 : vector<8x8xf32>
    %37 = math.exp %36 : vector<8x8xf32>
    %cst_14 = arith.constant dense<0.000000e+00> : vector<8xf32>
    %38 = vector.multi_reduction <add>, %37, %cst_14 [1] : vector<8x8xf32> to vector<8xf32>
    %39 = vector.shape_cast %38 : vector<8xf32> to vector<8x1xf32>
    %40 = tpu.reciprocal %39 {approx = true} : vector<8x1xf32> -> vector<8x1xf32>
    %41 = vector.broadcast %40 : vector<8x1xf32> to vector<8x8xf32>
    %42 = arith.mulf %37, %41 : vector<8x8xf32>
    %cst_15 = arith.constant dense<0.000000e+00> : vector<8x8xf32>
    %43 = tpu.matmul %42, %25, %cst_15 {dimension_numbers = #tpu.dot_dimension_numbers<[1], [0], [0], [1], [0, 0, 1, 1], [], []>} : vector<8x8xf32>, vector<8x8xf32>, vector<8x8xf32> -> vector<8x8xf32>
    %44 = vector.extract_strided_slice %1 {offsets = [0, 16], sizes = [8, 8], strides = [1, 1]} : vector<8x128xf32> to vector<8x8xf32>
    %45 = vector.extract_strided_slice %1 {offsets = [0, 48], sizes = [8, 8], strides = [1, 1]} : vector<8x128xf32> to vector<8x8xf32>
    %46 = vector.extract_strided_slice %1 {offsets = [0, 80], sizes = [8, 8], strides = [1, 1]} : vector<8x128xf32> to vector<8x8xf32>
    %47 = tpu.transpose %45, [1, 0] : vector<8x8xf32> -> vector<8x8xf32>
    %cst_16 = arith.constant dense<0.000000e+00> : vector<8x8xf32>
    %48 = tpu.matmul %44, %47, %cst_16 {dimension_numbers = #tpu.dot_dimension_numbers<[1], [0], [0], [1], [0, 0, 1, 1], [], []>} : vector<8x8xf32>, vector<8x8xf32>, vector<8x8xf32> -> vector<8x8xf32>
    %cst_17 = arith.constant 0.353553385 : f32
    %49 = vector.broadcast %cst_17 : f32 to vector<8x8xf32>
    %50 = arith.mulf %48, %49 : vector<8x8xf32>
    %c2 = arith.constant 2 : index
    %c0_18 = arith.constant 0 : index
    %c0_19 = arith.constant 0 : index
    %51 = vector.load %arg2[%c2, %c0_18, %c0_19] : memref<4x8x8xf32, #tpu.memory_space<vmem>>, vector<1x8x8xf32>
    %52 = vector.shape_cast %51 : vector<1x8x8xf32> to vector<8x8xf32>
    %53 = arith.addf %50, %52 : vector<8x8xf32>
    %cst_20 = arith.constant dense<0xFF800000> : vector<8xf32>
    %54 = vector.multi_reduction <maximumf>, %53, %cst_20 [1] : vector<8x8xf32> to vector<8xf32>
    %55 = vector.shape_cast %54 : vector<8xf32> to vector<8x1xf32>
    %56 = vector.broadcast %55 : vector<8x1xf32> to vector<8x8xf32>
    %57 = arith.subf %53, %56 : vector<8x8xf32>
    %58 = math.exp %57 : vector<8x8xf32>
    %cst_21 = arith.constant dense<0.000000e+00> : vector<8xf32>
    %59 = vector.multi_reduction <add>, %58, %cst_21 [1] : vector<8x8xf32> to vector<8xf32>
    %60 = vector.shape_cast %59 : vector<8xf32> to vector<8x1xf32>
    %61 = tpu.reciprocal %60 {approx = true} : vector<8x1xf32> -> vector<8x1xf32>
    %62 = vector.broadcast %61 : vector<8x1xf32> to vector<8x8xf32>
    %63 = arith.mulf %58, %62 : vector<8x8xf32>
    %cst_22 = arith.constant dense<0.000000e+00> : vector<8x8xf32>
    %64 = tpu.matmul %63, %46, %cst_22 {dimension_numbers = #tpu.dot_dimension_numbers<[1], [0], [0], [1], [0, 0, 1, 1], [], []>} : vector<8x8xf32>, vector<8x8xf32>, vector<8x8xf32> -> vector<8x8xf32>
    %65 = vector.extract_strided_slice %1 {offsets = [0, 24], sizes = [8, 8], strides = [1, 1]} : vector<8x128xf32> to vector<8x8xf32>
    %66 = vector.extract_strided_slice %1 {offsets = [0, 56], sizes = [8, 8], strides = [1, 1]} : vector<8x128xf32> to vector<8x8xf32>
    %67 = vector.extract_strided_slice %1 {offsets = [0, 88], sizes = [8, 8], strides = [1, 1]} : vector<8x128xf32> to vector<8x8xf32>
    %68 = tpu.transpose %66, [1, 0] : vector<8x8xf32> -> vector<8x8xf32>
    %cst_23 = arith.constant dense<0.000000e+00> : vector<8x8xf32>
    %69 = tpu.matmul %65, %68, %cst_23 {dimension_numbers = #tpu.dot_dimension_numbers<[1], [0], [0], [1], [0, 0, 1, 1], [], []>} : vector<8x8xf32>, vector<8x8xf32>, vector<8x8xf32> -> vector<8x8xf32>
    %cst_24 = arith.constant 0.353553385 : f32
    %70 = vector.broadcast %cst_24 : f32 to vector<8x8xf32>
    %71 = arith.mulf %69, %70 : vector<8x8xf32>
    %c3 = arith.constant 3 : index
    %c0_25 = arith.constant 0 : index
    %c0_26 = arith.constant 0 : index
    %72 = vector.load %arg2[%c3, %c0_25, %c0_26] : memref<4x8x8xf32, #tpu.memory_space<vmem>>, vector<1x8x8xf32>
    %73 = vector.shape_cast %72 : vector<1x8x8xf32> to vector<8x8xf32>
    %74 = arith.addf %71, %73 : vector<8x8xf32>
    %cst_27 = arith.constant dense<0xFF800000> : vector<8xf32>
    %75 = vector.multi_reduction <maximumf>, %74, %cst_27 [1] : vector<8x8xf32> to vector<8xf32>
    %76 = vector.shape_cast %75 : vector<8xf32> to vector<8x1xf32>
    %77 = vector.broadcast %76 : vector<8x1xf32> to vector<8x8xf32>
    %78 = arith.subf %74, %77 : vector<8x8xf32>
    %79 = math.exp %78 : vector<8x8xf32>
    %cst_28 = arith.constant dense<0.000000e+00> : vector<8xf32>
    %80 = vector.multi_reduction <add>, %79, %cst_28 [1] : vector<8x8xf32> to vector<8xf32>
    %81 = vector.shape_cast %80 : vector<8xf32> to vector<8x1xf32>
    %82 = tpu.reciprocal %81 {approx = true} : vector<8x1xf32> -> vector<8x1xf32>
    %83 = vector.broadcast %82 : vector<8x1xf32> to vector<8x8xf32>
    %84 = arith.mulf %79, %83 : vector<8x8xf32>
    %cst_29 = arith.constant dense<0.000000e+00> : vector<8x8xf32>
    %85 = tpu.matmul %84, %67, %cst_29 {dimension_numbers = #tpu.dot_dimension_numbers<[1], [0], [0], [1], [0, 0, 1, 1], [], []>} : vector<8x8xf32>, vector<8x8xf32>, vector<8x8xf32> -> vector<8x8xf32>
    %86 = tpu.concatenate %22, %43, %64, %85 in 1 : vector<8x8xf32>, vector<8x8xf32>, vector<8x8xf32>, vector<8x8xf32> -> vector<8x32xf32>
    %87 = vector.extract_strided_slice %1 {offsets = [0, 96], sizes = [8, 32], strides = [1, 1]} : vector<8x128xf32> to vector<8x32xf32>
    %88 = arith.negf %87 : vector<8x32xf32>
    %89 = math.exp %88 : vector<8x32xf32>
    %cst_30 = arith.constant 1.000000e+00 : f32
    %90 = vector.broadcast %cst_30 : f32 to vector<8x32xf32>
    %91 = arith.addf %90, %89 : vector<8x32xf32>
    %92 = arith.divf %90, %91 : vector<8x32xf32>
    %93 = arith.mulf %86, %92 : vector<8x32xf32>
    %c0_31 = arith.constant 0 : index
    %c0_32 = arith.constant 0 : index
    %c0_33 = arith.constant 0 : index
    %94 = vector.load %arg3[%c0_31, %c0_32, %c0_33] : memref<1x8x32xf32, #tpu.memory_space<vmem>>, vector<1x8x32xf32>
    %95 = vector.shape_cast %94 : vector<1x8x32xf32> to vector<8x32xf32>
    %96 = vector.shape_cast %93 : vector<8x32xf32> to vector<1x8x32xf32>
    tpu.vector_store %arg3[%c0_31, %c0_32, %c0_33], %96 {strides = array<i32>} : memref<1x8x32xf32, #tpu.memory_space<vmem>>, vector<1x8x32xf32>,
    return
  }
  func.func @transform_0(%arg0: i32) -> (i32, i32, i32) {
    %c0_i32 = arith.constant 0 : i32
    %c0_i32_0 = arith.constant 0 : i32
    %c0_i32_1 = arith.constant 0 : i32
    return %arg0, %c0_i32, %c0_i32_0 : i32, i32, i32
  }
  func.func @transform_1(%arg0: i32) -> (i32, i32, i32) {
    %c0_i32 = arith.constant 0 : i32
    %c0_i32_0 = arith.constant 0 : i32
    %c0_i32_1 = arith.constant 0 : i32
    %c0_i32_2 = arith.constant 0 : i32
    return %c0_i32, %c0_i32_0, %c0_i32_1 : i32, i32, i32
  }
  func.func @transform_2(%arg0: i32) -> (i32, i32, i32) {
    %c0_i32 = arith.constant 0 : i32
    %c0_i32_0 = arith.constant 0 : i32
    %c0_i32_1 = arith.constant 0 : i32
    return %arg0, %c0_i32, %c0_i32_0 : i32, i32, i32
  }
}

module attributes {stable_mosaic.version = 11 : i64} {
  func.func @_fused_linear_kernel(%arg0: i32, %arg1: memref<64x32xf32, #tpu.memory_space<vmem>>, %arg2: memref<32x32xf32, #tpu.memory_space<vmem>>, %arg3: memref<1x32xf32, #tpu.memory_space<vmem>>, %arg4: memref<64x32xf32, #tpu.memory_space<vmem>>, %arg5: memref<64x32xf32, #tpu.memory_space<vmem>>) attributes {dimension_semantics = [#tpu.dimension_semantics<parallel>], iteration_bounds = array<i64: 1>, scalar_prefetch = 0 : i64, scratch_operands = 0 : i64, tpu.core_type = #tpu.core_type<tc>, window_params = [{transform_indices = @transform_0, window_bounds = array<i64: 64, 32>}, {pipeline_mode = #tpu.pipeline_mode<synchronous>, transform_indices = @transform_1, window_bounds = array<i64: 32, 32>}, {pipeline_mode = #tpu.pipeline_mode<synchronous>, transform_indices = @transform_2, window_bounds = array<i64: 1, 32>}, {transform_indices = @transform_3, window_bounds = array<i64: 64, 32>}, {transform_indices = @transform_4, window_bounds = array<i64: 64, 32>}]} {
    %c0 = arith.constant 0 : index
    %c0_0 = arith.constant 0 : index
    %0 = vector.load %arg1[%c0, %c0_0] : memref<64x32xf32, #tpu.memory_space<vmem>>, vector<64x32xf32>
    %c0_1 = arith.constant 0 : index
    %c0_2 = arith.constant 0 : index
    %1 = vector.load %arg2[%c0_1, %c0_2] : memref<32x32xf32, #tpu.memory_space<vmem>>, vector<32x32xf32>
    %cst = arith.constant dense<0.000000e+00> : vector<64x32xf32>
    %2 = tpu.matmul %0, %1, %cst {dimension_numbers = #tpu.dot_dimension_numbers<[1], [0], [0], [1], [0, 0, 1, 1], [], []>} : vector<64x32xf32>, vector<32x32xf32>, vector<64x32xf32> -> vector<64x32xf32>
    %c0_3 = arith.constant 0 : index
    %c0_4 = arith.constant 0 : index
    %3 = vector.load %arg3[%c0_3, %c0_4] : memref<1x32xf32, #tpu.memory_space<vmem>>, vector<1x32xf32>
    %4 = vector.broadcast %3 : vector<1x32xf32> to vector<64x32xf32>
    %5 = arith.addf %2, %4 : vector<64x32xf32>
    %c0_5 = arith.constant 0 : index
    %c0_6 = arith.constant 0 : index
    %6 = vector.load %arg4[%c0_5, %c0_6] : memref<64x32xf32, #tpu.memory_space<vmem>>, vector<64x32xf32>
    %7 = arith.addf %5, %6 : vector<64x32xf32>
    %c0_7 = arith.constant 0 : index
    %c0_8 = arith.constant 0 : index
    %8 = vector.load %arg5[%c0_7, %c0_8] : memref<64x32xf32, #tpu.memory_space<vmem>>, vector<64x32xf32>
    tpu.vector_store %arg5[%c0_7, %c0_8], %7 {strides = array<i32>} : memref<64x32xf32, #tpu.memory_space<vmem>>, vector<64x32xf32>,
    return
  }
  func.func @transform_0(%arg0: i32) -> (i32, i32) {
    %c0_i32 = arith.constant 0 : i32
    %c0_i32_0 = arith.constant 0 : i32
    return %arg0, %c0_i32 : i32, i32
  }
  func.func @transform_1(%arg0: i32) -> (i32, i32) {
    %c0_i32 = arith.constant 0 : i32
    %c0_i32_0 = arith.constant 0 : i32
    %c0_i32_1 = arith.constant 0 : i32
    return %c0_i32, %c0_i32_0 : i32, i32
  }
  func.func @transform_2(%arg0: i32) -> (i32, i32) {
    %c0_i32 = arith.constant 0 : i32
    %c0_i32_0 = arith.constant 0 : i32
    %c0_i32_1 = arith.constant 0 : i32
    return %c0_i32, %c0_i32_0 : i32, i32
  }
  func.func @transform_3(%arg0: i32) -> (i32, i32) {
    %c0_i32 = arith.constant 0 : i32
    %c0_i32_0 = arith.constant 0 : i32
    return %arg0, %c0_i32 : i32, i32
  }
  func.func @transform_4(%arg0: i32) -> (i32, i32) {
    %c0_i32 = arith.constant 0 : i32
    %c0_i32_0 = arith.constant 0 : i32
    return %arg0, %c0_i32 : i32, i32
  }
}

module attributes {stable_mosaic.version = 11 : i64} {
  func.func @_attn_kernel(%arg0: i32, %arg1: memref<1x8x128xf32, #tpu.memory_space<vmem>>, %arg2: memref<1x8x32xf32, #tpu.memory_space<vmem>>) attributes {dimension_semantics = [#tpu.dimension_semantics<parallel>], iteration_bounds = array<i64: 8>, scalar_prefetch = 0 : i64, scratch_operands = 0 : i64, tpu.core_type = #tpu.core_type<tc>, window_params = [{transform_indices = @transform_0, window_bounds = array<i64: 1, 8, 128>}, {transform_indices = @transform_1, window_bounds = array<i64: 1, 8, 32>}]} {
    %c0 = arith.constant 0 : index
    %c0_0 = arith.constant 0 : index
    %c0_1 = arith.constant 0 : index
    %0 = vector.load %arg1[%c0, %c0_0, %c0_1] : memref<1x8x128xf32, #tpu.memory_space<vmem>>, vector<1x8x128xf32>
    %1 = vector.shape_cast %0 : vector<1x8x128xf32> to vector<8x128xf32>
    %2 = vector.extract_strided_slice %1 {offsets = [0, 0], sizes = [8, 8], strides = [1, 1]} : vector<8x128xf32> to vector<8x8xf32>
    %3 = vector.extract_strided_slice %1 {offsets = [0, 32], sizes = [8, 8], strides = [1, 1]} : vector<8x128xf32> to vector<8x8xf32>
    %4 = vector.extract_strided_slice %1 {offsets = [0, 64], sizes = [8, 8], strides = [1, 1]} : vector<8x128xf32> to vector<8x8xf32>
    %5 = tpu.transpose %3, [1, 0] : vector<8x8xf32> -> vector<8x8xf32>
    %cst = arith.constant dense<0.000000e+00> : vector<8x8xf32>
    %6 = tpu.matmul %2, %5, %cst {dimension_numbers = #tpu.dot_dimension_numbers<[1], [0], [0], [1], [0, 0, 1, 1], [], []>} : vector<8x8xf32>, vector<8x8xf32>, vector<8x8xf32> -> vector<8x8xf32>
    %cst_2 = arith.constant 0.353553385 : f32
    %7 = vector.broadcast %cst_2 : f32 to vector<8x8xf32>
    %8 = arith.mulf %6, %7 : vector<8x8xf32>
    %cst_3 = arith.constant dense<0xFF800000> : vector<8xf32>
    %9 = vector.multi_reduction <maximumf>, %8, %cst_3 [1] : vector<8x8xf32> to vector<8xf32>
    %10 = vector.shape_cast %9 : vector<8xf32> to vector<8x1xf32>
    %11 = vector.broadcast %10 : vector<8x1xf32> to vector<8x8xf32>
    %12 = arith.subf %8, %11 : vector<8x8xf32>
    %13 = math.exp %12 : vector<8x8xf32>
    %cst_4 = arith.constant dense<0.000000e+00> : vector<8xf32>
    %14 = vector.multi_reduction <add>, %13, %cst_4 [1] : vector<8x8xf32> to vector<8xf32>
    %15 = vector.shape_cast %14 : vector<8xf32> to vector<8x1xf32>
    %16 = tpu.reciprocal %15 {approx = true} : vector<8x1xf32> -> vector<8x1xf32>
    %17 = vector.broadcast %16 : vector<8x1xf32> to vector<8x8xf32>
    %18 = arith.mulf %13, %17 : vector<8x8xf32>
    %cst_5 = arith.constant dense<0.000000e+00> : vector<8x8xf32>
    %19 = tpu.matmul %18, %4, %cst_5 {dimension_numbers = #tpu.dot_dimension_numbers<[1], [0], [0], [1], [0, 0, 1, 1], [], []>} : vector<8x8xf32>, vector<8x8xf32>, vector<8x8xf32> -> vector<8x8xf32>
    %20 = vector.extract_strided_slice %1 {offsets = [0, 8], sizes = [8, 8], strides = [1, 1]} : vector<8x128xf32> to vector<8x8xf32>
    %21 = vector.extract_strided_slice %1 {offsets = [0, 40], sizes = [8, 8], strides = [1, 1]} : vector<8x128xf32> to vector<8x8xf32>
    %22 = vector.extract_strided_slice %1 {offsets = [0, 72], sizes = [8, 8], strides = [1, 1]} : vector<8x128xf32> to vector<8x8xf32>
    %23 = tpu.transpose %21, [1, 0] : vector<8x8xf32> -> vector<8x8xf32>
    %cst_6 = arith.constant dense<0.000000e+00> : vector<8x8xf32>
    %24 = tpu.matmul %20, %23, %cst_6 {dimension_numbers = #tpu.dot_dimension_numbers<[1], [0], [0], [1], [0, 0, 1, 1], [], []>} : vector<8x8xf32>, vector<8x8xf32>, vector<8x8xf32> -> vector<8x8xf32>
    %cst_7 = arith.constant 0.353553385 : f32
    %25 = vector.broadcast %cst_7 : f32 to vector<8x8xf32>
    %26 = arith.mulf %24, %25 : vector<8x8xf32>
    %cst_8 = arith.constant dense<0xFF800000> : vector<8xf32>
    %27 = vector.multi_reduction <maximumf>, %26, %cst_8 [1] : vector<8x8xf32> to vector<8xf32>
    %28 = vector.shape_cast %27 : vector<8xf32> to vector<8x1xf32>
    %29 = vector.broadcast %28 : vector<8x1xf32> to vector<8x8xf32>
    %30 = arith.subf %26, %29 : vector<8x8xf32>
    %31 = math.exp %30 : vector<8x8xf32>
    %cst_9 = arith.constant dense<0.000000e+00> : vector<8xf32>
    %32 = vector.multi_reduction <add>, %31, %cst_9 [1] : vector<8x8xf32> to vector<8xf32>
    %33 = vector.shape_cast %32 : vector<8xf32> to vector<8x1xf32>
    %34 = tpu.reciprocal %33 {approx = true} : vector<8x1xf32> -> vector<8x1xf32>
    %35 = vector.broadcast %34 : vector<8x1xf32> to vector<8x8xf32>
    %36 = arith.mulf %31, %35 : vector<8x8xf32>
    %cst_10 = arith.constant dense<0.000000e+00> : vector<8x8xf32>
    %37 = tpu.matmul %36, %22, %cst_10 {dimension_numbers = #tpu.dot_dimension_numbers<[1], [0], [0], [1], [0, 0, 1, 1], [], []>} : vector<8x8xf32>, vector<8x8xf32>, vector<8x8xf32> -> vector<8x8xf32>
    %38 = vector.extract_strided_slice %1 {offsets = [0, 16], sizes = [8, 8], strides = [1, 1]} : vector<8x128xf32> to vector<8x8xf32>
    %39 = vector.extract_strided_slice %1 {offsets = [0, 48], sizes = [8, 8], strides = [1, 1]} : vector<8x128xf32> to vector<8x8xf32>
    %40 = vector.extract_strided_slice %1 {offsets = [0, 80], sizes = [8, 8], strides = [1, 1]} : vector<8x128xf32> to vector<8x8xf32>
    %41 = tpu.transpose %39, [1, 0] : vector<8x8xf32> -> vector<8x8xf32>
    %cst_11 = arith.constant dense<0.000000e+00> : vector<8x8xf32>
    %42 = tpu.matmul %38, %41, %cst_11 {dimension_numbers = #tpu.dot_dimension_numbers<[1], [0], [0], [1], [0, 0, 1, 1], [], []>} : vector<8x8xf32>, vector<8x8xf32>, vector<8x8xf32> -> vector<8x8xf32>
    %cst_12 = arith.constant 0.353553385 : f32
    %43 = vector.broadcast %cst_12 : f32 to vector<8x8xf32>
    %44 = arith.mulf %42, %43 : vector<8x8xf32>
    %cst_13 = arith.constant dense<0xFF800000> : vector<8xf32>
    %45 = vector.multi_reduction <maximumf>, %44, %cst_13 [1] : vector<8x8xf32> to vector<8xf32>
    %46 = vector.shape_cast %45 : vector<8xf32> to vector<8x1xf32>
    %47 = vector.broadcast %46 : vector<8x1xf32> to vector<8x8xf32>
    %48 = arith.subf %44, %47 : vector<8x8xf32>
    %49 = math.exp %48 : vector<8x8xf32>
    %cst_14 = arith.constant dense<0.000000e+00> : vector<8xf32>
    %50 = vector.multi_reduction <add>, %49, %cst_14 [1] : vector<8x8xf32> to vector<8xf32>
    %51 = vector.shape_cast %50 : vector<8xf32> to vector<8x1xf32>
    %52 = tpu.reciprocal %51 {approx = true} : vector<8x1xf32> -> vector<8x1xf32>
    %53 = vector.broadcast %52 : vector<8x1xf32> to vector<8x8xf32>
    %54 = arith.mulf %49, %53 : vector<8x8xf32>
    %cst_15 = arith.constant dense<0.000000e+00> : vector<8x8xf32>
    %55 = tpu.matmul %54, %40, %cst_15 {dimension_numbers = #tpu.dot_dimension_numbers<[1], [0], [0], [1], [0, 0, 1, 1], [], []>} : vector<8x8xf32>, vector<8x8xf32>, vector<8x8xf32> -> vector<8x8xf32>
    %56 = vector.extract_strided_slice %1 {offsets = [0, 24], sizes = [8, 8], strides = [1, 1]} : vector<8x128xf32> to vector<8x8xf32>
    %57 = vector.extract_strided_slice %1 {offsets = [0, 56], sizes = [8, 8], strides = [1, 1]} : vector<8x128xf32> to vector<8x8xf32>
    %58 = vector.extract_strided_slice %1 {offsets = [0, 88], sizes = [8, 8], strides = [1, 1]} : vector<8x128xf32> to vector<8x8xf32>
    %59 = tpu.transpose %57, [1, 0] : vector<8x8xf32> -> vector<8x8xf32>
    %cst_16 = arith.constant dense<0.000000e+00> : vector<8x8xf32>
    %60 = tpu.matmul %56, %59, %cst_16 {dimension_numbers = #tpu.dot_dimension_numbers<[1], [0], [0], [1], [0, 0, 1, 1], [], []>} : vector<8x8xf32>, vector<8x8xf32>, vector<8x8xf32> -> vector<8x8xf32>
    %cst_17 = arith.constant 0.353553385 : f32
    %61 = vector.broadcast %cst_17 : f32 to vector<8x8xf32>
    %62 = arith.mulf %60, %61 : vector<8x8xf32>
    %cst_18 = arith.constant dense<0xFF800000> : vector<8xf32>
    %63 = vector.multi_reduction <maximumf>, %62, %cst_18 [1] : vector<8x8xf32> to vector<8xf32>
    %64 = vector.shape_cast %63 : vector<8xf32> to vector<8x1xf32>
    %65 = vector.broadcast %64 : vector<8x1xf32> to vector<8x8xf32>
    %66 = arith.subf %62, %65 : vector<8x8xf32>
    %67 = math.exp %66 : vector<8x8xf32>
    %cst_19 = arith.constant dense<0.000000e+00> : vector<8xf32>
    %68 = vector.multi_reduction <add>, %67, %cst_19 [1] : vector<8x8xf32> to vector<8xf32>
    %69 = vector.shape_cast %68 : vector<8xf32> to vector<8x1xf32>
    %70 = tpu.reciprocal %69 {approx = true} : vector<8x1xf32> -> vector<8x1xf32>
    %71 = vector.broadcast %70 : vector<8x1xf32> to vector<8x8xf32>
    %72 = arith.mulf %67, %71 : vector<8x8xf32>
    %cst_20 = arith.constant dense<0.000000e+00> : vector<8x8xf32>
    %73 = tpu.matmul %72, %58, %cst_20 {dimension_numbers = #tpu.dot_dimension_numbers<[1], [0], [0], [1], [0, 0, 1, 1], [], []>} : vector<8x8xf32>, vector<8x8xf32>, vector<8x8xf32> -> vector<8x8xf32>
    %74 = tpu.concatenate %19, %37, %55, %73 in 1 : vector<8x8xf32>, vector<8x8xf32>, vector<8x8xf32>, vector<8x8xf32> -> vector<8x32xf32>
    %75 = vector.extract_strided_slice %1 {offsets = [0, 96], sizes = [8, 32], strides = [1, 1]} : vector<8x128xf32> to vector<8x32xf32>
    %76 = arith.negf %75 : vector<8x32xf32>
    %77 = math.exp %76 : vector<8x32xf32>
    %cst_21 = arith.constant 1.000000e+00 : f32
    %78 = vector.broadcast %cst_21 : f32 to vector<8x32xf32>
    %79 = arith.addf %78, %77 : vector<8x32xf32>
    %80 = arith.divf %78, %79 : vector<8x32xf32>
    %81 = arith.mulf %74, %80 : vector<8x32xf32>
    %c0_22 = arith.constant 0 : index
    %c0_23 = arith.constant 0 : index
    %c0_24 = arith.constant 0 : index
    %82 = vector.load %arg2[%c0_22, %c0_23, %c0_24] : memref<1x8x32xf32, #tpu.memory_space<vmem>>, vector<1x8x32xf32>
    %83 = vector.shape_cast %82 : vector<1x8x32xf32> to vector<8x32xf32>
    %84 = vector.shape_cast %81 : vector<8x32xf32> to vector<1x8x32xf32>
    tpu.vector_store %arg2[%c0_22, %c0_23, %c0_24], %84 {strides = array<i32>} : memref<1x8x32xf32, #tpu.memory_space<vmem>>, vector<1x8x32xf32>,
    return
  }
  func.func @transform_0(%arg0: i32) -> (i32, i32, i32) {
    %c0_i32 = arith.constant 0 : i32
    %c0_i32_0 = arith.constant 0 : i32
    %c0_i32_1 = arith.constant 0 : i32
    return %arg0, %c0_i32, %c0_i32_0 : i32, i32, i32
  }
  func.func @transform_1(%arg0: i32) -> (i32, i32, i32) {
    %c0_i32 = arith.constant 0 : i32
    %c0_i32_0 = arith.constant 0 : i32
    %c0_i32_1 = arith.constant 0 : i32
    return %arg0, %c0_i32, %c0_i32_0 : i32, i32, i32
  }
}

module attributes {stable_mosaic.version = 11 : i64} {
  func.func @_fused_linear_kernel(%arg0: i32, %arg1: memref<64x32xf32, #tpu.memory_space<vmem>>, %arg2: memref<32x128xf32, #tpu.memory_space<vmem>>, %arg3: memref<1x128xf32, #tpu.memory_space<vmem>>, %arg4: memref<1x32xf32, #tpu.memory_space<vmem>>, %arg5: memref<1x32xf32, #tpu.memory_space<vmem>>, %arg6: memref<64x128xf32, #tpu.memory_space<vmem>>) attributes {dimension_semantics = [#tpu.dimension_semantics<parallel>], iteration_bounds = array<i64: 1>, scalar_prefetch = 0 : i64, scratch_operands = 0 : i64, tpu.core_type = #tpu.core_type<tc>, window_params = [{transform_indices = @transform_0, window_bounds = array<i64: 64, 32>}, {pipeline_mode = #tpu.pipeline_mode<synchronous>, transform_indices = @transform_1, window_bounds = array<i64: 32, 128>}, {pipeline_mode = #tpu.pipeline_mode<synchronous>, transform_indices = @transform_2, window_bounds = array<i64: 1, 128>}, {pipeline_mode = #tpu.pipeline_mode<synchronous>, transform_indices = @transform_3, window_bounds = array<i64: 1, 32>}, {pipeline_mode = #tpu.pipeline_mode<synchronous>, transform_indices = @transform_4, window_bounds = array<i64: 1, 32>}, {transform_indices = @transform_5, window_bounds = array<i64: 64, 128>}]} {
    %c0 = arith.constant 0 : index
    %c0_0 = arith.constant 0 : index
    %0 = vector.load %arg1[%c0, %c0_0] : memref<64x32xf32, #tpu.memory_space<vmem>>, vector<64x32xf32>
    %cst = arith.constant dense<0.000000e+00> : vector<64xf32>
    %1 = vector.multi_reduction <add>, %0, %cst [1] : vector<64x32xf32> to vector<64xf32>
    %2 = vector.shape_cast %1 : vector<64xf32> to vector<64x1xf32>
    %cst_1 = arith.constant 3.200000e+01 : f32
    %3 = vector.broadcast %cst_1 : f32 to vector<64x1xf32>
    %4 = arith.divf %2, %3 : vector<64x1xf32>
    %5 = vector.broadcast %4 : vector<64x1xf32> to vector<64x32xf32>
    %6 = arith.subf %0, %5 : vector<64x32xf32>
    %7 = arith.mulf %6, %6 : vector<64x32xf32>
    %cst_2 = arith.constant dense<0.000000e+00> : vector<64xf32>
    %8 = vector.multi_reduction <add>, %7, %cst_2 [1] : vector<64x32xf32> to vector<64xf32>
    %9 = vector.shape_cast %8 : vector<64xf32> to vector<64x1xf32>
    %cst_3 = arith.constant 3.200000e+01 : f32
    %10 = vector.broadcast %cst_3 : f32 to vector<64x1xf32>
    %11 = arith.divf %9, %10 : vector<64x1xf32>
    %cst_4 = arith.constant 9.99999974E-6 : f32
    %12 = vector.broadcast %cst_4 : f32 to vector<64x1xf32>
    %13 = arith.addf %11, %12 : vector<64x1xf32>
    %14 = math.rsqrt %13 : vector<64x1xf32>
    %15 = vector.broadcast %14 : vector<64x1xf32> to vector<64x32xf32>
    %16 = arith.mulf %6, %15 : vector<64x32xf32>
    %c0_5 = arith.constant 0 : index
    %c0_6 = arith.constant 0 : index
    %17 = vector.load %arg4[%c0_5, %c0_6] : memref<1x32xf32, #tpu.memory_space<vmem>>, vector<1x32xf32>
    %18 = vector.broadcast %17 : vector<1x32xf32> to vector<64x32xf32>
    %19 = arith.mulf %16, %18 : vector<64x32xf32>
    %c0_7 = arith.constant 0 : index
    %c0_8 = arith.constant 0 : index
    %20 = vector.load %arg5[%c0_7, %c0_8] : memref<1x32xf32, #tpu.memory_space<vmem>>, vector<1x32xf32>
    %21 = vector.broadcast %20 : vector<1x32xf32> to vector<64x32xf32>
    %22 = arith.addf %19, %21 : vector<64x32xf32>
    %c0_9 = arith.constant 0 : index
    %c0_10 = arith.constant 0 : index
    %23 = vector.load %arg2[%c0_9, %c0_10] : memref<32x128xf32, #tpu.memory_space<vmem>>, vector<32x128xf32>
    %cst_11 = arith.constant dense<0.000000e+00> : vector<64x128xf32>
    %24 = tpu.matmul %22, %23, %cst_11 {dimension_numbers = #tpu.dot_dimension_numbers<[1], [0], [0], [1], [0, 0, 1, 1], [], []>} : vector<64x32xf32>, vector<32x128xf32>, vector<64x128xf32> -> vector<64x128xf32>
    %c0_12 = arith.constant 0 : index
    %c0_13 = arith.constant 0 : index
    %25 = vector.load %arg3[%c0_12, %c0_13] : memref<1x128xf32, #tpu.memory_space<vmem>>, vector<1x128xf32>
    %26 = vector.broadcast %25 : vector<1x128xf32> to vector<64x128xf32>
    %27 = arith.addf %24, %26 : vector<64x128xf32>
    %cst_14 = arith.constant 0.000000e+00 : f32
    %28 = vector.broadcast %cst_14 : f32 to vector<64x128xf32>
    %29 = arith.maximumf %27, %28 : vector<64x128xf32>
    %c0_15 = arith.constant 0 : index
    %c0_16 = arith.constant 0 : index
    %30 = vector.load %arg6[%c0_15, %c0_16] : memref<64x128xf32, #tpu.memory_space<vmem>>, vector<64x128xf32>
    tpu.vector_store %arg6[%c0_15, %c0_16], %29 {strides = array<i32>} : memref<64x128xf32, #tpu.memory_space<vmem>>, vector<64x128xf32>,
    return
  }
  func.func @transform_0(%arg0: i32) -> (i32, i32) {
    %c0_i32 = arith.constant 0 : i32
    %c0_i32_0 = arith.constant 0 : i32
    return %arg0, %c0_i32 : i32, i32
  }
  func.func @transform_1(%arg0: i32) -> (i32, i32) {
    %c0_i32 = arith.constant 0 : i32
    %c0_i32_0 = arith.constant 0 : i32
    %c0_i32_1 = arith.constant 0 : i32
    return %c0_i32, %c0_i32_0 : i32, i32
  }
  func.func @transform_2(%arg0: i32) -> (i32, i32) {
    %c0_i32 = arith.constant 0 : i32
    %c0_i32_0 = arith.constant 0 : i32
    %c0_i32_1 = arith.constant 0 : i32
    return %c0_i32, %c0_i32_0 : i32, i32
  }
  func.func @transform_3(%arg0: i32) -> (i32, i32) {
    %c0_i32 = arith.constant 0 : i32
    %c0_i32_0 = arith.constant 0 : i32
    %c0_i32_1 = arith.constant 0 : i32
    return %c0_i32, %c0_i32_0 : i32, i32
  }
  func.func @transform_4(%arg0: i32) -> (i32, i32) {
    %c0_i32 = arith.constant 0 : i32
    %c0_i32_0 = arith.constant 0 : i32
    %c0_i32_1 = arith.constant 0 : i32
    return %c0_i32, %c0_i32_0 : i32, i32
  }
  func.func @transform_5(%arg0: i32) -> (i32, i32) {
    %c0_i32 = arith.constant 0 : i32
    %c0_i32_0 = arith.constant 0 : i32
    return %arg0, %c0_i32 : i32, i32
  }
}

module attributes {stable_mosaic.version = 11 : i64} {
  func.func @_fused_linear_kernel(%arg0: i32, %arg1: memref<64x128xf32, #tpu.memory_space<vmem>>, %arg2: memref<128x32xf32, #tpu.memory_space<vmem>>, %arg3: memref<1x32xf32, #tpu.memory_space<vmem>>, %arg4: memref<64x32xf32, #tpu.memory_space<vmem>>, %arg5: memref<64x32xf32, #tpu.memory_space<vmem>>) attributes {dimension_semantics = [#tpu.dimension_semantics<parallel>], iteration_bounds = array<i64: 1>, scalar_prefetch = 0 : i64, scratch_operands = 0 : i64, tpu.core_type = #tpu.core_type<tc>, window_params = [{transform_indices = @transform_0, window_bounds = array<i64: 64, 128>}, {pipeline_mode = #tpu.pipeline_mode<synchronous>, transform_indices = @transform_1, window_bounds = array<i64: 128, 32>}, {pipeline_mode = #tpu.pipeline_mode<synchronous>, transform_indices = @transform_2, window_bounds = array<i64: 1, 32>}, {transform_indices = @transform_3, window_bounds = array<i64: 64, 32>}, {transform_indices = @transform_4, window_bounds = array<i64: 64, 32>}]} {
    %c0 = arith.constant 0 : index
    %c0_0 = arith.constant 0 : index
    %0 = vector.load %arg1[%c0, %c0_0] : memref<64x128xf32, #tpu.memory_space<vmem>>, vector<64x128xf32>
    %c0_1 = arith.constant 0 : index
    %c0_2 = arith.constant 0 : index
    %1 = vector.load %arg2[%c0_1, %c0_2] : memref<128x32xf32, #tpu.memory_space<vmem>>, vector<128x32xf32>
    %cst = arith.constant dense<0.000000e+00> : vector<64x32xf32>
    %2 = tpu.matmul %0, %1, %cst {dimension_numbers = #tpu.dot_dimension_numbers<[1], [0], [0], [1], [0, 0, 1, 1], [], []>} : vector<64x128xf32>, vector<128x32xf32>, vector<64x32xf32> -> vector<64x32xf32>
    %c0_3 = arith.constant 0 : index
    %c0_4 = arith.constant 0 : index
    %3 = vector.load %arg3[%c0_3, %c0_4] : memref<1x32xf32, #tpu.memory_space<vmem>>, vector<1x32xf32>
    %4 = vector.broadcast %3 : vector<1x32xf32> to vector<64x32xf32>
    %5 = arith.addf %2, %4 : vector<64x32xf32>
    %c0_5 = arith.constant 0 : index
    %c0_6 = arith.constant 0 : index
    %6 = vector.load %arg4[%c0_5, %c0_6] : memref<64x32xf32, #tpu.memory_space<vmem>>, vector<64x32xf32>
    %7 = arith.addf %5, %6 : vector<64x32xf32>
    %c0_7 = arith.constant 0 : index
    %c0_8 = arith.constant 0 : index
    %8 = vector.load %arg5[%c0_7, %c0_8] : memref<64x32xf32, #tpu.memory_space<vmem>>, vector<64x32xf32>
    tpu.vector_store %arg5[%c0_7, %c0_8], %7 {strides = array<i32>} : memref<64x32xf32, #tpu.memory_space<vmem>>, vector<64x32xf32>,
    return
  }
  func.func @transform_0(%arg0: i32) -> (i32, i32) {
    %c0_i32 = arith.constant 0 : i32
    %c0_i32_0 = arith.constant 0 : i32
    return %arg0, %c0_i32 : i32, i32
  }
  func.func @transform_1(%arg0: i32) -> (i32, i32) {
    %c0_i32 = arith.constant 0 : i32
    %c0_i32_0 = arith.constant 0 : i32
    %c0_i32_1 = arith.constant 0 : i32
    return %c0_i32, %c0_i32_0 : i32, i32
  }
  func.func @transform_2(%arg0: i32) -> (i32, i32) {
    %c0_i32 = arith.constant 0 : i32
    %c0_i32_0 = arith.constant 0 : i32
    %c0_i32_1 = arith.constant 0 : i32
    return %c0_i32, %c0_i32_0 : i32, i32
  }
  func.func @transform_3(%arg0: i32) -> (i32, i32) {
    %c0_i32 = arith.constant 0 : i32
    %c0_i32_0 = arith.constant 0 : i32
    return %arg0, %c0_i32 : i32, i32
  }
  func.func @transform_4(%arg0: i32) -> (i32, i32) {
    %c0_i32 = arith.constant 0 : i32
    %c0_i32_0 = arith.constant 0 : i32
    return %arg0, %c0_i32 : i32, i32
  }
}

module attributes {stable_mosaic.version = 11 : i64} {
  func.func @_fused_linear_kernel(%arg0: i32, %arg1: memref<64x32xf32, #tpu.memory_space<vmem>>, %arg2: memref<32x16xf32, #tpu.memory_space<vmem>>, %arg3: memref<1x16xf32, #tpu.memory_space<vmem>>, %arg4: memref<1x32xf32, #tpu.memory_space<vmem>>, %arg5: memref<1x32xf32, #tpu.memory_space<vmem>>, %arg6: memref<64x16xf32, #tpu.memory_space<vmem>>) attributes {dimension_semantics = [#tpu.dimension_semantics<parallel>], iteration_bounds = array<i64: 1>, scalar_prefetch = 0 : i64, scratch_operands = 0 : i64, tpu.core_type = #tpu.core_type<tc>, window_params = [{transform_indices = @transform_0, window_bounds = array<i64: 64, 32>}, {pipeline_mode = #tpu.pipeline_mode<synchronous>, transform_indices = @transform_1, window_bounds = array<i64: 32, 16>}, {pipeline_mode = #tpu.pipeline_mode<synchronous>, transform_indices = @transform_2, window_bounds = array<i64: 1, 16>}, {pipeline_mode = #tpu.pipeline_mode<synchronous>, transform_indices = @transform_3, window_bounds = array<i64: 1, 32>}, {pipeline_mode = #tpu.pipeline_mode<synchronous>, transform_indices = @transform_4, window_bounds = array<i64: 1, 32>}, {transform_indices = @transform_5, window_bounds = array<i64: 64, 16>}]} {
    %c0 = arith.constant 0 : index
    %c0_0 = arith.constant 0 : index
    %0 = vector.load %arg1[%c0, %c0_0] : memref<64x32xf32, #tpu.memory_space<vmem>>, vector<64x32xf32>
    %cst = arith.constant dense<0.000000e+00> : vector<64xf32>
    %1 = vector.multi_reduction <add>, %0, %cst [1] : vector<64x32xf32> to vector<64xf32>
    %2 = vector.shape_cast %1 : vector<64xf32> to vector<64x1xf32>
    %cst_1 = arith.constant 3.200000e+01 : f32
    %3 = vector.broadcast %cst_1 : f32 to vector<64x1xf32>
    %4 = arith.divf %2, %3 : vector<64x1xf32>
    %5 = vector.broadcast %4 : vector<64x1xf32> to vector<64x32xf32>
    %6 = arith.subf %0, %5 : vector<64x32xf32>
    %7 = arith.mulf %6, %6 : vector<64x32xf32>
    %cst_2 = arith.constant dense<0.000000e+00> : vector<64xf32>
    %8 = vector.multi_reduction <add>, %7, %cst_2 [1] : vector<64x32xf32> to vector<64xf32>
    %9 = vector.shape_cast %8 : vector<64xf32> to vector<64x1xf32>
    %cst_3 = arith.constant 3.200000e+01 : f32
    %10 = vector.broadcast %cst_3 : f32 to vector<64x1xf32>
    %11 = arith.divf %9, %10 : vector<64x1xf32>
    %cst_4 = arith.constant 9.99999974E-6 : f32
    %12 = vector.broadcast %cst_4 : f32 to vector<64x1xf32>
    %13 = arith.addf %11, %12 : vector<64x1xf32>
    %14 = math.rsqrt %13 : vector<64x1xf32>
    %15 = vector.broadcast %14 : vector<64x1xf32> to vector<64x32xf32>
    %16 = arith.mulf %6, %15 : vector<64x32xf32>
    %c0_5 = arith.constant 0 : index
    %c0_6 = arith.constant 0 : index
    %17 = vector.load %arg4[%c0_5, %c0_6] : memref<1x32xf32, #tpu.memory_space<vmem>>, vector<1x32xf32>
    %18 = vector.broadcast %17 : vector<1x32xf32> to vector<64x32xf32>
    %19 = arith.mulf %16, %18 : vector<64x32xf32>
    %c0_7 = arith.constant 0 : index
    %c0_8 = arith.constant 0 : index
    %20 = vector.load %arg5[%c0_7, %c0_8] : memref<1x32xf32, #tpu.memory_space<vmem>>, vector<1x32xf32>
    %21 = vector.broadcast %20 : vector<1x32xf32> to vector<64x32xf32>
    %22 = arith.addf %19, %21 : vector<64x32xf32>
    %c0_9 = arith.constant 0 : index
    %c0_10 = arith.constant 0 : index
    %23 = vector.load %arg2[%c0_9, %c0_10] : memref<32x16xf32, #tpu.memory_space<vmem>>, vector<32x16xf32>
    %cst_11 = arith.constant dense<0.000000e+00> : vector<64x16xf32>
    %24 = tpu.matmul %22, %23, %cst_11 {dimension_numbers = #tpu.dot_dimension_numbers<[1], [0], [0], [1], [0, 0, 1, 1], [], []>} : vector<64x32xf32>, vector<32x16xf32>, vector<64x16xf32> -> vector<64x16xf32>
    %c0_12 = arith.constant 0 : index
    %c0_13 = arith.constant 0 : index
    %25 = vector.load %arg3[%c0_12, %c0_13] : memref<1x16xf32, #tpu.memory_space<vmem>>, vector<1x16xf32>
    %26 = vector.broadcast %25 : vector<1x16xf32> to vector<64x16xf32>
    %27 = arith.addf %24, %26 : vector<64x16xf32>
    %c0_14 = arith.constant 0 : index
    %c0_15 = arith.constant 0 : index
    %28 = vector.load %arg6[%c0_14, %c0_15] : memref<64x16xf32, #tpu.memory_space<vmem>>, vector<64x16xf32>
    tpu.vector_store %arg6[%c0_14, %c0_15], %27 {strides = array<i32>} : memref<64x16xf32, #tpu.memory_space<vmem>>, vector<64x16xf32>,
    return
  }
  func.func @transform_0(%arg0: i32) -> (i32, i32) {
    %c0_i32 = arith.constant 0 : i32
    %c0_i32_0 = arith.constant 0 : i32
    return %arg0, %c0_i32 : i32, i32
  }
  func.func @transform_1(%arg0: i32) -> (i32, i32) {
    %c0_i32 = arith.constant 0 : i32
    %c0_i32_0 = arith.constant 0 : i32
    %c0_i32_1 = arith.constant 0 : i32
    return %c0_i32, %c0_i32_0 : i32, i32
  }
  func.func @transform_2(%arg0: i32) -> (i32, i32) {
    %c0_i32 = arith.constant 0 : i32
    %c0_i32_0 = arith.constant 0 : i32
    %c0_i32_1 = arith.constant 0 : i32
    return %c0_i32, %c0_i32_0 : i32, i32
  }
  func.func @transform_3(%arg0: i32) -> (i32, i32) {
    %c0_i32 = arith.constant 0 : i32
    %c0_i32_0 = arith.constant 0 : i32
    %c0_i32_1 = arith.constant 0 : i32
    return %c0_i32, %c0_i32_0 : i32, i32
  }
  func.func @transform_4(%arg0: i32) -> (i32, i32) {
    %c0_i32 = arith.constant 0 : i32
    %c0_i32_0 = arith.constant 0 : i32
    %c0_i32_1 = arith.constant 0 : i32
    return %c0_i32, %c0_i32_0 : i32, i32
  }
  func.func @transform_5(%arg0: i32) -> (i32, i32) {
    %c0_i32 = arith.constant 0 : i32
    %c0_i32_0 = arith.constant 0 : i32
    return %arg0, %c0_i32 : i32, i32
  }
}

module attributes {stable_mosaic.version = 11 : i64} {
  func.func @_opm_kernel(%arg0: i32, %arg1: i32, %arg2: i32, %arg3: memref<8x64xf32, #tpu.memory_space<vmem>>, %arg4: memref<8x64xf32, #tpu.memory_space<vmem>>, %arg5: memref<64x64xf32, #tpu.memory_space<vmem>>, %arg6: memref<64x64xf32, #tpu.memory_space<vmem>>) attributes {dimension_semantics = [#tpu.dimension_semantics<parallel>, #tpu.dimension_semantics<parallel>, #tpu.dimension_semantics<arbitrary>], iteration_bounds = array<i64: 1, 1, 1>, scalar_prefetch = 0 : i64, scratch_operands = 1 : i64, tpu.core_type = #tpu.core_type<tc>, window_params = [{transform_indices = @transform_0, window_bounds = array<i64: 8, 64>}, {transform_indices = @transform_1, window_bounds = array<i64: 8, 64>}, {transform_indices = @transform_2, window_bounds = array<i64: 64, 64>}]} {
    %c0_i32 = arith.constant 0 : i32
    %0 = arith.cmpi eq, %arg2, %c0_i32 : i32
    %1 = arith.extui %0 : i1 to i32
    %c0_i32_0 = arith.constant 0 : i32
    %2 = arith.cmpi ne, %1, %c0_i32_0 : i32
    scf.if %2 {
      %cst_10 = arith.constant 0.000000e+00 : f32
      %12 = vector.broadcast %cst_10 : f32 to vector<64x64xf32>
      %c0_11 = arith.constant 0 : index
      %c0_12 = arith.constant 0 : index
      %13 = vector.load %arg6[%c0_11, %c0_12] : memref<64x64xf32, #tpu.memory_space<vmem>>, vector<64x64xf32>
      tpu.vector_store %arg6[%c0_11, %c0_12], %12 {strides = array<i32>} : memref<64x64xf32, #tpu.memory_space<vmem>>, vector<64x64xf32>,
    } else {
    }
    %c0 = arith.constant 0 : index
    %c0_1 = arith.constant 0 : index
    %3 = vector.load %arg6[%c0, %c0_1] : memref<64x64xf32, #tpu.memory_space<vmem>>, vector<64x64xf32>
    %c0_2 = arith.constant 0 : index
    %c0_3 = arith.constant 0 : index
    %4 = vector.load %arg3[%c0_2, %c0_3] : memref<8x64xf32, #tpu.memory_space<vmem>>, vector<8x64xf32>
    %c0_4 = arith.constant 0 : index
    %c0_5 = arith.constant 0 : index
    %5 = vector.load %arg4[%c0_4, %c0_5] : memref<8x64xf32, #tpu.memory_space<vmem>>, vector<8x64xf32>
    %cst = arith.constant dense<0.000000e+00> : vector<64x64xf32>
    %6 = tpu.matmul %4, %5, %cst {dimension_numbers = #tpu.dot_dimension_numbers<[0], [0], [1], [1], [0, 1, 1, 1], [], []>} : vector<8x64xf32>, vector<8x64xf32>, vector<64x64xf32> -> vector<64x64xf32>
    %7 = arith.addf %3, %6 : vector<64x64xf32>
    %c0_6 = arith.constant 0 : index
    %c0_7 = arith.constant 0 : index
    %8 = vector.load %arg6[%c0_6, %c0_7] : memref<64x64xf32, #tpu.memory_space<vmem>>, vector<64x64xf32>
    tpu.vector_store %arg6[%c0_6, %c0_7], %7 {strides = array<i32>} : memref<64x64xf32, #tpu.memory_space<vmem>>, vector<64x64xf32>,
    %c0_i32_8 = arith.constant 0 : i32
    %9 = arith.cmpi eq, %arg2, %c0_i32_8 : i32
    %10 = arith.extui %9 : i1 to i32
    %c0_i32_9 = arith.constant 0 : i32
    %11 = arith.cmpi ne, %10, %c0_i32_9 : i32
    scf.if %11 {
      %c0_10 = arith.constant 0 : index
      %c0_11 = arith.constant 0 : index
      %12 = vector.load %arg6[%c0_10, %c0_11] : memref<64x64xf32, #tpu.memory_space<vmem>>, vector<64x64xf32>
      %cst_12 = arith.constant 1.250000e-01 : f32
      %13 = vector.broadcast %cst_12 : f32 to vector<64x64xf32>
      %14 = arith.mulf %12, %13 : vector<64x64xf32>
      %c0_13 = arith.constant 0 : index
      %c0_14 = arith.constant 0 : index
      %15 = vector.load %arg5[%c0_13, %c0_14] : memref<64x64xf32, #tpu.memory_space<vmem>>, vector<64x64xf32>
      tpu.vector_store %arg5[%c0_13, %c0_14], %14 {strides = array<i32>} : memref<64x64xf32, #tpu.memory_space<vmem>>, vector<64x64xf32>,
    } else {
    }
    return
  }
  func.func @transform_0(%arg0: i32, %arg1: i32, %arg2: i32) -> (i32, i32) {
    %c0_i32 = arith.constant 0 : i32
    return %arg2, %arg0 : i32, i32
  }
  func.func @transform_1(%arg0: i32, %arg1: i32, %arg2: i32) -> (i32, i32) {
    %c0_i32 = arith.constant 0 : i32
    return %arg2, %arg1 : i32, i32
  }
  func.func @transform_2(%arg0: i32, %arg1: i32, %arg2: i32) -> (i32, i32) {
    %c0_i32 = arith.constant 0 : i32
    return %arg0, %arg1 : i32, i32
  }
}

module attributes {stable_mosaic.version = 11 : i64} {
  func.func @_fused_linear_kernel(%arg0: i32, %arg1: memref<64x64xf32, #tpu.memory_space<vmem>>, %arg2: memref<64x16xf32, #tpu.memory_space<vmem>>, %arg3: memref<1x16xf32, #tpu.memory_space<vmem>>, %arg4: memref<64x16xf32, #tpu.memory_space<vmem>>, %arg5: memref<64x16xf32, #tpu.memory_space<vmem>>) attributes {dimension_semantics = [#tpu.dimension_semantics<parallel>], iteration_bounds = array<i64: 1>, scalar_prefetch = 0 : i64, scratch_operands = 0 : i64, tpu.core_type = #tpu.core_type<tc>, window_params = [{transform_indices = @transform_0, window_bounds = array<i64: 64, 64>}, {pipeline_mode = #tpu.pipeline_mode<synchronous>, transform_indices = @transform_1, window_bounds = array<i64: 64, 16>}, {pipeline_mode = #tpu.pipeline_mode<synchronous>, transform_indices = @transform_2, window_bounds = array<i64: 1, 16>}, {transform_indices = @transform_3, window_bounds = array<i64: 64, 16>}, {transform_indices = @transform_4, window_bounds = array<i64: 64, 16>}]} {
    %c0 = arith.constant 0 : index
    %c0_0 = arith.constant 0 : index
    %0 = vector.load %arg1[%c0, %c0_0] : memref<64x64xf32, #tpu.memory_space<vmem>>, vector<64x64xf32>
    %c0_1 = arith.constant 0 : index
    %c0_2 = arith.constant 0 : index
    %1 = vector.load %arg2[%c0_1, %c0_2] : memref<64x16xf32, #tpu.memory_space<vmem>>, vector<64x16xf32>
    %cst = arith.constant dense<0.000000e+00> : vector<64x16xf32>
    %2 = tpu.matmul %0, %1, %cst {dimension_numbers = #tpu.dot_dimension_numbers<[1], [0], [0], [1], [0, 0, 1, 1], [], []>} : vector<64x64xf32>, vector<64x16xf32>, vector<64x16xf32> -> vector<64x16xf32>
    %c0_3 = arith.constant 0 : index
    %c0_4 = arith.constant 0 : index
    %3 = vector.load %arg3[%c0_3, %c0_4] : memref<1x16xf32, #tpu.memory_space<vmem>>, vector<1x16xf32>
    %4 = vector.broadcast %3 : vector<1x16xf32> to vector<64x16xf32>
    %5 = arith.addf %2, %4 : vector<64x16xf32>
    %c0_5 = arith.constant 0 : index
    %c0_6 = arith.constant 0 : index
    %6 = vector.load %arg4[%c0_5, %c0_6] : memref<64x16xf32, #tpu.memory_space<vmem>>, vector<64x16xf32>
    %7 = arith.addf %5, %6 : vector<64x16xf32>
    %c0_7 = arith.constant 0 : index
    %c0_8 = arith.constant 0 : index
    %8 = vector.load %arg5[%c0_7, %c0_8] : memref<64x16xf32, #tpu.memory_space<vmem>>, vector<64x16xf32>
    tpu.vector_store %arg5[%c0_7, %c0_8], %7 {strides = array<i32>} : memref<64x16xf32, #tpu.memory_space<vmem>>, vector<64x16xf32>,
    return
  }
  func.func @transform_0(%arg0: i32) -> (i32, i32) {
    %c0_i32 = arith.constant 0 : i32
    %c0_i32_0 = arith.constant 0 : i32
    return %arg0, %c0_i32 : i32, i32
  }
  func.func @transform_1(%arg0: i32) -> (i32, i32) {
    %c0_i32 = arith.constant 0 : i32
    %c0_i32_0 = arith.constant 0 : i32
    %c0_i32_1 = arith.constant 0 : i32
    return %c0_i32, %c0_i32_0 : i32, i32
  }
  func.func @transform_2(%arg0: i32) -> (i32, i32) {
    %c0_i32 = arith.constant 0 : i32
    %c0_i32_0 = arith.constant 0 : i32
    %c0_i32_1 = arith.constant 0 : i32
    return %c0_i32, %c0_i32_0 : i32, i32
  }
  func.func @transform_3(%arg0: i32) -> (i32, i32) {
    %c0_i32 = arith.constant 0 : i32
    %c0_i32_0 = arith.constant 0 : i32
    return %arg0, %c0_i32 : i32, i32
  }
  func.func @transform_4(%arg0: i32) -> (i32, i32) {
    %c0_i32 = arith.constant 0 : i32
    %c0_i32_0 = arith.constant 0 : i32
    return %arg0, %c0_i32 : i32, i32
  }
}

module attributes {stable_mosaic.version = 11 : i64} {
  func.func @_fused_linear_kernel(%arg0: i32, %arg1: memref<64x16xf32, #tpu.memory_space<vmem>>, %arg2: memref<16x80xf32, #tpu.memory_space<vmem>>, %arg3: memref<1x80xf32, #tpu.memory_space<vmem>>, %arg4: memref<1x16xf32, #tpu.memory_space<vmem>>, %arg5: memref<1x16xf32, #tpu.memory_space<vmem>>, %arg6: memref<64x80xf32, #tpu.memory_space<vmem>>) attributes {dimension_semantics = [#tpu.dimension_semantics<parallel>], iteration_bounds = array<i64: 1>, scalar_prefetch = 0 : i64, scratch_operands = 0 : i64, tpu.core_type = #tpu.core_type<tc>, window_params = [{transform_indices = @transform_0, window_bounds = array<i64: 64, 16>}, {pipeline_mode = #tpu.pipeline_mode<synchronous>, transform_indices = @transform_1, window_bounds = array<i64: 16, 80>}, {pipeline_mode = #tpu.pipeline_mode<synchronous>, transform_indices = @transform_2, window_bounds = array<i64: 1, 80>}, {pipeline_mode = #tpu.pipeline_mode<synchronous>, transform_indices = @transform_3, window_bounds = array<i64: 1, 16>}, {pipeline_mode = #tpu.pipeline_mode<synchronous>, transform_indices = @transform_4, window_bounds = array<i64: 1, 16>}, {transform_indices = @transform_5, window_bounds = array<i64: 64, 80>}]} {
    %c0 = arith.constant 0 : index
    %c0_0 = arith.constant 0 : index
    %0 = vector.load %arg1[%c0, %c0_0] : memref<64x16xf32, #tpu.memory_space<vmem>>, vector<64x16xf32>
    %cst = arith.constant dense<0.000000e+00> : vector<64xf32>
    %1 = vector.multi_reduction <add>, %0, %cst [1] : vector<64x16xf32> to vector<64xf32>
    %2 = vector.shape_cast %1 : vector<64xf32> to vector<64x1xf32>
    %cst_1 = arith.constant 1.600000e+01 : f32
    %3 = vector.broadcast %cst_1 : f32 to vector<64x1xf32>
    %4 = arith.divf %2, %3 : vector<64x1xf32>
    %5 = vector.broadcast %4 : vector<64x1xf32> to vector<64x16xf32>
    %6 = arith.subf %0, %5 : vector<64x16xf32>
    %7 = arith.mulf %6, %6 : vector<64x16xf32>
    %cst_2 = arith.constant dense<0.000000e+00> : vector<64xf32>
    %8 = vector.multi_reduction <add>, %7, %cst_2 [1] : vector<64x16xf32> to vector<64xf32>
    %9 = vector.shape_cast %8 : vector<64xf32> to vector<64x1xf32>
    %cst_3 = arith.constant 1.600000e+01 : f32
    %10 = vector.broadcast %cst_3 : f32 to vector<64x1xf32>
    %11 = arith.divf %9, %10 : vector<64x1xf32>
    %cst_4 = arith.constant 9.99999974E-6 : f32
    %12 = vector.broadcast %cst_4 : f32 to vector<64x1xf32>
    %13 = arith.addf %11, %12 : vector<64x1xf32>
    %14 = math.rsqrt %13 : vector<64x1xf32>
    %15 = vector.broadcast %14 : vector<64x1xf32> to vector<64x16xf32>
    %16 = arith.mulf %6, %15 : vector<64x16xf32>
    %c0_5 = arith.constant 0 : index
    %c0_6 = arith.constant 0 : index
    %17 = vector.load %arg4[%c0_5, %c0_6] : memref<1x16xf32, #tpu.memory_space<vmem>>, vector<1x16xf32>
    %18 = vector.broadcast %17 : vector<1x16xf32> to vector<64x16xf32>
    %19 = arith.mulf %16, %18 : vector<64x16xf32>
    %c0_7 = arith.constant 0 : index
    %c0_8 = arith.constant 0 : index
    %20 = vector.load %arg5[%c0_7, %c0_8] : memref<1x16xf32, #tpu.memory_space<vmem>>, vector<1x16xf32>
    %21 = vector.broadcast %20 : vector<1x16xf32> to vector<64x16xf32>
    %22 = arith.addf %19, %21 : vector<64x16xf32>
    %c0_9 = arith.constant 0 : index
    %c0_10 = arith.constant 0 : index
    %23 = vector.load %arg2[%c0_9, %c0_10] : memref<16x80xf32, #tpu.memory_space<vmem>>, vector<16x80xf32>
    %cst_11 = arith.constant dense<0.000000e+00> : vector<64x80xf32>
    %24 = tpu.matmul %22, %23, %cst_11 {dimension_numbers = #tpu.dot_dimension_numbers<[1], [0], [0], [1], [0, 0, 1, 1], [], []>} : vector<64x16xf32>, vector<16x80xf32>, vector<64x80xf32> -> vector<64x80xf32>
    %c0_12 = arith.constant 0 : index
    %c0_13 = arith.constant 0 : index
    %25 = vector.load %arg3[%c0_12, %c0_13] : memref<1x80xf32, #tpu.memory_space<vmem>>, vector<1x80xf32>
    %26 = vector.broadcast %25 : vector<1x80xf32> to vector<64x80xf32>
    %27 = arith.addf %24, %26 : vector<64x80xf32>
    %c0_14 = arith.constant 0 : index
    %c0_15 = arith.constant 0 : index
    %28 = vector.load %arg6[%c0_14, %c0_15] : memref<64x80xf32, #tpu.memory_space<vmem>>, vector<64x80xf32>
    tpu.vector_store %arg6[%c0_14, %c0_15], %27 {strides = array<i32>} : memref<64x80xf32, #tpu.memory_space<vmem>>, vector<64x80xf32>,
    return
  }
  func.func @transform_0(%arg0: i32) -> (i32, i32) {
    %c0_i32 = arith.constant 0 : i32
    %c0_i32_0 = arith.constant 0 : i32
    return %arg0, %c0_i32 : i32, i32
  }
  func.func @transform_1(%arg0: i32) -> (i32, i32) {
    %c0_i32 = arith.constant 0 : i32
    %c0_i32_0 = arith.constant 0 : i32
    %c0_i32_1 = arith.constant 0 : i32
    return %c0_i32, %c0_i32_0 : i32, i32
  }
  func.func @transform_2(%arg0: i32) -> (i32, i32) {
    %c0_i32 = arith.constant 0 : i32
    %c0_i32_0 = arith.constant 0 : i32
    %c0_i32_1 = arith.constant 0 : i32
    return %c0_i32, %c0_i32_0 : i32, i32
  }
  func.func @transform_3(%arg0: i32) -> (i32, i32) {
    %c0_i32 = arith.constant 0 : i32
    %c0_i32_0 = arith.constant 0 : i32
    %c0_i32_1 = arith.constant 0 : i32
    return %c0_i32, %c0_i32_0 : i32, i32
  }
  func.func @transform_4(%arg0: i32) -> (i32, i32) {
    %c0_i32 = arith.constant 0 : i32
    %c0_i32_0 = arith.constant 0 : i32
    %c0_i32_1 = arith.constant 0 : i32
    return %c0_i32, %c0_i32_0 : i32, i32
  }
  func.func @transform_5(%arg0: i32) -> (i32, i32) {
    %c0_i32 = arith.constant 0 : i32
    %c0_i32_0 = arith.constant 0 : i32
    return %arg0, %c0_i32 : i32, i32
  }
}

module attributes {stable_mosaic.version = 11 : i64} {
  func.func @_trimul_kernel(%arg0: i32, %arg1: memref<8x8x8xf32, #tpu.memory_space<vmem>>, %arg2: memref<8x8x8xf32, #tpu.memory_space<vmem>>, %arg3: memref<8x8x8xf32, #tpu.memory_space<vmem>>) attributes {dimension_semantics = [#tpu.dimension_semantics<parallel>], iteration_bounds = array<i64: 2>, scalar_prefetch = 0 : i64, scratch_operands = 0 : i64, tpu.core_type = #tpu.core_type<tc>, window_params = [{transform_indices = @transform_0, window_bounds = array<i64: 8, 8, 8>}, {transform_indices = @transform_1, window_bounds = array<i64: 8, 8, 8>}, {transform_indices = @transform_2, window_bounds = array<i64: 8, 8, 8>}]} {
    %c0 = arith.constant 0 : index
    %c0_0 = arith.constant 0 : index
    %c0_1 = arith.constant 0 : index
    %0 = vector.load %arg1[%c0, %c0_0, %c0_1] : memref<8x8x8xf32, #tpu.memory_space<vmem>>, vector<1x8x8xf32>
    %1 = vector.shape_cast %0 : vector<1x8x8xf32> to vector<8x8xf32>
    %c0_2 = arith.constant 0 : index
    %c0_3 = arith.constant 0 : index
    %c0_4 = arith.constant 0 : index
    %2 = vector.load %arg2[%c0_2, %c0_3, %c0_4] : memref<8x8x8xf32, #tpu.memory_space<vmem>>, vector<1x8x8xf32>
    %3 = vector.shape_cast %2 : vector<1x8x8xf32> to vector<8x8xf32>
    %4 = tpu.transpose %3, [1, 0] : vector<8x8xf32> -> vector<8x8xf32>
    %cst = arith.constant dense<0.000000e+00> : vector<8x8xf32>
    %5 = tpu.matmul %1, %4, %cst {dimension_numbers = #tpu.dot_dimension_numbers<[1], [0], [0], [1], [0, 0, 1, 1], [], []>} : vector<8x8xf32>, vector<8x8xf32>, vector<8x8xf32> -> vector<8x8xf32>
    %c0_5 = arith.constant 0 : index
    %c0_6 = arith.constant 0 : index
    %c0_7 = arith.constant 0 : index
    %6 = vector.load %arg3[%c0_5, %c0_6, %c0_7] : memref<8x8x8xf32, #tpu.memory_space<vmem>>, vector<1x8x8xf32>
    %7 = vector.shape_cast %6 : vector<1x8x8xf32> to vector<8x8xf32>
    %8 = vector.shape_cast %5 : vector<8x8xf32> to vector<1x8x8xf32>
    tpu.vector_store %arg3[%c0_5, %c0_6, %c0_7], %8 {strides = array<i32>} : memref<8x8x8xf32, #tpu.memory_space<vmem>>, vector<1x8x8xf32>,
    %c1 = arith.constant 1 : index
    %c0_8 = arith.constant 0 : index
    %c0_9 = arith.constant 0 : index
    %9 = vector.load %arg1[%c1, %c0_8, %c0_9] : memref<8x8x8xf32, #tpu.memory_space<vmem>>, vector<1x8x8xf32>
    %10 = vector.shape_cast %9 : vector<1x8x8xf32> to vector<8x8xf32>
    %c1_10 = arith.constant 1 : index
    %c0_11 = arith.constant 0 : index
    %c0_12 = arith.constant 0 : index
    %11 = vector.load %arg2[%c1_10, %c0_11, %c0_12] : memref<8x8x8xf32, #tpu.memory_space<vmem>>, vector<1x8x8xf32>
    %12 = vector.shape_cast %11 : vector<1x8x8xf32> to vector<8x8xf32>
    %13 = tpu.transpose %12, [1, 0] : vector<8x8xf32> -> vector<8x8xf32>
    %cst_13 = arith.constant dense<0.000000e+00> : vector<8x8xf32>
    %14 = tpu.matmul %10, %13, %cst_13 {dimension_numbers = #tpu.dot_dimension_numbers<[1], [0], [0], [1], [0, 0, 1, 1], [], []>} : vector<8x8xf32>, vector<8x8xf32>, vector<8x8xf32> -> vector<8x8xf32>
    %c1_14 = arith.constant 1 : index
    %c0_15 = arith.constant 0 : index
    %c0_16 = arith.constant 0 : index
    %15 = vector.load %arg3[%c1_14, %c0_15, %c0_16] : memref<8x8x8xf32, #tpu.memory_space<vmem>>, vector<1x8x8xf32>
    %16 = vector.shape_cast %15 : vector<1x8x8xf32> to vector<8x8xf32>
    %17 = vector.shape_cast %14 : vector<8x8xf32> to vector<1x8x8xf32>
    tpu.vector_store %arg3[%c1_14, %c0_15, %c0_16], %17 {strides = array<i32>} : memref<8x8x8xf32, #tpu.memory_space<vmem>>, vector<1x8x8xf32>,
    %c2 = arith.constant 2 : index
    %c0_17 = arith.constant 0 : index
    %c0_18 = arith.constant 0 : index
    %18 = vector.load %arg1[%c2, %c0_17, %c0_18] : memref<8x8x8xf32, #tpu.memory_space<vmem>>, vector<1x8x8xf32>
    %19 = vector.shape_cast %18 : vector<1x8x8xf32> to vector<8x8xf32>
    %c2_19 = arith.constant 2 : index
    %c0_20 = arith.constant 0 : index
    %c0_21 = arith.constant 0 : index
    %20 = vector.load %arg2[%c2_19, %c0_20, %c0_21] : memref<8x8x8xf32, #tpu.memory_space<vmem>>, vector<1x8x8xf32>
    %21 = vector.shape_cast %20 : vector<1x8x8xf32> to vector<8x8xf32>
    %22 = tpu.transpose %21, [1, 0] : vector<8x8xf32> -> vector<8x8xf32>
    %cst_22 = arith.constant dense<0.000000e+00> : vector<8x8xf32>
    %23 = tpu.matmul %19, %22, %cst_22 {dimension_numbers = #tpu.dot_dimension_numbers<[1], [0], [0], [1], [0, 0, 1, 1], [], []>} : vector<8x8xf32>, vector<8x8xf32>, vector<8x8xf32> -> vector<8x8xf32>
    %c2_23 = arith.constant 2 : index
    %c0_24 = arith.constant 0 : index
    %c0_25 = arith.constant 0 : index
    %24 = vector.load %arg3[%c2_23, %c0_24, %c0_25] : memref<8x8x8xf32, #tpu.memory_space<vmem>>, vector<1x8x8xf32>
    %25 = vector.shape_cast %24 : vector<1x8x8xf32> to vector<8x8xf32>
    %26 = vector.shape_cast %23 : vector<8x8xf32> to vector<1x8x8xf32>
    tpu.vector_store %arg3[%c2_23, %c0_24, %c0_25], %26 {strides = array<i32>} : memref<8x8x8xf32, #tpu.memory_space<vmem>>, vector<1x8x8xf32>,
    %c3 = arith.constant 3 : index
    %c0_26 = arith.constant 0 : index
    %c0_27 = arith.constant 0 : index
    %27 = vector.load %arg1[%c3, %c0_26, %c0_27] : memref<8x8x8xf32, #tpu.memory_space<vmem>>, vector<1x8x8xf32>
    %28 = vector.shape_cast %27 : vector<1x8x8xf32> to vector<8x8xf32>
    %c3_28 = arith.constant 3 : index
    %c0_29 = arith.constant 0 : index
    %c0_30 = arith.constant 0 : index
    %29 = vector.load %arg2[%c3_28, %c0_29, %c0_30] : memref<8x8x8xf32, #tpu.memory_space<vmem>>, vector<1x8x8xf32>
    %30 = vector.shape_cast %29 : vector<1x8x8xf32> to vector<8x8xf32>
    %31 = tpu.transpose %30, [1, 0] : vector<8x8xf32> -> vector<8x8xf32>
    %cst_31 = arith.constant dense<0.000000e+00> : vector<8x8xf32>
    %32 = tpu.matmul %28, %31, %cst_31 {dimension_numbers = #tpu.dot_dimension_numbers<[1], [0], [0], [1], [0, 0, 1, 1], [], []>} : vector<8x8xf32>, vector<8x8xf32>, vector<8x8xf32> -> vector<8x8xf32>
    %c3_32 = arith.constant 3 : index
    %c0_33 = arith.constant 0 : index
    %c0_34 = arith.constant 0 : index
    %33 = vector.load %arg3[%c3_32, %c0_33, %c0_34] : memref<8x8x8xf32, #tpu.memory_space<vmem>>, vector<1x8x8xf32>
    %34 = vector.shape_cast %33 : vector<1x8x8xf32> to vector<8x8xf32>
    %35 = vector.shape_cast %32 : vector<8x8xf32> to vector<1x8x8xf32>
    tpu.vector_store %arg3[%c3_32, %c0_33, %c0_34], %35 {strides = array<i32>} : memref<8x8x8xf32, #tpu.memory_space<vmem>>, vector<1x8x8xf32>,
    %c4 = arith.constant 4 : index
    %c0_35 = arith.constant 0 : index
    %c0_36 = arith.constant 0 : index
    %36 = vector.load %arg1[%c4, %c0_35, %c0_36] : memref<8x8x8xf32, #tpu.memory_space<vmem>>, vector<1x8x8xf32>
    %37 = vector.shape_cast %36 : vector<1x8x8xf32> to vector<8x8xf32>
    %c4_37 = arith.constant 4 : index
    %c0_38 = arith.constant 0 : index
    %c0_39 = arith.constant 0 : index
    %38 = vector.load %arg2[%c4_37, %c0_38, %c0_39] : memref<8x8x8xf32, #tpu.memory_space<vmem>>, vector<1x8x8xf32>
    %39 = vector.shape_cast %38 : vector<1x8x8xf32> to vector<8x8xf32>
    %40 = tpu.transpose %39, [1, 0] : vector<8x8xf32> -> vector<8x8xf32>
    %cst_40 = arith.constant dense<0.000000e+00> : vector<8x8xf32>
    %41 = tpu.matmul %37, %40, %cst_40 {dimension_numbers = #tpu.dot_dimension_numbers<[1], [0], [0], [1], [0, 0, 1, 1], [], []>} : vector<8x8xf32>, vector<8x8xf32>, vector<8x8xf32> -> vector<8x8xf32>
    %c4_41 = arith.constant 4 : index
    %c0_42 = arith.constant 0 : index
    %c0_43 = arith.constant 0 : index
    %42 = vector.load %arg3[%c4_41, %c0_42, %c0_43] : memref<8x8x8xf32, #tpu.memory_space<vmem>>, vector<1x8x8xf32>
    %43 = vector.shape_cast %42 : vector<1x8x8xf32> to vector<8x8xf32>
    %44 = vector.shape_cast %41 : vector<8x8xf32> to vector<1x8x8xf32>
    tpu.vector_store %arg3[%c4_41, %c0_42, %c0_43], %44 {strides = array<i32>} : memref<8x8x8xf32, #tpu.memory_space<vmem>>, vector<1x8x8xf32>,
    %c5 = arith.constant 5 : index
    %c0_44 = arith.constant 0 : index
    %c0_45 = arith.constant 0 : index
    %45 = vector.load %arg1[%c5, %c0_44, %c0_45] : memref<8x8x8xf32, #tpu.memory_space<vmem>>, vector<1x8x8xf32>
    %46 = vector.shape_cast %45 : vector<1x8x8xf32> to vector<8x8xf32>
    %c5_46 = arith.constant 5 : index
    %c0_47 = arith.constant 0 : index
    %c0_48 = arith.constant 0 : index
    %47 = vector.load %arg2[%c5_46, %c0_47, %c0_48] : memref<8x8x8xf32, #tpu.memory_space<vmem>>, vector<1x8x8xf32>
    %48 = vector.shape_cast %47 : vector<1x8x8xf32> to vector<8x8xf32>
    %49 = tpu.transpose %48, [1, 0] : vector<8x8xf32> -> vector<8x8xf32>
    %cst_49 = arith.constant dense<0.000000e+00> : vector<8x8xf32>
    %50 = tpu.matmul %46, %49, %cst_49 {dimension_numbers = #tpu.dot_dimension_numbers<[1], [0], [0], [1], [0, 0, 1, 1], [], []>} : vector<8x8xf32>, vector<8x8xf32>, vector<8x8xf32> -> vector<8x8xf32>
    %c5_50 = arith.constant 5 : index
    %c0_51 = arith.constant 0 : index
    %c0_52 = arith.constant 0 : index
    %51 = vector.load %arg3[%c5_50, %c0_51, %c0_52] : memref<8x8x8xf32, #tpu.memory_space<vmem>>, vector<1x8x8xf32>
    %52 = vector.shape_cast %51 : vector<1x8x8xf32> to vector<8x8xf32>
    %53 = vector.shape_cast %50 : vector<8x8xf32> to vector<1x8x8xf32>
    tpu.vector_store %arg3[%c5_50, %c0_51, %c0_52], %53 {strides = array<i32>} : memref<8x8x8xf32, #tpu.memory_space<vmem>>, vector<1x8x8xf32>,
    %c6 = arith.constant 6 : index
    %c0_53 = arith.constant 0 : index
    %c0_54 = arith.constant 0 : index
    %54 = vector.load %arg1[%c6, %c0_53, %c0_54] : memref<8x8x8xf32, #tpu.memory_space<vmem>>, vector<1x8x8xf32>
    %55 = vector.shape_cast %54 : vector<1x8x8xf32> to vector<8x8xf32>
    %c6_55 = arith.constant 6 : index
    %c0_56 = arith.constant 0 : index
    %c0_57 = arith.constant 0 : index
    %56 = vector.load %arg2[%c6_55, %c0_56, %c0_57] : memref<8x8x8xf32, #tpu.memory_space<vmem>>, vector<1x8x8xf32>
    %57 = vector.shape_cast %56 : vector<1x8x8xf32> to vector<8x8xf32>
    %58 = tpu.transpose %57, [1, 0] : vector<8x8xf32> -> vector<8x8xf32>
    %cst_58 = arith.constant dense<0.000000e+00> : vector<8x8xf32>
    %59 = tpu.matmul %55, %58, %cst_58 {dimension_numbers = #tpu.dot_dimension_numbers<[1], [0], [0], [1], [0, 0, 1, 1], [], []>} : vector<8x8xf32>, vector<8x8xf32>, vector<8x8xf32> -> vector<8x8xf32>
    %c6_59 = arith.constant 6 : index
    %c0_60 = arith.constant 0 : index
    %c0_61 = arith.constant 0 : index
    %60 = vector.load %arg3[%c6_59, %c0_60, %c0_61] : memref<8x8x8xf32, #tpu.memory_space<vmem>>, vector<1x8x8xf32>
    %61 = vector.shape_cast %60 : vector<1x8x8xf32> to vector<8x8xf32>
    %62 = vector.shape_cast %59 : vector<8x8xf32> to vector<1x8x8xf32>
    tpu.vector_store %arg3[%c6_59, %c0_60, %c0_61], %62 {strides = array<i32>} : memref<8x8x8xf32, #tpu.memory_space<vmem>>, vector<1x8x8xf32>,
    %c7 = arith.constant 7 : index
    %c0_62 = arith.constant 0 : index
    %c0_63 = arith.constant 0 : index
    %63 = vector.load %arg1[%c7, %c0_62, %c0_63] : memref<8x8x8xf32, #tpu.memory_space<vmem>>, vector<1x8x8xf32>
    %64 = vector.shape_cast %63 : vector<1x8x8xf32> to vector<8x8xf32>
    %c7_64 = arith.constant 7 : index
    %c0_65 = arith.constant 0 : index
    %c0_66 = arith.constant 0 : index
    %65 = vector.load %arg2[%c7_64, %c0_65, %c0_66] : memref<8x8x8xf32, #tpu.memory_space<vmem>>, vector<1x8x8xf32>
    %66 = vector.shape_cast %65 : vector<1x8x8xf32> to vector<8x8xf32>
    %67 = tpu.transpose %66, [1, 0] : vector<8x8xf32> -> vector<8x8xf32>
    %cst_67 = arith.constant dense<0.000000e+00> : vector<8x8xf32>
    %68 = tpu.matmul %64, %67, %cst_67 {dimension_numbers = #tpu.dot_dimension_numbers<[1], [0], [0], [1], [0, 0, 1, 1], [], []>} : vector<8x8xf32>, vector<8x8xf32>, vector<8x8xf32> -> vector<8x8xf32>
    %c7_68 = arith.constant 7 : index
    %c0_69 = arith.constant 0 : index
    %c0_70 = arith.constant 0 : index
    %69 = vector.load %arg3[%c7_68, %c0_69, %c0_70] : memref<8x8x8xf32, #tpu.memory_space<vmem>>, vector<1x8x8xf32>
    %70 = vector.shape_cast %69 : vector<1x8x8xf32> to vector<8x8xf32>
    %71 = vector.shape_cast %68 : vector<8x8xf32> to vector<1x8x8xf32>
    tpu.vector_store %arg3[%c7_68, %c0_69, %c0_70], %71 {strides = array<i32>} : memref<8x8x8xf32, #tpu.memory_space<vmem>>, vector<1x8x8xf32>,
    return
  }
  func.func @transform_0(%arg0: i32) -> (i32, i32, i32) {
    %c0_i32 = arith.constant 0 : i32
    %c0_i32_0 = arith.constant 0 : i32
    %c0_i32_1 = arith.constant 0 : i32
    return %arg0, %c0_i32, %c0_i32_0 : i32, i32, i32
  }
  func.func @transform_1(%arg0: i32) -> (i32, i32, i32) {
    %c0_i32 = arith.constant 0 : i32
    %c0_i32_0 = arith.constant 0 : i32
    %c0_i32_1 = arith.constant 0 : i32
    return %arg0, %c0_i32, %c0_i32_0 : i32, i32, i32
  }
  func.func @transform_2(%arg0: i32) -> (i32, i32, i32) {
    %c0_i32 = arith.constant 0 : i32
    %c0_i32_0 = arith.constant 0 : i32
    %c0_i32_1 = arith.constant 0 : i32
    return %arg0, %c0_i32, %c0_i32_0 : i32, i32, i32
  }
}

module attributes {stable_mosaic.version = 11 : i64} {
  func.func @_fused_linear_kernel(%arg0: i32, %arg1: memref<64x16xf32, #tpu.memory_space<vmem>>, %arg2: memref<16x16xf32, #tpu.memory_space<vmem>>, %arg3: memref<1x16xf32, #tpu.memory_space<vmem>>, %arg4: memref<1x16xf32, #tpu.memory_space<vmem>>, %arg5: memref<1x16xf32, #tpu.memory_space<vmem>>, %arg6: memref<64x16xf32, #tpu.memory_space<vmem>>, %arg7: memref<64x16xf32, #tpu.memory_space<vmem>>, %arg8: memref<64x16xf32, #tpu.memory_space<vmem>>) attributes {dimension_semantics = [#tpu.dimension_semantics<parallel>], iteration_bounds = array<i64: 1>, scalar_prefetch = 0 : i64, scratch_operands = 0 : i64, tpu.core_type = #tpu.core_type<tc>, window_params = [{transform_indices = @transform_0, window_bounds = array<i64: 64, 16>}, {pipeline_mode = #tpu.pipeline_mode<synchronous>, transform_indices = @transform_1, window_bounds = array<i64: 16, 16>}, {pipeline_mode = #tpu.pipeline_mode<synchronous>, transform_indices = @transform_2, window_bounds = array<i64: 1, 16>}, {pipeline_mode = #tpu.pipeline_mode<synchronous>, transform_indices = @transform_3, window_bounds = array<i64: 1, 16>}, {pipeline_mode = #tpu.pipeline_mode<synchronous>, transform_indices = @transform_4, window_bounds = array<i64: 1, 16>}, {transform_indices = @transform_5, window_bounds = array<i64: 64, 16>}, {transform_indices = @transform_6, window_bounds = array<i64: 64, 16>}, {transform_indices = @transform_7, window_bounds = array<i64: 64, 16>}]} {
    %c0 = arith.constant 0 : index
    %c0_0 = arith.constant 0 : index
    %0 = vector.load %arg1[%c0, %c0_0] : memref<64x16xf32, #tpu.memory_space<vmem>>, vector<64x16xf32>
    %cst = arith.constant dense<0.000000e+00> : vector<64xf32>
    %1 = vector.multi_reduction <add>, %0, %cst [1] : vector<64x16xf32> to vector<64xf32>
    %2 = vector.shape_cast %1 : vector<64xf32> to vector<64x1xf32>
    %cst_1 = arith.constant 1.600000e+01 : f32
    %3 = vector.broadcast %cst_1 : f32 to vector<64x1xf32>
    %4 = arith.divf %2, %3 : vector<64x1xf32>
    %5 = vector.broadcast %4 : vector<64x1xf32> to vector<64x16xf32>
    %6 = arith.subf %0, %5 : vector<64x16xf32>
    %7 = arith.mulf %6, %6 : vector<64x16xf32>
    %cst_2 = arith.constant dense<0.000000e+00> : vector<64xf32>
    %8 = vector.multi_reduction <add>, %7, %cst_2 [1] : vector<64x16xf32> to vector<64xf32>
    %9 = vector.shape_cast %8 : vector<64xf32> to vector<64x1xf32>
    %cst_3 = arith.constant 1.600000e+01 : f32
    %10 = vector.broadcast %cst_3 : f32 to vector<64x1xf32>
    %11 = arith.divf %9, %10 : vector<64x1xf32>
    %cst_4 = arith.constant 9.99999974E-6 : f32
    %12 = vector.broadcast %cst_4 : f32 to vector<64x1xf32>
    %13 = arith.addf %11, %12 : vector<64x1xf32>
    %14 = math.rsqrt %13 : vector<64x1xf32>
    %15 = vector.broadcast %14 : vector<64x1xf32> to vector<64x16xf32>
    %16 = arith.mulf %6, %15 : vector<64x16xf32>
    %c0_5 = arith.constant 0 : index
    %c0_6 = arith.constant 0 : index
    %17 = vector.load %arg4[%c0_5, %c0_6] : memref<1x16xf32, #tpu.memory_space<vmem>>, vector<1x16xf32>
    %18 = vector.broadcast %17 : vector<1x16xf32> to vector<64x16xf32>
    %19 = arith.mulf %16, %18 : vector<64x16xf32>
    %c0_7 = arith.constant 0 : index
    %c0_8 = arith.constant 0 : index
    %20 = vector.load %arg5[%c0_7, %c0_8] : memref<1x16xf32, #tpu.memory_space<vmem>>, vector<1x16xf32>
    %21 = vector.broadcast %20 : vector<1x16xf32> to vector<64x16xf32>
    %22 = arith.addf %19, %21 : vector<64x16xf32>
    %c0_9 = arith.constant 0 : index
    %c0_10 = arith.constant 0 : index
    %23 = vector.load %arg2[%c0_9, %c0_10] : memref<16x16xf32, #tpu.memory_space<vmem>>, vector<16x16xf32>
    %cst_11 = arith.constant dense<0.000000e+00> : vector<64x16xf32>
    %24 = tpu.matmul %22, %23, %cst_11 {dimension_numbers = #tpu.dot_dimension_numbers<[1], [0], [0], [1], [0, 0, 1, 1], [], []>} : vector<64x16xf32>, vector<16x16xf32>, vector<64x16xf32> -> vector<64x16xf32>
    %c0_12 = arith.constant 0 : index
    %c0_13 = arith.constant 0 : index
    %25 = vector.load %arg3[%c0_12, %c0_13] : memref<1x16xf32, #tpu.memory_space<vmem>>, vector<1x16xf32>
    %26 = vector.broadcast %25 : vector<1x16xf32> to vector<64x16xf32>
    %27 = arith.addf %24, %26 : vector<64x16xf32>
    %c0_14 = arith.constant 0 : index
    %c0_15 = arith.constant 0 : index
    %28 = vector.load %arg6[%c0_14, %c0_15] : memref<64x16xf32, #tpu.memory_space<vmem>>, vector<64x16xf32>
    %29 = arith.negf %28 : vector<64x16xf32>
    %30 = math.exp %29 : vector<64x16xf32>
    %cst_16 = arith.constant 1.000000e+00 : f32
    %31 = vector.broadcast %cst_16 : f32 to vector<64x16xf32>
    %32 = arith.addf %31, %30 : vector<64x16xf32>
    %33 = arith.divf %31, %32 : vector<64x16xf32>
    %34 = arith.mulf %27, %33 : vector<64x16xf32>
    %c0_17 = arith.constant 0 : index
    %c0_18 = arith.constant 0 : index
    %35 = vector.load %arg7[%c0_17, %c0_18] : memref<64x16xf32, #tpu.memory_space<vmem>>, vector<64x16xf32>
    %36 = arith.addf %34, %35 : vector<64x16xf32>
    %c0_19 = arith.constant 0 : index
    %c0_20 = arith.constant 0 : index
    %37 = vector.load %arg8[%c0_19, %c0_20] : memref<64x16xf32, #tpu.memory_space<vmem>>, vector<64x16xf32>
    tpu.vector_store %arg8[%c0_19, %c0_20], %36 {strides = array<i32>} : memref<64x16xf32, #tpu.memory_space<vmem>>, vector<64x16xf32>,
    return
  }
  func.func @transform_0(%arg0: i32) -> (i32, i32) {
    %c0_i32 = arith.constant 0 : i32
    %c0_i32_0 = arith.constant 0 : i32
    return %arg0, %c0_i32 : i32, i32
  }
  func.func @transform_1(%arg0: i32) -> (i32, i32) {
    %c0_i32 = arith.constant 0 : i32
    %c0_i32_0 = arith.constant 0 : i32
    %c0_i32_1 = arith.constant 0 : i32
    return %c0_i32, %c0_i32_0 : i32, i32
  }
  func.func @transform_2(%arg0: i32) -> (i32, i32) {
    %c0_i32 = arith.constant 0 : i32
    %c0_i32_0 = arith.constant 0 : i32
    %c0_i32_1 = arith.constant 0 : i32
    return %c0_i32, %c0_i32_0 : i32, i32
  }
  func.func @transform_3(%arg0: i32) -> (i32, i32) {
    %c0_i32 = arith.constant 0 : i32
    %c0_i32_0 = arith.constant 0 : i32
    %c0_i32_1 = arith.constant 0 : i32
    return %c0_i32, %c0_i32_0 : i32, i32
  }
  func.func @transform_4(%arg0: i32) -> (i32, i32) {
    %c0_i32 = arith.constant 0 : i32
    %c0_i32_0 = arith.constant 0 : i32
    %c0_i32_1 = arith.constant 0 : i32
    return %c0_i32, %c0_i32_0 : i32, i32
  }
  func.func @transform_5(%arg0: i32) -> (i32, i32) {
    %c0_i32 = arith.constant 0 : i32
    %c0_i32_0 = arith.constant 0 : i32
    return %arg0, %c0_i32 : i32, i32
  }
  func.func @transform_6(%arg0: i32) -> (i32, i32) {
    %c0_i32 = arith.constant 0 : i32
    %c0_i32_0 = arith.constant 0 : i32
    return %arg0, %c0_i32 : i32, i32
  }
  func.func @transform_7(%arg0: i32) -> (i32, i32) {
    %c0_i32 = arith.constant 0 : i32
    %c0_i32_0 = arith.constant 0 : i32
    return %arg0, %c0_i32 : i32, i32
  }
}

module attributes {stable_mosaic.version = 11 : i64} {
  func.func @_trimul_kernel(%arg0: i32, %arg1: memref<8x8x8xf32, #tpu.memory_space<vmem>>, %arg2: memref<8x8x8xf32, #tpu.memory_space<vmem>>, %arg3: memref<8x8x8xf32, #tpu.memory_space<vmem>>) attributes {dimension_semantics = [#tpu.dimension_semantics<parallel>], iteration_bounds = array<i64: 2>, scalar_prefetch = 0 : i64, scratch_operands = 0 : i64, tpu.core_type = #tpu.core_type<tc>, window_params = [{transform_indices = @transform_0, window_bounds = array<i64: 8, 8, 8>}, {transform_indices = @transform_1, window_bounds = array<i64: 8, 8, 8>}, {transform_indices = @transform_2, window_bounds = array<i64: 8, 8, 8>}]} {
    %c0 = arith.constant 0 : index
    %c0_0 = arith.constant 0 : index
    %c0_1 = arith.constant 0 : index
    %0 = vector.load %arg1[%c0, %c0_0, %c0_1] : memref<8x8x8xf32, #tpu.memory_space<vmem>>, vector<1x8x8xf32>
    %1 = vector.shape_cast %0 : vector<1x8x8xf32> to vector<8x8xf32>
    %c0_2 = arith.constant 0 : index
    %c0_3 = arith.constant 0 : index
    %c0_4 = arith.constant 0 : index
    %2 = vector.load %arg2[%c0_2, %c0_3, %c0_4] : memref<8x8x8xf32, #tpu.memory_space<vmem>>, vector<1x8x8xf32>
    %3 = vector.shape_cast %2 : vector<1x8x8xf32> to vector<8x8xf32>
    %4 = tpu.transpose %1, [1, 0] : vector<8x8xf32> -> vector<8x8xf32>
    %cst = arith.constant dense<0.000000e+00> : vector<8x8xf32>
    %5 = tpu.matmul %4, %3, %cst {dimension_numbers = #tpu.dot_dimension_numbers<[1], [0], [0], [1], [0, 0, 1, 1], [], []>} : vector<8x8xf32>, vector<8x8xf32>, vector<8x8xf32> -> vector<8x8xf32>
    %c0_5 = arith.constant 0 : index
    %c0_6 = arith.constant 0 : index
    %c0_7 = arith.constant 0 : index
    %6 = vector.load %arg3[%c0_5, %c0_6, %c0_7] : memref<8x8x8xf32, #tpu.memory_space<vmem>>, vector<1x8x8xf32>
    %7 = vector.shape_cast %6 : vector<1x8x8xf32> to vector<8x8xf32>
    %8 = vector.shape_cast %5 : vector<8x8xf32> to vector<1x8x8xf32>
    tpu.vector_store %arg3[%c0_5, %c0_6, %c0_7], %8 {strides = array<i32>} : memref<8x8x8xf32, #tpu.memory_space<vmem>>, vector<1x8x8xf32>,
    %c1 = arith.constant 1 : index
    %c0_8 = arith.constant 0 : index
    %c0_9 = arith.constant 0 : index
    %9 = vector.load %arg1[%c1, %c0_8, %c0_9] : memref<8x8x8xf32, #tpu.memory_space<vmem>>, vector<1x8x8xf32>
    %10 = vector.shape_cast %9 : vector<1x8x8xf32> to vector<8x8xf32>
    %c1_10 = arith.constant 1 : index
    %c0_11 = arith.constant 0 : index
    %c0_12 = arith.constant 0 : index
    %11 = vector.load %arg2[%c1_10, %c0_11, %c0_12] : memref<8x8x8xf32, #tpu.memory_space<vmem>>, vector<1x8x8xf32>
    %12 = vector.shape_cast %11 : vector<1x8x8xf32> to vector<8x8xf32>
    %13 = tpu.transpose %10, [1, 0] : vector<8x8xf32> -> vector<8x8xf32>
    %cst_13 = arith.constant dense<0.000000e+00> : vector<8x8xf32>
    %14 = tpu.matmul %13, %12, %cst_13 {dimension_numbers = #tpu.dot_dimension_numbers<[1], [0], [0], [1], [0, 0, 1, 1], [], []>} : vector<8x8xf32>, vector<8x8xf32>, vector<8x8xf32> -> vector<8x8xf32>
    %c1_14 = arith.constant 1 : index
    %c0_15 = arith.constant 0 : index
    %c0_16 = arith.constant 0 : index
    %15 = vector.load %arg3[%c1_14, %c0_15, %c0_16] : memref<8x8x8xf32, #tpu.memory_space<vmem>>, vector<1x8x8xf32>
    %16 = vector.shape_cast %15 : vector<1x8x8xf32> to vector<8x8xf32>
    %17 = vector.shape_cast %14 : vector<8x8xf32> to vector<1x8x8xf32>
    tpu.vector_store %arg3[%c1_14, %c0_15, %c0_16], %17 {strides = array<i32>} : memref<8x8x8xf32, #tpu.memory_space<vmem>>, vector<1x8x8xf32>,
    %c2 = arith.constant 2 : index
    %c0_17 = arith.constant 0 : index
    %c0_18 = arith.constant 0 : index
    %18 = vector.load %arg1[%c2, %c0_17, %c0_18] : memref<8x8x8xf32, #tpu.memory_space<vmem>>, vector<1x8x8xf32>
    %19 = vector.shape_cast %18 : vector<1x8x8xf32> to vector<8x8xf32>
    %c2_19 = arith.constant 2 : index
    %c0_20 = arith.constant 0 : index
    %c0_21 = arith.constant 0 : index
    %20 = vector.load %arg2[%c2_19, %c0_20, %c0_21] : memref<8x8x8xf32, #tpu.memory_space<vmem>>, vector<1x8x8xf32>
    %21 = vector.shape_cast %20 : vector<1x8x8xf32> to vector<8x8xf32>
    %22 = tpu.transpose %19, [1, 0] : vector<8x8xf32> -> vector<8x8xf32>
    %cst_22 = arith.constant dense<0.000000e+00> : vector<8x8xf32>
    %23 = tpu.matmul %22, %21, %cst_22 {dimension_numbers = #tpu.dot_dimension_numbers<[1], [0], [0], [1], [0, 0, 1, 1], [], []>} : vector<8x8xf32>, vector<8x8xf32>, vector<8x8xf32> -> vector<8x8xf32>
    %c2_23 = arith.constant 2 : index
    %c0_24 = arith.constant 0 : index
    %c0_25 = arith.constant 0 : index
    %24 = vector.load %arg3[%c2_23, %c0_24, %c0_25] : memref<8x8x8xf32, #tpu.memory_space<vmem>>, vector<1x8x8xf32>
    %25 = vector.shape_cast %24 : vector<1x8x8xf32> to vector<8x8xf32>
    %26 = vector.shape_cast %23 : vector<8x8xf32> to vector<1x8x8xf32>
    tpu.vector_store %arg3[%c2_23, %c0_24, %c0_25], %26 {strides = array<i32>} : memref<8x8x8xf32, #tpu.memory_space<vmem>>, vector<1x8x8xf32>,
    %c3 = arith.constant 3 : index
    %c0_26 = arith.constant 0 : index
    %c0_27 = arith.constant 0 : index
    %27 = vector.load %arg1[%c3, %c0_26, %c0_27] : memref<8x8x8xf32, #tpu.memory_space<vmem>>, vector<1x8x8xf32>
    %28 = vector.shape_cast %27 : vector<1x8x8xf32> to vector<8x8xf32>
    %c3_28 = arith.constant 3 : index
    %c0_29 = arith.constant 0 : index
    %c0_30 = arith.constant 0 : index
    %29 = vector.load %arg2[%c3_28, %c0_29, %c0_30] : memref<8x8x8xf32, #tpu.memory_space<vmem>>, vector<1x8x8xf32>
    %30 = vector.shape_cast %29 : vector<1x8x8xf32> to vector<8x8xf32>
    %31 = tpu.transpose %28, [1, 0] : vector<8x8xf32> -> vector<8x8xf32>
    %cst_31 = arith.constant dense<0.000000e+00> : vector<8x8xf32>
    %32 = tpu.matmul %31, %30, %cst_31 {dimension_numbers = #tpu.dot_dimension_numbers<[1], [0], [0], [1], [0, 0, 1, 1], [], []>} : vector<8x8xf32>, vector<8x8xf32>, vector<8x8xf32> -> vector<8x8xf32>
    %c3_32 = arith.constant 3 : index
    %c0_33 = arith.constant 0 : index
    %c0_34 = arith.constant 0 : index
    %33 = vector.load %arg3[%c3_32, %c0_33, %c0_34] : memref<8x8x8xf32, #tpu.memory_space<vmem>>, vector<1x8x8xf32>
    %34 = vector.shape_cast %33 : vector<1x8x8xf32> to vector<8x8xf32>
    %35 = vector.shape_cast %32 : vector<8x8xf32> to vector<1x8x8xf32>
    tpu.vector_store %arg3[%c3_32, %c0_33, %c0_34], %35 {strides = array<i32>} : memref<8x8x8xf32, #tpu.memory_space<vmem>>, vector<1x8x8xf32>,
    %c4 = arith.constant 4 : index
    %c0_35 = arith.constant 0 : index
    %c0_36 = arith.constant 0 : index
    %36 = vector.load %arg1[%c4, %c0_35, %c0_36] : memref<8x8x8xf32, #tpu.memory_space<vmem>>, vector<1x8x8xf32>
    %37 = vector.shape_cast %36 : vector<1x8x8xf32> to vector<8x8xf32>
    %c4_37 = arith.constant 4 : index
    %c0_38 = arith.constant 0 : index
    %c0_39 = arith.constant 0 : index
    %38 = vector.load %arg2[%c4_37, %c0_38, %c0_39] : memref<8x8x8xf32, #tpu.memory_space<vmem>>, vector<1x8x8xf32>
    %39 = vector.shape_cast %38 : vector<1x8x8xf32> to vector<8x8xf32>
    %40 = tpu.transpose %37, [1, 0] : vector<8x8xf32> -> vector<8x8xf32>
    %cst_40 = arith.constant dense<0.000000e+00> : vector<8x8xf32>
    %41 = tpu.matmul %40, %39, %cst_40 {dimension_numbers = #tpu.dot_dimension_numbers<[1], [0], [0], [1], [0, 0, 1, 1], [], []>} : vector<8x8xf32>, vector<8x8xf32>, vector<8x8xf32> -> vector<8x8xf32>
    %c4_41 = arith.constant 4 : index
    %c0_42 = arith.constant 0 : index
    %c0_43 = arith.constant 0 : index
    %42 = vector.load %arg3[%c4_41, %c0_42, %c0_43] : memref<8x8x8xf32, #tpu.memory_space<vmem>>, vector<1x8x8xf32>
    %43 = vector.shape_cast %42 : vector<1x8x8xf32> to vector<8x8xf32>
    %44 = vector.shape_cast %41 : vector<8x8xf32> to vector<1x8x8xf32>
    tpu.vector_store %arg3[%c4_41, %c0_42, %c0_43], %44 {strides = array<i32>} : memref<8x8x8xf32, #tpu.memory_space<vmem>>, vector<1x8x8xf32>,
    %c5 = arith.constant 5 : index
    %c0_44 = arith.constant 0 : index
    %c0_45 = arith.constant 0 : index
    %45 = vector.load %arg1[%c5, %c0_44, %c0_45] : memref<8x8x8xf32, #tpu.memory_space<vmem>>, vector<1x8x8xf32>
    %46 = vector.shape_cast %45 : vector<1x8x8xf32> to vector<8x8xf32>
    %c5_46 = arith.constant 5 : index
    %c0_47 = arith.constant 0 : index
    %c0_48 = arith.constant 0 : index
    %47 = vector.load %arg2[%c5_46, %c0_47, %c0_48] : memref<8x8x8xf32, #tpu.memory_space<vmem>>, vector<1x8x8xf32>
    %48 = vector.shape_cast %47 : vector<1x8x8xf32> to vector<8x8xf32>
    %49 = tpu.transpose %46, [1, 0] : vector<8x8xf32> -> vector<8x8xf32>
    %cst_49 = arith.constant dense<0.000000e+00> : vector<8x8xf32>
    %50 = tpu.matmul %49, %48, %cst_49 {dimension_numbers = #tpu.dot_dimension_numbers<[1], [0], [0], [1], [0, 0, 1, 1], [], []>} : vector<8x8xf32>, vector<8x8xf32>, vector<8x8xf32> -> vector<8x8xf32>
    %c5_50 = arith.constant 5 : index
    %c0_51 = arith.constant 0 : index
    %c0_52 = arith.constant 0 : index
    %51 = vector.load %arg3[%c5_50, %c0_51, %c0_52] : memref<8x8x8xf32, #tpu.memory_space<vmem>>, vector<1x8x8xf32>
    %52 = vector.shape_cast %51 : vector<1x8x8xf32> to vector<8x8xf32>
    %53 = vector.shape_cast %50 : vector<8x8xf32> to vector<1x8x8xf32>
    tpu.vector_store %arg3[%c5_50, %c0_51, %c0_52], %53 {strides = array<i32>} : memref<8x8x8xf32, #tpu.memory_space<vmem>>, vector<1x8x8xf32>,
    %c6 = arith.constant 6 : index
    %c0_53 = arith.constant 0 : index
    %c0_54 = arith.constant 0 : index
    %54 = vector.load %arg1[%c6, %c0_53, %c0_54] : memref<8x8x8xf32, #tpu.memory_space<vmem>>, vector<1x8x8xf32>
    %55 = vector.shape_cast %54 : vector<1x8x8xf32> to vector<8x8xf32>
    %c6_55 = arith.constant 6 : index
    %c0_56 = arith.constant 0 : index
    %c0_57 = arith.constant 0 : index
    %56 = vector.load %arg2[%c6_55, %c0_56, %c0_57] : memref<8x8x8xf32, #tpu.memory_space<vmem>>, vector<1x8x8xf32>
    %57 = vector.shape_cast %56 : vector<1x8x8xf32> to vector<8x8xf32>
    %58 = tpu.transpose %55, [1, 0] : vector<8x8xf32> -> vector<8x8xf32>
    %cst_58 = arith.constant dense<0.000000e+00> : vector<8x8xf32>
    %59 = tpu.matmul %58, %57, %cst_58 {dimension_numbers = #tpu.dot_dimension_numbers<[1], [0], [0], [1], [0, 0, 1, 1], [], []>} : vector<8x8xf32>, vector<8x8xf32>, vector<8x8xf32> -> vector<8x8xf32>
    %c6_59 = arith.constant 6 : index
    %c0_60 = arith.constant 0 : index
    %c0_61 = arith.constant 0 : index
    %60 = vector.load %arg3[%c6_59, %c0_60, %c0_61] : memref<8x8x8xf32, #tpu.memory_space<vmem>>, vector<1x8x8xf32>
    %61 = vector.shape_cast %60 : vector<1x8x8xf32> to vector<8x8xf32>
    %62 = vector.shape_cast %59 : vector<8x8xf32> to vector<1x8x8xf32>
    tpu.vector_store %arg3[%c6_59, %c0_60, %c0_61], %62 {strides = array<i32>} : memref<8x8x8xf32, #tpu.memory_space<vmem>>, vector<1x8x8xf32>,
    %c7 = arith.constant 7 : index
    %c0_62 = arith.constant 0 : index
    %c0_63 = arith.constant 0 : index
    %63 = vector.load %arg1[%c7, %c0_62, %c0_63] : memref<8x8x8xf32, #tpu.memory_space<vmem>>, vector<1x8x8xf32>
    %64 = vector.shape_cast %63 : vector<1x8x8xf32> to vector<8x8xf32>
    %c7_64 = arith.constant 7 : index
    %c0_65 = arith.constant 0 : index
    %c0_66 = arith.constant 0 : index
    %65 = vector.load %arg2[%c7_64, %c0_65, %c0_66] : memref<8x8x8xf32, #tpu.memory_space<vmem>>, vector<1x8x8xf32>
    %66 = vector.shape_cast %65 : vector<1x8x8xf32> to vector<8x8xf32>
    %67 = tpu.transpose %64, [1, 0] : vector<8x8xf32> -> vector<8x8xf32>
    %cst_67 = arith.constant dense<0.000000e+00> : vector<8x8xf32>
    %68 = tpu.matmul %67, %66, %cst_67 {dimension_numbers = #tpu.dot_dimension_numbers<[1], [0], [0], [1], [0, 0, 1, 1], [], []>} : vector<8x8xf32>, vector<8x8xf32>, vector<8x8xf32> -> vector<8x8xf32>
    %c7_68 = arith.constant 7 : index
    %c0_69 = arith.constant 0 : index
    %c0_70 = arith.constant 0 : index
    %69 = vector.load %arg3[%c7_68, %c0_69, %c0_70] : memref<8x8x8xf32, #tpu.memory_space<vmem>>, vector<1x8x8xf32>
    %70 = vector.shape_cast %69 : vector<1x8x8xf32> to vector<8x8xf32>
    %71 = vector.shape_cast %68 : vector<8x8xf32> to vector<1x8x8xf32>
    tpu.vector_store %arg3[%c7_68, %c0_69, %c0_70], %71 {strides = array<i32>} : memref<8x8x8xf32, #tpu.memory_space<vmem>>, vector<1x8x8xf32>,
    return
  }
  func.func @transform_0(%arg0: i32) -> (i32, i32, i32) {
    %c0_i32 = arith.constant 0 : i32
    %c0_i32_0 = arith.constant 0 : i32
    %c0_i32_1 = arith.constant 0 : i32
    return %arg0, %c0_i32, %c0_i32_0 : i32, i32, i32
  }
  func.func @transform_1(%arg0: i32) -> (i32, i32, i32) {
    %c0_i32 = arith.constant 0 : i32
    %c0_i32_0 = arith.constant 0 : i32
    %c0_i32_1 = arith.constant 0 : i32
    return %arg0, %c0_i32, %c0_i32_0 : i32, i32, i32
  }
  func.func @transform_2(%arg0: i32) -> (i32, i32, i32) {
    %c0_i32 = arith.constant 0 : i32
    %c0_i32_0 = arith.constant 0 : i32
    %c0_i32_1 = arith.constant 0 : i32
    return %arg0, %c0_i32, %c0_i32_0 : i32, i32, i32
  }
}

module attributes {stable_mosaic.version = 11 : i64} {
  func.func @_fused_linear_kernel(%arg0: i32, %arg1: memref<64x16xf32, #tpu.memory_space<vmem>>, %arg2: memref<16x128xf32, #tpu.memory_space<vmem>>, %arg3: memref<1x128xf32, #tpu.memory_space<vmem>>, %arg4: memref<1x16xf32, #tpu.memory_space<vmem>>, %arg5: memref<1x16xf32, #tpu.memory_space<vmem>>, %arg6: memref<64x128xf32, #tpu.memory_space<vmem>>) attributes {dimension_semantics = [#tpu.dimension_semantics<parallel>], iteration_bounds = array<i64: 1>, scalar_prefetch = 0 : i64, scratch_operands = 0 : i64, tpu.core_type = #tpu.core_type<tc>, window_params = [{transform_indices = @transform_0, window_bounds = array<i64: 64, 16>}, {pipeline_mode = #tpu.pipeline_mode<synchronous>, transform_indices = @transform_1, window_bounds = array<i64: 16, 128>}, {pipeline_mode = #tpu.pipeline_mode<synchronous>, transform_indices = @transform_2, window_bounds = array<i64: 1, 128>}, {pipeline_mode = #tpu.pipeline_mode<synchronous>, transform_indices = @transform_3, window_bounds = array<i64: 1, 16>}, {pipeline_mode = #tpu.pipeline_mode<synchronous>, transform_indices = @transform_4, window_bounds = array<i64: 1, 16>}, {transform_indices = @transform_5, window_bounds = array<i64: 64, 128>}]} {
    %c0 = arith.constant 0 : index
    %c0_0 = arith.constant 0 : index
    %0 = vector.load %arg1[%c0, %c0_0] : memref<64x16xf32, #tpu.memory_space<vmem>>, vector<64x16xf32>
    %cst = arith.constant dense<0.000000e+00> : vector<64xf32>
    %1 = vector.multi_reduction <add>, %0, %cst [1] : vector<64x16xf32> to vector<64xf32>
    %2 = vector.shape_cast %1 : vector<64xf32> to vector<64x1xf32>
    %cst_1 = arith.constant 1.600000e+01 : f32
    %3 = vector.broadcast %cst_1 : f32 to vector<64x1xf32>
    %4 = arith.divf %2, %3 : vector<64x1xf32>
    %5 = vector.broadcast %4 : vector<64x1xf32> to vector<64x16xf32>
    %6 = arith.subf %0, %5 : vector<64x16xf32>
    %7 = arith.mulf %6, %6 : vector<64x16xf32>
    %cst_2 = arith.constant dense<0.000000e+00> : vector<64xf32>
    %8 = vector.multi_reduction <add>, %7, %cst_2 [1] : vector<64x16xf32> to vector<64xf32>
    %9 = vector.shape_cast %8 : vector<64xf32> to vector<64x1xf32>
    %cst_3 = arith.constant 1.600000e+01 : f32
    %10 = vector.broadcast %cst_3 : f32 to vector<64x1xf32>
    %11 = arith.divf %9, %10 : vector<64x1xf32>
    %cst_4 = arith.constant 9.99999974E-6 : f32
    %12 = vector.broadcast %cst_4 : f32 to vector<64x1xf32>
    %13 = arith.addf %11, %12 : vector<64x1xf32>
    %14 = math.rsqrt %13 : vector<64x1xf32>
    %15 = vector.broadcast %14 : vector<64x1xf32> to vector<64x16xf32>
    %16 = arith.mulf %6, %15 : vector<64x16xf32>
    %c0_5 = arith.constant 0 : index
    %c0_6 = arith.constant 0 : index
    %17 = vector.load %arg4[%c0_5, %c0_6] : memref<1x16xf32, #tpu.memory_space<vmem>>, vector<1x16xf32>
    %18 = vector.broadcast %17 : vector<1x16xf32> to vector<64x16xf32>
    %19 = arith.mulf %16, %18 : vector<64x16xf32>
    %c0_7 = arith.constant 0 : index
    %c0_8 = arith.constant 0 : index
    %20 = vector.load %arg5[%c0_7, %c0_8] : memref<1x16xf32, #tpu.memory_space<vmem>>, vector<1x16xf32>
    %21 = vector.broadcast %20 : vector<1x16xf32> to vector<64x16xf32>
    %22 = arith.addf %19, %21 : vector<64x16xf32>
    %c0_9 = arith.constant 0 : index
    %c0_10 = arith.constant 0 : index
    %23 = vector.load %arg2[%c0_9, %c0_10] : memref<16x128xf32, #tpu.memory_space<vmem>>, vector<16x128xf32>
    %cst_11 = arith.constant dense<0.000000e+00> : vector<64x128xf32>
    %24 = tpu.matmul %22, %23, %cst_11 {dimension_numbers = #tpu.dot_dimension_numbers<[1], [0], [0], [1], [0, 0, 1, 1], [], []>} : vector<64x16xf32>, vector<16x128xf32>, vector<64x128xf32> -> vector<64x128xf32>
    %c0_12 = arith.constant 0 : index
    %c0_13 = arith.constant 0 : index
    %25 = vector.load %arg3[%c0_12, %c0_13] : memref<1x128xf32, #tpu.memory_space<vmem>>, vector<1x128xf32>
    %26 = vector.broadcast %25 : vector<1x128xf32> to vector<64x128xf32>
    %27 = arith.addf %24, %26 : vector<64x128xf32>
    %c0_14 = arith.constant 0 : index
    %c0_15 = arith.constant 0 : index
    %28 = vector.load %arg6[%c0_14, %c0_15] : memref<64x128xf32, #tpu.memory_space<vmem>>, vector<64x128xf32>
    tpu.vector_store %arg6[%c0_14, %c0_15], %27 {strides = array<i32>} : memref<64x128xf32, #tpu.memory_space<vmem>>, vector<64x128xf32>,
    return
  }
  func.func @transform_0(%arg0: i32) -> (i32, i32) {
    %c0_i32 = arith.constant 0 : i32
    %c0_i32_0 = arith.constant 0 : i32
    return %arg0, %c0_i32 : i32, i32
  }
  func.func @transform_1(%arg0: i32) -> (i32, i32) {
    %c0_i32 = arith.constant 0 : i32
    %c0_i32_0 = arith.constant 0 : i32
    %c0_i32_1 = arith.constant 0 : i32
    return %c0_i32, %c0_i32_0 : i32, i32
  }
  func.func @transform_2(%arg0: i32) -> (i32, i32) {
    %c0_i32 = arith.constant 0 : i32
    %c0_i32_0 = arith.constant 0 : i32
    %c0_i32_1 = arith.constant 0 : i32
    return %c0_i32, %c0_i32_0 : i32, i32
  }
  func.func @transform_3(%arg0: i32) -> (i32, i32) {
    %c0_i32 = arith.constant 0 : i32
    %c0_i32_0 = arith.constant 0 : i32
    %c0_i32_1 = arith.constant 0 : i32
    return %c0_i32, %c0_i32_0 : i32, i32
  }
  func.func @transform_4(%arg0: i32) -> (i32, i32) {
    %c0_i32 = arith.constant 0 : i32
    %c0_i32_0 = arith.constant 0 : i32
    %c0_i32_1 = arith.constant 0 : i32
    return %c0_i32, %c0_i32_0 : i32, i32
  }
  func.func @transform_5(%arg0: i32) -> (i32, i32) {
    %c0_i32 = arith.constant 0 : i32
    %c0_i32_0 = arith.constant 0 : i32
    return %arg0, %c0_i32 : i32, i32
  }
}

module attributes {stable_mosaic.version = 11 : i64} {
  func.func @_fused_linear_kernel(%arg0: i32, %arg1: memref<64x32xf32, #tpu.memory_space<vmem>>, %arg2: memref<32x16xf32, #tpu.memory_space<vmem>>, %arg3: memref<1x16xf32, #tpu.memory_space<vmem>>, %arg4: memref<64x16xf32, #tpu.memory_space<vmem>>, %arg5: memref<64x16xf32, #tpu.memory_space<vmem>>) attributes {dimension_semantics = [#tpu.dimension_semantics<parallel>], iteration_bounds = array<i64: 1>, scalar_prefetch = 0 : i64, scratch_operands = 0 : i64, tpu.core_type = #tpu.core_type<tc>, window_params = [{transform_indices = @transform_0, window_bounds = array<i64: 64, 32>}, {pipeline_mode = #tpu.pipeline_mode<synchronous>, transform_indices = @transform_1, window_bounds = array<i64: 32, 16>}, {pipeline_mode = #tpu.pipeline_mode<synchronous>, transform_indices = @transform_2, window_bounds = array<i64: 1, 16>}, {transform_indices = @transform_3, window_bounds = array<i64: 64, 16>}, {transform_indices = @transform_4, window_bounds = array<i64: 64, 16>}]} {
    %c0 = arith.constant 0 : index
    %c0_0 = arith.constant 0 : index
    %0 = vector.load %arg1[%c0, %c0_0] : memref<64x32xf32, #tpu.memory_space<vmem>>, vector<64x32xf32>
    %c0_1 = arith.constant 0 : index
    %c0_2 = arith.constant 0 : index
    %1 = vector.load %arg2[%c0_1, %c0_2] : memref<32x16xf32, #tpu.memory_space<vmem>>, vector<32x16xf32>
    %cst = arith.constant dense<0.000000e+00> : vector<64x16xf32>
    %2 = tpu.matmul %0, %1, %cst {dimension_numbers = #tpu.dot_dimension_numbers<[1], [0], [0], [1], [0, 0, 1, 1], [], []>} : vector<64x32xf32>, vector<32x16xf32>, vector<64x16xf32> -> vector<64x16xf32>
    %c0_3 = arith.constant 0 : index
    %c0_4 = arith.constant 0 : index
    %3 = vector.load %arg3[%c0_3, %c0_4] : memref<1x16xf32, #tpu.memory_space<vmem>>, vector<1x16xf32>
    %4 = vector.broadcast %3 : vector<1x16xf32> to vector<64x16xf32>
    %5 = arith.addf %2, %4 : vector<64x16xf32>
    %c0_5 = arith.constant 0 : index
    %c0_6 = arith.constant 0 : index
    %6 = vector.load %arg4[%c0_5, %c0_6] : memref<64x16xf32, #tpu.memory_space<vmem>>, vector<64x16xf32>
    %7 = arith.addf %5, %6 : vector<64x16xf32>
    %c0_7 = arith.constant 0 : index
    %c0_8 = arith.constant 0 : index
    %8 = vector.load %arg5[%c0_7, %c0_8] : memref<64x16xf32, #tpu.memory_space<vmem>>, vector<64x16xf32>
    tpu.vector_store %arg5[%c0_7, %c0_8], %7 {strides = array<i32>} : memref<64x16xf32, #tpu.memory_space<vmem>>, vector<64x16xf32>,
    return
  }
  func.func @transform_0(%arg0: i32) -> (i32, i32) {
    %c0_i32 = arith.constant 0 : i32
    %c0_i32_0 = arith.constant 0 : i32
    return %arg0, %c0_i32 : i32, i32
  }
  func.func @transform_1(%arg0: i32) -> (i32, i32) {
    %c0_i32 = arith.constant 0 : i32
    %c0_i32_0 = arith.constant 0 : i32
    %c0_i32_1 = arith.constant 0 : i32
    return %c0_i32, %c0_i32_0 : i32, i32
  }
  func.func @transform_2(%arg0: i32) -> (i32, i32) {
    %c0_i32 = arith.constant 0 : i32
    %c0_i32_0 = arith.constant 0 : i32
    %c0_i32_1 = arith.constant 0 : i32
    return %c0_i32, %c0_i32_0 : i32, i32
  }
  func.func @transform_3(%arg0: i32) -> (i32, i32) {
    %c0_i32 = arith.constant 0 : i32
    %c0_i32_0 = arith.constant 0 : i32
    return %arg0, %c0_i32 : i32, i32
  }
  func.func @transform_4(%arg0: i32) -> (i32, i32) {
    %c0_i32 = arith.constant 0 : i32
    %c0_i32_0 = arith.constant 0 : i32
    return %arg0, %c0_i32 : i32, i32
  }
}

module attributes {stable_mosaic.version = 11 : i64} {
  func.func @_fused_linear_kernel(%arg0: i32, %arg1: memref<64x16xf32, #tpu.memory_space<vmem>>, %arg2: memref<16x32xf32, #tpu.memory_space<vmem>>, %arg3: memref<1x32xf32, #tpu.memory_space<vmem>>, %arg4: memref<1x16xf32, #tpu.memory_space<vmem>>, %arg5: memref<1x16xf32, #tpu.memory_space<vmem>>, %arg6: memref<64x32xf32, #tpu.memory_space<vmem>>) attributes {dimension_semantics = [#tpu.dimension_semantics<parallel>], iteration_bounds = array<i64: 1>, scalar_prefetch = 0 : i64, scratch_operands = 0 : i64, tpu.core_type = #tpu.core_type<tc>, window_params = [{transform_indices = @transform_0, window_bounds = array<i64: 64, 16>}, {pipeline_mode = #tpu.pipeline_mode<synchronous>, transform_indices = @transform_1, window_bounds = array<i64: 16, 32>}, {pipeline_mode = #tpu.pipeline_mode<synchronous>, transform_indices = @transform_2, window_bounds = array<i64: 1, 32>}, {pipeline_mode = #tpu.pipeline_mode<synchronous>, transform_indices = @transform_3, window_bounds = array<i64: 1, 16>}, {pipeline_mode = #tpu.pipeline_mode<synchronous>, transform_indices = @transform_4, window_bounds = array<i64: 1, 16>}, {transform_indices = @transform_5, window_bounds = array<i64: 64, 32>}]} {
    %c0 = arith.constant 0 : index
    %c0_0 = arith.constant 0 : index
    %0 = vector.load %arg1[%c0, %c0_0] : memref<64x16xf32, #tpu.memory_space<vmem>>, vector<64x16xf32>
    %cst = arith.constant dense<0.000000e+00> : vector<64xf32>
    %1 = vector.multi_reduction <add>, %0, %cst [1] : vector<64x16xf32> to vector<64xf32>
    %2 = vector.shape_cast %1 : vector<64xf32> to vector<64x1xf32>
    %cst_1 = arith.constant 1.600000e+01 : f32
    %3 = vector.broadcast %cst_1 : f32 to vector<64x1xf32>
    %4 = arith.divf %2, %3 : vector<64x1xf32>
    %5 = vector.broadcast %4 : vector<64x1xf32> to vector<64x16xf32>
    %6 = arith.subf %0, %5 : vector<64x16xf32>
    %7 = arith.mulf %6, %6 : vector<64x16xf32>
    %cst_2 = arith.constant dense<0.000000e+00> : vector<64xf32>
    %8 = vector.multi_reduction <add>, %7, %cst_2 [1] : vector<64x16xf32> to vector<64xf32>
    %9 = vector.shape_cast %8 : vector<64xf32> to vector<64x1xf32>
    %cst_3 = arith.constant 1.600000e+01 : f32
    %10 = vector.broadcast %cst_3 : f32 to vector<64x1xf32>
    %11 = arith.divf %9, %10 : vector<64x1xf32>
    %cst_4 = arith.constant 9.99999974E-6 : f32
    %12 = vector.broadcast %cst_4 : f32 to vector<64x1xf32>
    %13 = arith.addf %11, %12 : vector<64x1xf32>
    %14 = math.rsqrt %13 : vector<64x1xf32>
    %15 = vector.broadcast %14 : vector<64x1xf32> to vector<64x16xf32>
    %16 = arith.mulf %6, %15 : vector<64x16xf32>
    %c0_5 = arith.constant 0 : index
    %c0_6 = arith.constant 0 : index
    %17 = vector.load %arg4[%c0_5, %c0_6] : memref<1x16xf32, #tpu.memory_space<vmem>>, vector<1x16xf32>
    %18 = vector.broadcast %17 : vector<1x16xf32> to vector<64x16xf32>
    %19 = arith.mulf %16, %18 : vector<64x16xf32>
    %c0_7 = arith.constant 0 : index
    %c0_8 = arith.constant 0 : index
    %20 = vector.load %arg5[%c0_7, %c0_8] : memref<1x16xf32, #tpu.memory_space<vmem>>, vector<1x16xf32>
    %21 = vector.broadcast %20 : vector<1x16xf32> to vector<64x16xf32>
    %22 = arith.addf %19, %21 : vector<64x16xf32>
    %c0_9 = arith.constant 0 : index
    %c0_10 = arith.constant 0 : index
    %23 = vector.load %arg2[%c0_9, %c0_10] : memref<16x32xf32, #tpu.memory_space<vmem>>, vector<16x32xf32>
    %cst_11 = arith.constant dense<0.000000e+00> : vector<64x32xf32>
    %24 = tpu.matmul %22, %23, %cst_11 {dimension_numbers = #tpu.dot_dimension_numbers<[1], [0], [0], [1], [0, 0, 1, 1], [], []>} : vector<64x16xf32>, vector<16x32xf32>, vector<64x32xf32> -> vector<64x32xf32>
    %c0_12 = arith.constant 0 : index
    %c0_13 = arith.constant 0 : index
    %25 = vector.load %arg3[%c0_12, %c0_13] : memref<1x32xf32, #tpu.memory_space<vmem>>, vector<1x32xf32>
    %26 = vector.broadcast %25 : vector<1x32xf32> to vector<64x32xf32>
    %27 = arith.addf %24, %26 : vector<64x32xf32>
    %cst_14 = arith.constant 0.000000e+00 : f32
    %28 = vector.broadcast %cst_14 : f32 to vector<64x32xf32>
    %29 = arith.maximumf %27, %28 : vector<64x32xf32>
    %c0_15 = arith.constant 0 : index
    %c0_16 = arith.constant 0 : index
    %30 = vector.load %arg6[%c0_15, %c0_16] : memref<64x32xf32, #tpu.memory_space<vmem>>, vector<64x32xf32>
    tpu.vector_store %arg6[%c0_15, %c0_16], %29 {strides = array<i32>} : memref<64x32xf32, #tpu.memory_space<vmem>>, vector<64x32xf32>,
    return
  }
  func.func @transform_0(%arg0: i32) -> (i32, i32) {
    %c0_i32 = arith.constant 0 : i32
    %c0_i32_0 = arith.constant 0 : i32
    return %arg0, %c0_i32 : i32, i32
  }
  func.func @transform_1(%arg0: i32) -> (i32, i32) {
    %c0_i32 = arith.constant 0 : i32
    %c0_i32_0 = arith.constant 0 : i32
    %c0_i32_1 = arith.constant 0 : i32
    return %c0_i32, %c0_i32_0 : i32, i32
  }
  func.func @transform_2(%arg0: i32) -> (i32, i32) {
    %c0_i32 = arith.constant 0 : i32
    %c0_i32_0 = arith.constant 0 : i32
    %c0_i32_1 = arith.constant 0 : i32
    return %c0_i32, %c0_i32_0 : i32, i32
  }
  func.func @transform_3(%arg0: i32) -> (i32, i32) {
    %c0_i32 = arith.constant 0 : i32
    %c0_i32_0 = arith.constant 0 : i32
    %c0_i32_1 = arith.constant 0 : i32
    return %c0_i32, %c0_i32_0 : i32, i32
  }
  func.func @transform_4(%arg0: i32) -> (i32, i32) {
    %c0_i32 = arith.constant 0 : i32
    %c0_i32_0 = arith.constant 0 : i32
    %c0_i32_1 = arith.constant 0 : i32
    return %c0_i32, %c0_i32_0 : i32, i32
  }
  func.func @transform_5(%arg0: i32) -> (i32, i32) {
    %c0_i32 = arith.constant 0 : i32
    %c0_i32_0 = arith.constant 0 : i32
    return %arg0, %c0_i32 : i32, i32
  }
}

module attributes {stable_mosaic.version = 11 : i64} {
  func.func @_fused_linear_kernel(%arg0: i32, %arg1: memref<64x32xf32, #tpu.memory_space<vmem>>, %arg2: memref<32x16xf32, #tpu.memory_space<vmem>>, %arg3: memref<1x16xf32, #tpu.memory_space<vmem>>, %arg4: memref<64x16xf32, #tpu.memory_space<vmem>>, %arg5: memref<64x16xf32, #tpu.memory_space<vmem>>) attributes {dimension_semantics = [#tpu.dimension_semantics<parallel>], iteration_bounds = array<i64: 1>, scalar_prefetch = 0 : i64, scratch_operands = 0 : i64, tpu.core_type = #tpu.core_type<tc>, window_params = [{transform_indices = @transform_0, window_bounds = array<i64: 64, 32>}, {pipeline_mode = #tpu.pipeline_mode<synchronous>, transform_indices = @transform_1, window_bounds = array<i64: 32, 16>}, {pipeline_mode = #tpu.pipeline_mode<synchronous>, transform_indices = @transform_2, window_bounds = array<i64: 1, 16>}, {transform_indices = @transform_3, window_bounds = array<i64: 64, 16>}, {transform_indices = @transform_4, window_bounds = array<i64: 64, 16>}]} {
    %c0 = arith.constant 0 : index
    %c0_0 = arith.constant 0 : index
    %0 = vector.load %arg1[%c0, %c0_0] : memref<64x32xf32, #tpu.memory_space<vmem>>, vector<64x32xf32>
    %c0_1 = arith.constant 0 : index
    %c0_2 = arith.constant 0 : index
    %1 = vector.load %arg2[%c0_1, %c0_2] : memref<32x16xf32, #tpu.memory_space<vmem>>, vector<32x16xf32>
    %cst = arith.constant dense<0.000000e+00> : vector<64x16xf32>
    %2 = tpu.matmul %0, %1, %cst {dimension_numbers = #tpu.dot_dimension_numbers<[1], [0], [0], [1], [0, 0, 1, 1], [], []>} : vector<64x32xf32>, vector<32x16xf32>, vector<64x16xf32> -> vector<64x16xf32>
    %c0_3 = arith.constant 0 : index
    %c0_4 = arith.constant 0 : index
    %3 = vector.load %arg3[%c0_3, %c0_4] : memref<1x16xf32, #tpu.memory_space<vmem>>, vector<1x16xf32>
    %4 = vector.broadcast %3 : vector<1x16xf32> to vector<64x16xf32>
    %5 = arith.addf %2, %4 : vector<64x16xf32>
    %c0_5 = arith.constant 0 : index
    %c0_6 = arith.constant 0 : index
    %6 = vector.load %arg4[%c0_5, %c0_6] : memref<64x16xf32, #tpu.memory_space<vmem>>, vector<64x16xf32>
    %7 = arith.addf %5, %6 : vector<64x16xf32>
    %c0_7 = arith.constant 0 : index
    %c0_8 = arith.constant 0 : index
    %8 = vector.load %arg5[%c0_7, %c0_8] : memref<64x16xf32, #tpu.memory_space<vmem>>, vector<64x16xf32>
    tpu.vector_store %arg5[%c0_7, %c0_8], %7 {strides = array<i32>} : memref<64x16xf32, #tpu.memory_space<vmem>>, vector<64x16xf32>,
    return
  }
  func.func @transform_0(%arg0: i32) -> (i32, i32) {
    %c0_i32 = arith.constant 0 : i32
    %c0_i32_0 = arith.constant 0 : i32
    return %arg0, %c0_i32 : i32, i32
  }
  func.func @transform_1(%arg0: i32) -> (i32, i32) {
    %c0_i32 = arith.constant 0 : i32
    %c0_i32_0 = arith.constant 0 : i32
    %c0_i32_1 = arith.constant 0 : i32
    return %c0_i32, %c0_i32_0 : i32, i32
  }
  func.func @transform_2(%arg0: i32) -> (i32, i32) {
    %c0_i32 = arith.constant 0 : i32
    %c0_i32_0 = arith.constant 0 : i32
    %c0_i32_1 = arith.constant 0 : i32
    return %c0_i32, %c0_i32_0 : i32, i32
  }
  func.func @transform_3(%arg0: i32) -> (i32, i32) {
    %c0_i32 = arith.constant 0 : i32
    %c0_i32_0 = arith.constant 0 : i32
    return %arg0, %c0_i32 : i32, i32
  }
  func.func @transform_4(%arg0: i32) -> (i32, i32) {
    %c0_i32 = arith.constant 0 : i32
    %c0_i32_0 = arith.constant 0 : i32
    return %arg0, %c0_i32 : i32, i32
  }
}

</mosaic_0001>

<bundles_post_ra>
// kernel: evoformer_forward.56
= control target key start
LH: loop header
LB: loop body
LE: loop exit
PB: predicated region body
PF: predicated region fallthrough
CT: control target
= control target key end

     0   :  { %vm28_vm0 = vcmask 261120   ;;  %s550_s0 = inlined_call_operand.vmem [shape: f32[64,32], index: 0, kind: input, shape index: {}]   ;;  %s551_s1 = inlined_call_operand.vmem [shape: f32[32,128], index: 1, kind: input, shape index: {}]   ;;  %s552_s3 = inlined_call_operand.vmem [shape: f32[1,32], index: 3, kind: input, shape index: {}]   ;;  %s553_s4 = inlined_call_operand.vmem [shape: f32[1,32], index: 4, kind: input, shape index: {}]   ;;  %s554_s2 = inlined_call_operand.vmem [shape: f32[1,128], index: 2, kind: input, shape index: {}]   ;;  %s555_s5 = inlined_call_operand.vmem [shape: f32[64,128], index: 5, kind: output, shape index: {}]  }
   0x1   :  { %v20_v0 = vld [vmem:[%s550_s0] sm:$0xff]  ;;  %v21_v1 = vld [vmem:[%s550_s0 + $0x8] sm:$0xff]  ;;  %v22_v8 = vld [vmem:[%s550_s0 + $0x10] sm:$0xff] }
   0x2   :  { %v24_v2 = vld [vmem:[%s550_s0 + $0x20] sm:$0xff]  ;;  %v29_v3 = vsel %vm28_vm0, %v20_v0, 0.0  ;;  %v32_v4 = vsel %vm28_vm0, %v21_v1, 0.0  ;;  %v25_v5 = vld [vmem:[%s550_s0 + $0x28] sm:$0xff]  ;;  %v26_v9 = vld [vmem:[%s550_s0 + $0x30] sm:$0xff]  ;;  %v35_v10 = vsel %vm28_vm0, %v22_v8, 0.0 }
   0x3   :  { %30 = vadd.xlane.f32.xlu0 %v29_v3  ;;  %33 = vadd.xlane.f32.xlu1 %v32_v4  ;;  %v41_v6 = vsel %vm28_vm0, %v24_v2, 0.0  ;;  %v44_v7 = vsel %vm28_vm0, %v25_v5, 0.0  ;;  %v47_v11 = vsel %vm28_vm0, %v26_v9, 0.0  ;;  %v23_v12 = vld [vmem:[%s550_s0 + $0x18] sm:$0xff]  ;;  %v164_v56 = vld [vmem:[%s551_s1] sm:$0xff]  ;;  %v165_v57 = vld [vmem:[%s551_s1 + $0x8] sm:$0xff] }
   0x4   :  { %v27_v13 = vld [vmem:[%s550_s0 + $0x38] sm:$0xff]  ;;  %v38_v14 = vsel %vm28_vm0, %v23_v12, 0.0  ;;  %v359_v58 = vpack.c.bf16 %v165_v57, %v164_v56  ;;  %v166_v59 = vld [vmem:[%s551_s1 + $0x10] sm:$0xff] }
   0x5   :  { %v50_v15 = vsel %vm28_vm0, %v27_v13, 0.0  ;;  %v167_v60 = vld [vmem:[%s551_s1 + $0x18] sm:$0xff] }
   0x6   :  { %360 = vmatprep.subr.bf16.mxu0 %v359_v58  ;;  %367 = vmatprep.subr.bf16.mxu1 %v359_v58  ;;  %v363_v61 = vpack.c.bf16 %v167_v60, %v166_v59 }
   0x7   :  { %42 = vadd.xlane.f32.xlu0 %v41_v6  ;;  %45 = vadd.xlane.f32.xlu1 %v44_v7 }
   0x8   :  { %362 = vmatpush3.bf16.msra.mxu0 %v359_v58  ;;  %369 = vmatpush3.bf16.msra.mxu1 %v359_v58 }
   0x9   :  { %364 = vmatprep.subr.bf16.mxu0 %v363_v61  ;;  %368 = vmatprep.subr.bf16.mxu1 %v363_v61 }
   0xb   :  { %36 = vadd.xlane.f32.xlu0 %v35_v10  ;;  %48 = vadd.xlane.f32.xlu1 %v47_v11 }
   0xc   :  { %366 = vmatpush3.bf16.msra.mxu0 %v363_v61  ;;  %370 = vmatpush3.bf16.msra.mxu1 %v363_v61 }
   0xf   :  { %39 = vadd.xlane.f32.xlu0 %v38_v14  ;;  %51 = vadd.xlane.f32.xlu1 %v50_v15 }
  0x90   :  { %v31_v16 = vpop.xlane.xlu0 %30  ;;  %v34_v17 = vpop.xlane.xlu1 %33 }
  0x91   :  { %v54_v18 = vmul.f32 0.03125, %v31_v16  ;;  %v55_v19 = vmul.f32 0.03125, %v34_v17 }
  0x93   :  { %v449_v20 = vsub.f32 %v20_v0, %v54_v18  ;;  %v451_v21 = vsub.f32 %v21_v1, %v55_v19 }
  0x94   :  { %v43_v22 = vpop.xlane.xlu0 %42  ;;  %v46_v23 = vpop.xlane.xlu1 %45 }
  0x95   :  { %v58_v24 = vmul.f32 0.03125, %v43_v22  ;;  %v59_v25 = vmul.f32 0.03125, %v46_v23  ;;  %v70_v26 = vmul.f32 %v449_v20, %v449_v20  ;;  %v71_v27 = vmul.f32 %v451_v21, %v451_v21  ;;  %v316_v22 = vld [vmem:[%s552_s3] ss:$0 sm:$0xff] }
  0x97   :  { %v457_v28 = vsub.f32 %v24_v2, %v58_v24  ;;  %v459_v29 = vsub.f32 %v25_v5, %v59_v25  ;;  %v78_v30 = vsel %vm28_vm0, %v70_v26, 0.0  ;;  %v81_v33 = vsel %vm28_vm0, %v71_v27, 0.0  ;;  %v317_v26 = vld [vmem:[%s553_s4] ss:$0 sm:$0xff] }
  0x98   :  { %79 = vadd.xlane.f32.xlu0 %v78_v30  ;;  %v37_v31 = vpop.xlane.xlu0 %36  ;;  %v49_v32 = vpop.xlane.xlu1 %48 }
  0x99   :  { %v56_v34 = vmul.f32 0.03125, %v37_v31  ;;  %v60_v35 = vmul.f32 0.03125, %v49_v32  ;;  %v74_v36 = vmul.f32 %v457_v28, %v457_v28  ;;  %v75_v37 = vmul.f32 %v459_v29, %v459_v29 }
  0x9b   :  { %v467_v38 = vsub.f32 %v22_v8, %v56_v34  ;;  %v469_v39 = vsub.f32 %v26_v9, %v60_v35  ;;  %v90_v40 = vsel %vm28_vm0, %v74_v36, 0.0  ;;  %v93_v43 = vsel %vm28_vm0, %v75_v37, 0.0 }
  0x9c   :  { %82 = vadd.xlane.f32.xlu0 %v81_v33  ;;  %91 = vadd.xlane.f32.xlu1 %v90_v40  ;;  %v40_v41 = vpop.xlane.xlu0 %39  ;;  %v52_v42 = vpop.xlane.xlu1 %51 }
  0x9d   :  { %v57_v44 = vmul.f32 0.03125, %v40_v41  ;;  %v61_v45 = vmul.f32 0.03125, %v52_v42  ;;  %v72_v46 = vmul.f32 %v467_v38, %v467_v38  ;;  %v76_v47 = vmul.f32 %v469_v39, %v469_v39 }
  0x9f   :  { %v477_v48 = vsub.f32 %v23_v12, %v57_v44  ;;  %v479_v49 = vsub.f32 %v27_v13, %v61_v45  ;;  %v84_v50 = vsel %vm28_vm0, %v72_v46, 0.0  ;;  %v96_v51 = vsel %vm28_vm0, %v76_v47, 0.0 }
  0xa0   :  { %94 = vadd.xlane.f32.xlu1 %v93_v43  ;;  %85 = vadd.xlane.f32.xlu0 %v84_v50 }
  0xa1   :  { %v73_v52 = vmul.f32 %v477_v48, %v477_v48  ;;  %v77_v53 = vmul.f32 %v479_v49, %v479_v49 }
  0xa3   :  { %v87_v54 = vsel %vm28_vm0, %v73_v52, 0.0  ;;  %v99_v55 = vsel %vm28_vm0, %v77_v53, 0.0 }
  0xa4   :  { %97 = vadd.xlane.f32.xlu1 %v96_v51  ;;  %88 = vadd.xlane.f32.xlu0 %v87_v54 }
  0xa8   :  { %100 = vadd.xlane.f32.xlu1 %v99_v55 }
 0x125   :  { %v80_v62 = vpop.xlane.xlu0 %79 }
 0x126   :  { %v102_v63 = vmul.f32 0.03125, %v80_v62 }
 0x128   :  { %v110_v0 = vadd.f32 1e-05, %v102_v63 }
 0x129   :  { %v92_v1 = vpop.xlane.xlu1 %91  ;;  %v83_v2 = vpop.xlane.xlu0 %82 }
 0x12a   :  { %371 = vrsqrt.f32 %v110_v0  ;;  %v106_v3 = vmul.f32 0.03125, %v92_v1  ;;  %v103_v4 = vmul.f32 0.03125, %v83_v2 }
 0x12c   :  { %v114_v5 = vadd.f32 1e-05, %v106_v3  ;;  %v111_v6 = vadd.f32 1e-05, %v103_v4 }
 0x12d   :  { %v95_v7 = vpop.xlane.xlu1 %94  ;;  %v86_v8 = vpop.xlane.xlu0 %85 }
 0x12e   :  { %373 = vrsqrt.f32 %v114_v5  ;;  %v107_v9 = vmul.f32 0.03125, %v95_v7  ;;  %v104_v10 = vmul.f32 0.03125, %v86_v8 }
 0x12f   :  { %375 = vrsqrt.f32 %v111_v6 }
 0x130   :  { %v115_v11 = vadd.f32 1e-05, %v107_v9  ;;  %v112_v12 = vadd.f32 1e-05, %v104_v10 }
 0x131   :  { %v98_v13 = vpop.xlane.xlu1 %97  ;;  %v89_v14 = vpop.xlane.xlu0 %88 }
 0x132   :  { %377 = vrsqrt.f32 %v115_v11  ;;  %v108_v15 = vmul.f32 0.03125, %v98_v13  ;;  %v105_v16 = vmul.f32 0.03125, %v89_v14 }
 0x133   :  { %379 = vrsqrt.f32 %v112_v12 }
 0x134   :  { %v372_v17 = vpop.eup %371  ;;  %v116_v18 = vadd.f32 1e-05, %v108_v15  ;;  %v113_v19 = vadd.f32 1e-05, %v105_v16 }
 0x135   :  { %v101_v23 = vpop.xlane.xlu1 %100  ;;  %v126_v24 = vmul.f32 %v372_v17, %v449_v20 }
 0x136   :  { %381 = vrsqrt.f32 %v116_v18  ;;  %v109_v25 = vmul.f32 0.03125, %v101_v23 }
 0x137   :  { %383 = vrsqrt.f32 %v113_v19  ;;  %v141_v27 = vmul.f32 %v316_v22, %v126_v24 }
 0x138   :  { %v374_v30 = vpop.eup %373  ;;  %v117_v31 = vadd.f32 1e-05, %v109_v25 }
 0x139   :  { %v376_v32 = vpop.eup %375  ;;  %v156_v33 = vadd.f32 %v317_v26, %v141_v27  ;;  %v130_v34 = vmul.f32 %v374_v30, %v457_v28 }
 0x13a   :  { %385 = vrsqrt.f32 %v117_v31  ;;  %v127_v35 = vmul.f32 %v376_v32, %v451_v21 }
 0x13b   :  { %347 = vmatprep.mubr.msk.f32.mxu0 %vm28_vm0, %v156_v33  ;;  %v145_v20 = vmul.f32 %v316_v22, %v130_v34 }
 0x13c   :  { %v378_v36 = vpop.eup %377  ;;  %v142_v37 = vmul.f32 %v316_v22, %v127_v35 }
 0x13d   :  { %v380_v40 = vpop.eup %379  ;;  %v160_v41 = vadd.f32 %v317_v26, %v145_v20  ;;  %v131_v42 = vmul.f32 %v378_v36, %v459_v29 }
 0x13e   :  { %v157_v43 = vadd.f32 %v317_v26, %v142_v37  ;;  %v128_v44 = vmul.f32 %v380_v40, %v467_v38 }
 0x13f   :  { %353 = vmatprep.mubr.msk.f32.mxu1 %vm28_vm0, %v160_v41  ;;  %v146_v45 = vmul.f32 %v316_v22, %v131_v42 }
 0x140   :  { %v382_v46 = vpop.eup %381  ;;  %348 = vmatmul.mubr.msk.f32.vlgmr.msra.gmra.mrb[0].mxu0 %vm28_vm0, %v157_v43  ;;  %v143_v28 = vmul.f32 %v316_v22, %v128_v44 }
 0x141   :  { %v384_v21 = vpop.eup %383  ;;  %v161_v47 = vadd.f32 %v317_v26, %v146_v45  ;;  %v132_v50 = vmul.f32 %v382_v46, %v469_v39 }
 0x142   :  { %v158_v51 = vadd.f32 %v317_v26, %v143_v28  ;;  %v129_v52 = vmul.f32 %v384_v21, %v477_v48  ;;  %v318_v48 = vld [vmem:[%s554_s2] ss:$0 sm:$0xff] }
 0x143   :  { %354 = vmatmul.mubr.msk.f32.vlgmr.msra.gmra.mrb[0].mxu1 %vm28_vm0, %v161_v47  ;;  %v147_v29 = vmul.f32 %v316_v22, %v132_v50 }
 0x144   :  { %v386_v53 = vpop.eup %385  ;;  %350 = vmatprep.mubr.msk.f32.mxu0 %vm28_vm0, %v158_v51  ;;  %v144_v38 = vmul.f32 %v316_v22, %v129_v52 }
 0x145   :  { %v162_v54 = vadd.f32 %v317_v26, %v147_v29  ;;  %v133_v55 = vmul.f32 %v386_v53, %v479_v49 }
 0x146   :  { %v159_v56 = vadd.f32 %v317_v26, %v144_v38 }
 0x147   :  { %356 = vmatprep.mubr.msk.f32.mxu1 %vm28_vm0, %v162_v54  ;;  %v148_v57 = vmul.f32 %v316_v22, %v133_v55 }
 0x148   :  { %351 = vmatmul.mubr.msk.f32.gmra.mrb[2].mxu0 %vm28_vm0, %v159_v56 }
 0x149   :  { %v163_v39 = vadd.f32 %v317_v26, %v148_v57 }
 0x14b   :  { %357 = vmatmul.mubr.msk.f32.gmra.mrb[2].mxu1 %vm28_vm0, %v163_v39 }
 0x213   :  { %v349_v58 = vpop.f32.mrb[0].mxu0 }
 0x214   :  { %v271_v59 = vadd.f32 %v349_v58, %v318_v48  ;;  %v265_v60 = vpop.f32.mrb[1].mxu0 }
 0x215   :  { %v266_v61 = vadd.f32 %v318_v48, %v265_v60 }
 0x216   :  { %305 = vst [vmem:[%s555_s5 + $0x8] sm:$0xff] %v271_v59  ;;  %v355_v49 = vpop.f32.mrb[0].mxu1 }
 0x217   :  { %304 = vst [vmem:[%s555_s5] sm:$0xff] %v266_v61  ;;  %v291_v62 = vadd.f32 %v355_v49, %v318_v48  ;;  %v285_v63 = vpop.f32.mrb[1].mxu1 }
 0x218   :  { %v286_v0 = vadd.f32 %v318_v48, %v285_v63 }
 0x219   :  { %309 = vst [vmem:[%s555_s5 + $0x28] sm:$0xff] %v291_v62 }
 0x21a   :  { %308 = vst [vmem:[%s555_s5 + $0x20] sm:$0xff] %v286_v0 }
 0x21b   :  { %v352_v1 = vpop.f32.mrb[2].mxu0 }
 0x21c   :  { %v281_v2 = vadd.f32 %v352_v1, %v318_v48  ;;  %v275_v3 = vpop.f32.mrb[3].mxu0 }
 0x21d   :  { %v276_v4 = vadd.f32 %v318_v48, %v275_v3 }
 0x21e   :  { %307 = vst [vmem:[%s555_s5 + $0x18] sm:$0xff] %v281_v2  ;;  %v358_v5 = vpop.f32.mrb[2].mxu1 }
 0x21f   :  { %306 = vst [vmem:[%s555_s5 + $0x10] sm:$0xff] %v276_v4  ;;  %v301_v6 = vadd.f32 %v358_v5, %v318_v48  ;;  %v295_v7 = vpop.f32.mrb[3].mxu1 }
 0x220   :  { %v296_v8 = vadd.f32 %v318_v48, %v295_v7 }
 0x221   :  { %311 = vst [vmem:[%s555_s5 + $0x38] sm:$0xff] %v301_v6 }
 0x222   :  { %310 = vst [vmem:[%s555_s5 + $0x30] sm:$0xff] %v296_v8 }

// kernel: evoformer_forward.57
= control target key start
LH: loop header
LB: loop body
LE: loop exit
PB: predicated region body
PF: predicated region fallthrough
CT: control target
= control target key end

     0   :  { %vm28_vm0 = vcmask 130048   ;;  %vm302_vm1 = vcmask 31744   ;;  %s539_s0 = inlined_call_operand.vmem [shape: f32[64,16], index: 0, kind: input, shape index: {}]   ;;  %s540_s1 = inlined_call_operand.vmem [shape: f32[16,4], index: 1, kind: input, shape index: {}]   ;;  %s541_s3 = inlined_call_operand.vmem [shape: f32[1,16], index: 3, kind: input, shape index: {}]   ;;  %s542_s4 = inlined_call_operand.vmem [shape: f32[1,16], index: 4, kind: input, shape index: {}]   ;;  %s543_s2 = inlined_call_operand.vmem [shape: f32[1,4], index: 2, kind: input, shape index: {}]   ;;  %s544_s5 = inlined_call_operand.vmem [shape: f32[64,4], index: 5, kind: output, shape index: {}]  }
   0x1   :  { %v20_v0 = vld [vmem:[%s539_s0] sm:$0xff]  ;;  %v21_v1 = vld [vmem:[%s539_s0 + $0x8] sm:$0xff]  ;;  %v22_v8 = vld [vmem:[%s539_s0 + $0x10] sm:$0xff] }
   0x2   :  { %v24_v2 = vld [vmem:[%s539_s0 + $0x20] sm:$0xff]  ;;  %v29_v3 = vsel %vm28_vm0, %v20_v0, 0.0  ;;  %v32_v4 = vsel %vm28_vm0, %v21_v1, 0.0  ;;  %v25_v5 = vld [vmem:[%s539_s0 + $0x28] sm:$0xff]  ;;  %v26_v9 = vld [vmem:[%s539_s0 + $0x30] sm:$0xff]  ;;  %v35_v10 = vsel %vm28_vm0, %v22_v8, 0.0 }
   0x3   :  { %30 = vadd.xlane.f32.xlu0 %v29_v3  ;;  %33 = vadd.xlane.f32.xlu1 %v32_v4  ;;  %v41_v6 = vsel %vm28_vm0, %v24_v2, 0.0  ;;  %v44_v7 = vsel %vm28_vm0, %v25_v5, 0.0  ;;  %v47_v11 = vsel %vm28_vm0, %v26_v9, 0.0  ;;  %v23_v12 = vld [vmem:[%s539_s0 + $0x18] sm:$0xff]  ;;  %v164_v56 = vld [vmem:[%s540_s1] sm:$0xff]  ;;  %v165_v57 = vld [vmem:[%s540_s1 + $0x8] sm:$0xff] }
   0x4   :  { %v27_v13 = vld [vmem:[%s539_s0 + $0x38] sm:$0xff]  ;;  %v38_v14 = vsel %vm28_vm0, %v23_v12, 0.0  ;;  %v352_v58 = vpack.c.bf16 %v165_v57, %v164_v56 }
   0x5   :  { %v50_v15 = vsel %vm28_vm0, %v27_v13, 0.0 }
   0x6   :  { %353 = vmatprep.subr.bf16.mxu0 %v352_v58  ;;  %356 = vmatprep.subr.bf16.mxu1 %v352_v58 }
   0x7   :  { %42 = vadd.xlane.f32.xlu0 %v41_v6  ;;  %45 = vadd.xlane.f32.xlu1 %v44_v7 }
   0x8   :  { %355 = vmatpush3.bf16.msra.mxu0 %v352_v58  ;;  %357 = vmatpush3.bf16.msra.mxu1 %v352_v58 }
   0xb   :  { %36 = vadd.xlane.f32.xlu0 %v35_v10  ;;  %48 = vadd.xlane.f32.xlu1 %v47_v11 }
   0xf   :  { %39 = vadd.xlane.f32.xlu0 %v38_v14  ;;  %51 = vadd.xlane.f32.xlu1 %v50_v15 }
  0x90   :  { %v31_v16 = vpop.xlane.xlu0 %30  ;;  %v34_v17 = vpop.xlane.xlu1 %33 }
  0x91   :  { %v54_v18 = vmul.f32 0.0625, %v31_v16  ;;  %v55_v19 = vmul.f32 0.0625, %v34_v17  ;;  %v315_v17 = vld [vmem:[%s541_s3] ss:$0 sm:$0xff] }
  0x93   :  { %v436_v20 = vsub.f32 %v20_v0, %v54_v18  ;;  %v438_v21 = vsub.f32 %v21_v1, %v55_v19 }
  0x94   :  { %v43_v22 = vpop.xlane.xlu0 %42  ;;  %v46_v23 = vpop.xlane.xlu1 %45 }
  0x95   :  { %v58_v24 = vmul.f32 0.0625, %v43_v22  ;;  %v59_v25 = vmul.f32 0.0625, %v46_v23  ;;  %v70_v26 = vmul.f32 %v436_v20, %v436_v20  ;;  %v71_v27 = vmul.f32 %v438_v21, %v438_v21  ;;  %v316_v23 = vld [vmem:[%s542_s4] ss:$0 sm:$0xff] }
  0x97   :  { %v444_v28 = vsub.f32 %v24_v2, %v58_v24  ;;  %v446_v29 = vsub.f32 %v25_v5, %v59_v25  ;;  %v78_v30 = vsel %vm28_vm0, %v70_v26, 0.0  ;;  %v81_v33 = vsel %vm28_vm0, %v71_v27, 0.0 }
  0x98   :  { %79 = vadd.xlane.f32.xlu0 %v78_v30  ;;  %v37_v31 = vpop.xlane.xlu0 %36  ;;  %v49_v32 = vpop.xlane.xlu1 %48 }
  0x99   :  { %v56_v34 = vmul.f32 0.0625, %v37_v31  ;;  %v60_v35 = vmul.f32 0.0625, %v49_v32  ;;  %v74_v36 = vmul.f32 %v444_v28, %v444_v28  ;;  %v75_v37 = vmul.f32 %v446_v29, %v446_v29 }
  0x9b   :  { %v454_v38 = vsub.f32 %v22_v8, %v56_v34  ;;  %v456_v39 = vsub.f32 %v26_v9, %v60_v35  ;;  %v90_v40 = vsel %vm28_vm0, %v74_v36, 0.0  ;;  %v93_v43 = vsel %vm28_vm0, %v75_v37, 0.0 }
  0x9c   :  { %82 = vadd.xlane.f32.xlu0 %v81_v33  ;;  %91 = vadd.xlane.f32.xlu1 %v90_v40  ;;  %v40_v41 = vpop.xlane.xlu0 %39  ;;  %v52_v42 = vpop.xlane.xlu1 %51 }
  0x9d   :  { %v57_v44 = vmul.f32 0.0625, %v40_v41  ;;  %v61_v45 = vmul.f32 0.0625, %v52_v42  ;;  %v72_v46 = vmul.f32 %v454_v38, %v454_v38  ;;  %v76_v47 = vmul.f32 %v456_v39, %v456_v39 }
  0x9f   :  { %v464_v48 = vsub.f32 %v23_v12, %v57_v44  ;;  %v466_v49 = vsub.f32 %v27_v13, %v61_v45  ;;  %v84_v50 = vsel %vm28_vm0, %v72_v46, 0.0  ;;  %v96_v51 = vsel %vm28_vm0, %v76_v47, 0.0 }
  0xa0   :  { %94 = vadd.xlane.f32.xlu1 %v93_v43  ;;  %85 = vadd.xlane.f32.xlu0 %v84_v50 }
  0xa1   :  { %v73_v52 = vmul.f32 %v464_v48, %v464_v48  ;;  %v77_v53 = vmul.f32 %v466_v49, %v466_v49 }
  0xa3   :  { %v87_v54 = vsel %vm28_vm0, %v73_v52, 0.0  ;;  %v99_v55 = vsel %vm28_vm0, %v77_v53, 0.0 }
  0xa4   :  { %97 = vadd.xlane.f32.xlu1 %v96_v51  ;;  %88 = vadd.xlane.f32.xlu0 %v87_v54 }
  0xa8   :  { %100 = vadd.xlane.f32.xlu1 %v99_v55 }
 0x125   :  { %v80_v59 = vpop.xlane.xlu0 %79 }
 0x126   :  { %v102_v60 = vmul.f32 0.0625, %v80_v59 }
 0x128   :  { %v110_v61 = vadd.f32 1e-05, %v102_v60 }
 0x129   :  { %v92_v62 = vpop.xlane.xlu1 %91  ;;  %v83_v63 = vpop.xlane.xlu0 %82 }
 0x12a   :  { %358 = vrsqrt.f32 %v110_v61  ;;  %v106_v0 = vmul.f32 0.0625, %v92_v62  ;;  %v103_v1 = vmul.f32 0.0625, %v83_v63 }
 0x12c   :  { %v114_v2 = vadd.f32 1e-05, %v106_v0  ;;  %v111_v3 = vadd.f32 1e-05, %v103_v1 }
 0x12d   :  { %v95_v4 = vpop.xlane.xlu1 %94  ;;  %v86_v5 = vpop.xlane.xlu0 %85 }
 0x12e   :  { %360 = vrsqrt.f32 %v114_v2  ;;  %v107_v6 = vmul.f32 0.0625, %v95_v4  ;;  %v104_v7 = vmul.f32 0.0625, %v86_v5 }
 0x12f   :  { %362 = vrsqrt.f32 %v111_v3 }
 0x130   :  { %v115_v8 = vadd.f32 1e-05, %v107_v6  ;;  %v112_v9 = vadd.f32 1e-05, %v104_v7 }
 0x131   :  { %v98_v10 = vpop.xlane.xlu1 %97  ;;  %v89_v11 = vpop.xlane.xlu0 %88 }
 0x132   :  { %364 = vrsqrt.f32 %v115_v8  ;;  %v108_v12 = vmul.f32 0.0625, %v98_v10  ;;  %v105_v13 = vmul.f32 0.0625, %v89_v11 }
 0x133   :  { %366 = vrsqrt.f32 %v112_v9 }
 0x134   :  { %v359_v14 = vpop.eup %358  ;;  %v116_v15 = vadd.f32 1e-05, %v108_v12  ;;  %v113_v16 = vadd.f32 1e-05, %v105_v13 }
 0x135   :  { %v101_v18 = vpop.xlane.xlu1 %100  ;;  %v126_v19 = vmul.f32 %v359_v14, %v436_v20 }
 0x136   :  { %368 = vrsqrt.f32 %v116_v15  ;;  %v109_v22 = vmul.f32 0.0625, %v101_v18 }
 0x137   :  { %370 = vrsqrt.f32 %v113_v16  ;;  %v141_v24 = vmul.f32 %v315_v17, %v126_v19 }
 0x138   :  { %v361_v25 = vpop.eup %360  ;;  %v117_v26 = vadd.f32 1e-05, %v109_v22 }
 0x139   :  { %v363_v27 = vpop.eup %362  ;;  %v156_v30 = vadd.f32 %v316_v23, %v141_v24  ;;  %v130_v31 = vmul.f32 %v361_v25, %v444_v28 }
 0x13a   :  { %372 = vrsqrt.f32 %v117_v26  ;;  %v127_v32 = vmul.f32 %v363_v27, %v438_v21 }
 0x13b   :  { %340 = vmatprep.mubr.msk.f32.mxu0 %vm28_vm0, %v156_v30  ;;  %v145_v20 = vmul.f32 %v315_v17, %v130_v31 }
 0x13c   :  { %v365_v33 = vpop.eup %364  ;;  %v142_v34 = vmul.f32 %v315_v17, %v127_v32 }
 0x13d   :  { %v367_v35 = vpop.eup %366  ;;  %v160_v36 = vadd.f32 %v316_v23, %v145_v20  ;;  %v131_v37 = vmul.f32 %v365_v33, %v446_v29 }
 0x13e   :  { %v157_v40 = vadd.f32 %v316_v23, %v142_v34  ;;  %v128_v41 = vmul.f32 %v367_v35, %v454_v38 }
 0x13f   :  { %346 = vmatprep.mubr.msk.f32.mxu1 %vm28_vm0, %v160_v36  ;;  %v146_v42 = vmul.f32 %v315_v17, %v131_v37 }
 0x140   :  { %v369_v43 = vpop.eup %368  ;;  %341 = vmatmul.mubr.msk.f32.vlgmr.msra.gmra.mrb[0].mxu0 %vm28_vm0, %v157_v40  ;;  %v143_v28 = vmul.f32 %v315_v17, %v128_v41 }
 0x141   :  { %v371_v21 = vpop.eup %370  ;;  %v161_v44 = vadd.f32 %v316_v23, %v146_v42  ;;  %v132_v45 = vmul.f32 %v369_v43, %v456_v39 }
 0x142   :  { %v158_v46 = vadd.f32 %v316_v23, %v143_v28  ;;  %v129_v47 = vmul.f32 %v371_v21, %v464_v48  ;;  %v317_v48 = vld [vmem:[%s543_s2] ss:$0 sm:$0xff] }
 0x143   :  { %347 = vmatmul.mubr.msk.f32.vlgmr.msra.gmra.mrb[0].mxu1 %vm28_vm0, %v161_v44  ;;  %v147_v29 = vmul.f32 %v315_v17, %v132_v45 }
 0x144   :  { %v373_v50 = vpop.eup %372  ;;  %343 = vmatprep.mubr.msk.f32.mxu0 %vm28_vm0, %v158_v46  ;;  %v144_v38 = vmul.f32 %v315_v17, %v129_v47 }
 0x145   :  { %v162_v51 = vadd.f32 %v316_v23, %v147_v29  ;;  %v133_v52 = vmul.f32 %v373_v50, %v466_v49 }
 0x146   :  { %v159_v53 = vadd.f32 %v316_v23, %v144_v38 }
 0x147   :  { %349 = vmatprep.mubr.msk.f32.mxu1 %vm28_vm0, %v162_v51  ;;  %v148_v54 = vmul.f32 %v315_v17, %v133_v52 }
 0x148   :  { %344 = vmatmul.mubr.msk.f32.gmra.mrb[2].mxu0 %vm28_vm0, %v159_v53 }
 0x149   :  { %v163_v39 = vadd.f32 %v316_v23, %v148_v54 }
 0x14b   :  { %350 = vmatmul.mubr.msk.f32.gmra.mrb[2].mxu1 %vm28_vm0, %v163_v39 }
 0x213   :  { %v342_v55 = vpop.f32.mrb[0].mxu0 }
 0x214   :  { %v269_v56 = vadd.f32 %v342_v55, %v317_v48  ;;  %v263_v57 = vpop.f32.mrb[1].mxu0 }
 0x215   :  { %v264_v58 = vadd.f32 %v317_v48, %v263_v57 }
 0x216   :  { %304 = vst.msk [vmem:[%s544_s5 + $0x8] sm:$0xff] %vm302_vm1, %v269_v56  ;;  %v348_v49 = vpop.f32.mrb[0].mxu1 }
 0x217   :  { %303 = vst.msk [vmem:[%s544_s5] sm:$0xff] %vm302_vm1, %v264_v58  ;;  %v289_v59 = vadd.f32 %v348_v49, %v317_v48  ;;  %v283_v60 = vpop.f32.mrb[1].mxu1 }
 0x218   :  { %v284_v61 = vadd.f32 %v317_v48, %v283_v60 }
 0x219   :  { %308 = vst.msk [vmem:[%s544_s5 + $0x28] sm:$0xff] %vm302_vm1, %v289_v59 }
 0x21a   :  { %307 = vst.msk [vmem:[%s544_s5 + $0x20] sm:$0xff] %vm302_vm1, %v284_v61 }
 0x21b   :  { %v345_v62 = vpop.f32.mrb[2].mxu0 }
 0x21c   :  { %v279_v63 = vadd.f32 %v345_v62, %v317_v48  ;;  %v273_v0 = vpop.f32.mrb[3].mxu0 }
 0x21d   :  { %v274_v1 = vadd.f32 %v317_v48, %v273_v0 }
 0x21e   :  { %306 = vst.msk [vmem:[%s544_s5 + $0x18] sm:$0xff] %vm302_vm1, %v279_v63  ;;  %v351_v2 = vpop.f32.mrb[2].mxu1 }
 0x21f   :  { %305 = vst.msk [vmem:[%s544_s5 + $0x10] sm:$0xff] %vm302_vm1, %v274_v1  ;;  %v299_v3 = vadd.f32 %v351_v2, %v317_v48  ;;  %v293_v4 = vpop.f32.mrb[3].mxu1 }
 0x220   :  { %v294_v5 = vadd.f32 %v317_v48, %v293_v4 }
 0x221   :  { %310 = vst.msk [vmem:[%s544_s5 + $0x38] sm:$0xff] %vm302_vm1, %v299_v3 }
 0x222   :  { %309 = vst.msk [vmem:[%s544_s5 + $0x30] sm:$0xff] %vm302_vm1, %v294_v5 }

// kernel: evoformer_forward.58
= control target key start
LH: loop header
LB: loop body
LE: loop exit
PB: predicated region body
PF: predicated region fallthrough
CT: control target
= control target key end

     0   :  { %s1064_s9 = smov 0   ;;  %s1163_s0 = inlined_call_operand.vmem [shape: f32[8,8,128], index: 0, kind: input, shape index: {}]   ;;  %s1164_s1 = inlined_call_operand.vmem [shape: f32[4,8,8], index: 1, kind: input, shape index: {}]   ;;  %s1165_s2 = inlined_call_operand.vmem [shape: f32[8,8,32], index: 2, kind: output, shape index: {}]  }
   0x1 LB: > { %s898_s10 = sadd.s32 4294967295, %s1030_s9   ;;  %p902_p0 = scmp.ge.s32.totalorder %s1030_s9, 1  ;;  %s1030_s9 = sphi %s1064_s9, %s12_s9  }
   0x2   : > { %p111_p1 = scmp.lt.s32.totalorder %s1030_s9, 9 }
   0x4   : > { %p112_p2 = pnand %p902_p0, %p111_p1 }
   0x5   : > { %p131_p3 = scmp.lt.s32.totalorder (!%p112_p2), %s898_s10, 7  ;;  %v1032_v0 = vmov (!%p112_p2), 0.0   ;;  %vm1033_vm0 = vmmov (!%p112_p2), 0   ;;  %s1034_s15 = smov (!%p112_p2), 96   ;;  %vm143_vm1 = vcmask (!%p112_p2), 64512   ;;  %v219_v4 = vld [vmem:[%s1164_s1] sm:$0xff] (!%p112_p2) }
   0x6   : > { %115 = sbr.rel (%p112_p2) target bundleno = 1538 (0x602), region = 28  ;;  %939 = vmatprep.subr.mxu0 (!%p112_p2), %v1032_v0  ;;  %941 = vmatprep.mubr.msk.f32.mxu0 (!%p112_p2), %vm1033_vm0, %v1032_v0  ;;  %s1035_s16 = smov (!%p112_p2), 64   ;;  %v910_v27 = vld [vmem:[%s1164_s1 + $0x8] sm:$0xff] (!%p112_p2)  ;;  %v914_v32 = vld [vmem:[%s1164_s1 + $0x10] sm:$0xff] (!%p112_p2)  ;;  %v918_v38 = vld [vmem:[%s1164_s1 + $0x18] sm:$0xff] (!%p112_p2)  ;;  %vm828_vm2 = vcmask (!%p112_p2), 130048  }
   0x7   : > { %944 = vmatprep.subr.mxu1 (!%p112_p2), %v1032_v0  ;;  %946 = vmatprep.mubr.msk.f32.mxu1 (!%p112_p2), %vm1033_vm0, %v1032_v0  ;;  %s1036_s17 = smov (!%p112_p2), 88   ;;  %s1037_s18 = smov (!%p112_p2), 120   ;;  %vm830_vm3 = vcmask (!%p112_p2), 195584   ;;  %vm843_vm4 = vcmask (!%p112_p2), 261120  }
   0x8   : > { %s1038_s19 = smov (!%p112_p2), 80   ;;  %s1039_s22 = smov (!%p112_p2), 72  }
   0x9   : > { %s1040_s23 = smov (!%p112_p2), 112   ;;  %s1041_s24 = smov (!%p112_p2), 104  }
   0xa   : > { %s1042_s3 = smov (!%p112_p2), 56   ;;  %s1043_s4 = smov (!%p112_p2), 40  }
   0xb   : > { %s1044_s5 = smov (!%p112_p2), 48   ;;  %s1045_s6 = smov (!%p112_p2), 8  }
   0xc   : > { %s1046_s7 = smov (!%p112_p2), 16   ;;  %s1047_s8 = smov (!%p112_p2), 24  }
   0xd   : > { %s1167_s10 = smov (!%p131_p3, %s898_s10), 7  ;;  %s1048_s12 = smov 32  }
   0xe   : > { %s903_s11 = sshll.u32 %s1167_s10, 3 }
   0xf   : > { %s134_s14 = scalar_lea.vmem %s1163_s0, %s903_s11 }
  0x10   : > { %v1086_v1 = vld [vmem:[%s134_s14] sm:$0xff] }
  0x11   : > { %141 = vrot.lane.b32.xlu0 %v1086_v1, %s1034_s15  ;;  %232 = vrot.lane.b32.xlu1 %v1086_v1, %s1035_s16  ;;  %s138_s15 = scalar_lea.vmem %s1165_s2, %s903_s11 }
  0x15   : > { %310 = vrot.lane.b32.xlu1 %v1086_v1, %s1036_s17 }
  0x19   : > { %308 = vrot.lane.b32.xlu1 %v1086_v1, %s1037_s18 }
  0x1d   : > { %479 = vrot.lane.b32.xlu1 %v1086_v1, %s1038_s19 }
  0x83   : > { %v142_v2 = vpop.permute.xlu0 %141  ;;  %v233_v9 = vpop.permute.xlu1 %232 }
  0x84   : > { %940 = vmatpush3.xpose.msk.msra.mxu0 %vm143_vm1, %v142_v2  ;;  %945 = vmatpush3.msra.mxu1 %v233_v9  ;;  %v920_v9 = vmul.f32 -1.442695, %v1086_v1 }
  0x85   : > { %954 = vmatprep.subr.mxu0 %v1032_v0  ;;  %949 = vmatprep.subr.mxu1 %v1032_v0 }
  0x87   : > { %942 = vmatmul.mubr.msk.f32.vlgmr.msra.gmra.mrb[0].mxu0 %vm143_vm1, %v1086_v1  ;;  %v311_v15 = vpop.permute.xlu1 %310 }
  0x88   : > { %956 = vmatprep.mubr.msk.f32.mxu0 %vm1033_vm0, %v1032_v0 }
  0x8b   : > { %v309_v16 = vpop.permute.xlu1 %308 }
  0x8f   : > { %v480_v17 = vpop.permute.xlu1 %479 }
 0x15a   : > { %v214_v3 = vpop.f32.mrb[0].mxu0 }
 0x15b   : > { %v218_v5 = vmul.f32 0.35355338, %v214_v3  ;;  %v943_v6 = vpop.f32.mrb[1].mxu0 }
 0x15d   : > { %v220_v7 = vadd.f32 %v219_v4, %v218_v5 }
 0x15f   : > { %v221_v8 = vsel %vm143_vm1, %v220_v7, -inf }
 0x160   : > { %222 = vmax.xlane.f32.xlu0 %v221_v8 }
 0x176   : > { %648 = vrot.lane.b32.xlu0 %v1086_v1, %s1039_s22 }
 0x1ed   : > { %v223_v10 = vpop.xlane.xlu0 %222 }
 0x1ee   : > { %v224_v11 = vsub.f32 %v220_v7, %v223_v10 }
 0x1f0   : > { %v225_v12 = vmul.f32 1.442695, %v224_v11 }
 0x1f1   : > { %v649_v22 = vpop.permute.xlu0 %648 }
 0x1f2   : > { %1004 = vpow2.f32 %v225_v12 }
 0x1fc   : > { %v1005_v13 = vpop.eup %1004 }
 0x1fd   : > { %v227_v14 = vsel %vm143_vm1, %v1005_v13, 0.0 }
 0x1fe   : > { %228 = vadd.xlane.f32.xlu1 %v227_v14 }
 0x20f   : > { %477 = vrot.lane.b32.xlu1 %v1086_v1, %s1040_s23 }
 0x213   : > { %646 = vrot.lane.b32.xlu1 %v1086_v1, %s1041_s24 }
 0x28b   : > { %v229_v18 = vpop.xlane.xlu1 %228 }
 0x28c   : > { %1006 = vrcp.f32 %v229_v18 }
 0x28f   : > { %v478_v21 = vpop.permute.xlu1 %477 }
 0x293   : > { %v647_v23 = vpop.permute.xlu1 %646 }
 0x296   : > { %v1007_v19 = vpop.eup %1006 }
 0x297   : > { %v231_v20 = vmul.f32 %v1007_v19, %v1005_v13 }
 0x299   : > { %947 = vmatmul.mubr.msk.f32.vlgmr.msra.gmra.mrb[0].mxu1 %vm143_vm1, %v231_v20 }
 0x29a   : > { %950 = vmatpush3.xpose.msk.msra.mxu1 %vm143_vm1, %v311_v15  ;;  %951 = vmatprep.mubr.msk.f32.mxu1 %vm1033_vm0, %v1032_v0 }
 0x29b   : > { %959 = vmatprep.subr.mxu1 %v1032_v0 }
 0x29d   : > { %952 = vmatmul.mubr.msk.f32.vlgmr.msra.gmra.mrb[2].mxu1 %vm143_vm1, %v309_v16 }
 0x29e   : > { %960 = vmatpush3.xpose.msk.msra.mxu1 %vm143_vm1, %v480_v17  ;;  %961 = vmatprep.mubr.msk.f32.mxu1 %vm1033_vm0, %v1032_v0 }
 0x29f   : > { %969 = vmatprep.subr.mxu1 %v1032_v0 }
 0x2a1   : > { %962 = vmatmul.mubr.msk.f32.vlgmr.msra.gmra.mrb[4].mxu1 %vm143_vm1, %v478_v21 }
 0x2a2   : > { %970 = vmatpush3.xpose.msk.msra.mxu1 %vm143_vm1, %v649_v22  ;;  %971 = vmatprep.mubr.msk.f32.mxu1 %vm1033_vm0, %v1032_v0 }
 0x2a5   : > { %972 = vmatmul.mubr.msk.f32.vlgmr.msra.gmra.mrb[6].mxu1 %vm143_vm1, %v647_v23 }
 0x36c   : > { %v1123_v24 = vpop.f32.mrb[0].mxu1 }
 0x36d   : > { %v948_v25 = vpop.f32.mrb[1].mxu1 }
 0x370   : > { %v382_v26 = vpop.f32.mrb[2].mxu1 }
 0x371   : > { %v386_v28 = vmul.f32 0.35355338, %v382_v26  ;;  %v953_v29 = vpop.f32.mrb[3].mxu1 }
 0x373   : > { %v389_v30 = vadd.f32 %v910_v27, %v386_v28 }
 0x374   : > { %v551_v31 = vpop.f32.mrb[4].mxu1 }
 0x375   : > { %v555_v33 = vmul.f32 0.35355338, %v551_v31  ;;  %v963_v34 = vpop.f32.mrb[5].mxu1  ;;  %v390_v35 = vsel %vm143_vm1, %v389_v30, -inf }
 0x376   : > { %391 = vmax.xlane.f32.xlu1 %v390_v35 }
 0x377   : > { %v558_v36 = vadd.f32 %v914_v32, %v555_v33 }
 0x378   : > { %v720_v37 = vpop.f32.mrb[6].mxu1 }
 0x379   : > { %v724_v39 = vmul.f32 0.35355338, %v720_v37  ;;  %v973_v40 = vpop.f32.mrb[7].mxu1  ;;  %v559_v41 = vsel %vm143_vm1, %v558_v36, -inf }
 0x37a   : > { %560 = vmax.xlane.f32.xlu0 %v559_v41 }
 0x37b   : > { %v727_v42 = vadd.f32 %v918_v38, %v724_v39 }
 0x37d   : > { %v728_v43 = vsel %vm143_vm1, %v727_v42, -inf }
 0x37e   : > { %729 = vmax.xlane.f32.xlu1 %v728_v43 }
 0x38f   : > { %401 = vrot.lane.b32.xlu1 %v1086_v1, %s1042_s3 }
 0x403   : > { %v392_v44 = vpop.xlane.xlu1 %391 }
 0x404   : > { %v393_v45 = vsub.f32 %v389_v30, %v392_v44 }
 0x406   : > { %v394_v46 = vmul.f32 1.442695, %v393_v45 }
 0x407   : > { %v561_v47 = vpop.xlane.xlu0 %560 }
 0x408   : > { %1008 = vpow2.f32 %v394_v46  ;;  %v562_v48 = vsub.f32 %v558_v36, %v561_v47 }
 0x40a   : > { %v563_v49 = vmul.f32 1.442695, %v562_v48 }
 0x40b   : > { %v730_v50 = vpop.xlane.xlu1 %729 }
 0x40c   : > { %1010 = vpow2.f32 %v563_v49  ;;  %v731_v51 = vsub.f32 %v727_v42, %v730_v50 }
 0x40e   : > { %v732_v52 = vmul.f32 1.442695, %v731_v51 }
 0x40f   : > { %v402_v53 = vpop.permute.xlu1 %401 }
 0x410   : > { %1012 = vpow2.f32 %v732_v52  ;;  %955 = vmatpush3.msra.mxu0 %v402_v53 }
 0x411   : > { %964 = vmatprep.subr.mxu0 %v1032_v0 }
 0x412   : > { %v1009_v54 = vpop.eup %1008 }
 0x413   : > { %v396_v55 = vsel %vm143_vm1, %v1009_v54, 0.0 }
 0x414   : > { %397 = vadd.xlane.f32.xlu1 %v396_v55 }
 0x416   : > { %v1011_v56 = vpop.eup %1010 }
 0x417   : > { %v565_v57 = vsel %vm143_vm1, %v1011_v56, 0.0 }
 0x418   : > { %566 = vadd.xlane.f32.xlu1 %v565_v57 }
 0x41a   : > { %v1013_v58 = vpop.eup %1012 }
 0x41b   : > { %v734_v59 = vsel %vm143_vm1, %v1013_v58, 0.0 }
 0x41c   : > { %735 = vadd.xlane.f32.xlu0 %v734_v59 }
 0x429   : > { %739 = vrot.lane.b32.xlu1 %v1086_v1, %s1043_s4 }
 0x432   : > { %570 = vrot.lane.b32.xlu0 %v1086_v1, %s1044_s5 }
 0x4a1   : > { %v398_v60 = vpop.xlane.xlu1 %397 }
 0x4a2   : > { %1014 = vrcp.f32 %v398_v60 }
 0x4a5   : > { %v567_v61 = vpop.xlane.xlu1 %566 }
 0x4a6   : > { %1016 = vrcp.f32 %v567_v61 }
 0x4a9   : > { %v736_v62 = vpop.xlane.xlu0 %735  ;;  %v740_v6 = vpop.permute.xlu1 %739 }
 0x4aa   : > { %1018 = vrcp.f32 %v736_v62 }
 0x4ab   : > { %1020 = vpow2.f32 %v920_v9 }
 0x4ac   : > { %v1015_v63 = vpop.eup %1014 }
 0x4ad   : > { %v400_v2 = vmul.f32 %v1015_v63, %v1009_v54  ;;  %v571_v3 = vpop.permute.xlu0 %570 }
 0x4af   : > { %957 = vmatmul.mubr.msk.f32.vlgmr.msra.gmra.mrb[2].mxu0 %vm143_vm1, %v400_v2 }
 0x4b0   : > { %v1017_v4 = vpop.eup %1016  ;;  %965 = vmatpush3.msra.mxu0 %v571_v3  ;;  %966 = vmatprep.mubr.msk.f32.mxu0 %vm1033_vm0, %v1032_v0 }
 0x4b1   : > { %v569_v5 = vmul.f32 %v1017_v4, %v1011_v56  ;;  %974 = vmatprep.subr.mxu0 %v1032_v0 }
 0x4b3   : > { %967 = vmatmul.mubr.msk.f32.vlgmr.msra.gmra.mrb[4].mxu0 %vm143_vm1, %v569_v5 }
 0x4b4   : > { %v1019_v7 = vpop.eup %1018  ;;  %975 = vmatpush3.msra.mxu0 %v740_v6  ;;  %976 = vmatprep.mubr.msk.f32.mxu0 %vm1033_vm0, %v1032_v0 }
 0x4b5   : > { %v738_v8 = vmul.f32 %v1019_v7, %v1013_v58  ;;  %v1021_v10 = vpop.eup %1020 }
 0x4b6   : > { %v835_v11 = vadd.f32 1.0, %v1021_v10 }
 0x4b7   : > { %977 = vmatmul.mubr.msk.f32.vlgmr.msra.gmra.mrb[6].mxu0 %vm143_vm1, %v738_v8 }
 0x4b8   : > { %1022 = vrcp.f32 %v835_v11 }
 0x4c2   : > { %v1023_v16 = vpop.eup %1022 }
 0x582   : > { %v473_v12 = vpop.f32.mrb[2].mxu0 }
 0x583   : > { %816 = vrot.lane.b32.xlu1 %v473_v12, %s1045_s6  ;;  %v958_v13 = vpop.f32.mrb[3].mxu0 }
 0x586   : > { %v642_v14 = vpop.f32.mrb[4].mxu0 }
 0x587   : > { %820 = vrot.lane.b32.xlu0 %v642_v14, %s1046_s7  ;;  %v968_v15 = vpop.f32.mrb[5].mxu0 }
 0x58a   : > { %v811_v0 = vpop.f32.mrb[6].mxu0 }
 0x58b   : > { %824 = vrot.lane.b32.xlu1 %v811_v0, %s1047_s8  ;;  %v978_v17 = vpop.f32.mrb[7].mxu0  ;;  %839 = vrot.lane.b32.xlu0 %v1023_v16, %s1048_s12 }
 0x5f5   : > { %v817_v1 = vpop.permute.xlu1 %816 }
 0x5f6   : > { %v827_v19 = vsel %vm143_vm1, %v1123_v24, %v817_v1 }
 0x5f9   : > { %v821_v18 = vpop.permute.xlu0 %820 }
 0x5fa   : > { %v829_v20 = vsel %vm828_vm2, %v827_v19, %v821_v18 }
 0x5fd   : > { %v825_v21 = vpop.permute.xlu1 %824  ;;  %v840_v22 = vpop.permute.xlu0 %839 }
 0x5fe   : > { %v831_v23 = vsel %vm830_vm3, %v829_v20, %v825_v21 }
 0x5ff   : > { %v842_v25 = vmul.f32 %v840_v22, %v831_v23 }
 0x601   : > { %844 = vst.msk [vmem:[%s138_s15] sm:$0xff] %vm843_vm4, %v842_v25 }
 0x602 PF: > { %s12_s9 = sadd.s32 1, %s1030_s9  }
 0x603   : > { %p9_p4 = scmp.ge.s32.totalorder %s12_s9, 10  }
 0x605   :  { %11 = sbr.rel (!%p9_p4) target bundleno = 1 (0x1), region = 61 }

// kernel: evoformer_forward.59
= control target key start
LH: loop header
LB: loop body
LE: loop exit
PB: predicated region body
PF: predicated region fallthrough
CT: control target
= control target key end

     0   :  { %vm36_vm0 = vcmask 261120   ;;  %s375_s1 = inlined_call_operand.vmem [shape: f32[32,32], index: 1, kind: input, shape index: {}]   ;;  %s376_s0 = inlined_call_operand.vmem [shape: f32[64,32], index: 0, kind: input, shape index: {}]   ;;  %s377_s2 = inlined_call_operand.vmem [shape: f32[1,32], index: 2, kind: input, shape index: {}]   ;;  %s378_s3 = inlined_call_operand.vmem [shape: f32[64,32], index: 3, kind: input, shape index: {}]   ;;  %s379_s4 = inlined_call_operand.vmem [shape: f32[64,32], index: 4, kind: output, shape index: {}]  }
   0x1   :  { %v25_v0 = vld [vmem:[%s375_s1] sm:$0xff]  ;;  %v26_v1 = vld [vmem:[%s375_s1 + $0x8] sm:$0xff]  ;;  %v27_v2 = vld [vmem:[%s375_s1 + $0x10] sm:$0xff] }
   0x2   :  { %v235_v3 = vpack.c.bf16 %v26_v1, %v25_v0  ;;  %v28_v4 = vld [vmem:[%s375_s1 + $0x18] sm:$0xff]  ;;  %v17_v5 = vld [vmem:[%s376_s0] sm:$0xff]  ;;  %v18_v8 = vld [vmem:[%s376_s0 + $0x8] sm:$0xff] }
   0x3   :  { %v21_v6 = vld [vmem:[%s376_s0 + $0x20] sm:$0xff]  ;;  %v239_v7 = vpack.c.bf16 %v28_v4, %v27_v2  ;;  %223 = vmatprep.mubr.msk.f32.mxu0 %vm36_vm0, %v17_v5  ;;  %v22_v9 = vld [vmem:[%s376_s0 + $0x28] sm:$0xff]  ;;  %v19_v10 = vld [vmem:[%s376_s0 + $0x10] sm:$0xff] }
   0x4   :  { %229 = vmatprep.mubr.msk.f32.mxu1 %vm36_vm0, %v21_v6  ;;  %236 = vmatprep.subr.bf16.mxu0 %v235_v3  ;;  %v23_v11 = vld [vmem:[%s376_s0 + $0x30] sm:$0xff]  ;;  %v20_v12 = vld [vmem:[%s376_s0 + $0x18] sm:$0xff]  ;;  %v194_v14 = vld [vmem:[%s377_s2] ss:$0 sm:$0xff] }
   0x5   :  { %243 = vmatprep.subr.bf16.mxu1 %v235_v3  ;;  %238 = vmatpush3.bf16.msra.mxu0 %v235_v3  ;;  %v24_v13 = vld [vmem:[%s376_s0 + $0x38] sm:$0xff]  ;;  %v167_v16 = vld [vmem:[%s378_s3 + $0x8] sm:$0xff]  ;;  %v166_v22 = vld [vmem:[%s378_s3] sm:$0xff] }
   0x6   :  { %245 = vmatpush3.bf16.msra.mxu1 %v235_v3  ;;  %240 = vmatprep.subr.bf16.mxu0 %v239_v7  ;;  %v171_v18 = vld [vmem:[%s378_s3 + $0x28] sm:$0xff]  ;;  %v170_v24 = vld [vmem:[%s378_s3 + $0x20] sm:$0xff]  ;;  %v169_v32 = vld [vmem:[%s378_s3 + $0x18] sm:$0xff] }
   0x7   :  { %244 = vmatprep.subr.bf16.mxu1 %v239_v7  ;;  %v173_v34 = vld [vmem:[%s378_s3 + $0x38] sm:$0xff]  ;;  %v168_v38 = vld [vmem:[%s378_s3 + $0x10] sm:$0xff] }
   0x8   :  { %v172_v40 = vld [vmem:[%s378_s3 + $0x30] sm:$0xff] }
   0x9   :  { %242 = vmatpush3.bf16.msra.mxu0 %v239_v7 }
   0xa   :  { %246 = vmatpush3.bf16.msra.mxu1 %v239_v7 }
   0xc   :  { %224 = vmatmul.mubr.msk.f32.vlgmr.msra.gmra.mrb[0].mxu0 %vm36_vm0, %v18_v8 }
   0xd   :  { %230 = vmatmul.mubr.msk.f32.vlgmr.msra.gmra.mrb[0].mxu1 %vm36_vm0, %v22_v9  ;;  %226 = vmatprep.mubr.msk.f32.mxu0 %vm36_vm0, %v19_v10 }
   0xe   :  { %232 = vmatprep.mubr.msk.f32.mxu1 %vm36_vm0, %v23_v11 }
  0x10   :  { %227 = vmatmul.mubr.msk.f32.gmra.mrb[2].mxu0 %vm36_vm0, %v20_v12 }
  0x11   :  { %233 = vmatmul.mubr.msk.f32.gmra.mrb[2].mxu1 %vm36_vm0, %v24_v13 }
  0xdf   :  { %v225_v15 = vpop.f32.mrb[0].mxu0 }
  0xe0   :  { %v231_v17 = vpop.f32.mrb[0].mxu1  ;;  %v133_v19 = vadd.f32 %v225_v15, %v194_v14  ;;  %v127_v21 = vpop.f32.mrb[1].mxu0 }
  0xe1   :  { %v153_v20 = vadd.f32 %v231_v17, %v194_v14  ;;  %v147_v23 = vpop.f32.mrb[1].mxu1  ;;  %v128_v25 = vadd.f32 %v194_v14, %v127_v21 }
  0xe2   :  { %v148_v26 = vadd.f32 %v194_v14, %v147_v23  ;;  %v175_v27 = vadd.f32 %v167_v16, %v133_v19 }
  0xe3   :  { %v179_v28 = vadd.f32 %v171_v18, %v153_v20  ;;  %v174_v29 = vadd.f32 %v166_v22, %v128_v25  ;;  %v228_v31 = vpop.f32.mrb[2].mxu0 }
  0xe4   :  { %v178_v30 = vadd.f32 %v170_v24, %v148_v26  ;;  %v234_v33 = vpop.f32.mrb[2].mxu1  ;;  %183 = vst.msk [vmem:[%s379_s4 + $0x8] sm:$0xff] %vm36_vm0, %v175_v27  ;;  %v143_v35 = vadd.f32 %v228_v31, %v194_v14  ;;  %v137_v37 = vpop.f32.mrb[3].mxu0 }
  0xe5   :  { %187 = vst.msk [vmem:[%s379_s4 + $0x28] sm:$0xff] %vm36_vm0, %v179_v28  ;;  %v163_v36 = vadd.f32 %v234_v33, %v194_v14  ;;  %v157_v39 = vpop.f32.mrb[3].mxu1  ;;  %182 = vst.msk [vmem:[%s379_s4] sm:$0xff] %vm36_vm0, %v174_v29  ;;  %v138_v41 = vadd.f32 %v194_v14, %v137_v37 }
  0xe6   :  { %186 = vst.msk [vmem:[%s379_s4 + $0x20] sm:$0xff] %vm36_vm0, %v178_v30  ;;  %v158_v42 = vadd.f32 %v194_v14, %v157_v39  ;;  %v177_v43 = vadd.f32 %v169_v32, %v143_v35 }
  0xe7   :  { %v181_v44 = vadd.f32 %v173_v34, %v163_v36  ;;  %v176_v45 = vadd.f32 %v168_v38, %v138_v41 }
  0xe8   :  { %v180_v46 = vadd.f32 %v172_v40, %v158_v42  ;;  %185 = vst.msk [vmem:[%s379_s4 + $0x18] sm:$0xff] %vm36_vm0, %v177_v43 }
  0xe9   :  { %189 = vst.msk [vmem:[%s379_s4 + $0x38] sm:$0xff] %vm36_vm0, %v181_v44  ;;  %184 = vst.msk [vmem:[%s379_s4 + $0x10] sm:$0xff] %vm36_vm0, %v176_v45 }
  0xea   :  { %188 = vst.msk [vmem:[%s379_s4 + $0x30] sm:$0xff] %vm36_vm0, %v180_v46 }

// kernel: evoformer_forward.63
= control target key start
LH: loop header
LB: loop body
LE: loop exit
PB: predicated region body
PF: predicated region fallthrough
CT: control target
= control target key end

     0   :  { %vm28_vm0 = vcmask 261120   ;;  %s558_s0 = inlined_call_operand.vmem [shape: f32[64,32], index: 0, kind: input, shape index: {}]   ;;  %s559_s1 = inlined_call_operand.vmem [shape: f32[32,128], index: 1, kind: input, shape index: {}]   ;;  %s560_s3 = inlined_call_operand.vmem [shape: f32[1,32], index: 3, kind: input, shape index: {}]   ;;  %s561_s4 = inlined_call_operand.vmem [shape: f32[1,32], index: 4, kind: input, shape index: {}]   ;;  %s562_s2 = inlined_call_operand.vmem [shape: f32[1,128], index: 2, kind: input, shape index: {}]   ;;  %s563_s5 = inlined_call_operand.vmem [shape: f32[64,128], index: 5, kind: output, shape index: {}]  }
   0x1   :  { %v20_v0 = vld [vmem:[%s558_s0] sm:$0xff]  ;;  %v21_v1 = vld [vmem:[%s558_s0 + $0x8] sm:$0xff]  ;;  %v22_v8 = vld [vmem:[%s558_s0 + $0x10] sm:$0xff] }
   0x2   :  { %v24_v2 = vld [vmem:[%s558_s0 + $0x20] sm:$0xff]  ;;  %v29_v3 = vsel %vm28_vm0, %v20_v0, 0.0  ;;  %v32_v4 = vsel %vm28_vm0, %v21_v1, 0.0  ;;  %v25_v5 = vld [vmem:[%s558_s0 + $0x28] sm:$0xff]  ;;  %v26_v9 = vld [vmem:[%s558_s0 + $0x30] sm:$0xff]  ;;  %v35_v10 = vsel %vm28_vm0, %v22_v8, 0.0 }
   0x3   :  { %30 = vadd.xlane.f32.xlu0 %v29_v3  ;;  %33 = vadd.xlane.f32.xlu1 %v32_v4  ;;  %v41_v6 = vsel %vm28_vm0, %v24_v2, 0.0  ;;  %v44_v7 = vsel %vm28_vm0, %v25_v5, 0.0  ;;  %v47_v11 = vsel %vm28_vm0, %v26_v9, 0.0  ;;  %v23_v12 = vld [vmem:[%s558_s0 + $0x18] sm:$0xff]  ;;  %v164_v56 = vld [vmem:[%s559_s1] sm:$0xff]  ;;  %v165_v57 = vld [vmem:[%s559_s1 + $0x8] sm:$0xff] }
   0x4   :  { %v27_v13 = vld [vmem:[%s558_s0 + $0x38] sm:$0xff]  ;;  %v38_v14 = vsel %vm28_vm0, %v23_v12, 0.0  ;;  %v367_v58 = vpack.c.bf16 %v165_v57, %v164_v56  ;;  %v166_v59 = vld [vmem:[%s559_s1 + $0x10] sm:$0xff] }
   0x5   :  { %v50_v15 = vsel %vm28_vm0, %v27_v13, 0.0  ;;  %v167_v60 = vld [vmem:[%s559_s1 + $0x18] sm:$0xff] }
   0x6   :  { %368 = vmatprep.subr.bf16.mxu0 %v367_v58  ;;  %375 = vmatprep.subr.bf16.mxu1 %v367_v58  ;;  %v371_v61 = vpack.c.bf16 %v167_v60, %v166_v59 }
   0x7   :  { %42 = vadd.xlane.f32.xlu0 %v41_v6  ;;  %45 = vadd.xlane.f32.xlu1 %v44_v7 }
   0x8   :  { %370 = vmatpush3.bf16.msra.mxu0 %v367_v58  ;;  %377 = vmatpush3.bf16.msra.mxu1 %v367_v58 }
   0x9   :  { %372 = vmatprep.subr.bf16.mxu0 %v371_v61  ;;  %376 = vmatprep.subr.bf16.mxu1 %v371_v61 }
   0xb   :  { %36 = vadd.xlane.f32.xlu0 %v35_v10  ;;  %48 = vadd.xlane.f32.xlu1 %v47_v11 }
   0xc   :  { %374 = vmatpush3.bf16.msra.mxu0 %v371_v61  ;;  %378 = vmatpush3.bf16.msra.mxu1 %v371_v61 }
   0xf   :  { %39 = vadd.xlane.f32.xlu0 %v38_v14  ;;  %51 = vadd.xlane.f32.xlu1 %v50_v15 }
  0x90   :  { %v31_v16 = vpop.xlane.xlu0 %30  ;;  %v34_v17 = vpop.xlane.xlu1 %33 }
  0x91   :  { %v54_v18 = vmul.f32 0.03125, %v31_v16  ;;  %v55_v19 = vmul.f32 0.03125, %v34_v17 }
  0x93   :  { %v457_v20 = vsub.f32 %v20_v0, %v54_v18  ;;  %v459_v21 = vsub.f32 %v21_v1, %v55_v19 }
  0x94   :  { %v43_v22 = vpop.xlane.xlu0 %42  ;;  %v46_v23 = vpop.xlane.xlu1 %45 }
  0x95   :  { %v58_v24 = vmul.f32 0.03125, %v43_v22  ;;  %v59_v25 = vmul.f32 0.03125, %v46_v23  ;;  %v70_v26 = vmul.f32 %v457_v20, %v457_v20  ;;  %v71_v27 = vmul.f32 %v459_v21, %v459_v21  ;;  %v324_v22 = vld [vmem:[%s560_s3] ss:$0 sm:$0xff] }
  0x97   :  { %v465_v28 = vsub.f32 %v24_v2, %v58_v24  ;;  %v467_v29 = vsub.f32 %v25_v5, %v59_v25  ;;  %v78_v30 = vsel %vm28_vm0, %v70_v26, 0.0  ;;  %v81_v33 = vsel %vm28_vm0, %v71_v27, 0.0  ;;  %v325_v26 = vld [vmem:[%s561_s4] ss:$0 sm:$0xff] }
  0x98   :  { %79 = vadd.xlane.f32.xlu0 %v78_v30  ;;  %v37_v31 = vpop.xlane.xlu0 %36  ;;  %v49_v32 = vpop.xlane.xlu1 %48 }
  0x99   :  { %v56_v34 = vmul.f32 0.03125, %v37_v31  ;;  %v60_v35 = vmul.f32 0.03125, %v49_v32  ;;  %v74_v36 = vmul.f32 %v465_v28, %v465_v28  ;;  %v75_v37 = vmul.f32 %v467_v29, %v467_v29 }
  0x9b   :  { %v475_v38 = vsub.f32 %v22_v8, %v56_v34  ;;  %v477_v39 = vsub.f32 %v26_v9, %v60_v35  ;;  %v90_v40 = vsel %vm28_vm0, %v74_v36, 0.0  ;;  %v93_v43 = vsel %vm28_vm0, %v75_v37, 0.0 }
  0x9c   :  { %82 = vadd.xlane.f32.xlu0 %v81_v33  ;;  %91 = vadd.xlane.f32.xlu1 %v90_v40  ;;  %v40_v41 = vpop.xlane.xlu0 %39  ;;  %v52_v42 = vpop.xlane.xlu1 %51 }
  0x9d   :  { %v57_v44 = vmul.f32 0.03125, %v40_v41  ;;  %v61_v45 = vmul.f32 0.03125, %v52_v42  ;;  %v72_v46 = vmul.f32 %v475_v38, %v475_v38  ;;  %v76_v47 = vmul.f32 %v477_v39, %v477_v39 }
  0x9f   :  { %v485_v48 = vsub.f32 %v23_v12, %v57_v44  ;;  %v487_v49 = vsub.f32 %v27_v13, %v61_v45  ;;  %v84_v50 = vsel %vm28_vm0, %v72_v46, 0.0  ;;  %v96_v51 = vsel %vm28_vm0, %v76_v47, 0.0 }
  0xa0   :  { %94 = vadd.xlane.f32.xlu1 %v93_v43  ;;  %85 = vadd.xlane.f32.xlu0 %v84_v50 }
  0xa1   :  { %v73_v52 = vmul.f32 %v485_v48, %v485_v48  ;;  %v77_v53 = vmul.f32 %v487_v49, %v487_v49 }
  0xa3   :  { %v87_v54 = vsel %vm28_vm0, %v73_v52, 0.0  ;;  %v99_v55 = vsel %vm28_vm0, %v77_v53, 0.0 }
  0xa4   :  { %97 = vadd.xlane.f32.xlu1 %v96_v51  ;;  %88 = vadd.xlane.f32.xlu0 %v87_v54 }
  0xa8   :  { %100 = vadd.xlane.f32.xlu1 %v99_v55 }
 0x125   :  { %v80_v62 = vpop.xlane.xlu0 %79 }
 0x126   :  { %v102_v63 = vmul.f32 0.03125, %v80_v62 }
 0x128   :  { %v110_v0 = vadd.f32 1e-05, %v102_v63 }
 0x129   :  { %v92_v1 = vpop.xlane.xlu1 %91  ;;  %v83_v2 = vpop.xlane.xlu0 %82 }
 0x12a   :  { %379 = vrsqrt.f32 %v110_v0  ;;  %v106_v3 = vmul.f32 0.03125, %v92_v1  ;;  %v103_v4 = vmul.f32 0.03125, %v83_v2 }
 0x12c   :  { %v114_v5 = vadd.f32 1e-05, %v106_v3  ;;  %v111_v6 = vadd.f32 1e-05, %v103_v4 }
 0x12d   :  { %v95_v7 = vpop.xlane.xlu1 %94  ;;  %v86_v8 = vpop.xlane.xlu0 %85 }
 0x12e   :  { %381 = vrsqrt.f32 %v114_v5  ;;  %v107_v9 = vmul.f32 0.03125, %v95_v7  ;;  %v104_v10 = vmul.f32 0.03125, %v86_v8 }
 0x12f   :  { %383 = vrsqrt.f32 %v111_v6 }
 0x130   :  { %v115_v11 = vadd.f32 1e-05, %v107_v9  ;;  %v112_v12 = vadd.f32 1e-05, %v104_v10 }
 0x131   :  { %v98_v13 = vpop.xlane.xlu1 %97  ;;  %v89_v14 = vpop.xlane.xlu0 %88 }
 0x132   :  { %385 = vrsqrt.f32 %v115_v11  ;;  %v108_v15 = vmul.f32 0.03125, %v98_v13  ;;  %v105_v16 = vmul.f32 0.03125, %v89_v14 }
 0x133   :  { %387 = vrsqrt.f32 %v112_v12 }
 0x134   :  { %v380_v17 = vpop.eup %379  ;;  %v116_v18 = vadd.f32 1e-05, %v108_v15  ;;  %v113_v19 = vadd.f32 1e-05, %v105_v16 }
 0x135   :  { %v101_v23 = vpop.xlane.xlu1 %100  ;;  %v126_v24 = vmul.f32 %v380_v17, %v457_v20 }
 0x136   :  { %389 = vrsqrt.f32 %v116_v18  ;;  %v109_v25 = vmul.f32 0.03125, %v101_v23 }
 0x137   :  { %391 = vrsqrt.f32 %v113_v19  ;;  %v141_v27 = vmul.f32 %v324_v22, %v126_v24 }
 0x138   :  { %v382_v30 = vpop.eup %381  ;;  %v117_v31 = vadd.f32 1e-05, %v109_v25 }
 0x139   :  { %v384_v32 = vpop.eup %383  ;;  %v156_v33 = vadd.f32 %v325_v26, %v141_v27  ;;  %v130_v34 = vmul.f32 %v382_v30, %v465_v28 }
 0x13a   :  { %393 = vrsqrt.f32 %v117_v31  ;;  %v127_v35 = vmul.f32 %v384_v32, %v459_v21 }
 0x13b   :  { %355 = vmatprep.mubr.msk.f32.mxu0 %vm28_vm0, %v156_v33  ;;  %v145_v20 = vmul.f32 %v324_v22, %v130_v34 }
 0x13c   :  { %v386_v36 = vpop.eup %385  ;;  %v142_v37 = vmul.f32 %v324_v22, %v127_v35 }
 0x13d   :  { %v388_v40 = vpop.eup %387  ;;  %v160_v41 = vadd.f32 %v325_v26, %v145_v20  ;;  %v131_v42 = vmul.f32 %v386_v36, %v467_v29 }
 0x13e   :  { %v157_v43 = vadd.f32 %v325_v26, %v142_v37  ;;  %v128_v44 = vmul.f32 %v388_v40, %v475_v38 }
 0x13f   :  { %361 = vmatprep.mubr.msk.f32.mxu1 %vm28_vm0, %v160_v41  ;;  %v146_v45 = vmul.f32 %v324_v22, %v131_v42 }
 0x140   :  { %v390_v46 = vpop.eup %389  ;;  %356 = vmatmul.mubr.msk.f32.vlgmr.msra.gmra.mrb[0].mxu0 %vm28_vm0, %v157_v43  ;;  %v143_v28 = vmul.f32 %v324_v22, %v128_v44 }
 0x141   :  { %v392_v21 = vpop.eup %391  ;;  %v161_v47 = vadd.f32 %v325_v26, %v146_v45  ;;  %v132_v50 = vmul.f32 %v390_v46, %v477_v39 }
 0x142   :  { %v158_v51 = vadd.f32 %v325_v26, %v143_v28  ;;  %v129_v52 = vmul.f32 %v392_v21, %v485_v48  ;;  %v326_v48 = vld [vmem:[%s562_s2] ss:$0 sm:$0xff] }
 0x143   :  { %362 = vmatmul.mubr.msk.f32.vlgmr.msra.gmra.mrb[0].mxu1 %vm28_vm0, %v161_v47  ;;  %v147_v29 = vmul.f32 %v324_v22, %v132_v50 }
 0x144   :  { %v394_v53 = vpop.eup %393  ;;  %358 = vmatprep.mubr.msk.f32.mxu0 %vm28_vm0, %v158_v51  ;;  %v144_v38 = vmul.f32 %v324_v22, %v129_v52 }
 0x145   :  { %v162_v54 = vadd.f32 %v325_v26, %v147_v29  ;;  %v133_v55 = vmul.f32 %v394_v53, %v487_v49 }
 0x146   :  { %v159_v56 = vadd.f32 %v325_v26, %v144_v38 }
 0x147   :  { %364 = vmatprep.mubr.msk.f32.mxu1 %vm28_vm0, %v162_v54  ;;  %v148_v57 = vmul.f32 %v324_v22, %v133_v55 }
 0x148   :  { %359 = vmatmul.mubr.msk.f32.gmra.mrb[2].mxu0 %vm28_vm0, %v159_v56 }
 0x149   :  { %v163_v39 = vadd.f32 %v325_v26, %v148_v57 }
 0x14b   :  { %365 = vmatmul.mubr.msk.f32.gmra.mrb[2].mxu1 %vm28_vm0, %v163_v39 }
 0x213   :  { %v357_v58 = vpop.f32.mrb[0].mxu0 }
 0x214   :  { %v271_v59 = vadd.f32 %v357_v58, %v326_v48  ;;  %v265_v60 = vpop.f32.mrb[1].mxu0 }
 0x215   :  { %v266_v61 = vadd.f32 %v326_v48, %v265_v60 }
 0x216   :  { %v305_v62 = vmax.f32 %v271_v59, 0.0  ;;  %v363_v63 = vpop.f32.mrb[0].mxu1 }
 0x217   :  { %v304_v49 = vmax.f32 %v266_v61, 0.0  ;;  %v291_v0 = vadd.f32 %v363_v63, %v326_v48  ;;  %v285_v1 = vpop.f32.mrb[1].mxu1 }
 0x218   :  { %313 = vst [vmem:[%s563_s5 + $0x8] sm:$0xff] %v305_v62  ;;  %v286_v2 = vadd.f32 %v326_v48, %v285_v1 }
 0x219   :  { %312 = vst [vmem:[%s563_s5] sm:$0xff] %v304_v49  ;;  %v309_v3 = vmax.f32 %v291_v0, 0.0 }
 0x21a   :  { %v308_v4 = vmax.f32 %v286_v2, 0.0 }
 0x21b   :  { %317 = vst [vmem:[%s563_s5 + $0x28] sm:$0xff] %v309_v3  ;;  %v360_v5 = vpop.f32.mrb[2].mxu0 }
 0x21c   :  { %316 = vst [vmem:[%s563_s5 + $0x20] sm:$0xff] %v308_v4  ;;  %v281_v6 = vadd.f32 %v360_v5, %v326_v48  ;;  %v275_v7 = vpop.f32.mrb[3].mxu0 }
 0x21d   :  { %v276_v8 = vadd.f32 %v326_v48, %v275_v7 }
 0x21e   :  { %v307_v9 = vmax.f32 %v281_v6, 0.0  ;;  %v366_v10 = vpop.f32.mrb[2].mxu1 }
 0x21f   :  { %v306_v11 = vmax.f32 %v276_v8, 0.0  ;;  %v301_v12 = vadd.f32 %v366_v10, %v326_v48  ;;  %v295_v13 = vpop.f32.mrb[3].mxu1 }
 0x220   :  { %315 = vst [vmem:[%s563_s5 + $0x18] sm:$0xff] %v307_v9  ;;  %v296_v14 = vadd.f32 %v326_v48, %v295_v13 }
 0x221   :  { %314 = vst [vmem:[%s563_s5 + $0x10] sm:$0xff] %v306_v11  ;;  %v311_v15 = vmax.f32 %v301_v12, 0.0 }
 0x222   :  { %v310_v16 = vmax.f32 %v296_v14, 0.0 }
 0x223   :  { %319 = vst [vmem:[%s563_s5 + $0x38] sm:$0xff] %v311_v15 }
 0x224   :  { %318 = vst [vmem:[%s563_s5 + $0x30] sm:$0xff] %v310_v16 }

// kernel: evoformer_forward.64
= control target key start
LH: loop header
LB: loop body
LE: loop exit
PB: predicated region body
PF: predicated region fallthrough
CT: control target
= control target key end

     0   :  { %vm169_vm0 = vcmask 261120   ;;  %s455_s1 = inlined_call_operand.vmem [shape: f32[128,32], index: 1, kind: input, shape index: {}]   ;;  %s456_s0 = inlined_call_operand.vmem [shape: f32[64,128], index: 0, kind: input, shape index: {}]   ;;  %s457_s2 = inlined_call_operand.vmem [shape: f32[1,32], index: 2, kind: input, shape index: {}]   ;;  %s458_s3 = inlined_call_operand.vmem [shape: f32[64,32], index: 3, kind: input, shape index: {}]   ;;  %s459_s4 = inlined_call_operand.vmem [shape: f32[64,32], index: 4, kind: output, shape index: {}]  }
   0x1   :  { %v25_v0 = vld [vmem:[%s455_s1] sm:$0xff]  ;;  %v26_v1 = vld [vmem:[%s455_s1 + $0x8] sm:$0xff]  ;;  %v27_v2 = vld [vmem:[%s455_s1 + $0x10] sm:$0xff] }
   0x2   :  { %v251_v3 = vpack.c.bf16 %v26_v1, %v25_v0  ;;  %v28_v4 = vld [vmem:[%s455_s1 + $0x18] sm:$0xff]  ;;  %v29_v6 = vld [vmem:[%s455_s1 + $0x20] sm:$0xff]  ;;  %v30_v7 = vld [vmem:[%s455_s1 + $0x28] sm:$0xff] }
   0x3   :  { %v255_v5 = vpack.c.bf16 %v28_v4, %v27_v2  ;;  %v259_v8 = vpack.c.bf16 %v30_v7, %v29_v6  ;;  %v17_v9 = vld [vmem:[%s456_s0] sm:$0xff]  ;;  %v31_v11 = vld [vmem:[%s455_s1 + $0x30] sm:$0xff]  ;;  %v32_v12 = vld [vmem:[%s455_s1 + $0x38] sm:$0xff] }
   0x4   :  { %252 = vmatprep.subr.bf16.mxu0 %v251_v3  ;;  %283 = vmatprep.subr.bf16.mxu1 %v251_v3  ;;  %v21_v10 = vld [vmem:[%s456_s0 + $0x20] sm:$0xff]  ;;  %v263_v13 = vpack.c.bf16 %v32_v12, %v31_v11  ;;  %v34_v15 = vld [vmem:[%s455_s1 + $0x48] sm:$0xff]  ;;  %v35_v17 = vld [vmem:[%s455_s1 + $0x50] sm:$0xff] }
   0x5   :  { %254 = vmatpush3.bf16.msra.mxu0 %v251_v3  ;;  %291 = vmatpush3.bf16.msra.mxu1 %v251_v3  ;;  %v33_v14 = vld [vmem:[%s455_s1 + $0x40] sm:$0xff]  ;;  %v36_v18 = vld [vmem:[%s455_s1 + $0x58] sm:$0xff]  ;;  %v38_v21 = vld [vmem:[%s455_s1 + $0x68] sm:$0xff] }
   0x6   :  { %256 = vmatprep.subr.bf16.mxu0 %v255_v5  ;;  %284 = vmatprep.subr.bf16.mxu1 %v255_v5  ;;  %v267_v16 = vpack.c.bf16 %v34_v15, %v33_v14  ;;  %v271_v19 = vpack.c.bf16 %v36_v18, %v35_v17  ;;  %v37_v20 = vld [vmem:[%s455_s1 + $0x60] sm:$0xff]  ;;  %v39_v23 = vld [vmem:[%s455_s1 + $0x70] sm:$0xff]  ;;  %v40_v24 = vld [vmem:[%s455_s1 + $0x78] sm:$0xff] }
   0x7   :  { %239 = vmatprep.mubr.f32.mxu0 %v17_v9  ;;  %245 = vmatprep.mubr.f32.mxu1 %v21_v10  ;;  %v275_v22 = vpack.c.bf16 %v38_v21, %v37_v20  ;;  %v279_v25 = vpack.c.bf16 %v40_v24, %v39_v23  ;;  %v18_v26 = vld [vmem:[%s456_s0 + $0x8] sm:$0xff]  ;;  %v19_v28 = vld [vmem:[%s456_s0 + $0x10] sm:$0xff]  ;;  %v20_v30 = vld [vmem:[%s456_s0 + $0x18] sm:$0xff] }
   0x8   :  { %v22_v27 = vld [vmem:[%s456_s0 + $0x28] sm:$0xff]  ;;  %v23_v29 = vld [vmem:[%s456_s0 + $0x30] sm:$0xff]  ;;  %v24_v31 = vld [vmem:[%s456_s0 + $0x38] sm:$0xff] }
   0x9   :  { %258 = vmatpush3.bf16.msra.mxu0 %v255_v5  ;;  %292 = vmatpush3.bf16.msra.mxu1 %v255_v5  ;;  %v182_v32 = vld [vmem:[%s457_s2] ss:$0 sm:$0xff]  ;;  %v154_v34 = vld [vmem:[%s458_s3 + $0x8] sm:$0xff]  ;;  %v156_v50 = vld [vmem:[%s458_s3 + $0x18] sm:$0xff] }
   0xa   :  { %260 = vmatprep.subr.bf16.mxu0 %v259_v8  ;;  %285 = vmatprep.subr.bf16.mxu1 %v259_v8  ;;  %v158_v36 = vld [vmem:[%s458_s3 + $0x28] sm:$0xff]  ;;  %v153_v40 = vld [vmem:[%s458_s3] sm:$0xff]  ;;  %v160_v52 = vld [vmem:[%s458_s3 + $0x38] sm:$0xff] }
   0xb   :  { %v157_v42 = vld [vmem:[%s458_s3 + $0x20] sm:$0xff]  ;;  %v155_v56 = vld [vmem:[%s458_s3 + $0x10] sm:$0xff] }
   0xc   :  { %v159_v58 = vld [vmem:[%s458_s3 + $0x30] sm:$0xff] }
   0xd   :  { %262 = vmatpush3.bf16.msra.mxu0 %v259_v8  ;;  %293 = vmatpush3.bf16.msra.mxu1 %v259_v8 }
   0xe   :  { %264 = vmatprep.subr.bf16.mxu0 %v263_v13  ;;  %286 = vmatprep.subr.bf16.mxu1 %v263_v13 }
  0x11   :  { %266 = vmatpush3.bf16.msra.mxu0 %v263_v13  ;;  %294 = vmatpush3.bf16.msra.mxu1 %v263_v13 }
  0x12   :  { %268 = vmatprep.subr.bf16.mxu0 %v267_v16  ;;  %287 = vmatprep.subr.bf16.mxu1 %v267_v16 }
  0x15   :  { %270 = vmatpush3.bf16.msra.mxu0 %v267_v16  ;;  %295 = vmatpush3.bf16.msra.mxu1 %v267_v16 }
  0x16   :  { %272 = vmatprep.subr.bf16.mxu0 %v271_v19  ;;  %288 = vmatprep.subr.bf16.mxu1 %v271_v19 }
  0x19   :  { %274 = vmatpush3.bf16.msra.mxu0 %v271_v19  ;;  %296 = vmatpush3.bf16.msra.mxu1 %v271_v19 }
  0x1a   :  { %276 = vmatprep.subr.bf16.mxu0 %v275_v22  ;;  %289 = vmatprep.subr.bf16.mxu1 %v275_v22 }
  0x1d   :  { %278 = vmatpush3.bf16.msra.mxu0 %v275_v22  ;;  %297 = vmatpush3.bf16.msra.mxu1 %v275_v22 }
  0x1e   :  { %280 = vmatprep.subr.bf16.mxu0 %v279_v25  ;;  %290 = vmatprep.subr.bf16.mxu1 %v279_v25 }
  0x21   :  { %282 = vmatpush3.bf16.msra.mxu0 %v279_v25  ;;  %298 = vmatpush3.bf16.msra.mxu1 %v279_v25 }
  0x24   :  { %240 = vmatmul.mubr.f32.vlgmr.msra.gmra.mrb[0].mxu0 %v18_v26  ;;  %246 = vmatmul.mubr.f32.vlgmr.msra.gmra.mrb[0].mxu1 %v22_v27 }
  0x25   :  { %242 = vmatprep.mubr.f32.mxu0 %v19_v28  ;;  %248 = vmatprep.mubr.f32.mxu1 %v23_v29 }
  0x28   :  { %243 = vmatmul.mubr.f32.gmra.mrb[2].mxu0 %v20_v30  ;;  %249 = vmatmul.mubr.f32.gmra.mrb[2].mxu1 %v24_v31 }
  0xf7   :  { %v241_v33 = vpop.f32.mrb[0].mxu0  ;;  %v247_v35 = vpop.f32.mrb[0].mxu1 }
  0xf8   :  { %v120_v37 = vadd.f32 %v241_v33, %v182_v32  ;;  %v140_v38 = vadd.f32 %v247_v35, %v182_v32  ;;  %v114_v39 = vpop.f32.mrb[1].mxu0  ;;  %v134_v41 = vpop.f32.mrb[1].mxu1 }
  0xf9   :  { %v115_v43 = vadd.f32 %v182_v32, %v114_v39  ;;  %v135_v44 = vadd.f32 %v182_v32, %v134_v41 }
  0xfa   :  { %v162_v45 = vadd.f32 %v154_v34, %v120_v37  ;;  %v166_v46 = vadd.f32 %v158_v36, %v140_v38 }
  0xfb   :  { %v161_v47 = vadd.f32 %v153_v40, %v115_v43  ;;  %v165_v48 = vadd.f32 %v157_v42, %v135_v44  ;;  %v244_v49 = vpop.f32.mrb[2].mxu0  ;;  %v250_v51 = vpop.f32.mrb[2].mxu1 }
  0xfc   :  { %171 = vst.msk [vmem:[%s459_s4 + $0x8] sm:$0xff] %vm169_vm0, %v162_v45  ;;  %175 = vst.msk [vmem:[%s459_s4 + $0x28] sm:$0xff] %vm169_vm0, %v166_v46  ;;  %v130_v53 = vadd.f32 %v244_v49, %v182_v32  ;;  %v150_v54 = vadd.f32 %v250_v51, %v182_v32  ;;  %v124_v55 = vpop.f32.mrb[3].mxu0  ;;  %v144_v57 = vpop.f32.mrb[3].mxu1 }
  0xfd   :  { %170 = vst.msk [vmem:[%s459_s4] sm:$0xff] %vm169_vm0, %v161_v47  ;;  %174 = vst.msk [vmem:[%s459_s4 + $0x20] sm:$0xff] %vm169_vm0, %v165_v48  ;;  %v125_v59 = vadd.f32 %v182_v32, %v124_v55  ;;  %v145_v60 = vadd.f32 %v182_v32, %v144_v57 }
  0xfe   :  { %v164_v61 = vadd.f32 %v156_v50, %v130_v53  ;;  %v168_v62 = vadd.f32 %v160_v52, %v150_v54 }
  0xff   :  { %v163_v63 = vadd.f32 %v155_v56, %v125_v59  ;;  %v167_v0 = vadd.f32 %v159_v58, %v145_v60 }
 0x100   :  { %173 = vst.msk [vmem:[%s459_s4 + $0x18] sm:$0xff] %vm169_vm0, %v164_v61  ;;  %177 = vst.msk [vmem:[%s459_s4 + $0x38] sm:$0xff] %vm169_vm0, %v168_v62 }
 0x101   :  { %172 = vst.msk [vmem:[%s459_s4 + $0x10] sm:$0xff] %vm169_vm0, %v163_v63  ;;  %176 = vst.msk [vmem:[%s459_s4 + $0x30] sm:$0xff] %vm169_vm0, %v167_v0 }

// kernel: evoformer_forward.61
= control target key start
LH: loop header
LB: loop body
LE: loop exit
PB: predicated region body
PF: predicated region fallthrough
CT: control target
= control target key end

     0   :  { %s1018_s6 = smov 0   ;;  %s1105_s0 = inlined_call_operand.vmem [shape: f32[8,8,128], index: 0, kind: input, shape index: {}]   ;;  %s1106_s1 = inlined_call_operand.vmem [shape: f32[8,8,32], index: 1, kind: output, shape index: {}]  }
   0x1 LB: > { %s860_s7 = sadd.s32 4294967295, %s989_s6   ;;  %p864_p0 = scmp.ge.s32.totalorder %s989_s6, 1  ;;  %s989_s6 = sphi %s1018_s6, %s11_s6  }
   0x2   : > { %p86_p1 = scmp.lt.s32.totalorder %s989_s6, 9 }
   0x4   : > { %p87_p2 = pnand %p864_p0, %p86_p1 }
   0x5   : > { %p104_p3 = scmp.lt.s32.totalorder (!%p87_p2), %s860_s7, 7  ;;  %v991_v0 = vmov (!%p87_p2), 0.0   ;;  %vm992_vm0 = vmmov (!%p87_p2), 0   ;;  %s993_s12 = smov (!%p87_p2), 96   ;;  %vm116_vm1 = vcmask (!%p87_p2), 64512   ;;  %vm790_vm2 = vcmask (!%p87_p2), 130048  }
   0x6   : > { %90 = sbr.rel (%p87_p2) target bundleno = 1534 (0x5fe), region = 24  ;;  %898 = vmatprep.subr.mxu0 (!%p87_p2), %v991_v0  ;;  %900 = vmatprep.mubr.msk.f32.mxu0 (!%p87_p2), %vm992_vm0, %v991_v0  ;;  %s994_s13 = smov (!%p87_p2), 64   ;;  %vm792_vm3 = vcmask (!%p87_p2), 195584   ;;  %vm805_vm4 = vcmask (!%p87_p2), 261120  }
   0x7   : > { %903 = vmatprep.subr.mxu1 (!%p87_p2), %v991_v0  ;;  %905 = vmatprep.mubr.msk.f32.mxu1 (!%p87_p2), %vm992_vm0, %v991_v0  ;;  %s995_s14 = smov (!%p87_p2), 88   ;;  %s996_s15 = smov (!%p87_p2), 120  }
   0x8   : > { %s997_s16 = smov (!%p87_p2), 80   ;;  %s998_s17 = smov (!%p87_p2), 72  }
   0x9   : > { %s999_s18 = smov (!%p87_p2), 112   ;;  %s1000_s19 = smov (!%p87_p2), 104  }
   0xa   : > { %s1001_s20 = smov (!%p87_p2), 56   ;;  %s1002_s21 = smov (!%p87_p2), 40  }
   0xb   : > { %s1003_s22 = smov (!%p87_p2), 48   ;;  %s1004_s23 = smov (!%p87_p2), 8  }
   0xc   : > { %s1005_s24 = smov (!%p87_p2), 16   ;;  %s1006_s25 = smov (!%p87_p2), 24  }
   0xd   : > { %s1108_s7 = smov (!%p104_p3, %s860_s7), 7  ;;  %s1007_s26 = smov 32  }
   0xe   : > { %s865_s8 = sshll.u32 %s1108_s7, 3 }
   0xf   : > { %s107_s11 = scalar_lea.vmem %s1105_s0, %s865_s8  ;;  %s111_s29 = scalar_lea.vmem %s1106_s1, %s865_s8 }
  0x10   : > { %v1040_v1 = vld [vmem:[%s107_s11] sm:$0xff] }
  0x11   : > { %114 = vrot.lane.b32.xlu0 %v1040_v1, %s993_s12  ;;  %203 = vrot.lane.b32.xlu1 %v1040_v1, %s994_s13  ;;  %v879_v63 = vmul.f32 -1.442695, %v1040_v1 }
  0x15   : > { %281 = vrot.lane.b32.xlu1 %v1040_v1, %s995_s14 }
  0x19   : > { %279 = vrot.lane.b32.xlu1 %v1040_v1, %s996_s15 }
  0x1d   : > { %447 = vrot.lane.b32.xlu1 %v1040_v1, %s997_s16 }
  0x83   : > { %v115_v2 = vpop.permute.xlu0 %114  ;;  %v204_v7 = vpop.permute.xlu1 %203 }
  0x84   : > { %899 = vmatpush3.xpose.msk.msra.mxu0 %vm116_vm1, %v115_v2  ;;  %904 = vmatpush3.msra.mxu1 %v204_v7 }
  0x85   : > { %913 = vmatprep.subr.mxu0 %v991_v0  ;;  %908 = vmatprep.subr.mxu1 %v991_v0 }
  0x87   : > { %901 = vmatmul.mubr.msk.f32.vlgmr.msra.gmra.mrb[0].mxu0 %vm116_vm1, %v1040_v1  ;;  %v282_v13 = vpop.permute.xlu1 %281 }
  0x88   : > { %915 = vmatprep.mubr.msk.f32.mxu0 %vm992_vm0, %v991_v0 }
  0x8b   : > { %v280_v14 = vpop.permute.xlu1 %279 }
  0x8f   : > { %v448_v15 = vpop.permute.xlu1 %447 }
 0x15a   : > { %v187_v3 = vpop.f32.mrb[0].mxu0 }
 0x15b   : > { %v191_v4 = vmul.f32 0.35355338, %v187_v3  ;;  %v902_v5 = vpop.f32.mrb[1].mxu0 }
 0x15d   : > { %v192_v6 = vsel %vm116_vm1, %v191_v4, -inf }
 0x15e   : > { %193 = vmax.xlane.f32.xlu0 %v192_v6 }
 0x174   : > { %613 = vrot.lane.b32.xlu0 %v1040_v1, %s998_s17 }
 0x1eb   : > { %v194_v8 = vpop.xlane.xlu0 %193 }
 0x1ec   : > { %v195_v9 = vsub.f32 %v191_v4, %v194_v8 }
 0x1ee   : > { %v196_v10 = vmul.f32 1.442695, %v195_v9 }
 0x1ef   : > { %v614_v20 = vpop.permute.xlu0 %613 }
 0x1f0   : > { %963 = vpow2.f32 %v196_v10 }
 0x1fa   : > { %v964_v11 = vpop.eup %963 }
 0x1fb   : > { %v198_v12 = vsel %vm116_vm1, %v964_v11, 0.0 }
 0x1fc   : > { %199 = vadd.xlane.f32.xlu1 %v198_v12 }
 0x20d   : > { %445 = vrot.lane.b32.xlu1 %v1040_v1, %s999_s18 }
 0x211   : > { %611 = vrot.lane.b32.xlu1 %v1040_v1, %s1000_s19 }
 0x289   : > { %v200_v16 = vpop.xlane.xlu1 %199 }
 0x28a   : > { %965 = vrcp.f32 %v200_v16 }
 0x28d   : > { %v446_v19 = vpop.permute.xlu1 %445 }
 0x291   : > { %v612_v21 = vpop.permute.xlu1 %611 }
 0x294   : > { %v966_v17 = vpop.eup %965 }
 0x295   : > { %v202_v18 = vmul.f32 %v966_v17, %v964_v11 }
 0x297   : > { %906 = vmatmul.mubr.msk.f32.vlgmr.msra.gmra.mrb[0].mxu1 %vm116_vm1, %v202_v18 }
 0x298   : > { %909 = vmatpush3.xpose.msk.msra.mxu1 %vm116_vm1, %v282_v13  ;;  %910 = vmatprep.mubr.msk.f32.mxu1 %vm992_vm0, %v991_v0 }
 0x299   : > { %918 = vmatprep.subr.mxu1 %v991_v0 }
 0x29b   : > { %911 = vmatmul.mubr.msk.f32.vlgmr.msra.gmra.mrb[2].mxu1 %vm116_vm1, %v280_v14 }
 0x29c   : > { %919 = vmatpush3.xpose.msk.msra.mxu1 %vm116_vm1, %v448_v15  ;;  %920 = vmatprep.mubr.msk.f32.mxu1 %vm992_vm0, %v991_v0 }
 0x29d   : > { %928 = vmatprep.subr.mxu1 %v991_v0 }
 0x29f   : > { %921 = vmatmul.mubr.msk.f32.vlgmr.msra.gmra.mrb[4].mxu1 %vm116_vm1, %v446_v19 }
 0x2a0   : > { %929 = vmatpush3.xpose.msk.msra.mxu1 %vm116_vm1, %v614_v20  ;;  %930 = vmatprep.mubr.msk.f32.mxu1 %vm992_vm0, %v991_v0 }
 0x2a3   : > { %931 = vmatmul.mubr.msk.f32.vlgmr.msra.gmra.mrb[6].mxu1 %vm116_vm1, %v612_v21 }
 0x36a   : > { %v1074_v22 = vpop.f32.mrb[0].mxu1 }
 0x36b   : > { %v907_v23 = vpop.f32.mrb[1].mxu1 }
 0x36e   : > { %v353_v24 = vpop.f32.mrb[2].mxu1 }
 0x36f   : > { %v357_v25 = vmul.f32 0.35355338, %v353_v24  ;;  %v912_v26 = vpop.f32.mrb[3].mxu1 }
 0x371   : > { %v358_v27 = vsel %vm116_vm1, %v357_v25, -inf }
 0x372   : > { %359 = vmax.xlane.f32.xlu1 %v358_v27  ;;  %v519_v28 = vpop.f32.mrb[4].mxu1 }
 0x373   : > { %v523_v29 = vmul.f32 0.35355338, %v519_v28  ;;  %v922_v30 = vpop.f32.mrb[5].mxu1 }
 0x375   : > { %v524_v31 = vsel %vm116_vm1, %v523_v29, -inf }
 0x376   : > { %525 = vmax.xlane.f32.xlu0 %v524_v31  ;;  %v685_v32 = vpop.f32.mrb[6].mxu1 }
 0x377   : > { %v689_v33 = vmul.f32 0.35355338, %v685_v32  ;;  %v932_v34 = vpop.f32.mrb[7].mxu1 }
 0x379   : > { %v690_v35 = vsel %vm116_vm1, %v689_v33, -inf }
 0x37a   : > { %691 = vmax.xlane.f32.xlu1 %v690_v35 }
 0x38b   : > { %369 = vrot.lane.b32.xlu1 %v1040_v1, %s1001_s20 }
 0x3ff   : > { %v360_v36 = vpop.xlane.xlu1 %359 }
 0x400   : > { %v361_v37 = vsub.f32 %v357_v25, %v360_v36 }
 0x402   : > { %v362_v38 = vmul.f32 1.442695, %v361_v37 }
 0x403   : > { %v526_v39 = vpop.xlane.xlu0 %525 }
 0x404   : > { %967 = vpow2.f32 %v362_v38  ;;  %v527_v40 = vsub.f32 %v523_v29, %v526_v39 }
 0x406   : > { %v528_v41 = vmul.f32 1.442695, %v527_v40 }
 0x407   : > { %v692_v42 = vpop.xlane.xlu1 %691 }
 0x408   : > { %969 = vpow2.f32 %v528_v41  ;;  %v693_v43 = vsub.f32 %v689_v33, %v692_v42 }
 0x40a   : > { %v694_v44 = vmul.f32 1.442695, %v693_v43 }
 0x40b   : > { %v370_v45 = vpop.permute.xlu1 %369 }
 0x40c   : > { %971 = vpow2.f32 %v694_v44  ;;  %914 = vmatpush3.msra.mxu0 %v370_v45 }
 0x40d   : > { %923 = vmatprep.subr.mxu0 %v991_v0 }
 0x40e   : > { %v968_v46 = vpop.eup %967 }
 0x40f   : > { %v364_v47 = vsel %vm116_vm1, %v968_v46, 0.0 }
 0x410   : > { %365 = vadd.xlane.f32.xlu1 %v364_v47 }
 0x412   : > { %v970_v48 = vpop.eup %969 }
 0x413   : > { %v530_v49 = vsel %vm116_vm1, %v970_v48, 0.0 }
 0x414   : > { %531 = vadd.xlane.f32.xlu1 %v530_v49 }
 0x416   : > { %v972_v50 = vpop.eup %971 }
 0x417   : > { %v696_v51 = vsel %vm116_vm1, %v972_v50, 0.0 }
 0x418   : > { %697 = vadd.xlane.f32.xlu0 %v696_v51 }
 0x425   : > { %701 = vrot.lane.b32.xlu1 %v1040_v1, %s1002_s21 }
 0x42e   : > { %535 = vrot.lane.b32.xlu0 %v1040_v1, %s1003_s22 }
 0x49d   : > { %v366_v52 = vpop.xlane.xlu1 %365 }
 0x49e   : > { %973 = vrcp.f32 %v366_v52 }
 0x4a1   : > { %v532_v53 = vpop.xlane.xlu1 %531 }
 0x4a2   : > { %975 = vrcp.f32 %v532_v53 }
 0x4a5   : > { %v698_v54 = vpop.xlane.xlu0 %697  ;;  %v702_v60 = vpop.permute.xlu1 %701 }
 0x4a6   : > { %977 = vrcp.f32 %v698_v54 }
 0x4a7   : > { %979 = vpow2.f32 %v879_v63 }
 0x4a8   : > { %v974_v55 = vpop.eup %973 }
 0x4a9   : > { %v368_v56 = vmul.f32 %v974_v55, %v968_v46  ;;  %v536_v57 = vpop.permute.xlu0 %535 }
 0x4ab   : > { %916 = vmatmul.mubr.msk.f32.vlgmr.msra.gmra.mrb[2].mxu0 %vm116_vm1, %v368_v56 }
 0x4ac   : > { %v976_v58 = vpop.eup %975  ;;  %924 = vmatpush3.msra.mxu0 %v536_v57  ;;  %925 = vmatprep.mubr.msk.f32.mxu0 %vm992_vm0, %v991_v0 }
 0x4ad   : > { %v534_v59 = vmul.f32 %v976_v58, %v970_v48  ;;  %933 = vmatprep.subr.mxu0 %v991_v0 }
 0x4af   : > { %926 = vmatmul.mubr.msk.f32.vlgmr.msra.gmra.mrb[4].mxu0 %vm116_vm1, %v534_v59 }
 0x4b0   : > { %v978_v61 = vpop.eup %977  ;;  %934 = vmatpush3.msra.mxu0 %v702_v60  ;;  %935 = vmatprep.mubr.msk.f32.mxu0 %vm992_vm0, %v991_v0 }
 0x4b1   : > { %v700_v62 = vmul.f32 %v978_v61, %v972_v50  ;;  %v980_v2 = vpop.eup %979 }
 0x4b2   : > { %v797_v3 = vadd.f32 1.0, %v980_v2 }
 0x4b3   : > { %936 = vmatmul.mubr.msk.f32.vlgmr.msra.gmra.mrb[6].mxu0 %vm116_vm1, %v700_v62 }
 0x4b4   : > { %981 = vrcp.f32 %v797_v3 }
 0x4be   : > { %v982_v8 = vpop.eup %981 }
 0x57e   : > { %v441_v4 = vpop.f32.mrb[2].mxu0 }
 0x57f   : > { %778 = vrot.lane.b32.xlu1 %v441_v4, %s1004_s23  ;;  %v917_v5 = vpop.f32.mrb[3].mxu0 }
 0x582   : > { %v607_v6 = vpop.f32.mrb[4].mxu0 }
 0x583   : > { %782 = vrot.lane.b32.xlu0 %v607_v6, %s1005_s24  ;;  %v927_v7 = vpop.f32.mrb[5].mxu0 }
 0x586   : > { %v773_v0 = vpop.f32.mrb[6].mxu0 }
 0x587   : > { %786 = vrot.lane.b32.xlu1 %v773_v0, %s1006_s25  ;;  %v937_v9 = vpop.f32.mrb[7].mxu0  ;;  %801 = vrot.lane.b32.xlu0 %v982_v8, %s1007_s26 }
 0x5f1   : > { %v779_v1 = vpop.permute.xlu1 %778 }
 0x5f2   : > { %v789_v11 = vsel %vm116_vm1, %v1074_v22, %v779_v1 }
 0x5f5   : > { %v783_v10 = vpop.permute.xlu0 %782 }
 0x5f6   : > { %v791_v12 = vsel %vm790_vm2, %v789_v11, %v783_v10 }
 0x5f9   : > { %v787_v13 = vpop.permute.xlu1 %786  ;;  %v802_v14 = vpop.permute.xlu0 %801 }
 0x5fa   : > { %v793_v15 = vsel %vm792_vm3, %v791_v12, %v787_v13 }
 0x5fb   : > { %v804_v16 = vmul.f32 %v802_v14, %v793_v15 }
 0x5fd   : > { %806 = vst.msk [vmem:[%s111_s29] sm:$0xff] %vm805_vm4, %v804_v16 }
 0x5fe PF: > { %s11_s6 = sadd.s32 1, %s989_s6  }
 0x5ff   : > { %p8_p4 = scmp.ge.s32.totalorder %s11_s6, 10  }
 0x601   :  { %10 = sbr.rel (!%p8_p4) target bundleno = 1 (0x1), region = 54 }

// kernel: evoformer_forward.65
= control target key start
LH: loop header
LB: loop body
LE: loop exit
PB: predicated region body
PF: predicated region fallthrough
CT: control target
= control target key end

     0   :  { %vm28_vm0 = vcmask 261120   ;;  %vm304_vm1 = vcmask 130048   ;;  %s559_s0 = inlined_call_operand.vmem [shape: f32[64,32], index: 0, kind: input, shape index: {}]   ;;  %s560_s1 = inlined_call_operand.vmem [shape: f32[32,16], index: 1, kind: input, shape index: {}]   ;;  %s561_s3 = inlined_call_operand.vmem [shape: f32[1,32], index: 3, kind: input, shape index: {}]   ;;  %s562_s4 = inlined_call_operand.vmem [shape: f32[1,32], index: 4, kind: input, shape index: {}]   ;;  %s563_s2 = inlined_call_operand.vmem [shape: f32[1,16], index: 2, kind: input, shape index: {}]   ;;  %s564_s5 = inlined_call_operand.vmem [shape: f32[64,16], index: 5, kind: output, shape index: {}]  }
   0x1   :  { %v20_v0 = vld [vmem:[%s559_s0] sm:$0xff]  ;;  %v21_v1 = vld [vmem:[%s559_s0 + $0x8] sm:$0xff]  ;;  %v22_v8 = vld [vmem:[%s559_s0 + $0x10] sm:$0xff] }
   0x2   :  { %v24_v2 = vld [vmem:[%s559_s0 + $0x20] sm:$0xff]  ;;  %v29_v3 = vsel %vm28_vm0, %v20_v0, 0.0  ;;  %v32_v4 = vsel %vm28_vm0, %v21_v1, 0.0  ;;  %v25_v5 = vld [vmem:[%s559_s0 + $0x28] sm:$0xff]  ;;  %v26_v9 = vld [vmem:[%s559_s0 + $0x30] sm:$0xff]  ;;  %v35_v10 = vsel %vm28_vm0, %v22_v8, 0.0 }
   0x3   :  { %30 = vadd.xlane.f32.xlu0 %v29_v3  ;;  %33 = vadd.xlane.f32.xlu1 %v32_v4  ;;  %v41_v6 = vsel %vm28_vm0, %v24_v2, 0.0  ;;  %v44_v7 = vsel %vm28_vm0, %v25_v5, 0.0  ;;  %v47_v11 = vsel %vm28_vm0, %v26_v9, 0.0  ;;  %v23_v12 = vld [vmem:[%s559_s0 + $0x18] sm:$0xff]  ;;  %v164_v56 = vld [vmem:[%s560_s1] sm:$0xff]  ;;  %v165_v57 = vld [vmem:[%s560_s1 + $0x8] sm:$0xff] }
   0x4   :  { %v27_v13 = vld [vmem:[%s559_s0 + $0x38] sm:$0xff]  ;;  %v38_v14 = vsel %vm28_vm0, %v23_v12, 0.0  ;;  %v360_v58 = vpack.c.bf16 %v165_v57, %v164_v56  ;;  %v166_v59 = vld [vmem:[%s560_s1 + $0x10] sm:$0xff] }
   0x5   :  { %v50_v15 = vsel %vm28_vm0, %v27_v13, 0.0  ;;  %v167_v60 = vld [vmem:[%s560_s1 + $0x18] sm:$0xff] }
   0x6   :  { %361 = vmatprep.subr.bf16.mxu0 %v360_v58  ;;  %368 = vmatprep.subr.bf16.mxu1 %v360_v58  ;;  %v364_v61 = vpack.c.bf16 %v167_v60, %v166_v59 }
   0x7   :  { %42 = vadd.xlane.f32.xlu0 %v41_v6  ;;  %45 = vadd.xlane.f32.xlu1 %v44_v7 }
   0x8   :  { %363 = vmatpush3.bf16.msra.mxu0 %v360_v58  ;;  %370 = vmatpush3.bf16.msra.mxu1 %v360_v58 }
   0x9   :  { %365 = vmatprep.subr.bf16.mxu0 %v364_v61  ;;  %369 = vmatprep.subr.bf16.mxu1 %v364_v61 }
   0xb   :  { %36 = vadd.xlane.f32.xlu0 %v35_v10  ;;  %48 = vadd.xlane.f32.xlu1 %v47_v11 }
   0xc   :  { %367 = vmatpush3.bf16.msra.mxu0 %v364_v61  ;;  %371 = vmatpush3.bf16.msra.mxu1 %v364_v61 }
   0xf   :  { %39 = vadd.xlane.f32.xlu0 %v38_v14  ;;  %51 = vadd.xlane.f32.xlu1 %v50_v15 }
  0x90   :  { %v31_v16 = vpop.xlane.xlu0 %30  ;;  %v34_v17 = vpop.xlane.xlu1 %33 }
  0x91   :  { %v54_v18 = vmul.f32 0.03125, %v31_v16  ;;  %v55_v19 = vmul.f32 0.03125, %v34_v17 }
  0x93   :  { %v450_v20 = vsub.f32 %v20_v0, %v54_v18  ;;  %v452_v21 = vsub.f32 %v21_v1, %v55_v19 }
  0x94   :  { %v43_v22 = vpop.xlane.xlu0 %42  ;;  %v46_v23 = vpop.xlane.xlu1 %45 }
  0x95   :  { %v58_v24 = vmul.f32 0.03125, %v43_v22  ;;  %v59_v25 = vmul.f32 0.03125, %v46_v23  ;;  %v70_v26 = vmul.f32 %v450_v20, %v450_v20  ;;  %v71_v27 = vmul.f32 %v452_v21, %v452_v21  ;;  %v317_v22 = vld [vmem:[%s561_s3] ss:$0 sm:$0xff] }
  0x97   :  { %v458_v28 = vsub.f32 %v24_v2, %v58_v24  ;;  %v460_v29 = vsub.f32 %v25_v5, %v59_v25  ;;  %v78_v30 = vsel %vm28_vm0, %v70_v26, 0.0  ;;  %v81_v33 = vsel %vm28_vm0, %v71_v27, 0.0  ;;  %v318_v26 = vld [vmem:[%s562_s4] ss:$0 sm:$0xff] }
  0x98   :  { %79 = vadd.xlane.f32.xlu0 %v78_v30  ;;  %v37_v31 = vpop.xlane.xlu0 %36  ;;  %v49_v32 = vpop.xlane.xlu1 %48 }
  0x99   :  { %v56_v34 = vmul.f32 0.03125, %v37_v31  ;;  %v60_v35 = vmul.f32 0.03125, %v49_v32  ;;  %v74_v36 = vmul.f32 %v458_v28, %v458_v28  ;;  %v75_v37 = vmul.f32 %v460_v29, %v460_v29 }
  0x9b   :  { %v468_v38 = vsub.f32 %v22_v8, %v56_v34  ;;  %v470_v39 = vsub.f32 %v26_v9, %v60_v35  ;;  %v90_v40 = vsel %vm28_vm0, %v74_v36, 0.0  ;;  %v93_v43 = vsel %vm28_vm0, %v75_v37, 0.0 }
  0x9c   :  { %82 = vadd.xlane.f32.xlu0 %v81_v33  ;;  %91 = vadd.xlane.f32.xlu1 %v90_v40  ;;  %v40_v41 = vpop.xlane.xlu0 %39  ;;  %v52_v42 = vpop.xlane.xlu1 %51 }
  0x9d   :  { %v57_v44 = vmul.f32 0.03125, %v40_v41  ;;  %v61_v45 = vmul.f32 0.03125, %v52_v42  ;;  %v72_v46 = vmul.f32 %v468_v38, %v468_v38  ;;  %v76_v47 = vmul.f32 %v470_v39, %v470_v39 }
  0x9f   :  { %v478_v48 = vsub.f32 %v23_v12, %v57_v44  ;;  %v480_v49 = vsub.f32 %v27_v13, %v61_v45  ;;  %v84_v50 = vsel %vm28_vm0, %v72_v46, 0.0  ;;  %v96_v51 = vsel %vm28_vm0, %v76_v47, 0.0 }
  0xa0   :  { %94 = vadd.xlane.f32.xlu1 %v93_v43  ;;  %85 = vadd.xlane.f32.xlu0 %v84_v50 }
  0xa1   :  { %v73_v52 = vmul.f32 %v478_v48, %v478_v48  ;;  %v77_v53 = vmul.f32 %v480_v49, %v480_v49 }
  0xa3   :  { %v87_v54 = vsel %vm28_vm0, %v73_v52, 0.0  ;;  %v99_v55 = vsel %vm28_vm0, %v77_v53, 0.0 }
  0xa4   :  { %97 = vadd.xlane.f32.xlu1 %v96_v51  ;;  %88 = vadd.xlane.f32.xlu0 %v87_v54 }
  0xa8   :  { %100 = vadd.xlane.f32.xlu1 %v99_v55 }
 0x125   :  { %v80_v62 = vpop.xlane.xlu0 %79 }
 0x126   :  { %v102_v63 = vmul.f32 0.03125, %v80_v62 }
 0x128   :  { %v110_v0 = vadd.f32 1e-05, %v102_v63 }
 0x129   :  { %v92_v1 = vpop.xlane.xlu1 %91  ;;  %v83_v2 = vpop.xlane.xlu0 %82 }
 0x12a   :  { %372 = vrsqrt.f32 %v110_v0  ;;  %v106_v3 = vmul.f32 0.03125, %v92_v1  ;;  %v103_v4 = vmul.f32 0.03125, %v83_v2 }
 0x12c   :  { %v114_v5 = vadd.f32 1e-05, %v106_v3  ;;  %v111_v6 = vadd.f32 1e-05, %v103_v4 }
 0x12d   :  { %v95_v7 = vpop.xlane.xlu1 %94  ;;  %v86_v8 = vpop.xlane.xlu0 %85 }
 0x12e   :  { %374 = vrsqrt.f32 %v114_v5  ;;  %v107_v9 = vmul.f32 0.03125, %v95_v7  ;;  %v104_v10 = vmul.f32 0.03125, %v86_v8 }
 0x12f   :  { %376 = vrsqrt.f32 %v111_v6 }
 0x130   :  { %v115_v11 = vadd.f32 1e-05, %v107_v9  ;;  %v112_v12 = vadd.f32 1e-05, %v104_v10 }
 0x131   :  { %v98_v13 = vpop.xlane.xlu1 %97  ;;  %v89_v14 = vpop.xlane.xlu0 %88 }
 0x132   :  { %378 = vrsqrt.f32 %v115_v11  ;;  %v108_v15 = vmul.f32 0.03125, %v98_v13  ;;  %v105_v16 = vmul.f32 0.03125, %v89_v14 }
 0x133   :  { %380 = vrsqrt.f32 %v112_v12 }
 0x134   :  { %v373_v17 = vpop.eup %372  ;;  %v116_v18 = vadd.f32 1e-05, %v108_v15  ;;  %v113_v19 = vadd.f32 1e-05, %v105_v16 }
 0x135   :  { %v101_v23 = vpop.xlane.xlu1 %100  ;;  %v126_v24 = vmul.f32 %v373_v17, %v450_v20 }
 0x136   :  { %382 = vrsqrt.f32 %v116_v18  ;;  %v109_v25 = vmul.f32 0.03125, %v101_v23 }
 0x137   :  { %384 = vrsqrt.f32 %v113_v19  ;;  %v141_v27 = vmul.f32 %v317_v22, %v126_v24 }
 0x138   :  { %v375_v30 = vpop.eup %374  ;;  %v117_v31 = vadd.f32 1e-05, %v109_v25 }
 0x139   :  { %v377_v32 = vpop.eup %376  ;;  %v156_v33 = vadd.f32 %v318_v26, %v141_v27  ;;  %v130_v34 = vmul.f32 %v375_v30, %v458_v28 }
 0x13a   :  { %386 = vrsqrt.f32 %v117_v31  ;;  %v127_v35 = vmul.f32 %v377_v32, %v452_v21 }
 0x13b   :  { %348 = vmatprep.mubr.msk.f32.mxu0 %vm28_vm0, %v156_v33  ;;  %v145_v20 = vmul.f32 %v317_v22, %v130_v34 }
 0x13c   :  { %v379_v36 = vpop.eup %378  ;;  %v142_v37 = vmul.f32 %v317_v22, %v127_v35 }
 0x13d   :  { %v381_v40 = vpop.eup %380  ;;  %v160_v41 = vadd.f32 %v318_v26, %v145_v20  ;;  %v131_v42 = vmul.f32 %v379_v36, %v460_v29 }
 0x13e   :  { %v157_v43 = vadd.f32 %v318_v26, %v142_v37  ;;  %v128_v44 = vmul.f32 %v381_v40, %v468_v38 }
 0x13f   :  { %354 = vmatprep.mubr.msk.f32.mxu1 %vm28_vm0, %v160_v41  ;;  %v146_v45 = vmul.f32 %v317_v22, %v131_v42 }
 0x140   :  { %v383_v46 = vpop.eup %382  ;;  %349 = vmatmul.mubr.msk.f32.vlgmr.msra.gmra.mrb[0].mxu0 %vm28_vm0, %v157_v43  ;;  %v143_v28 = vmul.f32 %v317_v22, %v128_v44 }
 0x141   :  { %v385_v21 = vpop.eup %384  ;;  %v161_v47 = vadd.f32 %v318_v26, %v146_v45  ;;  %v132_v50 = vmul.f32 %v383_v46, %v470_v39 }
 0x142   :  { %v158_v51 = vadd.f32 %v318_v26, %v143_v28  ;;  %v129_v52 = vmul.f32 %v385_v21, %v478_v48  ;;  %v319_v48 = vld [vmem:[%s563_s2] ss:$0 sm:$0xff] }
 0x143   :  { %355 = vmatmul.mubr.msk.f32.vlgmr.msra.gmra.mrb[0].mxu1 %vm28_vm0, %v161_v47  ;;  %v147_v29 = vmul.f32 %v317_v22, %v132_v50 }
 0x144   :  { %v387_v53 = vpop.eup %386  ;;  %351 = vmatprep.mubr.msk.f32.mxu0 %vm28_vm0, %v158_v51  ;;  %v144_v38 = vmul.f32 %v317_v22, %v129_v52 }
 0x145   :  { %v162_v54 = vadd.f32 %v318_v26, %v147_v29  ;;  %v133_v55 = vmul.f32 %v387_v53, %v480_v49 }
 0x146   :  { %v159_v56 = vadd.f32 %v318_v26, %v144_v38 }
 0x147   :  { %357 = vmatprep.mubr.msk.f32.mxu1 %vm28_vm0, %v162_v54  ;;  %v148_v57 = vmul.f32 %v317_v22, %v133_v55 }
 0x148   :  { %352 = vmatmul.mubr.msk.f32.gmra.mrb[2].mxu0 %vm28_vm0, %v159_v56 }
 0x149   :  { %v163_v39 = vadd.f32 %v318_v26, %v148_v57 }
 0x14b   :  { %358 = vmatmul.mubr.msk.f32.gmra.mrb[2].mxu1 %vm28_vm0, %v163_v39 }
 0x213   :  { %v350_v58 = vpop.f32.mrb[0].mxu0 }
 0x214   :  { %v271_v59 = vadd.f32 %v350_v58, %v319_v48  ;;  %v265_v60 = vpop.f32.mrb[1].mxu0 }
 0x215   :  { %v266_v61 = vadd.f32 %v319_v48, %v265_v60 }
 0x216   :  { %306 = vst.msk [vmem:[%s564_s5 + $0x8] sm:$0xff] %vm304_vm1, %v271_v59  ;;  %v356_v49 = vpop.f32.mrb[0].mxu1 }
 0x217   :  { %305 = vst.msk [vmem:[%s564_s5] sm:$0xff] %vm304_vm1, %v266_v61  ;;  %v291_v62 = vadd.f32 %v356_v49, %v319_v48  ;;  %v285_v63 = vpop.f32.mrb[1].mxu1 }
 0x218   :  { %v286_v0 = vadd.f32 %v319_v48, %v285_v63 }
 0x219   :  { %310 = vst.msk [vmem:[%s564_s5 + $0x28] sm:$0xff] %vm304_vm1, %v291_v62 }
 0x21a   :  { %309 = vst.msk [vmem:[%s564_s5 + $0x20] sm:$0xff] %vm304_vm1, %v286_v0 }
 0x21b   :  { %v353_v1 = vpop.f32.mrb[2].mxu0 }
 0x21c   :  { %v281_v2 = vadd.f32 %v353_v1, %v319_v48  ;;  %v275_v3 = vpop.f32.mrb[3].mxu0 }
 0x21d   :  { %v276_v4 = vadd.f32 %v319_v48, %v275_v3 }
 0x21e   :  { %308 = vst.msk [vmem:[%s564_s5 + $0x18] sm:$0xff] %vm304_vm1, %v281_v2  ;;  %v359_v5 = vpop.f32.mrb[2].mxu1 }
 0x21f   :  { %307 = vst.msk [vmem:[%s564_s5 + $0x10] sm:$0xff] %vm304_vm1, %v276_v4  ;;  %v301_v6 = vadd.f32 %v359_v5, %v319_v48  ;;  %v295_v7 = vpop.f32.mrb[3].mxu1 }
 0x220   :  { %v296_v8 = vadd.f32 %v319_v48, %v295_v7 }
 0x221   :  { %312 = vst.msk [vmem:[%s564_s5 + $0x38] sm:$0xff] %vm304_vm1, %v301_v6 }
 0x222   :  { %311 = vst.msk [vmem:[%s564_s5 + $0x30] sm:$0xff] %vm304_vm1, %v296_v8 }

// kernel: evoformer_forward.66
= control target key start
LH: loop header
LB: loop body
LE: loop exit
PB: predicated region body
PF: predicated region fallthrough
CT: control target
= control target key end

     0   :  { %vm15_vm0 = vcmask 523264   ;;  %v278_v2 = vmov 0.0   ;;  %vm66_vm1 = vcmask 64512   ;;  %s356_s0 = inlined_call_operand.vmem [shape: f32[8,64], index: 0, kind: input, shape index: {}]   ;;  %s357_s1 = inlined_call_operand.vmem [shape: f32[8,64], index: 1, kind: input, shape index: {}]   ;;  %s358_s2 = inlined_call_operand.vmem [shape: f32[64,64], index: 2, kind: output, shape index: {}]  }
   0x1   :  { %v32_v0 = vld [vmem:[%s356_s0] sm:$0xff]  ;;  %17 = vst.msk [vmem:[#allocation2 + $0x8] sm:$0xff] %vm15_vm0, %v278_v2  ;;  %16 = vst.msk [vmem:[#allocation2] sm:$0xff] %vm15_vm0, %v278_v2 }
   0x2   :  { %34 = vxpose.xlu0.b32.start.end [1/1] (short) (narrow) %v32_v0, 64  ;;  %v33_v1 = vld [vmem:[%s357_s1] sm:$0xff]  ;;  %18 = vst.msk [vmem:[#allocation2 + $0x10] sm:$0xff] %vm15_vm0, %v278_v2  ;;  %19 = vst.msk [vmem:[#allocation2 + $0x18] sm:$0xff] %vm15_vm0, %v278_v2 }
   0x3   :  { %261 = vmatprep.subr.mxu0 %v33_v1  ;;  %275 = vmatprep.subr.mxu1 %v33_v1  ;;  %20 = vst.msk [vmem:[#allocation2 + $0x20] sm:$0xff] %vm15_vm0, %v278_v2  ;;  %21 = vst.msk [vmem:[#allocation2 + $0x28] sm:$0xff] %vm15_vm0, %v278_v2 }
   0x4   :  { %262 = vmatpush3.msra.mxu0 %v33_v1  ;;  %276 = vmatpush3.msra.mxu1 %v33_v1  ;;  %22 = vst.msk [vmem:[#allocation2 + $0x30] sm:$0xff] %vm15_vm0, %v278_v2  ;;  %23 = vst.msk [vmem:[#allocation2 + $0x38] sm:$0xff] %vm15_vm0, %v278_v2 }
   0x8   :  { %v25_v11 = vld [vmem:[#allocation2 + $0x8] sm:$0xff]  ;;  %v24_v12 = vld [vmem:[#allocation2] sm:$0xff] }
   0x9   :  { %v27_v17 = vld [vmem:[#allocation2 + $0x18] sm:$0xff]  ;;  %v26_v18 = vld [vmem:[#allocation2 + $0x10] sm:$0xff] }
   0xa   :  { %v29_v27 = vld [vmem:[#allocation2 + $0x28] sm:$0xff]  ;;  %v28_v28 = vld [vmem:[#allocation2 + $0x20] sm:$0xff] }
   0xb   :  { %v31_v37 = vld [vmem:[#allocation2 + $0x38] sm:$0xff]  ;;  %v30_v38 = vld [vmem:[#allocation2 + $0x30] sm:$0xff] }
  0x82   :  { %v50_v3 = vpop.trf.xlu0 }
  0x83   :  { %263 = vmatprep.mubr.msk.f32.mxu0 %vm66_vm1, %v50_v3 }
  0x86   :  { %v51_v4 = vpop.trf.xlu0 }
  0x87   :  { %264 = vmatmul.mubr.msk.f32.vlgmr.msra.gmra.mrb[0].mxu0 %vm66_vm1, %v51_v4 }
  0x8a   :  { %v52_v5 = vpop.trf.xlu0 }
  0x8b   :  { %266 = vmatprep.mubr.msk.f32.mxu0 %vm66_vm1, %v52_v5 }
  0x8e   :  { %v53_v6 = vpop.trf.xlu0 }
  0x8f   :  { %267 = vmatmul.mubr.msk.f32.gmra.mrb[2].mxu0 %vm66_vm1, %v53_v6 }
  0x92   :  { %v54_v7 = vpop.trf.xlu0 }
  0x93   :  { %269 = vmatprep.mubr.msk.f32.mxu1 %vm66_vm1, %v54_v7 }
  0x96   :  { %v55_v8 = vpop.trf.xlu0 }
  0x97   :  { %270 = vmatmul.mubr.msk.f32.vlgmr.msra.gmra.mrb[0].mxu1 %vm66_vm1, %v55_v8 }
  0x9a   :  { %v56_v9 = vpop.trf.xlu0 }
  0x9b   :  { %272 = vmatprep.mubr.msk.f32.mxu1 %vm66_vm1, %v56_v9 }
  0x9e   :  { %v57_v10 = vpop.trf.xlu0 }
  0x9f   :  { %273 = vmatmul.mubr.msk.f32.gmra.mrb[2].mxu1 %vm66_vm1, %v57_v10 }
 0x15a   :  { %v265_v13 = vpop.f32.mrb[0].mxu0 }
 0x15b   :  { %v197_v14 = vadd.f32 %v265_v13, %v25_v11  ;;  %v157_v15 = vpop.f32.mrb[1].mxu0 }
 0x15c   :  { %v196_v16 = vadd.f32 %v157_v15, %v24_v12 }
 0x15d   :  { %206 = vst.msk [vmem:[#allocation2 + $0x8] sm:$0xff] %vm15_vm0, %v197_v14 }
 0x15e   :  { %205 = vst.msk [vmem:[#allocation2] sm:$0xff] %vm15_vm0, %v196_v16 }
 0x162   :  { %v268_v19 = vpop.f32.mrb[2].mxu0 }
 0x163   :  { %v199_v20 = vadd.f32 %v268_v19, %v27_v17  ;;  %v167_v21 = vpop.f32.mrb[3].mxu0 }
 0x164   :  { %v217_v22 = vld [vmem:[#allocation2 + $0x8] sm:$0xff]  ;;  %v198_v23 = vadd.f32 %v167_v21, %v26_v18 }
 0x165   :  { %v225_v24 = vmul.f32 0.125, %v217_v22  ;;  %v216_v25 = vld [vmem:[#allocation2] sm:$0xff]  ;;  %208 = vst.msk [vmem:[#allocation2 + $0x18] sm:$0xff] %vm15_vm0, %v199_v20 }
 0x166   :  { %v224_v26 = vmul.f32 0.125, %v216_v25  ;;  %207 = vst.msk [vmem:[#allocation2 + $0x10] sm:$0xff] %vm15_vm0, %v198_v23 }
 0x167   :  { %233 = vst.msk [vmem:[%s358_s2 + $0x8] sm:$0xff] %vm15_vm0, %v225_v24 }
 0x168   :  { %232 = vst.msk [vmem:[%s358_s2] sm:$0xff] %vm15_vm0, %v224_v26 }
 0x16a   :  { %v271_v29 = vpop.f32.mrb[0].mxu1 }
 0x16b   :  { %v201_v30 = vadd.f32 %v271_v29, %v29_v27  ;;  %v177_v31 = vpop.f32.mrb[1].mxu1 }
 0x16c   :  { %v219_v32 = vld [vmem:[#allocation2 + $0x18] sm:$0xff]  ;;  %v200_v33 = vadd.f32 %v177_v31, %v28_v28 }
 0x16d   :  { %v227_v34 = vmul.f32 0.125, %v219_v32  ;;  %v218_v35 = vld [vmem:[#allocation2 + $0x10] sm:$0xff]  ;;  %210 = vst.msk [vmem:[#allocation2 + $0x28] sm:$0xff] %vm15_vm0, %v201_v30 }
 0x16e   :  { %v226_v36 = vmul.f32 0.125, %v218_v35  ;;  %209 = vst.msk [vmem:[#allocation2 + $0x20] sm:$0xff] %vm15_vm0, %v200_v33 }
 0x16f   :  { %235 = vst.msk [vmem:[%s358_s2 + $0x18] sm:$0xff] %vm15_vm0, %v227_v34 }
 0x170   :  { %234 = vst.msk [vmem:[%s358_s2 + $0x10] sm:$0xff] %vm15_vm0, %v226_v36 }
 0x172   :  { %v274_v39 = vpop.f32.mrb[2].mxu1 }
 0x173   :  { %v203_v40 = vadd.f32 %v274_v39, %v31_v37  ;;  %v187_v41 = vpop.f32.mrb[3].mxu1 }
 0x174   :  { %v221_v42 = vld [vmem:[#allocation2 + $0x28] sm:$0xff]  ;;  %v202_v43 = vadd.f32 %v187_v41, %v30_v38 }
 0x175   :  { %v229_v44 = vmul.f32 0.125, %v221_v42  ;;  %v220_v45 = vld [vmem:[#allocation2 + $0x20] sm:$0xff]  ;;  %212 = vst.msk [vmem:[#allocation2 + $0x38] sm:$0xff] %vm15_vm0, %v203_v40 }
 0x176   :  { %v228_v46 = vmul.f32 0.125, %v220_v45  ;;  %211 = vst.msk [vmem:[#allocation2 + $0x30] sm:$0xff] %vm15_vm0, %v202_v43 }
 0x177   :  { %237 = vst.msk [vmem:[%s358_s2 + $0x28] sm:$0xff] %vm15_vm0, %v229_v44 }
 0x178   :  { %236 = vst.msk [vmem:[%s358_s2 + $0x20] sm:$0xff] %vm15_vm0, %v228_v46 }
 0x17c   :  { %v223_v47 = vld [vmem:[#allocation2 + $0x38] sm:$0xff] }
 0x17d   :  { %v231_v48 = vmul.f32 0.125, %v223_v47  ;;  %v222_v49 = vld [vmem:[#allocation2 + $0x30] sm:$0xff] }
 0x17e   :  { %v230_v50 = vmul.f32 0.125, %v222_v49 }
 0x17f   :  { %239 = vst.msk [vmem:[%s358_s2 + $0x38] sm:$0xff] %vm15_vm0, %v231_v48 }
 0x180   :  { %238 = vst.msk [vmem:[%s358_s2 + $0x30] sm:$0xff] %vm15_vm0, %v230_v50 }

// kernel: evoformer_forward.67
= control target key start
LH: loop header
LB: loop body
LE: loop exit
PB: predicated region body
PF: predicated region fallthrough
CT: control target
= control target key end

     0   :  { %vm40_vm0 = vcmask 523264   ;;  %vm186_vm1 = vcmask 130048   ;;  %s416_s1 = inlined_call_operand.vmem [shape: f32[64,16], index: 1, kind: input, shape index: {}]   ;;  %s417_s0 = inlined_call_operand.vmem [shape: f32[64,64], index: 0, kind: input, shape index: {}]   ;;  %s418_s2 = inlined_call_operand.vmem [shape: f32[1,16], index: 2, kind: input, shape index: {}]   ;;  %s419_s3 = inlined_call_operand.vmem [shape: f32[64,16], index: 3, kind: input, shape index: {}]   ;;  %s420_s4 = inlined_call_operand.vmem [shape: f32[64,16], index: 4, kind: output, shape index: {}]  }
   0x1   :  { %v25_v0 = vld [vmem:[%s416_s1] sm:$0xff]  ;;  %v26_v1 = vld [vmem:[%s416_s1 + $0x8] sm:$0xff]  ;;  %v27_v2 = vld [vmem:[%s416_s1 + $0x10] sm:$0xff] }
   0x2   :  { %v252_v3 = vpack.c.bf16 %v26_v1, %v25_v0  ;;  %v28_v4 = vld [vmem:[%s416_s1 + $0x18] sm:$0xff]  ;;  %v29_v6 = vld [vmem:[%s416_s1 + $0x20] sm:$0xff]  ;;  %v30_v7 = vld [vmem:[%s416_s1 + $0x28] sm:$0xff] }
   0x3   :  { %v256_v5 = vpack.c.bf16 %v28_v4, %v27_v2  ;;  %v17_v8 = vld [vmem:[%s417_s0] sm:$0xff]  ;;  %v260_v10 = vpack.c.bf16 %v30_v7, %v29_v6  ;;  %v31_v11 = vld [vmem:[%s416_s1 + $0x30] sm:$0xff]  ;;  %v32_v12 = vld [vmem:[%s416_s1 + $0x38] sm:$0xff] }
   0x4   :  { %253 = vmatprep.subr.bf16.mxu0 %v252_v3  ;;  %268 = vmatprep.subr.bf16.mxu1 %v252_v3  ;;  %v21_v9 = vld [vmem:[%s417_s0 + $0x20] sm:$0xff]  ;;  %v264_v13 = vpack.c.bf16 %v32_v12, %v31_v11  ;;  %v18_v14 = vld [vmem:[%s417_s0 + $0x8] sm:$0xff]  ;;  %v19_v16 = vld [vmem:[%s417_s0 + $0x10] sm:$0xff] }
   0x5   :  { %255 = vmatpush3.bf16.msra.mxu0 %v252_v3  ;;  %272 = vmatpush3.bf16.msra.mxu1 %v252_v3  ;;  %v22_v15 = vld [vmem:[%s417_s0 + $0x28] sm:$0xff]  ;;  %v23_v17 = vld [vmem:[%s417_s0 + $0x30] sm:$0xff]  ;;  %v20_v18 = vld [vmem:[%s417_s0 + $0x18] sm:$0xff] }
   0x6   :  { %257 = vmatprep.subr.bf16.mxu0 %v256_v5  ;;  %269 = vmatprep.subr.bf16.mxu1 %v256_v5  ;;  %v24_v19 = vld [vmem:[%s417_s0 + $0x38] sm:$0xff]  ;;  %v199_v20 = vld [vmem:[%s418_s2] ss:$0 sm:$0xff]  ;;  %v171_v22 = vld [vmem:[%s419_s3 + $0x8] sm:$0xff] }
   0x7   :  { %240 = vmatprep.mubr.msk.f32.mxu0 %vm40_vm0, %v17_v8  ;;  %246 = vmatprep.mubr.msk.f32.mxu1 %vm40_vm0, %v21_v9  ;;  %v175_v24 = vld [vmem:[%s419_s3 + $0x28] sm:$0xff]  ;;  %v170_v28 = vld [vmem:[%s419_s3] sm:$0xff]  ;;  %v173_v38 = vld [vmem:[%s419_s3 + $0x18] sm:$0xff] }
   0x8   :  { %v174_v30 = vld [vmem:[%s419_s3 + $0x20] sm:$0xff]  ;;  %v177_v40 = vld [vmem:[%s419_s3 + $0x38] sm:$0xff]  ;;  %v172_v44 = vld [vmem:[%s419_s3 + $0x10] sm:$0xff] }
   0x9   :  { %259 = vmatpush3.bf16.msra.mxu0 %v256_v5  ;;  %273 = vmatpush3.bf16.msra.mxu1 %v256_v5  ;;  %v176_v46 = vld [vmem:[%s419_s3 + $0x30] sm:$0xff] }
   0xa   :  { %261 = vmatprep.subr.bf16.mxu0 %v260_v10  ;;  %270 = vmatprep.subr.bf16.mxu1 %v260_v10 }
   0xd   :  { %263 = vmatpush3.bf16.msra.mxu0 %v260_v10  ;;  %274 = vmatpush3.bf16.msra.mxu1 %v260_v10 }
   0xe   :  { %265 = vmatprep.subr.bf16.mxu0 %v264_v13  ;;  %271 = vmatprep.subr.bf16.mxu1 %v264_v13 }
  0x11   :  { %267 = vmatpush3.bf16.msra.mxu0 %v264_v13  ;;  %275 = vmatpush3.bf16.msra.mxu1 %v264_v13 }
  0x14   :  { %241 = vmatmul.mubr.msk.f32.vlgmr.msra.gmra.mrb[0].mxu0 %vm40_vm0, %v18_v14  ;;  %247 = vmatmul.mubr.msk.f32.vlgmr.msra.gmra.mrb[0].mxu1 %vm40_vm0, %v22_v15 }
  0x15   :  { %243 = vmatprep.mubr.msk.f32.mxu0 %vm40_vm0, %v19_v16  ;;  %249 = vmatprep.mubr.msk.f32.mxu1 %vm40_vm0, %v23_v17 }
  0x18   :  { %244 = vmatmul.mubr.msk.f32.gmra.mrb[2].mxu0 %vm40_vm0, %v20_v18  ;;  %250 = vmatmul.mubr.msk.f32.gmra.mrb[2].mxu1 %vm40_vm0, %v24_v19 }
  0xe7   :  { %v242_v21 = vpop.f32.mrb[0].mxu0  ;;  %v248_v23 = vpop.f32.mrb[0].mxu1 }
  0xe8   :  { %v137_v25 = vadd.f32 %v242_v21, %v199_v20  ;;  %v157_v26 = vadd.f32 %v248_v23, %v199_v20  ;;  %v131_v27 = vpop.f32.mrb[1].mxu0  ;;  %v151_v29 = vpop.f32.mrb[1].mxu1 }
  0xe9   :  { %v132_v31 = vadd.f32 %v199_v20, %v131_v27  ;;  %v152_v32 = vadd.f32 %v199_v20, %v151_v29 }
  0xea   :  { %v179_v33 = vadd.f32 %v171_v22, %v137_v25  ;;  %v183_v34 = vadd.f32 %v175_v24, %v157_v26 }
  0xeb   :  { %v178_v35 = vadd.f32 %v170_v28, %v132_v31  ;;  %v182_v36 = vadd.f32 %v174_v30, %v152_v32  ;;  %v245_v37 = vpop.f32.mrb[2].mxu0  ;;  %v251_v39 = vpop.f32.mrb[2].mxu1 }
  0xec   :  { %188 = vst.msk [vmem:[%s420_s4 + $0x8] sm:$0xff] %vm186_vm1, %v179_v33  ;;  %192 = vst.msk [vmem:[%s420_s4 + $0x28] sm:$0xff] %vm186_vm1, %v183_v34  ;;  %v147_v41 = vadd.f32 %v245_v37, %v199_v20  ;;  %v167_v42 = vadd.f32 %v251_v39, %v199_v20  ;;  %v141_v43 = vpop.f32.mrb[3].mxu0  ;;  %v161_v45 = vpop.f32.mrb[3].mxu1 }
  0xed   :  { %187 = vst.msk [vmem:[%s420_s4] sm:$0xff] %vm186_vm1, %v178_v35  ;;  %191 = vst.msk [vmem:[%s420_s4 + $0x20] sm:$0xff] %vm186_vm1, %v182_v36  ;;  %v142_v47 = vadd.f32 %v199_v20, %v141_v43  ;;  %v162_v48 = vadd.f32 %v199_v20, %v161_v45 }
  0xee   :  { %v181_v49 = vadd.f32 %v173_v38, %v147_v41  ;;  %v185_v50 = vadd.f32 %v177_v40, %v167_v42 }
  0xef   :  { %v180_v51 = vadd.f32 %v172_v44, %v142_v47  ;;  %v184_v52 = vadd.f32 %v176_v46, %v162_v48 }
  0xf0   :  { %190 = vst.msk [vmem:[%s420_s4 + $0x18] sm:$0xff] %vm186_vm1, %v181_v49  ;;  %194 = vst.msk [vmem:[%s420_s4 + $0x38] sm:$0xff] %vm186_vm1, %v185_v50 }
  0xf1   :  { %189 = vst.msk [vmem:[%s420_s4 + $0x10] sm:$0xff] %vm186_vm1, %v180_v51  ;;  %193 = vst.msk [vmem:[%s420_s4 + $0x30] sm:$0xff] %vm186_vm1, %v184_v52 }

// kernel: evoformer_forward.68
= control target key start
LH: loop header
LB: loop body
LE: loop exit
PB: predicated region body
PF: predicated region fallthrough
CT: control target
= control target key end

     0   :  { %vm28_vm0 = vcmask 130048   ;;  %vm302_vm1 = vcmask 654336   ;;  %s539_s0 = inlined_call_operand.vmem [shape: f32[64,16], index: 0, kind: input, shape index: {}]   ;;  %s540_s1 = inlined_call_operand.vmem [shape: f32[16,80], index: 1, kind: input, shape index: {}]   ;;  %s541_s3 = inlined_call_operand.vmem [shape: f32[1,16], index: 3, kind: input, shape index: {}]   ;;  %s542_s4 = inlined_call_operand.vmem [shape: f32[1,16], index: 4, kind: input, shape index: {}]   ;;  %s543_s2 = inlined_call_operand.vmem [shape: f32[1,80], index: 2, kind: input, shape index: {}]   ;;  %s544_s5 = inlined_call_operand.vmem [shape: f32[64,80], index: 5, kind: output, shape index: {}]  }
   0x1   :  { %v20_v0 = vld [vmem:[%s539_s0] sm:$0xff]  ;;  %v21_v1 = vld [vmem:[%s539_s0 + $0x8] sm:$0xff]  ;;  %v22_v8 = vld [vmem:[%s539_s0 + $0x10] sm:$0xff] }
   0x2   :  { %v24_v2 = vld [vmem:[%s539_s0 + $0x20] sm:$0xff]  ;;  %v29_v3 = vsel %vm28_vm0, %v20_v0, 0.0  ;;  %v32_v4 = vsel %vm28_vm0, %v21_v1, 0.0  ;;  %v25_v5 = vld [vmem:[%s539_s0 + $0x28] sm:$0xff]  ;;  %v26_v9 = vld [vmem:[%s539_s0 + $0x30] sm:$0xff]  ;;  %v35_v10 = vsel %vm28_vm0, %v22_v8, 0.0 }
   0x3   :  { %30 = vadd.xlane.f32.xlu0 %v29_v3  ;;  %33 = vadd.xlane.f32.xlu1 %v32_v4  ;;  %v41_v6 = vsel %vm28_vm0, %v24_v2, 0.0  ;;  %v44_v7 = vsel %vm28_vm0, %v25_v5, 0.0  ;;  %v47_v11 = vsel %vm28_vm0, %v26_v9, 0.0  ;;  %v23_v12 = vld [vmem:[%s539_s0 + $0x18] sm:$0xff]  ;;  %v164_v56 = vld [vmem:[%s540_s1] sm:$0xff]  ;;  %v165_v57 = vld [vmem:[%s540_s1 + $0x8] sm:$0xff] }
   0x4   :  { %v27_v13 = vld [vmem:[%s539_s0 + $0x38] sm:$0xff]  ;;  %v38_v14 = vsel %vm28_vm0, %v23_v12, 0.0  ;;  %v352_v58 = vpack.c.bf16 %v165_v57, %v164_v56 }
   0x5   :  { %v50_v15 = vsel %vm28_vm0, %v27_v13, 0.0 }
   0x6   :  { %353 = vmatprep.subr.bf16.mxu0 %v352_v58  ;;  %356 = vmatprep.subr.bf16.mxu1 %v352_v58 }
   0x7   :  { %42 = vadd.xlane.f32.xlu0 %v41_v6  ;;  %45 = vadd.xlane.f32.xlu1 %v44_v7 }
   0x8   :  { %355 = vmatpush3.bf16.msra.mxu0 %v352_v58  ;;  %357 = vmatpush3.bf16.msra.mxu1 %v352_v58 }
   0xb   :  { %36 = vadd.xlane.f32.xlu0 %v35_v10  ;;  %48 = vadd.xlane.f32.xlu1 %v47_v11 }
   0xf   :  { %39 = vadd.xlane.f32.xlu0 %v38_v14  ;;  %51 = vadd.xlane.f32.xlu1 %v50_v15 }
  0x90   :  { %v31_v16 = vpop.xlane.xlu0 %30  ;;  %v34_v17 = vpop.xlane.xlu1 %33 }
  0x91   :  { %v54_v18 = vmul.f32 0.0625, %v31_v16  ;;  %v55_v19 = vmul.f32 0.0625, %v34_v17  ;;  %v315_v17 = vld [vmem:[%s541_s3] ss:$0 sm:$0xff] }
  0x93   :  { %v436_v20 = vsub.f32 %v20_v0, %v54_v18  ;;  %v438_v21 = vsub.f32 %v21_v1, %v55_v19 }
  0x94   :  { %v43_v22 = vpop.xlane.xlu0 %42  ;;  %v46_v23 = vpop.xlane.xlu1 %45 }
  0x95   :  { %v58_v24 = vmul.f32 0.0625, %v43_v22  ;;  %v59_v25 = vmul.f32 0.0625, %v46_v23  ;;  %v70_v26 = vmul.f32 %v436_v20, %v436_v20  ;;  %v71_v27 = vmul.f32 %v438_v21, %v438_v21  ;;  %v316_v23 = vld [vmem:[%s542_s4] ss:$0 sm:$0xff] }
  0x97   :  { %v444_v28 = vsub.f32 %v24_v2, %v58_v24  ;;  %v446_v29 = vsub.f32 %v25_v5, %v59_v25  ;;  %v78_v30 = vsel %vm28_vm0, %v70_v26, 0.0  ;;  %v81_v33 = vsel %vm28_vm0, %v71_v27, 0.0 }
  0x98   :  { %79 = vadd.xlane.f32.xlu0 %v78_v30  ;;  %v37_v31 = vpop.xlane.xlu0 %36  ;;  %v49_v32 = vpop.xlane.xlu1 %48 }
  0x99   :  { %v56_v34 = vmul.f32 0.0625, %v37_v31  ;;  %v60_v35 = vmul.f32 0.0625, %v49_v32  ;;  %v74_v36 = vmul.f32 %v444_v28, %v444_v28  ;;  %v75_v37 = vmul.f32 %v446_v29, %v446_v29 }
  0x9b   :  { %v454_v38 = vsub.f32 %v22_v8, %v56_v34  ;;  %v456_v39 = vsub.f32 %v26_v9, %v60_v35  ;;  %v90_v40 = vsel %vm28_vm0, %v74_v36, 0.0  ;;  %v93_v43 = vsel %vm28_vm0, %v75_v37, 0.0 }
  0x9c   :  { %82 = vadd.xlane.f32.xlu0 %v81_v33  ;;  %91 = vadd.xlane.f32.xlu1 %v90_v40  ;;  %v40_v41 = vpop.xlane.xlu0 %39  ;;  %v52_v42 = vpop.xlane.xlu1 %51 }
  0x9d   :  { %v57_v44 = vmul.f32 0.0625, %v40_v41  ;;  %v61_v45 = vmul.f32 0.0625, %v52_v42  ;;  %v72_v46 = vmul.f32 %v454_v38, %v454_v38  ;;  %v76_v47 = vmul.f32 %v456_v39, %v456_v39 }
  0x9f   :  { %v464_v48 = vsub.f32 %v23_v12, %v57_v44  ;;  %v466_v49 = vsub.f32 %v27_v13, %v61_v45  ;;  %v84_v50 = vsel %vm28_vm0, %v72_v46, 0.0  ;;  %v96_v51 = vsel %vm28_vm0, %v76_v47, 0.0 }
  0xa0   :  { %94 = vadd.xlane.f32.xlu1 %v93_v43  ;;  %85 = vadd.xlane.f32.xlu0 %v84_v50 }
  0xa1   :  { %v73_v52 = vmul.f32 %v464_v48, %v464_v48  ;;  %v77_v53 = vmul.f32 %v466_v49, %v466_v49 }
  0xa3   :  { %v87_v54 = vsel %vm28_vm0, %v73_v52, 0.0  ;;  %v99_v55 = vsel %vm28_vm0, %v77_v53, 0.0 }
  0xa4   :  { %97 = vadd.xlane.f32.xlu1 %v96_v51  ;;  %88 = vadd.xlane.f32.xlu0 %v87_v54 }
  0xa8   :  { %100 = vadd.xlane.f32.xlu1 %v99_v55 }
 0x125   :  { %v80_v59 = vpop.xlane.xlu0 %79 }
 0x126   :  { %v102_v60 = vmul.f32 0.0625, %v80_v59 }
 0x128   :  { %v110_v61 = vadd.f32 1e-05, %v102_v60 }
 0x129   :  { %v92_v62 = vpop.xlane.xlu1 %91  ;;  %v83_v63 = vpop.xlane.xlu0 %82 }
 0x12a   :  { %358 = vrsqrt.f32 %v110_v61  ;;  %v106_v0 = vmul.f32 0.0625, %v92_v62  ;;  %v103_v1 = vmul.f32 0.0625, %v83_v63 }
 0x12c   :  { %v114_v2 = vadd.f32 1e-05, %v106_v0  ;;  %v111_v3 = vadd.f32 1e-05, %v103_v1 }
 0x12d   :  { %v95_v4 = vpop.xlane.xlu1 %94  ;;  %v86_v5 = vpop.xlane.xlu0 %85 }
 0x12e   :  { %360 = vrsqrt.f32 %v114_v2  ;;  %v107_v6 = vmul.f32 0.0625, %v95_v4  ;;  %v104_v7 = vmul.f32 0.0625, %v86_v5 }
 0x12f   :  { %362 = vrsqrt.f32 %v111_v3 }
 0x130   :  { %v115_v8 = vadd.f32 1e-05, %v107_v6  ;;  %v112_v9 = vadd.f32 1e-05, %v104_v7 }
 0x131   :  { %v98_v10 = vpop.xlane.xlu1 %97  ;;  %v89_v11 = vpop.xlane.xlu0 %88 }
 0x132   :  { %364 = vrsqrt.f32 %v115_v8  ;;  %v108_v12 = vmul.f32 0.0625, %v98_v10  ;;  %v105_v13 = vmul.f32 0.0625, %v89_v11 }
 0x133   :  { %366 = vrsqrt.f32 %v112_v9 }
 0x134   :  { %v359_v14 = vpop.eup %358  ;;  %v116_v15 = vadd.f32 1e-05, %v108_v12  ;;  %v113_v16 = vadd.f32 1e-05, %v105_v13 }
 0x135   :  { %v101_v18 = vpop.xlane.xlu1 %100  ;;  %v126_v19 = vmul.f32 %v359_v14, %v436_v20 }
 0x136   :  { %368 = vrsqrt.f32 %v116_v15  ;;  %v109_v22 = vmul.f32 0.0625, %v101_v18 }
 0x137   :  { %370 = vrsqrt.f32 %v113_v16  ;;  %v141_v24 = vmul.f32 %v315_v17, %v126_v19 }
 0x138   :  { %v361_v25 = vpop.eup %360  ;;  %v117_v26 = vadd.f32 1e-05, %v109_v22 }
 0x139   :  { %v363_v27 = vpop.eup %362  ;;  %v156_v30 = vadd.f32 %v316_v23, %v141_v24  ;;  %v130_v31 = vmul.f32 %v361_v25, %v444_v28 }
 0x13a   :  { %372 = vrsqrt.f32 %v117_v26  ;;  %v127_v32 = vmul.f32 %v363_v27, %v438_v21 }
 0x13b   :  { %340 = vmatprep.mubr.msk.f32.mxu0 %vm28_vm0, %v156_v30  ;;  %v145_v20 = vmul.f32 %v315_v17, %v130_v31 }
 0x13c   :  { %v365_v33 = vpop.eup %364  ;;  %v142_v34 = vmul.f32 %v315_v17, %v127_v32 }
 0x13d   :  { %v367_v35 = vpop.eup %366  ;;  %v160_v36 = vadd.f32 %v316_v23, %v145_v20  ;;  %v131_v37 = vmul.f32 %v365_v33, %v446_v29 }
 0x13e   :  { %v157_v40 = vadd.f32 %v316_v23, %v142_v34  ;;  %v128_v41 = vmul.f32 %v367_v35, %v454_v38 }
 0x13f   :  { %346 = vmatprep.mubr.msk.f32.mxu1 %vm28_vm0, %v160_v36  ;;  %v146_v42 = vmul.f32 %v315_v17, %v131_v37 }
 0x140   :  { %v369_v43 = vpop.eup %368  ;;  %341 = vmatmul.mubr.msk.f32.vlgmr.msra.gmra.mrb[0].mxu0 %vm28_vm0, %v157_v40  ;;  %v143_v28 = vmul.f32 %v315_v17, %v128_v41 }
 0x141   :  { %v371_v21 = vpop.eup %370  ;;  %v161_v44 = vadd.f32 %v316_v23, %v146_v42  ;;  %v132_v45 = vmul.f32 %v369_v43, %v456_v39 }
 0x142   :  { %v158_v46 = vadd.f32 %v316_v23, %v143_v28  ;;  %v129_v47 = vmul.f32 %v371_v21, %v464_v48  ;;  %v317_v48 = vld [vmem:[%s543_s2] ss:$0 sm:$0xff] }
 0x143   :  { %347 = vmatmul.mubr.msk.f32.vlgmr.msra.gmra.mrb[0].mxu1 %vm28_vm0, %v161_v44  ;;  %v147_v29 = vmul.f32 %v315_v17, %v132_v45 }
 0x144   :  { %v373_v50 = vpop.eup %372  ;;  %343 = vmatprep.mubr.msk.f32.mxu0 %vm28_vm0, %v158_v46  ;;  %v144_v38 = vmul.f32 %v315_v17, %v129_v47 }
 0x145   :  { %v162_v51 = vadd.f32 %v316_v23, %v147_v29  ;;  %v133_v52 = vmul.f32 %v373_v50, %v466_v49 }
 0x146   :  { %v159_v53 = vadd.f32 %v316_v23, %v144_v38 }
 0x147   :  { %349 = vmatprep.mubr.msk.f32.mxu1 %vm28_vm0, %v162_v51  ;;  %v148_v54 = vmul.f32 %v315_v17, %v133_v52 }
 0x148   :  { %344 = vmatmul.mubr.msk.f32.gmra.mrb[2].mxu0 %vm28_vm0, %v159_v53 }
 0x149   :  { %v163_v39 = vadd.f32 %v316_v23, %v148_v54 }
 0x14b   :  { %350 = vmatmul.mubr.msk.f32.gmra.mrb[2].mxu1 %vm28_vm0, %v163_v39 }
 0x213   :  { %v342_v55 = vpop.f32.mrb[0].mxu0 }
 0x214   :  { %v269_v56 = vadd.f32 %v342_v55, %v317_v48  ;;  %v263_v57 = vpop.f32.mrb[1].mxu0 }
 0x215   :  { %v264_v58 = vadd.f32 %v317_v48, %v263_v57 }
 0x216   :  { %304 = vst.msk [vmem:[%s544_s5 + $0x8] sm:$0xff] %vm302_vm1, %v269_v56  ;;  %v348_v49 = vpop.f32.mrb[0].mxu1 }
 0x217   :  { %303 = vst.msk [vmem:[%s544_s5] sm:$0xff] %vm302_vm1, %v264_v58  ;;  %v289_v59 = vadd.f32 %v348_v49, %v317_v48  ;;  %v283_v60 = vpop.f32.mrb[1].mxu1 }
 0x218   :  { %v284_v61 = vadd.f32 %v317_v48, %v283_v60 }
 0x219   :  { %308 = vst.msk [vmem:[%s544_s5 + $0x28] sm:$0xff] %vm302_vm1, %v289_v59 }
 0x21a   :  { %307 = vst.msk [vmem:[%s544_s5 + $0x20] sm:$0xff] %vm302_vm1, %v284_v61 }
 0x21b   :  { %v345_v62 = vpop.f32.mrb[2].mxu0 }
 0x21c   :  { %v279_v63 = vadd.f32 %v345_v62, %v317_v48  ;;  %v273_v0 = vpop.f32.mrb[3].mxu0 }
 0x21d   :  { %v274_v1 = vadd.f32 %v317_v48, %v273_v0 }
 0x21e   :  { %306 = vst.msk [vmem:[%s544_s5 + $0x18] sm:$0xff] %vm302_vm1, %v279_v63  ;;  %v351_v2 = vpop.f32.mrb[2].mxu1 }
 0x21f   :  { %305 = vst.msk [vmem:[%s544_s5 + $0x10] sm:$0xff] %vm302_vm1, %v274_v1  ;;  %v299_v3 = vadd.f32 %v351_v2, %v317_v48  ;;  %v293_v4 = vpop.f32.mrb[3].mxu1 }
 0x220   :  { %v294_v5 = vadd.f32 %v317_v48, %v293_v4 }
 0x221   :  { %310 = vst.msk [vmem:[%s544_s5 + $0x38] sm:$0xff] %vm302_vm1, %v299_v3 }
 0x222   :  { %309 = vst.msk [vmem:[%s544_s5 + $0x30] sm:$0xff] %vm302_vm1, %v294_v5 }

// kernel: evoformer_forward.69
= control target key start
LH: loop header
LB: loop body
LE: loop exit
PB: predicated region body
PF: predicated region fallthrough
CT: control target
= control target key end

     0   :  { %s1032_s9 = smov 0   ;;  %s1109_s0 = inlined_call_operand.vmem [shape: f32[16,8,8], index: 0, kind: input, shape index: {}]   ;;  %s1110_s1 = inlined_call_operand.vmem [shape: f32[16,8,8], index: 1, kind: input, shape index: {}]   ;;  %s1111_s2 = inlined_call_operand.vmem [shape: f32[16,8,8], index: 2, kind: output, shape index: {}]  }
   0x1 LB: > { %s891_s10 = sadd.s32 4294967295, %s1013_s9   ;;  %p895_p0 = scmp.ge.s32.totalorder %s1013_s9, 1  ;;  %s1013_s9 = sphi %s1032_s9, %s12_s9  }
   0x2   : > { %p124_p1 = scmp.lt.s32.totalorder %s1013_s9, 3 }
   0x4   : > { %p125_p2 = pnand %p895_p0, %p124_p1 }
   0x5   : > { %s896_s11 = sshll.u32 (!%p125_p2), %s891_s10, 3  ;;  %v1015_v0 = vmov (!%p125_p2), 0.0   ;;  %vm1016_vm0 = vmmov (!%p125_p2), 0   ;;  %vm171_vm1 = vcmask (!%p125_p2), 64512  }
   0x6   : > { %128 = sbr.rel (%p125_p2) target bundleno = 245 (0xf5), region = 28  ;;  %957 = vmatprep.subr.mxu0 (!%p125_p2), %v1015_v0  ;;  %962 = vmatprep.subr.mxu1 (!%p125_p2), %v1015_v0  ;;  %p152_p3 = scmp.lt.s32.totalorder (!%p125_p2), %s896_s11, 15 }
   0x7   : > { %959 = vmatprep.mubr.msk.f32.mxu0 (!%p125_p2), %vm1016_vm0, %v1015_v0  ;;  %964 = vmatprep.mubr.msk.f32.mxu1 (!%p125_p2), %vm1016_vm0, %v1015_v0 }
   0xd   : > { %s1113_s11 = smov (!%p152_p3, %s896_s11), 15 }
   0xe   : > { %s1042_s12 = sshll.u32 %s1113_s11, 3 }
   0xf   : > { %s1048_s15 = scalar_lea.vmem %s1110_s1, %s1042_s12  ;;  %s1054_s18 = scalar_lea.vmem %s1109_s0, %s1042_s12 }
  0x10   : > { %v170_v1 = vld [vmem:[%s1048_s15] sm:$0xff]  ;;  %v905_v2 = vld [vmem:[%s1048_s15 + $0x8] sm:$0xff]  ;;  %v910_v5 = vld [vmem:[%s1048_s15 + $0x10] sm:$0xff]  ;;  %s167_s21 = scalar_lea.vmem %s1111_s2, %s1042_s12 }
  0x11   : > { %958 = vmatpush3.xpose.msk.msra.mxu0 %vm171_vm1, %v170_v1  ;;  %963 = vmatpush3.xpose.msk.msra.mxu1 %vm171_vm1, %v905_v2  ;;  %v169_v3 = vld [vmem:[%s1054_s18] sm:$0xff]  ;;  %v904_v4 = vld [vmem:[%s1054_s18 + $0x8] sm:$0xff]  ;;  %v915_v6 = vld [vmem:[%s1048_s15 + $0x18] sm:$0xff] }
  0x12   : > { %967 = vmatprep.subr.mxu0 %v1015_v0  ;;  %972 = vmatprep.subr.mxu1 %v1015_v0  ;;  %v909_v7 = vld [vmem:[%s1054_s18 + $0x10] sm:$0xff]  ;;  %v914_v8 = vld [vmem:[%s1054_s18 + $0x18] sm:$0xff]  ;;  %v920_v9 = vld [vmem:[%s1048_s15 + $0x20] sm:$0xff] }
  0x13   : > { %v925_v10 = vld [vmem:[%s1048_s15 + $0x28] sm:$0xff]  ;;  %v919_v11 = vld [vmem:[%s1054_s18 + $0x20] sm:$0xff]  ;;  %v930_v13 = vld [vmem:[%s1048_s15 + $0x30] sm:$0xff] }
  0x14   : > { %960 = vmatmul.mubr.msk.f32.vlgmr.msra.gmra.mrb[0].mxu0 %vm171_vm1, %v169_v3  ;;  %965 = vmatmul.mubr.msk.f32.vlgmr.msra.gmra.mrb[0].mxu1 %vm171_vm1, %v904_v4  ;;  %v924_v12 = vld [vmem:[%s1054_s18 + $0x28] sm:$0xff]  ;;  %v935_v14 = vld [vmem:[%s1048_s15 + $0x38] sm:$0xff]  ;;  %v929_v15 = vld [vmem:[%s1054_s18 + $0x30] sm:$0xff] }
  0x15   : > { %968 = vmatpush3.xpose.msk.msra.mxu0 %vm171_vm1, %v910_v5  ;;  %973 = vmatpush3.xpose.msk.msra.mxu1 %vm171_vm1, %v915_v6  ;;  %v934_v16 = vld [vmem:[%s1054_s18 + $0x38] sm:$0xff] }
  0x16   : > { %969 = vmatprep.mubr.msk.f32.mxu0 %vm1016_vm0, %v1015_v0  ;;  %974 = vmatprep.mubr.msk.f32.mxu1 %vm1016_vm0, %v1015_v0 }
  0x17   : > { %977 = vmatprep.subr.mxu0 %v1015_v0  ;;  %982 = vmatprep.subr.mxu1 %v1015_v0 }
  0x18   : > { %970 = vmatmul.mubr.msk.f32.vlgmr.msra.gmra.mrb[2].mxu0 %vm171_vm1, %v909_v7  ;;  %975 = vmatmul.mubr.msk.f32.vlgmr.msra.gmra.mrb[2].mxu1 %vm171_vm1, %v914_v8 }
  0x19   : > { %978 = vmatpush3.xpose.msk.msra.mxu0 %vm171_vm1, %v920_v9  ;;  %983 = vmatpush3.xpose.msk.msra.mxu1 %vm171_vm1, %v925_v10 }
  0x1a   : > { %979 = vmatprep.mubr.msk.f32.mxu0 %vm1016_vm0, %v1015_v0  ;;  %984 = vmatprep.mubr.msk.f32.mxu1 %vm1016_vm0, %v1015_v0 }
  0x1b   : > { %987 = vmatprep.subr.mxu0 %v1015_v0  ;;  %992 = vmatprep.subr.mxu1 %v1015_v0 }
  0x1c   : > { %980 = vmatmul.mubr.msk.f32.vlgmr.msra.gmra.mrb[4].mxu0 %vm171_vm1, %v919_v11  ;;  %985 = vmatmul.mubr.msk.f32.vlgmr.msra.gmra.mrb[4].mxu1 %vm171_vm1, %v924_v12 }
  0x1d   : > { %988 = vmatpush3.xpose.msk.msra.mxu0 %vm171_vm1, %v930_v13  ;;  %993 = vmatpush3.xpose.msk.msra.mxu1 %vm171_vm1, %v935_v14 }
  0x1e   : > { %989 = vmatprep.mubr.msk.f32.mxu0 %vm1016_vm0, %v1015_v0  ;;  %994 = vmatprep.mubr.msk.f32.mxu1 %vm1016_vm0, %v1015_v0 }
  0x20   : > { %990 = vmatmul.mubr.msk.f32.vlgmr.msra.gmra.mrb[6].mxu0 %vm171_vm1, %v929_v15  ;;  %995 = vmatmul.mubr.msk.f32.vlgmr.msra.gmra.mrb[6].mxu1 %vm171_vm1, %v934_v16 }
  0xe7   : > { %v244_v17 = vpop.f32.mrb[0].mxu0  ;;  %v325_v18 = vpop.f32.mrb[0].mxu1 }
  0xe8   : > { %248 = vst.msk [vmem:[%s167_s21] sm:$0xff] %vm171_vm1, %v244_v17  ;;  %908 = vst.msk [vmem:[%s167_s21 + $0x8] sm:$0xff] %vm171_vm1, %v325_v18  ;;  %v961_v19 = vpop.f32.mrb[1].mxu0  ;;  %v966_v20 = vpop.f32.mrb[1].mxu1 }
  0xeb   : > { %v407_v21 = vpop.f32.mrb[2].mxu0  ;;  %v489_v22 = vpop.f32.mrb[2].mxu1 }
  0xec   : > { %913 = vst.msk [vmem:[%s167_s21 + $0x10] sm:$0xff] %vm171_vm1, %v407_v21  ;;  %918 = vst.msk [vmem:[%s167_s21 + $0x18] sm:$0xff] %vm171_vm1, %v489_v22  ;;  %v971_v23 = vpop.f32.mrb[3].mxu0  ;;  %v976_v24 = vpop.f32.mrb[3].mxu1 }
  0xef   : > { %v571_v25 = vpop.f32.mrb[4].mxu0  ;;  %v653_v26 = vpop.f32.mrb[4].mxu1 }
  0xf0   : > { %923 = vst.msk [vmem:[%s167_s21 + $0x20] sm:$0xff] %vm171_vm1, %v571_v25  ;;  %928 = vst.msk [vmem:[%s167_s21 + $0x28] sm:$0xff] %vm171_vm1, %v653_v26  ;;  %v981_v27 = vpop.f32.mrb[5].mxu0  ;;  %v986_v28 = vpop.f32.mrb[5].mxu1 }
  0xf3   : > { %v735_v29 = vpop.f32.mrb[6].mxu0  ;;  %v817_v30 = vpop.f32.mrb[6].mxu1 }
  0xf4   : > { %933 = vst.msk [vmem:[%s167_s21 + $0x30] sm:$0xff] %vm171_vm1, %v735_v29  ;;  %938 = vst.msk [vmem:[%s167_s21 + $0x38] sm:$0xff] %vm171_vm1, %v817_v30  ;;  %v991_v31 = vpop.f32.mrb[7].mxu0  ;;  %v996_v32 = vpop.f32.mrb[7].mxu1 }
  0xf5 PF: > { %s12_s9 = sadd.s32 1, %s1013_s9  }
  0xf6   : > { %p9_p4 = scmp.ge.s32.totalorder %s12_s9, 4  }
  0xf8   :  { %11 = sbr.rel (!%p9_p4) target bundleno = 1 (0x1), region = 82 }

// kernel: evoformer_forward.70
= control target key start
LH: loop header
LB: loop body
LE: loop exit
PB: predicated region body
PF: predicated region fallthrough
CT: control target
= control target key end

     0   :  { %vm34_vm0 = vcmask 130048   ;;  %s722_s0 = inlined_call_operand.vmem [shape: f32[64,16], index: 0, kind: input, shape index: {}]   ;;  %s723_s1 = inlined_call_operand.vmem [shape: f32[16,16], index: 1, kind: input, shape index: {}]   ;;  %s724_s3 = inlined_call_operand.vmem [shape: f32[1,16], index: 3, kind: input, shape index: {}]   ;;  %s725_s4 = inlined_call_operand.vmem [shape: f32[1,16], index: 4, kind: input, shape index: {}]   ;;  %s726_s5 = inlined_call_operand.vmem [shape: f32[64,16], index: 5, kind: input, shape index: {}]   ;;  %s727_s2 = inlined_call_operand.vmem [shape: f32[1,16], index: 2, kind: input, shape index: {}]   ;;  %s728_s6 = inlined_call_operand.vmem [shape: f32[64,16], index: 6, kind: input, shape index: {}]   ;;  %s729_s7 = inlined_call_operand.vmem [shape: f32[64,16], index: 7, kind: output, shape index: {}]  }
   0x1   :  { %v26_v0 = vld [vmem:[%s722_s0] sm:$0xff]  ;;  %v27_v1 = vld [vmem:[%s722_s0 + $0x8] sm:$0xff]  ;;  %v28_v8 = vld [vmem:[%s722_s0 + $0x10] sm:$0xff] }
   0x2   :  { %v30_v2 = vld [vmem:[%s722_s0 + $0x20] sm:$0xff]  ;;  %v35_v3 = vsel %vm34_vm0, %v26_v0, 0.0  ;;  %v38_v4 = vsel %vm34_vm0, %v27_v1, 0.0  ;;  %v31_v5 = vld [vmem:[%s722_s0 + $0x28] sm:$0xff]  ;;  %v32_v9 = vld [vmem:[%s722_s0 + $0x30] sm:$0xff]  ;;  %v41_v10 = vsel %vm34_vm0, %v28_v8, 0.0 }
   0x3   :  { %36 = vadd.xlane.f32.xlu0 %v35_v3  ;;  %39 = vadd.xlane.f32.xlu1 %v38_v4  ;;  %v47_v6 = vsel %vm34_vm0, %v30_v2, 0.0  ;;  %v50_v7 = vsel %vm34_vm0, %v31_v5, 0.0  ;;  %v53_v11 = vsel %vm34_vm0, %v32_v9, 0.0  ;;  %v29_v12 = vld [vmem:[%s722_s0 + $0x18] sm:$0xff]  ;;  %v170_v56 = vld [vmem:[%s723_s1] sm:$0xff]  ;;  %v171_v57 = vld [vmem:[%s723_s1 + $0x8] sm:$0xff] }
   0x4   :  { %v33_v13 = vld [vmem:[%s722_s0 + $0x38] sm:$0xff]  ;;  %v44_v14 = vsel %vm34_vm0, %v29_v12, 0.0  ;;  %v445_v58 = vpack.c.bf16 %v171_v57, %v170_v56 }
   0x5   :  { %v56_v15 = vsel %vm34_vm0, %v33_v13, 0.0 }
   0x6   :  { %446 = vmatprep.subr.bf16.mxu0 %v445_v58  ;;  %449 = vmatprep.subr.bf16.mxu1 %v445_v58 }
   0x7   :  { %48 = vadd.xlane.f32.xlu0 %v47_v6  ;;  %51 = vadd.xlane.f32.xlu1 %v50_v7 }
   0x8   :  { %448 = vmatpush3.bf16.msra.mxu0 %v445_v58  ;;  %450 = vmatpush3.bf16.msra.mxu1 %v445_v58  ;;  %v312_v58 = vld [vmem:[%s726_s5 + $0x20] sm:$0xff] }
   0xb   :  { %42 = vadd.xlane.f32.xlu0 %v41_v10  ;;  %54 = vadd.xlane.f32.xlu1 %v53_v11 }
   0xf   :  { %45 = vadd.xlane.f32.xlu0 %v44_v14  ;;  %57 = vadd.xlane.f32.xlu1 %v56_v15 }
  0x90   :  { %v37_v16 = vpop.xlane.xlu0 %36  ;;  %v40_v17 = vpop.xlane.xlu1 %39 }
  0x91   :  { %v60_v18 = vmul.f32 0.0625, %v37_v16  ;;  %v61_v19 = vmul.f32 0.0625, %v40_v17  ;;  %v400_v17 = vld [vmem:[%s724_s3] ss:$0 sm:$0xff] }
  0x93   :  { %v571_v20 = vsub.f32 %v26_v0, %v60_v18  ;;  %v573_v21 = vsub.f32 %v27_v1, %v61_v19 }
  0x94   :  { %v49_v22 = vpop.xlane.xlu0 %48  ;;  %v52_v23 = vpop.xlane.xlu1 %51 }
  0x95   :  { %v64_v24 = vmul.f32 0.0625, %v49_v22  ;;  %v65_v25 = vmul.f32 0.0625, %v52_v23  ;;  %v76_v26 = vmul.f32 %v571_v20, %v571_v20  ;;  %v77_v27 = vmul.f32 %v573_v21, %v573_v21  ;;  %v401_v23 = vld [vmem:[%s725_s4] ss:$0 sm:$0xff] }
  0x97   :  { %v579_v28 = vsub.f32 %v30_v2, %v64_v24  ;;  %v581_v29 = vsub.f32 %v31_v5, %v65_v25  ;;  %v84_v30 = vsel %vm34_vm0, %v76_v26, 0.0  ;;  %v87_v33 = vsel %vm34_vm0, %v77_v27, 0.0 }
  0x98   :  { %85 = vadd.xlane.f32.xlu0 %v84_v30  ;;  %v43_v31 = vpop.xlane.xlu0 %42  ;;  %v55_v32 = vpop.xlane.xlu1 %54 }
  0x99   :  { %v62_v34 = vmul.f32 0.0625, %v43_v31  ;;  %v66_v35 = vmul.f32 0.0625, %v55_v32  ;;  %v80_v36 = vmul.f32 %v579_v28, %v579_v28  ;;  %v81_v37 = vmul.f32 %v581_v29, %v581_v29 }
  0x9b   :  { %v589_v38 = vsub.f32 %v28_v8, %v62_v34  ;;  %v591_v39 = vsub.f32 %v32_v9, %v66_v35  ;;  %v96_v40 = vsel %vm34_vm0, %v80_v36, 0.0  ;;  %v99_v43 = vsel %vm34_vm0, %v81_v37, 0.0 }
  0x9c   :  { %88 = vadd.xlane.f32.xlu0 %v87_v33  ;;  %97 = vadd.xlane.f32.xlu1 %v96_v40  ;;  %v46_v41 = vpop.xlane.xlu0 %45  ;;  %v58_v42 = vpop.xlane.xlu1 %57 }
  0x9d   :  { %v63_v44 = vmul.f32 0.0625, %v46_v41  ;;  %v67_v45 = vmul.f32 0.0625, %v58_v42  ;;  %v78_v46 = vmul.f32 %v589_v38, %v589_v38  ;;  %v82_v47 = vmul.f32 %v591_v39, %v591_v39 }
  0x9f   :  { %v599_v48 = vsub.f32 %v29_v12, %v63_v44  ;;  %v601_v49 = vsub.f32 %v33_v13, %v67_v45  ;;  %v90_v50 = vsel %vm34_vm0, %v78_v46, 0.0  ;;  %v102_v51 = vsel %vm34_vm0, %v82_v47, 0.0 }
  0xa0   :  { %100 = vadd.xlane.f32.xlu1 %v99_v43  ;;  %91 = vadd.xlane.f32.xlu0 %v90_v50 }
  0xa1   :  { %v79_v52 = vmul.f32 %v599_v48, %v599_v48  ;;  %v83_v53 = vmul.f32 %v601_v49, %v601_v49 }
  0xa3   :  { %v93_v54 = vsel %vm34_vm0, %v79_v52, 0.0  ;;  %v105_v55 = vsel %vm34_vm0, %v83_v53, 0.0 }
  0xa4   :  { %103 = vadd.xlane.f32.xlu1 %v102_v51  ;;  %94 = vadd.xlane.f32.xlu0 %v93_v54 }
  0xa8   :  { %106 = vadd.xlane.f32.xlu1 %v105_v55  ;;  %v308_v55 = vld [vmem:[%s726_s5] sm:$0xff] }
  0xa9   :  { %v411_v57 = vmul.f32 -1.442695, %v308_v55 }
 0x125   :  { %v86_v59 = vpop.xlane.xlu0 %85 }
 0x126   :  { %v108_v60 = vmul.f32 0.0625, %v86_v59 }
 0x128   :  { %v116_v61 = vadd.f32 1e-05, %v108_v60  ;;  %v415_v60 = vmul.f32 -1.442695, %v312_v58 }
 0x129   :  { %v98_v62 = vpop.xlane.xlu1 %97  ;;  %v89_v63 = vpop.xlane.xlu0 %88 }
 0x12a   :  { %451 = vrsqrt.f32 %v116_v61  ;;  %v112_v0 = vmul.f32 0.0625, %v98_v62  ;;  %v109_v1 = vmul.f32 0.0625, %v89_v63  ;;  %v311_v61 = vld [vmem:[%s726_s5 + $0x18] sm:$0xff]  ;;  %v310_v62 = vld [vmem:[%s726_s5 + $0x10] sm:$0xff] }
 0x12b   :  { %v414_v63 = vmul.f32 -1.442695, %v311_v61 }
 0x12c   :  { %v120_v2 = vadd.f32 1e-05, %v112_v0  ;;  %v117_v3 = vadd.f32 1e-05, %v109_v1  ;;  %v315_v0 = vld [vmem:[%s726_s5 + $0x38] sm:$0xff] }
 0x12d   :  { %v101_v4 = vpop.xlane.xlu1 %100  ;;  %v92_v5 = vpop.xlane.xlu0 %91  ;;  %v413_v1 = vmul.f32 -1.442695, %v310_v62  ;;  %v379_v62 = vld [vmem:[%s728_s6 + $0x38] sm:$0xff] }
 0x12e   :  { %453 = vrsqrt.f32 %v120_v2  ;;  %v113_v6 = vmul.f32 0.0625, %v101_v4  ;;  %v110_v7 = vmul.f32 0.0625, %v92_v5  ;;  %v314_v2 = vld [vmem:[%s726_s5 + $0x30] sm:$0xff] }
 0x12f   :  { %455 = vrsqrt.f32 %v117_v3  ;;  %v418_v3 = vmul.f32 -1.442695, %v315_v0  ;;  %v417_v4 = vmul.f32 -1.442695, %v314_v2  ;;  %v378_v2 = vld [vmem:[%s728_s6 + $0x30] sm:$0xff] }
 0x130   :  { %v121_v8 = vadd.f32 1e-05, %v113_v6  ;;  %v118_v9 = vadd.f32 1e-05, %v110_v7 }
 0x131   :  { %v104_v10 = vpop.xlane.xlu1 %103  ;;  %v95_v11 = vpop.xlane.xlu0 %94 }
 0x132   :  { %457 = vrsqrt.f32 %v121_v8  ;;  %v114_v12 = vmul.f32 0.0625, %v104_v10  ;;  %v111_v13 = vmul.f32 0.0625, %v95_v11 }
 0x133   :  { %459 = vrsqrt.f32 %v118_v9 }
 0x134   :  { %v452_v14 = vpop.eup %451  ;;  %v122_v15 = vadd.f32 1e-05, %v114_v12  ;;  %v119_v16 = vadd.f32 1e-05, %v111_v13 }
 0x135   :  { %v107_v18 = vpop.xlane.xlu1 %106  ;;  %v132_v19 = vmul.f32 %v452_v14, %v571_v20 }
 0x136   :  { %461 = vrsqrt.f32 %v122_v15  ;;  %v115_v22 = vmul.f32 0.0625, %v107_v18 }
 0x137   :  { %463 = vrsqrt.f32 %v119_v16  ;;  %v147_v24 = vmul.f32 %v400_v17, %v132_v19 }
 0x138   :  { %v454_v25 = vpop.eup %453  ;;  %v123_v26 = vadd.f32 1e-05, %v115_v22  ;;  %v402_v22 = vld [vmem:[%s727_s2] ss:$0 sm:$0xff] }
 0x139   :  { %v456_v27 = vpop.eup %455  ;;  %v162_v30 = vadd.f32 %v401_v23, %v147_v24  ;;  %v136_v31 = vmul.f32 %v454_v25, %v579_v28 }
 0x13a   :  { %465 = vrsqrt.f32 %v123_v26  ;;  %v133_v32 = vmul.f32 %v456_v27, %v573_v21 }
 0x13b   :  { %433 = vmatprep.mubr.msk.f32.mxu0 %vm34_vm0, %v162_v30  ;;  %v151_v20 = vmul.f32 %v400_v17, %v136_v31  ;;  %v373_v31 = vld [vmem:[%s728_s6 + $0x8] sm:$0xff] }
 0x13c   :  { %v458_v33 = vpop.eup %457  ;;  %v148_v34 = vmul.f32 %v400_v17, %v133_v32 }
 0x13d   :  { %v460_v35 = vpop.eup %459  ;;  %v166_v36 = vadd.f32 %v401_v23, %v151_v20  ;;  %v137_v37 = vmul.f32 %v458_v33, %v581_v29 }
 0x13e   :  { %v163_v40 = vadd.f32 %v401_v23, %v148_v34  ;;  %v134_v41 = vmul.f32 %v460_v35, %v589_v38  ;;  %v372_v34 = vld [vmem:[%s728_s6] sm:$0xff] }
 0x13f   :  { %439 = vmatprep.mubr.msk.f32.mxu1 %vm34_vm0, %v166_v36  ;;  %v152_v42 = vmul.f32 %v400_v17, %v137_v37 }
 0x140   :  { %v462_v43 = vpop.eup %461  ;;  %434 = vmatmul.mubr.msk.f32.vlgmr.msra.gmra.mrb[0].mxu0 %vm34_vm0, %v163_v40  ;;  %v149_v28 = vmul.f32 %v400_v17, %v134_v41 }
 0x141   :  { %v464_v21 = vpop.eup %463  ;;  %v167_v44 = vadd.f32 %v401_v23, %v152_v42  ;;  %v138_v45 = vmul.f32 %v462_v43, %v591_v39  ;;  %v377_v43 = vld [vmem:[%s728_s6 + $0x28] sm:$0xff] }
 0x142   :  { %v164_v46 = vadd.f32 %v401_v23, %v149_v28  ;;  %v135_v47 = vmul.f32 %v464_v21, %v599_v48  ;;  %v309_v48 = vld [vmem:[%s726_s5 + $0x8] sm:$0xff] }
 0x143   :  { %440 = vmatmul.mubr.msk.f32.vlgmr.msra.gmra.mrb[0].mxu1 %vm34_vm0, %v167_v44  ;;  %v153_v29 = vmul.f32 %v400_v17, %v138_v45  ;;  %v412_v56 = vmul.f32 -1.442695, %v309_v48  ;;  %v376_v45 = vld [vmem:[%s728_s6 + $0x20] sm:$0xff] }
 0x144   :  { %v466_v50 = vpop.eup %465  ;;  %436 = vmatprep.mubr.msk.f32.mxu0 %vm34_vm0, %v164_v46  ;;  %v150_v38 = vmul.f32 %v400_v17, %v135_v47 }
 0x145   :  { %v168_v51 = vadd.f32 %v401_v23, %v153_v29  ;;  %v139_v52 = vmul.f32 %v466_v50, %v601_v49  ;;  %v313_v49 = vld [vmem:[%s726_s5 + $0x28] sm:$0xff]  ;;  %467 = vpow2.f32 %v412_v56  ;;  %v374_v56 = vld [vmem:[%s728_s6 + $0x10] sm:$0xff] }
 0x146   :  { %v165_v53 = vadd.f32 %v401_v23, %v150_v38  ;;  %v416_v59 = vmul.f32 -1.442695, %v313_v49  ;;  %469 = vpow2.f32 %v411_v57 }
 0x147   :  { %442 = vmatprep.mubr.msk.f32.mxu1 %vm34_vm0, %v168_v51  ;;  %v154_v54 = vmul.f32 %v400_v17, %v139_v52 }
 0x148   :  { %437 = vmatmul.mubr.msk.f32.gmra.mrb[2].mxu0 %vm34_vm0, %v165_v53  ;;  %471 = vpow2.f32 %v416_v59 }
 0x149   :  { %v169_v39 = vadd.f32 %v401_v23, %v154_v54  ;;  %473 = vpow2.f32 %v415_v60  ;;  %v375_v54 = vld [vmem:[%s728_s6 + $0x18] sm:$0xff] }
 0x14a   :  { %475 = vpow2.f32 %v414_v63 }
 0x14b   :  { %443 = vmatmul.mubr.msk.f32.gmra.mrb[2].mxu1 %vm34_vm0, %v169_v39  ;;  %477 = vpow2.f32 %v413_v1 }
 0x14c   :  { %479 = vpow2.f32 %v418_v3 }
 0x14d   :  { %481 = vpow2.f32 %v417_v4 }
 0x14f   :  { %v468_v5 = vpop.eup %467 }
 0x150   :  { %v470_v6 = vpop.eup %469  ;;  %v341_v8 = vadd.f32 1.0, %v468_v5 }
 0x151   :  { %v340_v10 = vadd.f32 1.0, %v470_v6 }
 0x152   :  { %v472_v7 = vpop.eup %471  ;;  %483 = vrcp.f32 %v341_v8 }
 0x153   :  { %v474_v9 = vpop.eup %473  ;;  %v345_v11 = vadd.f32 1.0, %v472_v7  ;;  %485 = vrcp.f32 %v340_v10 }
 0x154   :  { %v344_v12 = vadd.f32 1.0, %v474_v9  ;;  %v476_v13 = vpop.eup %475 }
 0x155   :  { %v478_v14 = vpop.eup %477  ;;  %487 = vrcp.f32 %v345_v11  ;;  %v343_v16 = vadd.f32 1.0, %v476_v13 }
 0x156   :  { %v480_v15 = vpop.eup %479  ;;  %489 = vrcp.f32 %v344_v12  ;;  %v342_v18 = vadd.f32 1.0, %v478_v14 }
 0x157   :  { %v482_v17 = vpop.eup %481  ;;  %v347_v19 = vadd.f32 1.0, %v480_v15  ;;  %491 = vrcp.f32 %v343_v16 }
 0x158   :  { %v346_v23 = vadd.f32 1.0, %v482_v17  ;;  %493 = vrcp.f32 %v342_v18 }
 0x159   :  { %495 = vrcp.f32 %v347_v19 }
 0x15a   :  { %497 = vrcp.f32 %v346_v23 }
 0x15c   :  { %v484_v24 = vpop.eup %483 }
 0x15d   :  { %v486_v26 = vpop.eup %485 }
 0x15f   :  { %v488_v20 = vpop.eup %487 }
 0x160   :  { %v490_v36 = vpop.eup %489 }
 0x161   :  { %v492_v47 = vpop.eup %491 }
 0x162   :  { %v494_v38 = vpop.eup %493 }
 0x163   :  { %v496_v48 = vpop.eup %495 }
 0x164   :  { %v498_v57 = vpop.eup %497 }
 0x213   :  { %v435_v25 = vpop.f32.mrb[0].mxu0 }
 0x214   :  { %v275_v27 = vadd.f32 %v435_v25, %v402_v22  ;;  %v269_v30 = vpop.f32.mrb[1].mxu0 }
 0x215   :  { %v270_v32 = vadd.f32 %v402_v22, %v269_v30 }
 0x216   :  { %v365_v33 = vmul.f32 %v484_v24, %v275_v27  ;;  %v441_v35 = vpop.f32.mrb[0].mxu1 }
 0x217   :  { %v364_v37 = vmul.f32 %v486_v26, %v270_v32  ;;  %v295_v40 = vadd.f32 %v441_v35, %v402_v22  ;;  %v289_v41 = vpop.f32.mrb[1].mxu1 }
 0x218   :  { %v381_v42 = vadd.f32 %v373_v31, %v365_v33  ;;  %v290_v28 = vadd.f32 %v402_v22, %v289_v41 }
 0x219   :  { %v380_v21 = vadd.f32 %v372_v34, %v364_v37  ;;  %v369_v44 = vmul.f32 %v488_v20, %v295_v40 }
 0x21a   :  { %389 = vst.msk [vmem:[%s729_s7 + $0x8] sm:$0xff] %vm34_vm0, %v381_v42  ;;  %v368_v46 = vmul.f32 %v490_v36, %v290_v28 }
 0x21b   :  { %388 = vst.msk [vmem:[%s729_s7] sm:$0xff] %vm34_vm0, %v380_v21  ;;  %v385_v29 = vadd.f32 %v377_v43, %v369_v44  ;;  %v438_v50 = vpop.f32.mrb[2].mxu0 }
 0x21c   :  { %v384_v51 = vadd.f32 %v376_v45, %v368_v46  ;;  %v285_v52 = vadd.f32 %v438_v50, %v402_v22  ;;  %v279_v53 = vpop.f32.mrb[3].mxu0 }
 0x21d   :  { %393 = vst.msk [vmem:[%s729_s7 + $0x28] sm:$0xff] %vm34_vm0, %v385_v29  ;;  %v280_v39 = vadd.f32 %v402_v22, %v279_v53 }
 0x21e   :  { %392 = vst.msk [vmem:[%s729_s7 + $0x20] sm:$0xff] %vm34_vm0, %v384_v51  ;;  %v367_v55 = vmul.f32 %v492_v47, %v285_v52  ;;  %v444_v49 = vpop.f32.mrb[2].mxu1 }
 0x21f   :  { %v366_v58 = vmul.f32 %v494_v38, %v280_v39  ;;  %v305_v59 = vadd.f32 %v444_v49, %v402_v22  ;;  %v299_v60 = vpop.f32.mrb[3].mxu1 }
 0x220   :  { %v383_v61 = vadd.f32 %v375_v54, %v367_v55  ;;  %v300_v63 = vadd.f32 %v402_v22, %v299_v60 }
 0x221   :  { %v382_v0 = vadd.f32 %v374_v56, %v366_v58  ;;  %v371_v1 = vmul.f32 %v496_v48, %v305_v59 }
 0x222   :  { %391 = vst.msk [vmem:[%s729_s7 + $0x18] sm:$0xff] %vm34_vm0, %v383_v61  ;;  %v370_v3 = vmul.f32 %v498_v57, %v300_v63 }
 0x223   :  { %390 = vst.msk [vmem:[%s729_s7 + $0x10] sm:$0xff] %vm34_vm0, %v382_v0  ;;  %v387_v4 = vadd.f32 %v379_v62, %v371_v1 }
 0x224   :  { %v386_v5 = vadd.f32 %v378_v2, %v370_v3 }
 0x225   :  { %395 = vst.msk [vmem:[%s729_s7 + $0x38] sm:$0xff] %vm34_vm0, %v387_v4 }
 0x226   :  { %394 = vst.msk [vmem:[%s729_s7 + $0x30] sm:$0xff] %vm34_vm0, %v386_v5 }

// kernel: evoformer_forward.72
= control target key start
LH: loop header
LB: loop body
LE: loop exit
PB: predicated region body
PF: predicated region fallthrough
CT: control target
= control target key end

     0   :  { %s1256_s9 = smov 0   ;;  %s1331_s0 = inlined_call_operand.vmem [shape: f32[16,8,8], index: 0, kind: input, shape index: {}]   ;;  %s1332_s1 = inlined_call_operand.vmem [shape: f32[16,8,8], index: 1, kind: input, shape index: {}]   ;;  %s1333_s2 = inlined_call_operand.vmem [shape: f32[16,8,8], index: 2, kind: output, shape index: {}]  }
   0x1 LB: > { %s1123_s10 = sadd.s32 4294967295, %s1237_s9   ;;  %p1127_p0 = scmp.ge.s32.totalorder %s1237_s9, 1  ;;  %s1237_s9 = sphi %s1256_s9, %s12_s9  }
   0x2   : > { %p124_p1 = scmp.lt.s32.totalorder %s1237_s9, 3 }
   0x4   : > { %p125_p2 = pnand %p1127_p0, %p124_p1 }
   0x5   : > { %s1128_s11 = sshll.u32 (!%p125_p2), %s1123_s10, 3  ;;  %v1239_v0 = vmov (!%p125_p2), 0.0   ;;  %vm1240_vm0 = vmmov (!%p125_p2), 0   ;;  %vm203_vm1 = vcmask (!%p125_p2), 64512  }
   0x6   : > { %128 = sbr.rel (%p125_p2) target bundleno = 375 (0x177), region = 28  ;;  %p152_p3 = scmp.lt.s32.totalorder (!%p125_p2), %s1128_s11, 15  ;;  %1181 = vmatprep.subr.mxu0 (!%p125_p2), %v1239_v0  ;;  %1183 = vmatprep.mubr.msk.f32.mxu0 (!%p125_p2), %vm1240_vm0, %v1239_v0 }
   0x7   : > { %1186 = vmatprep.subr.mxu1 (!%p125_p2), %v1239_v0  ;;  %1188 = vmatprep.mubr.msk.f32.mxu1 (!%p125_p2), %vm1240_vm0, %v1239_v0 }
   0xd   : > { %s1335_s11 = smov (!%p152_p3, %s1128_s11), 15 }
   0xe   : > { %s1270_s12 = sshll.u32 %s1335_s11, 3 }
   0xf   : > { %s155_s15 = scalar_lea.vmem %s1331_s0, %s1270_s12  ;;  %s1280_s18 = scalar_lea.vmem %s1332_s1, %s1270_s12 }
  0x10   : > { %v169_v1 = vld [vmem:[%s155_s15] sm:$0xff]  ;;  %v1139_v2 = vld [vmem:[%s155_s15 + $0x10] sm:$0xff]  ;;  %v1135_v3 = vld [vmem:[%s155_s15 + $0x8] sm:$0xff]  ;;  %s167_s21 = scalar_lea.vmem %s1333_s2, %s1270_s12 }
  0x11   : > { %171 = vxpose.xlu0.b32.start.end [1/1] (short) (narrow) %v169_v1, 8  ;;  %393 = vxpose.xlu1.b32.start.end [1/1] (short) (narrow) %v1139_v2, 8  ;;  %v1143_v4 = vld [vmem:[%s155_s15 + $0x18] sm:$0xff]  ;;  %v170_v5 = vld [vmem:[%s1280_s18] sm:$0xff]  ;;  %v1136_v6 = vld [vmem:[%s1280_s18 + $0x8] sm:$0xff] }
  0x12   : > { %1182 = vmatpush3.msra.mxu0 %v170_v5  ;;  %1187 = vmatpush3.msra.mxu1 %v1136_v6  ;;  %v1147_v7 = vld [vmem:[%s155_s15 + $0x20] sm:$0xff]  ;;  %v1151_v8 = vld [vmem:[%s155_s15 + $0x28] sm:$0xff]  ;;  %v1155_v9 = vld [vmem:[%s155_s15 + $0x30] sm:$0xff] }
  0x13   : > { %1191 = vmatprep.subr.mxu0 %v1239_v0  ;;  %1196 = vmatprep.subr.mxu1 %v1239_v0  ;;  %v1159_v10 = vld [vmem:[%s155_s15 + $0x38] sm:$0xff]  ;;  %v1140_v11 = vld [vmem:[%s1280_s18 + $0x10] sm:$0xff]  ;;  %v1148_v17 = vld [vmem:[%s1280_s18 + $0x20] sm:$0xff] }
  0x14   : > { %v1144_v14 = vld [vmem:[%s1280_s18 + $0x18] sm:$0xff]  ;;  %v1152_v18 = vld [vmem:[%s1280_s18 + $0x28] sm:$0xff]  ;;  %v1156_v21 = vld [vmem:[%s1280_s18 + $0x30] sm:$0xff] }
  0x15   : > { %282 = vxpose.xlu0.b32.start.end [1/1] (short) (narrow) %v1135_v3, 8  ;;  %504 = vxpose.xlu1.b32.start.end [1/1] (short) (narrow) %v1143_v4, 8  ;;  %v1160_v22 = vld [vmem:[%s1280_s18 + $0x38] sm:$0xff] }
  0x19   : > { %615 = vxpose.xlu0.b32.start.end [1/1] (short) (narrow) %v1147_v7, 8  ;;  %726 = vxpose.xlu1.b32.start.end [1/1] (short) (narrow) %v1151_v8, 8 }
  0x1d   : > { %837 = vxpose.xlu0.b32.start.end [1/1] (short) (narrow) %v1155_v9, 8  ;;  %948 = vxpose.xlu1.b32.start.end [1/1] (short) (narrow) %v1159_v10, 8 }
  0x91   : > { %v187_v12 = vpop.trf.xlu0  ;;  %v409_v13 = vpop.trf.xlu1 }
  0x92   : > { %1184 = vmatmul.mubr.msk.f32.vlgmr.msra.gmra.mrb[0].mxu0 %vm203_vm1, %v187_v12 }
  0x93   : > { %1192 = vmatpush3.msra.mxu0 %v1140_v11  ;;  %1193 = vmatprep.mubr.msk.f32.mxu0 %vm1240_vm0, %v1239_v0 }
  0x94   : > { %1201 = vmatprep.subr.mxu0 %v1239_v0 }
  0x95   : > { %v298_v15 = vpop.trf.xlu0  ;;  %v520_v16 = vpop.trf.xlu1 }
  0x96   : > { %1189 = vmatmul.mubr.msk.f32.vlgmr.msra.gmra.mrb[0].mxu1 %vm203_vm1, %v298_v15  ;;  %1194 = vmatmul.mubr.msk.f32.vlgmr.msra.gmra.mrb[2].mxu0 %vm203_vm1, %v409_v13 }
  0x97   : > { %1197 = vmatpush3.msra.mxu1 %v1144_v14  ;;  %1198 = vmatprep.mubr.msk.f32.mxu1 %vm1240_vm0, %v1239_v0 }
  0x98   : > { %1206 = vmatprep.subr.mxu1 %v1239_v0  ;;  %1202 = vmatpush3.msra.mxu0 %v1148_v17 }
  0x99   : > { %1203 = vmatprep.mubr.msk.f32.mxu0 %vm1240_vm0, %v1239_v0  ;;  %v631_v19 = vpop.trf.xlu0  ;;  %v742_v20 = vpop.trf.xlu1  ;;  %1211 = vmatprep.subr.mxu0 %v1239_v0 }
  0x9a   : > { %1199 = vmatmul.mubr.msk.f32.vlgmr.msra.gmra.mrb[2].mxu1 %vm203_vm1, %v520_v16  ;;  %1204 = vmatmul.mubr.msk.f32.vlgmr.msra.gmra.mrb[4].mxu0 %vm203_vm1, %v631_v19 }
  0x9b   : > { %1207 = vmatpush3.msra.mxu1 %v1152_v18  ;;  %1208 = vmatprep.mubr.msk.f32.mxu1 %vm1240_vm0, %v1239_v0 }
  0x9c   : > { %1216 = vmatprep.subr.mxu1 %v1239_v0  ;;  %1212 = vmatpush3.msra.mxu0 %v1156_v21 }
  0x9d   : > { %1213 = vmatprep.mubr.msk.f32.mxu0 %vm1240_vm0, %v1239_v0  ;;  %v853_v23 = vpop.trf.xlu0  ;;  %v964_v24 = vpop.trf.xlu1 }
  0x9e   : > { %1209 = vmatmul.mubr.msk.f32.vlgmr.msra.gmra.mrb[4].mxu1 %vm203_vm1, %v742_v20  ;;  %1214 = vmatmul.mubr.msk.f32.vlgmr.msra.gmra.mrb[6].mxu0 %vm203_vm1, %v853_v23 }
  0x9f   : > { %1217 = vmatpush3.msra.mxu1 %v1160_v22  ;;  %1218 = vmatprep.mubr.msk.f32.mxu1 %vm1240_vm0, %v1239_v0 }
  0xa2   : > { %1219 = vmatmul.mubr.msk.f32.vlgmr.msra.gmra.mrb[6].mxu1 %vm203_vm1, %v964_v24 }
 0x165   : > { %v273_v25 = vpop.f32.mrb[0].mxu0 }
 0x166   : > { %277 = vst.msk [vmem:[%s167_s21] sm:$0xff] %vm203_vm1, %v273_v25  ;;  %v1185_v26 = vpop.f32.mrb[1].mxu0 }
 0x169   : > { %v383_v27 = vpop.f32.mrb[0].mxu1  ;;  %v494_v28 = vpop.f32.mrb[2].mxu0 }
 0x16a   : > { %1138 = vst.msk [vmem:[%s167_s21 + $0x8] sm:$0xff] %vm203_vm1, %v383_v27  ;;  %1142 = vst.msk [vmem:[%s167_s21 + $0x10] sm:$0xff] %vm203_vm1, %v494_v28  ;;  %v1190_v29 = vpop.f32.mrb[1].mxu1  ;;  %v1195_v30 = vpop.f32.mrb[3].mxu0 }
 0x16d   : > { %v605_v31 = vpop.f32.mrb[2].mxu1  ;;  %v716_v32 = vpop.f32.mrb[4].mxu0 }
 0x16e   : > { %1146 = vst.msk [vmem:[%s167_s21 + $0x18] sm:$0xff] %vm203_vm1, %v605_v31  ;;  %v1200_v33 = vpop.f32.mrb[3].mxu1  ;;  %1150 = vst.msk [vmem:[%s167_s21 + $0x20] sm:$0xff] %vm203_vm1, %v716_v32  ;;  %v1205_v34 = vpop.f32.mrb[5].mxu0 }
 0x171   : > { %v827_v35 = vpop.f32.mrb[4].mxu1  ;;  %v938_v36 = vpop.f32.mrb[6].mxu0 }
 0x172   : > { %1154 = vst.msk [vmem:[%s167_s21 + $0x28] sm:$0xff] %vm203_vm1, %v827_v35  ;;  %v1210_v37 = vpop.f32.mrb[5].mxu1  ;;  %1158 = vst.msk [vmem:[%s167_s21 + $0x30] sm:$0xff] %vm203_vm1, %v938_v36  ;;  %v1215_v38 = vpop.f32.mrb[7].mxu0 }
 0x175   : > { %v1049_v39 = vpop.f32.mrb[6].mxu1 }
 0x176   : > { %1162 = vst.msk [vmem:[%s167_s21 + $0x38] sm:$0xff] %vm203_vm1, %v1049_v39  ;;  %v1220_v40 = vpop.f32.mrb[7].mxu1 }
 0x177 PF: > { %s12_s9 = sadd.s32 1, %s1237_s9  }
 0x178   : > { %p9_p4 = scmp.ge.s32.totalorder %s12_s9, 4  }
 0x17a   :  { %11 = sbr.rel (!%p9_p4) target bundleno = 1 (0x1), region = 82 }

// kernel: evoformer_forward.74
= control target key start
LH: loop header
LB: loop body
LE: loop exit
PB: predicated region body
PF: predicated region fallthrough
CT: control target
= control target key end

     0   :  { %vm28_vm0 = vcmask 130048   ;;  %s530_s0 = inlined_call_operand.vmem [shape: f32[64,16], index: 0, kind: input, shape index: {}]   ;;  %s531_s1 = inlined_call_operand.vmem [shape: f32[16,128], index: 1, kind: input, shape index: {}]   ;;  %s532_s3 = inlined_call_operand.vmem [shape: f32[1,16], index: 3, kind: input, shape index: {}]   ;;  %s533_s4 = inlined_call_operand.vmem [shape: f32[1,16], index: 4, kind: input, shape index: {}]   ;;  %s534_s2 = inlined_call_operand.vmem [shape: f32[1,128], index: 2, kind: input, shape index: {}]   ;;  %s535_s5 = inlined_call_operand.vmem [shape: f32[64,128], index: 5, kind: output, shape index: {}]  }
   0x1   :  { %v20_v0 = vld [vmem:[%s530_s0] sm:$0xff]  ;;  %v21_v1 = vld [vmem:[%s530_s0 + $0x8] sm:$0xff]  ;;  %v22_v8 = vld [vmem:[%s530_s0 + $0x10] sm:$0xff] }
   0x2   :  { %v24_v2 = vld [vmem:[%s530_s0 + $0x20] sm:$0xff]  ;;  %v29_v3 = vsel %vm28_vm0, %v20_v0, 0.0  ;;  %v32_v4 = vsel %vm28_vm0, %v21_v1, 0.0  ;;  %v25_v5 = vld [vmem:[%s530_s0 + $0x28] sm:$0xff]  ;;  %v26_v9 = vld [vmem:[%s530_s0 + $0x30] sm:$0xff]  ;;  %v35_v10 = vsel %vm28_vm0, %v22_v8, 0.0 }
   0x3   :  { %30 = vadd.xlane.f32.xlu0 %v29_v3  ;;  %33 = vadd.xlane.f32.xlu1 %v32_v4  ;;  %v41_v6 = vsel %vm28_vm0, %v24_v2, 0.0  ;;  %v44_v7 = vsel %vm28_vm0, %v25_v5, 0.0  ;;  %v47_v11 = vsel %vm28_vm0, %v26_v9, 0.0  ;;  %v23_v12 = vld [vmem:[%s530_s0 + $0x18] sm:$0xff]  ;;  %v164_v56 = vld [vmem:[%s531_s1] sm:$0xff]  ;;  %v165_v57 = vld [vmem:[%s531_s1 + $0x8] sm:$0xff] }
   0x4   :  { %v27_v13 = vld [vmem:[%s530_s0 + $0x38] sm:$0xff]  ;;  %v38_v14 = vsel %vm28_vm0, %v23_v12, 0.0  ;;  %v351_v58 = vpack.c.bf16 %v165_v57, %v164_v56 }
   0x5   :  { %v50_v15 = vsel %vm28_vm0, %v27_v13, 0.0 }
   0x6   :  { %352 = vmatprep.subr.bf16.mxu0 %v351_v58  ;;  %355 = vmatprep.subr.bf16.mxu1 %v351_v58 }
   0x7   :  { %42 = vadd.xlane.f32.xlu0 %v41_v6  ;;  %45 = vadd.xlane.f32.xlu1 %v44_v7 }
   0x8   :  { %354 = vmatpush3.bf16.msra.mxu0 %v351_v58  ;;  %356 = vmatpush3.bf16.msra.mxu1 %v351_v58 }
   0xb   :  { %36 = vadd.xlane.f32.xlu0 %v35_v10  ;;  %48 = vadd.xlane.f32.xlu1 %v47_v11 }
   0xf   :  { %39 = vadd.xlane.f32.xlu0 %v38_v14  ;;  %51 = vadd.xlane.f32.xlu1 %v50_v15 }
  0x90   :  { %v31_v16 = vpop.xlane.xlu0 %30  ;;  %v34_v17 = vpop.xlane.xlu1 %33 }
  0x91   :  { %v54_v18 = vmul.f32 0.0625, %v31_v16  ;;  %v55_v19 = vmul.f32 0.0625, %v34_v17  ;;  %v314_v17 = vld [vmem:[%s532_s3] ss:$0 sm:$0xff] }
  0x93   :  { %v435_v20 = vsub.f32 %v20_v0, %v54_v18  ;;  %v437_v21 = vsub.f32 %v21_v1, %v55_v19 }
  0x94   :  { %v43_v22 = vpop.xlane.xlu0 %42  ;;  %v46_v23 = vpop.xlane.xlu1 %45 }
  0x95   :  { %v58_v24 = vmul.f32 0.0625, %v43_v22  ;;  %v59_v25 = vmul.f32 0.0625, %v46_v23  ;;  %v70_v26 = vmul.f32 %v435_v20, %v435_v20  ;;  %v71_v27 = vmul.f32 %v437_v21, %v437_v21  ;;  %v315_v23 = vld [vmem:[%s533_s4] ss:$0 sm:$0xff] }
  0x97   :  { %v443_v28 = vsub.f32 %v24_v2, %v58_v24  ;;  %v445_v29 = vsub.f32 %v25_v5, %v59_v25  ;;  %v78_v30 = vsel %vm28_vm0, %v70_v26, 0.0  ;;  %v81_v33 = vsel %vm28_vm0, %v71_v27, 0.0 }
  0x98   :  { %79 = vadd.xlane.f32.xlu0 %v78_v30  ;;  %v37_v31 = vpop.xlane.xlu0 %36  ;;  %v49_v32 = vpop.xlane.xlu1 %48 }
  0x99   :  { %v56_v34 = vmul.f32 0.0625, %v37_v31  ;;  %v60_v35 = vmul.f32 0.0625, %v49_v32  ;;  %v74_v36 = vmul.f32 %v443_v28, %v443_v28  ;;  %v75_v37 = vmul.f32 %v445_v29, %v445_v29 }
  0x9b   :  { %v453_v38 = vsub.f32 %v22_v8, %v56_v34  ;;  %v455_v39 = vsub.f32 %v26_v9, %v60_v35  ;;  %v90_v40 = vsel %vm28_vm0, %v74_v36, 0.0  ;;  %v93_v43 = vsel %vm28_vm0, %v75_v37, 0.0 }
  0x9c   :  { %82 = vadd.xlane.f32.xlu0 %v81_v33  ;;  %91 = vadd.xlane.f32.xlu1 %v90_v40  ;;  %v40_v41 = vpop.xlane.xlu0 %39  ;;  %v52_v42 = vpop.xlane.xlu1 %51 }
  0x9d   :  { %v57_v44 = vmul.f32 0.0625, %v40_v41  ;;  %v61_v45 = vmul.f32 0.0625, %v52_v42  ;;  %v72_v46 = vmul.f32 %v453_v38, %v453_v38  ;;  %v76_v47 = vmul.f32 %v455_v39, %v455_v39 }
  0x9f   :  { %v463_v48 = vsub.f32 %v23_v12, %v57_v44  ;;  %v465_v49 = vsub.f32 %v27_v13, %v61_v45  ;;  %v84_v50 = vsel %vm28_vm0, %v72_v46, 0.0  ;;  %v96_v51 = vsel %vm28_vm0, %v76_v47, 0.0 }
  0xa0   :  { %94 = vadd.xlane.f32.xlu1 %v93_v43  ;;  %85 = vadd.xlane.f32.xlu0 %v84_v50 }
  0xa1   :  { %v73_v52 = vmul.f32 %v463_v48, %v463_v48  ;;  %v77_v53 = vmul.f32 %v465_v49, %v465_v49 }
  0xa3   :  { %v87_v54 = vsel %vm28_vm0, %v73_v52, 0.0  ;;  %v99_v55 = vsel %vm28_vm0, %v77_v53, 0.0 }
  0xa4   :  { %97 = vadd.xlane.f32.xlu1 %v96_v51  ;;  %88 = vadd.xlane.f32.xlu0 %v87_v54 }
  0xa8   :  { %100 = vadd.xlane.f32.xlu1 %v99_v55 }
 0x125   :  { %v80_v59 = vpop.xlane.xlu0 %79 }
 0x126   :  { %v102_v60 = vmul.f32 0.0625, %v80_v59 }
 0x128   :  { %v110_v61 = vadd.f32 1e-05, %v102_v60 }
 0x129   :  { %v92_v62 = vpop.xlane.xlu1 %91  ;;  %v83_v63 = vpop.xlane.xlu0 %82 }
 0x12a   :  { %357 = vrsqrt.f32 %v110_v61  ;;  %v106_v0 = vmul.f32 0.0625, %v92_v62  ;;  %v103_v1 = vmul.f32 0.0625, %v83_v63 }
 0x12c   :  { %v114_v2 = vadd.f32 1e-05, %v106_v0  ;;  %v111_v3 = vadd.f32 1e-05, %v103_v1 }
 0x12d   :  { %v95_v4 = vpop.xlane.xlu1 %94  ;;  %v86_v5 = vpop.xlane.xlu0 %85 }
 0x12e   :  { %359 = vrsqrt.f32 %v114_v2  ;;  %v107_v6 = vmul.f32 0.0625, %v95_v4  ;;  %v104_v7 = vmul.f32 0.0625, %v86_v5 }
 0x12f   :  { %361 = vrsqrt.f32 %v111_v3 }
 0x130   :  { %v115_v8 = vadd.f32 1e-05, %v107_v6  ;;  %v112_v9 = vadd.f32 1e-05, %v104_v7 }
 0x131   :  { %v98_v10 = vpop.xlane.xlu1 %97  ;;  %v89_v11 = vpop.xlane.xlu0 %88 }
 0x132   :  { %363 = vrsqrt.f32 %v115_v8  ;;  %v108_v12 = vmul.f32 0.0625, %v98_v10  ;;  %v105_v13 = vmul.f32 0.0625, %v89_v11 }
 0x133   :  { %365 = vrsqrt.f32 %v112_v9 }
 0x134   :  { %v358_v14 = vpop.eup %357  ;;  %v116_v15 = vadd.f32 1e-05, %v108_v12  ;;  %v113_v16 = vadd.f32 1e-05, %v105_v13 }
 0x135   :  { %v101_v18 = vpop.xlane.xlu1 %100  ;;  %v126_v19 = vmul.f32 %v358_v14, %v435_v20 }
 0x136   :  { %367 = vrsqrt.f32 %v116_v15  ;;  %v109_v22 = vmul.f32 0.0625, %v101_v18 }
 0x137   :  { %369 = vrsqrt.f32 %v113_v16  ;;  %v141_v24 = vmul.f32 %v314_v17, %v126_v19 }
 0x138   :  { %v360_v25 = vpop.eup %359  ;;  %v117_v26 = vadd.f32 1e-05, %v109_v22 }
 0x139   :  { %v362_v27 = vpop.eup %361  ;;  %v156_v30 = vadd.f32 %v315_v23, %v141_v24  ;;  %v130_v31 = vmul.f32 %v360_v25, %v443_v28 }
 0x13a   :  { %371 = vrsqrt.f32 %v117_v26  ;;  %v127_v32 = vmul.f32 %v362_v27, %v437_v21 }
 0x13b   :  { %339 = vmatprep.mubr.msk.f32.mxu0 %vm28_vm0, %v156_v30  ;;  %v145_v20 = vmul.f32 %v314_v17, %v130_v31 }
 0x13c   :  { %v364_v33 = vpop.eup %363  ;;  %v142_v34 = vmul.f32 %v314_v17, %v127_v32 }
 0x13d   :  { %v366_v35 = vpop.eup %365  ;;  %v160_v36 = vadd.f32 %v315_v23, %v145_v20  ;;  %v131_v37 = vmul.f32 %v364_v33, %v445_v29 }
 0x13e   :  { %v157_v40 = vadd.f32 %v315_v23, %v142_v34  ;;  %v128_v41 = vmul.f32 %v366_v35, %v453_v38 }
 0x13f   :  { %345 = vmatprep.mubr.msk.f32.mxu1 %vm28_vm0, %v160_v36  ;;  %v146_v42 = vmul.f32 %v314_v17, %v131_v37 }
 0x140   :  { %v368_v43 = vpop.eup %367  ;;  %340 = vmatmul.mubr.msk.f32.vlgmr.msra.gmra.mrb[0].mxu0 %vm28_vm0, %v157_v40  ;;  %v143_v28 = vmul.f32 %v314_v17, %v128_v41 }
 0x141   :  { %v370_v21 = vpop.eup %369  ;;  %v161_v44 = vadd.f32 %v315_v23, %v146_v42  ;;  %v132_v45 = vmul.f32 %v368_v43, %v455_v39 }
 0x142   :  { %v158_v46 = vadd.f32 %v315_v23, %v143_v28  ;;  %v129_v47 = vmul.f32 %v370_v21, %v463_v48  ;;  %v316_v48 = vld [vmem:[%s534_s2] ss:$0 sm:$0xff] }
 0x143   :  { %346 = vmatmul.mubr.msk.f32.vlgmr.msra.gmra.mrb[0].mxu1 %vm28_vm0, %v161_v44  ;;  %v147_v29 = vmul.f32 %v314_v17, %v132_v45 }
 0x144   :  { %v372_v50 = vpop.eup %371  ;;  %342 = vmatprep.mubr.msk.f32.mxu0 %vm28_vm0, %v158_v46  ;;  %v144_v38 = vmul.f32 %v314_v17, %v129_v47 }
 0x145   :  { %v162_v51 = vadd.f32 %v315_v23, %v147_v29  ;;  %v133_v52 = vmul.f32 %v372_v50, %v465_v49 }
 0x146   :  { %v159_v53 = vadd.f32 %v315_v23, %v144_v38 }
 0x147   :  { %348 = vmatprep.mubr.msk.f32.mxu1 %vm28_vm0, %v162_v51  ;;  %v148_v54 = vmul.f32 %v314_v17, %v133_v52 }
 0x148   :  { %343 = vmatmul.mubr.msk.f32.gmra.mrb[2].mxu0 %vm28_vm0, %v159_v53 }
 0x149   :  { %v163_v39 = vadd.f32 %v315_v23, %v148_v54 }
 0x14b   :  { %349 = vmatmul.mubr.msk.f32.gmra.mrb[2].mxu1 %vm28_vm0, %v163_v39 }
 0x213   :  { %v341_v55 = vpop.f32.mrb[0].mxu0 }
 0x214   :  { %v269_v56 = vadd.f32 %v341_v55, %v316_v48  ;;  %v263_v57 = vpop.f32.mrb[1].mxu0 }
 0x215   :  { %v264_v58 = vadd.f32 %v316_v48, %v263_v57 }
 0x216   :  { %303 = vst [vmem:[%s535_s5 + $0x8] sm:$0xff] %v269_v56  ;;  %v347_v49 = vpop.f32.mrb[0].mxu1 }
 0x217   :  { %302 = vst [vmem:[%s535_s5] sm:$0xff] %v264_v58  ;;  %v289_v59 = vadd.f32 %v347_v49, %v316_v48  ;;  %v283_v60 = vpop.f32.mrb[1].mxu1 }
 0x218   :  { %v284_v61 = vadd.f32 %v316_v48, %v283_v60 }
 0x219   :  { %307 = vst [vmem:[%s535_s5 + $0x28] sm:$0xff] %v289_v59 }
 0x21a   :  { %306 = vst [vmem:[%s535_s5 + $0x20] sm:$0xff] %v284_v61 }
 0x21b   :  { %v344_v62 = vpop.f32.mrb[2].mxu0 }
 0x21c   :  { %v279_v63 = vadd.f32 %v344_v62, %v316_v48  ;;  %v273_v0 = vpop.f32.mrb[3].mxu0 }
 0x21d   :  { %v274_v1 = vadd.f32 %v316_v48, %v273_v0 }
 0x21e   :  { %305 = vst [vmem:[%s535_s5 + $0x18] sm:$0xff] %v279_v63  ;;  %v350_v2 = vpop.f32.mrb[2].mxu1 }
 0x21f   :  { %304 = vst [vmem:[%s535_s5 + $0x10] sm:$0xff] %v274_v1  ;;  %v299_v3 = vadd.f32 %v350_v2, %v316_v48  ;;  %v293_v4 = vpop.f32.mrb[3].mxu1 }
 0x220   :  { %v294_v5 = vadd.f32 %v316_v48, %v293_v4 }
 0x221   :  { %309 = vst [vmem:[%s535_s5 + $0x38] sm:$0xff] %v299_v3 }
 0x222   :  { %308 = vst [vmem:[%s535_s5 + $0x30] sm:$0xff] %v294_v5 }

// kernel: evoformer_forward.77
= control target key start
LH: loop header
LB: loop body
LE: loop exit
PB: predicated region body
PF: predicated region fallthrough
CT: control target
= control target key end

     0   :  { %vm36_vm0 = vcmask 261120   ;;  %vm182_vm1 = vcmask 130048   ;;  %s376_s1 = inlined_call_operand.vmem [shape: f32[32,16], index: 1, kind: input, shape index: {}]   ;;  %s377_s0 = inlined_call_operand.vmem [shape: f32[64,32], index: 0, kind: input, shape index: {}]   ;;  %s378_s2 = inlined_call_operand.vmem [shape: f32[1,16], index: 2, kind: input, shape index: {}]   ;;  %s379_s3 = inlined_call_operand.vmem [shape: f32[64,16], index: 3, kind: input, shape index: {}]   ;;  %s380_s4 = inlined_call_operand.vmem [shape: f32[64,16], index: 4, kind: output, shape index: {}]  }
   0x1   :  { %v25_v0 = vld [vmem:[%s376_s1] sm:$0xff]  ;;  %v26_v1 = vld [vmem:[%s376_s1 + $0x8] sm:$0xff]  ;;  %v27_v2 = vld [vmem:[%s376_s1 + $0x10] sm:$0xff] }
   0x2   :  { %v236_v3 = vpack.c.bf16 %v26_v1, %v25_v0  ;;  %v28_v4 = vld [vmem:[%s376_s1 + $0x18] sm:$0xff]  ;;  %v17_v5 = vld [vmem:[%s377_s0] sm:$0xff]  ;;  %v18_v8 = vld [vmem:[%s377_s0 + $0x8] sm:$0xff] }
   0x3   :  { %v21_v6 = vld [vmem:[%s377_s0 + $0x20] sm:$0xff]  ;;  %v240_v7 = vpack.c.bf16 %v28_v4, %v27_v2  ;;  %224 = vmatprep.mubr.msk.f32.mxu0 %vm36_vm0, %v17_v5  ;;  %v22_v9 = vld [vmem:[%s377_s0 + $0x28] sm:$0xff]  ;;  %v19_v10 = vld [vmem:[%s377_s0 + $0x10] sm:$0xff] }
   0x4   :  { %230 = vmatprep.mubr.msk.f32.mxu1 %vm36_vm0, %v21_v6  ;;  %237 = vmatprep.subr.bf16.mxu0 %v236_v3  ;;  %v23_v11 = vld [vmem:[%s377_s0 + $0x30] sm:$0xff]  ;;  %v20_v12 = vld [vmem:[%s377_s0 + $0x18] sm:$0xff]  ;;  %v195_v14 = vld [vmem:[%s378_s2] ss:$0 sm:$0xff] }
   0x5   :  { %244 = vmatprep.subr.bf16.mxu1 %v236_v3  ;;  %239 = vmatpush3.bf16.msra.mxu0 %v236_v3  ;;  %v24_v13 = vld [vmem:[%s377_s0 + $0x38] sm:$0xff]  ;;  %v167_v16 = vld [vmem:[%s379_s3 + $0x8] sm:$0xff]  ;;  %v166_v22 = vld [vmem:[%s379_s3] sm:$0xff] }
   0x6   :  { %246 = vmatpush3.bf16.msra.mxu1 %v236_v3  ;;  %241 = vmatprep.subr.bf16.mxu0 %v240_v7  ;;  %v171_v18 = vld [vmem:[%s379_s3 + $0x28] sm:$0xff]  ;;  %v170_v24 = vld [vmem:[%s379_s3 + $0x20] sm:$0xff]  ;;  %v169_v32 = vld [vmem:[%s379_s3 + $0x18] sm:$0xff] }
   0x7   :  { %245 = vmatprep.subr.bf16.mxu1 %v240_v7  ;;  %v173_v34 = vld [vmem:[%s379_s3 + $0x38] sm:$0xff]  ;;  %v168_v38 = vld [vmem:[%s379_s3 + $0x10] sm:$0xff] }
   0x8   :  { %v172_v40 = vld [vmem:[%s379_s3 + $0x30] sm:$0xff] }
   0x9   :  { %243 = vmatpush3.bf16.msra.mxu0 %v240_v7 }
   0xa   :  { %247 = vmatpush3.bf16.msra.mxu1 %v240_v7 }
   0xc   :  { %225 = vmatmul.mubr.msk.f32.vlgmr.msra.gmra.mrb[0].mxu0 %vm36_vm0, %v18_v8 }
   0xd   :  { %231 = vmatmul.mubr.msk.f32.vlgmr.msra.gmra.mrb[0].mxu1 %vm36_vm0, %v22_v9  ;;  %227 = vmatprep.mubr.msk.f32.mxu0 %vm36_vm0, %v19_v10 }
   0xe   :  { %233 = vmatprep.mubr.msk.f32.mxu1 %vm36_vm0, %v23_v11 }
  0x10   :  { %228 = vmatmul.mubr.msk.f32.gmra.mrb[2].mxu0 %vm36_vm0, %v20_v12 }
  0x11   :  { %234 = vmatmul.mubr.msk.f32.gmra.mrb[2].mxu1 %vm36_vm0, %v24_v13 }
  0xdf   :  { %v226_v15 = vpop.f32.mrb[0].mxu0 }
  0xe0   :  { %v232_v17 = vpop.f32.mrb[0].mxu1  ;;  %v133_v19 = vadd.f32 %v226_v15, %v195_v14  ;;  %v127_v21 = vpop.f32.mrb[1].mxu0 }
  0xe1   :  { %v153_v20 = vadd.f32 %v232_v17, %v195_v14  ;;  %v147_v23 = vpop.f32.mrb[1].mxu1  ;;  %v128_v25 = vadd.f32 %v195_v14, %v127_v21 }
  0xe2   :  { %v148_v26 = vadd.f32 %v195_v14, %v147_v23  ;;  %v175_v27 = vadd.f32 %v167_v16, %v133_v19 }
  0xe3   :  { %v179_v28 = vadd.f32 %v171_v18, %v153_v20  ;;  %v174_v29 = vadd.f32 %v166_v22, %v128_v25  ;;  %v229_v31 = vpop.f32.mrb[2].mxu0 }
  0xe4   :  { %v178_v30 = vadd.f32 %v170_v24, %v148_v26  ;;  %v235_v33 = vpop.f32.mrb[2].mxu1  ;;  %184 = vst.msk [vmem:[%s380_s4 + $0x8] sm:$0xff] %vm182_vm1, %v175_v27  ;;  %v143_v35 = vadd.f32 %v229_v31, %v195_v14  ;;  %v137_v37 = vpop.f32.mrb[3].mxu0 }
  0xe5   :  { %188 = vst.msk [vmem:[%s380_s4 + $0x28] sm:$0xff] %vm182_vm1, %v179_v28  ;;  %v163_v36 = vadd.f32 %v235_v33, %v195_v14  ;;  %v157_v39 = vpop.f32.mrb[3].mxu1  ;;  %183 = vst.msk [vmem:[%s380_s4] sm:$0xff] %vm182_vm1, %v174_v29  ;;  %v138_v41 = vadd.f32 %v195_v14, %v137_v37 }
  0xe6   :  { %187 = vst.msk [vmem:[%s380_s4 + $0x20] sm:$0xff] %vm182_vm1, %v178_v30  ;;  %v158_v42 = vadd.f32 %v195_v14, %v157_v39  ;;  %v177_v43 = vadd.f32 %v169_v32, %v143_v35 }
  0xe7   :  { %v181_v44 = vadd.f32 %v173_v34, %v163_v36  ;;  %v176_v45 = vadd.f32 %v168_v38, %v138_v41 }
  0xe8   :  { %v180_v46 = vadd.f32 %v172_v40, %v158_v42  ;;  %186 = vst.msk [vmem:[%s380_s4 + $0x18] sm:$0xff] %vm182_vm1, %v177_v43 }
  0xe9   :  { %190 = vst.msk [vmem:[%s380_s4 + $0x38] sm:$0xff] %vm182_vm1, %v181_v44  ;;  %185 = vst.msk [vmem:[%s380_s4 + $0x10] sm:$0xff] %vm182_vm1, %v176_v45 }
  0xea   :  { %189 = vst.msk [vmem:[%s380_s4 + $0x30] sm:$0xff] %vm182_vm1, %v180_v46 }

// kernel: evoformer_forward.111
= control target key start
LH: loop header
LB: loop body
LE: loop exit
PB: predicated region body
PF: predicated region fallthrough
CT: control target
= control target key end

     0   :  { %vm37_vm0 = vcmask 261120   ;;  %s407_s0 = inlined_call_operand.vmem [shape: f32[64,32], index: 0, kind: input, shape index: {}]   ;;  %s408_s1 = inlined_call_operand.vmem [shape: f32[32,16], index: 1, kind: input, shape index: {}]   ;;  %s409_s2 = inlined_call_operand.vmem [shape: f32[1,16], index: 2, kind: input, shape index: {}]   ;;  %s410_s3 = inlined_call_operand.vmem [shape: f32[64,16], index: 3, kind: input, shape index: {}]   ;;  %s411_s4 = inlined_call_operand.hbm [shape: f32[64,16], index: 4, kind: output, shape index: {}]  }
   0x1   :  { %v26_v0 = vld [vmem:[%s408_s1] sm:$0xff]  ;;  %v27_v1 = vld [vmem:[%s408_s1 + $0x8] sm:$0xff]  ;;  %v28_v2 = vld [vmem:[%s408_s1 + $0x10] sm:$0xff] }
   0x2   :  { %v249_v3 = vpack.c.bf16 %v27_v1, %v26_v0  ;;  %v29_v4 = vld [vmem:[%s408_s1 + $0x18] sm:$0xff]  ;;  %v18_v5 = vld [vmem:[%s407_s0] sm:$0xff] }
   0x3   :  { %v22_v6 = vld [vmem:[%s407_s0 + $0x20] sm:$0xff]  ;;  %v253_v7 = vpack.c.bf16 %v29_v4, %v28_v2  ;;  %237 = vmatprep.mubr.msk.f32.mxu0 %vm37_vm0, %v18_v5 }
   0x4   :  { %243 = vmatprep.mubr.msk.f32.mxu1 %vm37_vm0, %v22_v6  ;;  %250 = vmatprep.subr.bf16.mxu0 %v249_v3 }
   0x5   :  { %257 = vmatprep.subr.bf16.mxu1 %v249_v3  ;;  %252 = vmatpush3.bf16.msra.mxu0 %v249_v3 }
   0x6   :  { %259 = vmatpush3.bf16.msra.mxu1 %v249_v3 }
   0x7   :  { %9 = vsyncpa [#allocation3], 0  ;;  %254 = vmatprep.subr.bf16.mxu0 %v253_v7  ;;  %258 = vmatprep.subr.bf16.mxu1 %v253_v7  ;;  %v19_v8 = vld [vmem:[%s407_s0 + $0x8] sm:$0xff]  ;;  %v20_v10 = vld [vmem:[%s407_s0 + $0x10] sm:$0xff]  ;;  %vm183_vm1 = vcmask 130048   ;;  %s288_s24 = smov [#allocation2]  }
   0x8   :  { %v23_v9 = vld [vmem:[%s407_s0 + $0x28] sm:$0xff]  ;;  %v24_v11 = vld [vmem:[%s407_s0 + $0x30] sm:$0xff]  ;;  %v21_v12 = vld [vmem:[%s407_s0 + $0x18] sm:$0xff]  ;;  %s197_s25 = sshll.u32 %s288_s24, 4  ;;  %s198_s25 = int_to_ptr.vmem [resolvable:$true] %s197_s25 }
   0x9   :  { %256 = vmatpush3.bf16.msra.mxu0 %v253_v7  ;;  %v25_v13 = vld [vmem:[%s407_s0 + $0x38] sm:$0xff]  ;;  %v208_v14 = vld [vmem:[%s409_s2] ss:$0 sm:$0xff]  ;;  %v168_v16 = vld [vmem:[%s410_s3 + $0x8] sm:$0xff]  ;;  %p269_p1 = scmp.lt.s32.totalorder %s198_s25, %s198_s25 }
   0xa   :  { %260 = vmatpush3.bf16.msra.mxu1 %v253_v7  ;;  %v172_v18 = vld [vmem:[%s410_s3 + $0x28] sm:$0xff]  ;;  %v167_v22 = vld [vmem:[%s410_s3] sm:$0xff]  ;;  %v170_v32 = vld [vmem:[%s410_s3 + $0x18] sm:$0xff] }
   0xb   :  { %v171_v24 = vld [vmem:[%s410_s3 + $0x20] sm:$0xff]  ;;  %v174_v34 = vld [vmem:[%s410_s3 + $0x38] sm:$0xff]  ;;  %v169_v38 = vld [vmem:[%s410_s3 + $0x10] sm:$0xff] }
   0xc   :  { %238 = vmatmul.mubr.msk.f32.vlgmr.msra.gmra.mrb[0].mxu0 %vm37_vm0, %v19_v8  ;;  %v173_v40 = vld [vmem:[%s410_s3 + $0x30] sm:$0xff]  ;;  %s264_s3 = scalar_lea.vmem %s198_s25, 1024 }
   0xd   :  { %244 = vmatmul.mubr.msk.f32.vlgmr.msra.gmra.mrb[0].mxu1 %vm37_vm0, %v23_v9  ;;  %240 = vmatprep.mubr.msk.f32.mxu0 %vm37_vm0, %v20_v10  ;;  %p265_p0 = scmp.ne.s32.totalorder %s198_s25, %s264_s3  ;;  %p270_p2 = scmp.lt.s32.totalorder %s264_s3, %s264_s3 }
   0xe   :  { %246 = vmatprep.mubr.msk.f32.mxu1 %vm37_vm0, %v24_v11 }
   0xf   :  { %p271_p3 = por %p270_p2, %p269_p1 }
  0x10   :  { %241 = vmatmul.mubr.msk.f32.gmra.mrb[2].mxu0 %vm37_vm0, %v21_v12 }
  0x11   :  { %247 = vmatmul.mubr.msk.f32.gmra.mrb[2].mxu1 %vm37_vm0, %v25_v13  ;;  %p272_p4 = pnand %p271_p3, %p265_p0 }
  0xdf   :  { %v239_v15 = vpop.f32.mrb[0].mxu0 }
  0xe0   :  { %v245_v17 = vpop.f32.mrb[0].mxu1  ;;  %v134_v19 = vadd.f32 %v239_v15, %v208_v14  ;;  %v128_v21 = vpop.f32.mrb[1].mxu0 }
  0xe1   :  { %v154_v20 = vadd.f32 %v245_v17, %v208_v14  ;;  %v148_v23 = vpop.f32.mrb[1].mxu1  ;;  %v129_v25 = vadd.f32 %v208_v14, %v128_v21 }
  0xe2   :  { %v149_v26 = vadd.f32 %v208_v14, %v148_v23  ;;  %v176_v27 = vadd.f32 %v168_v16, %v134_v19 }
  0xe3   :  { %v180_v28 = vadd.f32 %v172_v18, %v154_v20  ;;  %v175_v29 = vadd.f32 %v167_v22, %v129_v25  ;;  %v242_v31 = vpop.f32.mrb[2].mxu0 }
  0xe4   :  { %v179_v30 = vadd.f32 %v171_v24, %v149_v26  ;;  %v248_v33 = vpop.f32.mrb[2].mxu1  ;;  %185 = vst.msk [vmem:[#allocation2 + $0x8] sm:$0xff] %vm183_vm1, %v176_v27  ;;  %v144_v35 = vadd.f32 %v242_v31, %v208_v14  ;;  %v138_v37 = vpop.f32.mrb[3].mxu0 }
  0xe5   :  { %189 = vst.msk [vmem:[#allocation2 + $0x28] sm:$0xff] %vm183_vm1, %v180_v28  ;;  %v164_v36 = vadd.f32 %v248_v33, %v208_v14  ;;  %v158_v39 = vpop.f32.mrb[3].mxu1  ;;  %184 = vst.msk [vmem:[#allocation2] sm:$0xff] %vm183_vm1, %v175_v29  ;;  %v139_v41 = vadd.f32 %v208_v14, %v138_v37 }
  0xe6   :  { %188 = vst.msk [vmem:[#allocation2 + $0x20] sm:$0xff] %vm183_vm1, %v179_v30  ;;  %v159_v42 = vadd.f32 %v208_v14, %v158_v39  ;;  %v178_v43 = vadd.f32 %v170_v32, %v144_v35 }
  0xe7   :  { %v182_v44 = vadd.f32 %v174_v34, %v164_v36  ;;  %v177_v45 = vadd.f32 %v169_v38, %v139_v41 }
  0xe8   :  { %v181_v46 = vadd.f32 %v173_v40, %v159_v42  ;;  %187 = vst.msk [vmem:[#allocation2 + $0x18] sm:$0xff] %vm183_vm1, %v178_v43 }
  0xe9   :  { %191 = vst.msk [vmem:[#allocation2 + $0x38] sm:$0xff] %vm183_vm1, %v182_v44  ;;  %186 = vst.msk [vmem:[#allocation2 + $0x10] sm:$0xff] %vm183_vm1, %v177_v45 }
  0xea   :  { %190 = vst.msk [vmem:[#allocation2 + $0x30] sm:$0xff] %vm183_vm1, %v181_v46 }
  0xeb   :  { %275 = shalt.err (!%p272_p4)
}
  0xec   :  { %s276_s5 = scalar_lea.hbm %s411_s4, 1024 }
  0xed   :  { %p277_p5 = scmp.ne.s32.totalorder %s411_s4, %s276_s5  ;;  %p280_p6 = scmp.lt.u32.totalorder %s276_s5, %s411_s4 }
  0xef   :  { %p282_p7 = pnand %p280_p6, %p277_p5 }
  0xf1   :  { %285 = shalt.err (!%p282_p7)
}
  0xf2   :  { %s289_s10 = smov 128   ;;  %s290_s11 = smov 8  }
  0xf3   :  { %203 = dma.vmem_to_hbm [thread:$0]  %s198_s25, 1024, %s411_s4, [#allocation3], %s289_s10, %s289_s10, %s290_s11  }
  0xf4   :  { %286 = dma.done.wait [#allocation3], 1024  }
  0xf5   :  { %287 = vsyncadd [#allocation3], 4294966272 }
  0xf6   :  { %207 = vsyncpa [#allocation3], 1 }

// kernel: evoformer_forward.82
= control target key start
LH: loop header
LB: loop body
LE: loop exit
PB: predicated region body
PF: predicated region fallthrough
CT: control target
= control target key end

     0   :  { %vm28_vm0 = vcmask 130048   ;;  %vm310_vm1 = vcmask 261120   ;;  %s547_s0 = inlined_call_operand.vmem [shape: f32[64,16], index: 0, kind: input, shape index: {}]   ;;  %s548_s1 = inlined_call_operand.vmem [shape: f32[16,32], index: 1, kind: input, shape index: {}]   ;;  %s549_s3 = inlined_call_operand.vmem [shape: f32[1,16], index: 3, kind: input, shape index: {}]   ;;  %s550_s4 = inlined_call_operand.vmem [shape: f32[1,16], index: 4, kind: input, shape index: {}]   ;;  %s551_s2 = inlined_call_operand.vmem [shape: f32[1,32], index: 2, kind: input, shape index: {}]   ;;  %s552_s5 = inlined_call_operand.vmem [shape: f32[64,32], index: 5, kind: output, shape index: {}]  }
   0x1   :  { %v20_v0 = vld [vmem:[%s547_s0] sm:$0xff]  ;;  %v21_v1 = vld [vmem:[%s547_s0 + $0x8] sm:$0xff]  ;;  %v22_v8 = vld [vmem:[%s547_s0 + $0x10] sm:$0xff] }
   0x2   :  { %v24_v2 = vld [vmem:[%s547_s0 + $0x20] sm:$0xff]  ;;  %v29_v3 = vsel %vm28_vm0, %v20_v0, 0.0  ;;  %v32_v4 = vsel %vm28_vm0, %v21_v1, 0.0  ;;  %v25_v5 = vld [vmem:[%s547_s0 + $0x28] sm:$0xff]  ;;  %v26_v9 = vld [vmem:[%s547_s0 + $0x30] sm:$0xff]  ;;  %v35_v10 = vsel %vm28_vm0, %v22_v8, 0.0 }
   0x3   :  { %30 = vadd.xlane.f32.xlu0 %v29_v3  ;;  %33 = vadd.xlane.f32.xlu1 %v32_v4  ;;  %v41_v6 = vsel %vm28_vm0, %v24_v2, 0.0  ;;  %v44_v7 = vsel %vm28_vm0, %v25_v5, 0.0  ;;  %v47_v11 = vsel %vm28_vm0, %v26_v9, 0.0  ;;  %v23_v12 = vld [vmem:[%s547_s0 + $0x18] sm:$0xff]  ;;  %v164_v56 = vld [vmem:[%s548_s1] sm:$0xff]  ;;  %v165_v57 = vld [vmem:[%s548_s1 + $0x8] sm:$0xff] }
   0x4   :  { %v27_v13 = vld [vmem:[%s547_s0 + $0x38] sm:$0xff]  ;;  %v38_v14 = vsel %vm28_vm0, %v23_v12, 0.0  ;;  %v360_v58 = vpack.c.bf16 %v165_v57, %v164_v56 }
   0x5   :  { %v50_v15 = vsel %vm28_vm0, %v27_v13, 0.0 }
   0x6   :  { %361 = vmatprep.subr.bf16.mxu0 %v360_v58  ;;  %364 = vmatprep.subr.bf16.mxu1 %v360_v58 }
   0x7   :  { %42 = vadd.xlane.f32.xlu0 %v41_v6  ;;  %45 = vadd.xlane.f32.xlu1 %v44_v7 }
   0x8   :  { %363 = vmatpush3.bf16.msra.mxu0 %v360_v58  ;;  %365 = vmatpush3.bf16.msra.mxu1 %v360_v58 }
   0xb   :  { %36 = vadd.xlane.f32.xlu0 %v35_v10  ;;  %48 = vadd.xlane.f32.xlu1 %v47_v11 }
   0xf   :  { %39 = vadd.xlane.f32.xlu0 %v38_v14  ;;  %51 = vadd.xlane.f32.xlu1 %v50_v15 }
  0x90   :  { %v31_v16 = vpop.xlane.xlu0 %30  ;;  %v34_v17 = vpop.xlane.xlu1 %33 }
  0x91   :  { %v54_v18 = vmul.f32 0.0625, %v31_v16  ;;  %v55_v19 = vmul.f32 0.0625, %v34_v17  ;;  %v323_v17 = vld [vmem:[%s549_s3] ss:$0 sm:$0xff] }
  0x93   :  { %v444_v20 = vsub.f32 %v20_v0, %v54_v18  ;;  %v446_v21 = vsub.f32 %v21_v1, %v55_v19 }
  0x94   :  { %v43_v22 = vpop.xlane.xlu0 %42  ;;  %v46_v23 = vpop.xlane.xlu1 %45 }
  0x95   :  { %v58_v24 = vmul.f32 0.0625, %v43_v22  ;;  %v59_v25 = vmul.f32 0.0625, %v46_v23  ;;  %v70_v26 = vmul.f32 %v444_v20, %v444_v20  ;;  %v71_v27 = vmul.f32 %v446_v21, %v446_v21  ;;  %v324_v23 = vld [vmem:[%s550_s4] ss:$0 sm:$0xff] }
  0x97   :  { %v452_v28 = vsub.f32 %v24_v2, %v58_v24  ;;  %v454_v29 = vsub.f32 %v25_v5, %v59_v25  ;;  %v78_v30 = vsel %vm28_vm0, %v70_v26, 0.0  ;;  %v81_v33 = vsel %vm28_vm0, %v71_v27, 0.0 }
  0x98   :  { %79 = vadd.xlane.f32.xlu0 %v78_v30  ;;  %v37_v31 = vpop.xlane.xlu0 %36  ;;  %v49_v32 = vpop.xlane.xlu1 %48 }
  0x99   :  { %v56_v34 = vmul.f32 0.0625, %v37_v31  ;;  %v60_v35 = vmul.f32 0.0625, %v49_v32  ;;  %v74_v36 = vmul.f32 %v452_v28, %v452_v28  ;;  %v75_v37 = vmul.f32 %v454_v29, %v454_v29 }
  0x9b   :  { %v462_v38 = vsub.f32 %v22_v8, %v56_v34  ;;  %v464_v39 = vsub.f32 %v26_v9, %v60_v35  ;;  %v90_v40 = vsel %vm28_vm0, %v74_v36, 0.0  ;;  %v93_v43 = vsel %vm28_vm0, %v75_v37, 0.0 }
  0x9c   :  { %82 = vadd.xlane.f32.xlu0 %v81_v33  ;;  %91 = vadd.xlane.f32.xlu1 %v90_v40  ;;  %v40_v41 = vpop.xlane.xlu0 %39  ;;  %v52_v42 = vpop.xlane.xlu1 %51 }
  0x9d   :  { %v57_v44 = vmul.f32 0.0625, %v40_v41  ;;  %v61_v45 = vmul.f32 0.0625, %v52_v42  ;;  %v72_v46 = vmul.f32 %v462_v38, %v462_v38  ;;  %v76_v47 = vmul.f32 %v464_v39, %v464_v39 }
  0x9f   :  { %v472_v48 = vsub.f32 %v23_v12, %v57_v44  ;;  %v474_v49 = vsub.f32 %v27_v13, %v61_v45  ;;  %v84_v50 = vsel %vm28_vm0, %v72_v46, 0.0  ;;  %v96_v51 = vsel %vm28_vm0, %v76_v47, 0.0 }
  0xa0   :  { %94 = vadd.xlane.f32.xlu1 %v93_v43  ;;  %85 = vadd.xlane.f32.xlu0 %v84_v50 }
  0xa1   :  { %v73_v52 = vmul.f32 %v472_v48, %v472_v48  ;;  %v77_v53 = vmul.f32 %v474_v49, %v474_v49 }
  0xa3   :  { %v87_v54 = vsel %vm28_vm0, %v73_v52, 0.0  ;;  %v99_v55 = vsel %vm28_vm0, %v77_v53, 0.0 }
  0xa4   :  { %97 = vadd.xlane.f32.xlu1 %v96_v51  ;;  %88 = vadd.xlane.f32.xlu0 %v87_v54 }
  0xa8   :  { %100 = vadd.xlane.f32.xlu1 %v99_v55 }
 0x125   :  { %v80_v59 = vpop.xlane.xlu0 %79 }
 0x126   :  { %v102_v60 = vmul.f32 0.0625, %v80_v59 }
 0x128   :  { %v110_v61 = vadd.f32 1e-05, %v102_v60 }
 0x129   :  { %v92_v62 = vpop.xlane.xlu1 %91  ;;  %v83_v63 = vpop.xlane.xlu0 %82 }
 0x12a   :  { %366 = vrsqrt.f32 %v110_v61  ;;  %v106_v0 = vmul.f32 0.0625, %v92_v62  ;;  %v103_v1 = vmul.f32 0.0625, %v83_v63 }
 0x12c   :  { %v114_v2 = vadd.f32 1e-05, %v106_v0  ;;  %v111_v3 = vadd.f32 1e-05, %v103_v1 }
 0x12d   :  { %v95_v4 = vpop.xlane.xlu1 %94  ;;  %v86_v5 = vpop.xlane.xlu0 %85 }
 0x12e   :  { %368 = vrsqrt.f32 %v114_v2  ;;  %v107_v6 = vmul.f32 0.0625, %v95_v4  ;;  %v104_v7 = vmul.f32 0.0625, %v86_v5 }
 0x12f   :  { %370 = vrsqrt.f32 %v111_v3 }
 0x130   :  { %v115_v8 = vadd.f32 1e-05, %v107_v6  ;;  %v112_v9 = vadd.f32 1e-05, %v104_v7 }
 0x131   :  { %v98_v10 = vpop.xlane.xlu1 %97  ;;  %v89_v11 = vpop.xlane.xlu0 %88 }
 0x132   :  { %372 = vrsqrt.f32 %v115_v8  ;;  %v108_v12 = vmul.f32 0.0625, %v98_v10  ;;  %v105_v13 = vmul.f32 0.0625, %v89_v11 }
 0x133   :  { %374 = vrsqrt.f32 %v112_v9 }
 0x134   :  { %v367_v14 = vpop.eup %366  ;;  %v116_v15 = vadd.f32 1e-05, %v108_v12  ;;  %v113_v16 = vadd.f32 1e-05, %v105_v13 }
 0x135   :  { %v101_v18 = vpop.xlane.xlu1 %100  ;;  %v126_v19 = vmul.f32 %v367_v14, %v444_v20 }
 0x136   :  { %376 = vrsqrt.f32 %v116_v15  ;;  %v109_v22 = vmul.f32 0.0625, %v101_v18 }
 0x137   :  { %378 = vrsqrt.f32 %v113_v16  ;;  %v141_v24 = vmul.f32 %v323_v17, %v126_v19 }
 0x138   :  { %v369_v25 = vpop.eup %368  ;;  %v117_v26 = vadd.f32 1e-05, %v109_v22 }
 0x139   :  { %v371_v27 = vpop.eup %370  ;;  %v156_v30 = vadd.f32 %v324_v23, %v141_v24  ;;  %v130_v31 = vmul.f32 %v369_v25, %v452_v28 }
 0x13a   :  { %380 = vrsqrt.f32 %v117_v26  ;;  %v127_v32 = vmul.f32 %v371_v27, %v446_v21 }
 0x13b   :  { %348 = vmatprep.mubr.msk.f32.mxu0 %vm28_vm0, %v156_v30  ;;  %v145_v20 = vmul.f32 %v323_v17, %v130_v31 }
 0x13c   :  { %v373_v33 = vpop.eup %372  ;;  %v142_v34 = vmul.f32 %v323_v17, %v127_v32 }
 0x13d   :  { %v375_v35 = vpop.eup %374  ;;  %v160_v36 = vadd.f32 %v324_v23, %v145_v20  ;;  %v131_v37 = vmul.f32 %v373_v33, %v454_v29 }
 0x13e   :  { %v157_v40 = vadd.f32 %v324_v23, %v142_v34  ;;  %v128_v41 = vmul.f32 %v375_v35, %v462_v38 }
 0x13f   :  { %354 = vmatprep.mubr.msk.f32.mxu1 %vm28_vm0, %v160_v36  ;;  %v146_v42 = vmul.f32 %v323_v17, %v131_v37 }
 0x140   :  { %v377_v43 = vpop.eup %376  ;;  %349 = vmatmul.mubr.msk.f32.vlgmr.msra.gmra.mrb[0].mxu0 %vm28_vm0, %v157_v40  ;;  %v143_v28 = vmul.f32 %v323_v17, %v128_v41 }
 0x141   :  { %v379_v21 = vpop.eup %378  ;;  %v161_v44 = vadd.f32 %v324_v23, %v146_v42  ;;  %v132_v45 = vmul.f32 %v377_v43, %v464_v39 }
 0x142   :  { %v158_v46 = vadd.f32 %v324_v23, %v143_v28  ;;  %v129_v47 = vmul.f32 %v379_v21, %v472_v48  ;;  %v325_v48 = vld [vmem:[%s551_s2] ss:$0 sm:$0xff] }
 0x143   :  { %355 = vmatmul.mubr.msk.f32.vlgmr.msra.gmra.mrb[0].mxu1 %vm28_vm0, %v161_v44  ;;  %v147_v29 = vmul.f32 %v323_v17, %v132_v45 }
 0x144   :  { %v381_v50 = vpop.eup %380  ;;  %351 = vmatprep.mubr.msk.f32.mxu0 %vm28_vm0, %v158_v46  ;;  %v144_v38 = vmul.f32 %v323_v17, %v129_v47 }
 0x145   :  { %v162_v51 = vadd.f32 %v324_v23, %v147_v29  ;;  %v133_v52 = vmul.f32 %v381_v50, %v474_v49 }
 0x146   :  { %v159_v53 = vadd.f32 %v324_v23, %v144_v38 }
 0x147   :  { %357 = vmatprep.mubr.msk.f32.mxu1 %vm28_vm0, %v162_v51  ;;  %v148_v54 = vmul.f32 %v323_v17, %v133_v52 }
 0x148   :  { %352 = vmatmul.mubr.msk.f32.gmra.mrb[2].mxu0 %vm28_vm0, %v159_v53 }
 0x149   :  { %v163_v39 = vadd.f32 %v324_v23, %v148_v54 }
 0x14b   :  { %358 = vmatmul.mubr.msk.f32.gmra.mrb[2].mxu1 %vm28_vm0, %v163_v39 }
 0x213   :  { %v350_v55 = vpop.f32.mrb[0].mxu0 }
 0x214   :  { %v269_v56 = vadd.f32 %v350_v55, %v325_v48  ;;  %v263_v57 = vpop.f32.mrb[1].mxu0 }
 0x215   :  { %v264_v58 = vadd.f32 %v325_v48, %v263_v57 }
 0x216   :  { %v303_v59 = vmax.f32 %v269_v56, 0.0  ;;  %v356_v49 = vpop.f32.mrb[0].mxu1 }
 0x217   :  { %v302_v60 = vmax.f32 %v264_v58, 0.0  ;;  %v289_v61 = vadd.f32 %v356_v49, %v325_v48  ;;  %v283_v62 = vpop.f32.mrb[1].mxu1 }
 0x218   :  { %312 = vst.msk [vmem:[%s552_s5 + $0x8] sm:$0xff] %vm310_vm1, %v303_v59  ;;  %v284_v63 = vadd.f32 %v325_v48, %v283_v62 }
 0x219   :  { %311 = vst.msk [vmem:[%s552_s5] sm:$0xff] %vm310_vm1, %v302_v60  ;;  %v307_v0 = vmax.f32 %v289_v61, 0.0 }
 0x21a   :  { %v306_v1 = vmax.f32 %v284_v63, 0.0 }
 0x21b   :  { %316 = vst.msk [vmem:[%s552_s5 + $0x28] sm:$0xff] %vm310_vm1, %v307_v0  ;;  %v353_v2 = vpop.f32.mrb[2].mxu0 }
 0x21c   :  { %315 = vst.msk [vmem:[%s552_s5 + $0x20] sm:$0xff] %vm310_vm1, %v306_v1  ;;  %v279_v3 = vadd.f32 %v353_v2, %v325_v48  ;;  %v273_v4 = vpop.f32.mrb[3].mxu0 }
 0x21d   :  { %v274_v5 = vadd.f32 %v325_v48, %v273_v4 }
 0x21e   :  { %v305_v6 = vmax.f32 %v279_v3, 0.0  ;;  %v359_v7 = vpop.f32.mrb[2].mxu1 }
 0x21f   :  { %v304_v8 = vmax.f32 %v274_v5, 0.0  ;;  %v299_v9 = vadd.f32 %v359_v7, %v325_v48  ;;  %v293_v10 = vpop.f32.mrb[3].mxu1 }
 0x220   :  { %314 = vst.msk [vmem:[%s552_s5 + $0x18] sm:$0xff] %vm310_vm1, %v305_v6  ;;  %v294_v11 = vadd.f32 %v325_v48, %v293_v10 }
 0x221   :  { %313 = vst.msk [vmem:[%s552_s5 + $0x10] sm:$0xff] %vm310_vm1, %v304_v8  ;;  %v309_v12 = vmax.f32 %v299_v9, 0.0 }
 0x222   :  { %v308_v13 = vmax.f32 %v294_v11, 0.0 }
 0x223   :  { %318 = vst.msk [vmem:[%s552_s5 + $0x38] sm:$0xff] %vm310_vm1, %v309_v12 }
 0x224   :  { %317 = vst.msk [vmem:[%s552_s5 + $0x30] sm:$0xff] %vm310_vm1, %v308_v13 }

</bundles_post_ra>
